<compile_context>
chip_gen: v6e
topology: v6e:2x2x1
jax: 0.10.0
libtpu: 0.0.40
codegen_flags: <defaults>
</compile_context>

<pallas_src>
import math

import jax
import jax.numpy as jnp
from jax import lax
from jax.experimental import pallas as pl
from jax.experimental.pallas import tpu as pltpu

# ---- Config (mirrors the PyTorch dataclass defaults) ----
ENTITY_DIM = 200
EMB_2D_D1 = 10
EMB_2D_D2 = 20
NUM_OUT_CHANNELS = 32
KERNEL_SIZE = 3
BN_EPS = 1e-5

H_OUT = 2 * EMB_2D_D1 - KERNEL_SIZE + 1      # 18
W_OUT = EMB_2D_D2 - KERNEL_SIZE + 1          # 18
N_PATCH = H_OUT * W_OUT                      # 324
FEAT_DIM = NUM_OUT_CHANNELS * N_PATCH        # 10368
N_TAPS = KERNEL_SIZE * KERNEL_SIZE           # 9

D_PAD = 256          # hidden dim padded 200 -> 256 (lane-dense fc/score operands)
CHAN_GROUP = 8       # conv channels (=> 8*324 = 2592 fc columns) per grid step
SCORE_TILE_E = 2048  # entity tile for the scoring stage


def _round_up(x, m):
    return ((x + m - 1) // m) * m


# ---------------- Pallas kernels ----------------

def conv_fc_kernel(wt_ref, bt_ref, taps_ref, wfc_ref, bfc_ref, h_ref, acc_ref):
    # Fused: 3x3 VALID conv (bn0 folded) + ReLU + fc (bn2 folded) reduction.
    #   wt:   (9, C)          f32 SMEM  per-tap/per-channel conv weights
    #   bt:   (1, C)          f32 SMEM  per-channel conv bias
    #   taps: (9, B, 324)     f32 VMEM  shifted views of the stacked input
    #   wfc:  (CG, 324, 256)  bf16 VMEM fc-weight chunk for this channel group
    #   bfc:  (1, 256)        f32 VMEM  fc bias (bn2 folded), zero-padded
    #   h:    (B, 256)        bf16      resident output
    #   acc:  (B, 256)        f32       scratch accumulator
    k = pl.program_id(0)
    cg = wfc_ref.shape[0]

    @pl.when(k == 0)
    def _():
        acc_ref[...] = jnp.zeros_like(acc_ref)

    # Load the 9 input taps once per grid step (each (B, 324) f32, ~3 vregs).
    taps = [taps_ref[t] for t in range(N_TAPS)]

    partial = jnp.zeros(acc_ref.shape, jnp.float32)
    for c in range(cg):
        ch = k * cg + c                                  # absolute channel id
        # VPU: conv output for this channel, (B, 324), torch p = i*18 + j order.
        f = taps[0] * wt_ref[0, ch]
        for t in range(1, N_TAPS):
            f = f + taps[t] * wt_ref[t, ch]
        f = jnp.maximum(f + bt_ref[0, ch], 0.0).astype(jnp.bfloat16)
        # MXU: partial fc contraction for this channel's 324 columns.
        partial = partial + jnp.dot(f, wfc_ref[c],
                                    preferred_element_type=jnp.float32)
    acc_ref[...] += partial

    @pl.when(k == pl.num_programs(0) - 1)
    def _():
        h_ref[...] = jnp.maximum(acc_ref[...] + bfc_ref[...],
                                 0.0).astype(h_ref.dtype)


def score_kernel(h_ref, embt_ref, bias_ref, o_ref):
    # One entity tile: scores = sigmoid(h @ emb_tile + bias_tile).
    #   h: (B, 256) bf16;  embt: (256, ET) bf16;  bias: (1, ET) f32; o: (B, ET) f32
    s = jnp.dot(h_ref[...], embt_ref[...], preferred_element_type=jnp.float32)
    o_ref[...] = jax.nn.sigmoid(s + bias_ref[...])


# ---------------- Pallas wrappers ----------------

def conv_fc_pallas(w_taps, b_taps, taps, wfc3, bfc):
    B = taps.shape[1]
    C = wfc3.shape[0]
    assert C % CHAN_GROUP == 0
    nsteps = C // CHAN_GROUP
    smem = pl.BlockSpec(memory_space=pltpu.MemorySpace.SMEM)
    return pl.pallas_call(
        conv_fc_kernel,
        out_shape=jax.ShapeDtypeStruct((B, D_PAD), jnp.bfloat16),
        grid_spec=pltpu.PrefetchScalarGridSpec(
            num_scalar_prefetch=0,
            grid=(nsteps,),
            in_specs=[
                smem,                                                     # w_taps
                smem,                                                     # b_taps
                pl.BlockSpec((N_TAPS, B, N_PATCH), lambda k: (0, 0, 0)),  # taps
                pl.BlockSpec((CHAN_GROUP, N_PATCH, D_PAD),
                             lambda k: (k, 0, 0)),                        # wfc3
                pl.BlockSpec((1, D_PAD), lambda k: (0, 0)),               # bfc
            ],
            out_specs=pl.BlockSpec((B, D_PAD), lambda k: (0, 0)),
            scratch_shapes=[pltpu.VMEM((B, D_PAD), jnp.float32)]),
        compiler_params=pltpu.CompilerParams(
            dimension_semantics=("arbitrary",)),
    )(w_taps, b_taps, taps, wfc3, bfc)


def score_pallas(h, emb_t, bias_row):
    B, Dp = h.shape
    E_pad = emb_t.shape[1]
    et = min(SCORE_TILE_E, E_pad)
    assert E_pad % et == 0, "prepare_params pads E to a multiple of the tile"
    return pl.pallas_call(
        score_kernel,
        out_shape=jax.ShapeDtypeStruct((B, E_pad), jnp.float32),
        grid_spec=pltpu.PrefetchScalarGridSpec(
            num_scalar_prefetch=0,
            grid=(E_pad // et,),
            in_specs=[
                pl.BlockSpec((B, Dp), lambda j: (0, 0)),
                pl.BlockSpec((Dp, et), lambda j: (0, j)),
                pl.BlockSpec((1, et), lambda j: (0, j)),
            ],
            out_specs=pl.BlockSpec((B, et), lambda j: (0, j)),
        ),
        compiler_params=pltpu.CompilerParams(
            dimension_semantics=("parallel",)),
    )(h, emb_t, bias_row)


# ---------------- one-time parameter preparation (hoisted folds / pads) ----------------

def prepare_params(params):
    C = NUM_OUT_CHANNELS

    # bn0 (inference, 1 channel) folded into the conv weights/bias.
    s0 = params["bn0_gamma"] / jnp.sqrt(params["bn0_var"] + BN_EPS)      # (1,)
    t0 = params["bn0_beta"] - params["bn0_mean"] * s0                    # (1,)
    conv_w = params["conv_w"]                                            # (C,1,3,3)
    w_fold = conv_w * s0
    b_fold = params["conv_b"] + t0 * conv_w.reshape(C, -1).sum(axis=1)   # (C,)
    w_taps = w_fold.reshape(C, N_TAPS).T.astype(jnp.float32)             # (9, C) -> SMEM
    b_taps = b_fold.reshape(1, C).astype(jnp.float32)                    # (1, C) -> SMEM

    # bn2 (inference) folded into fc.  Keep torch's channel-major flatten order
    # (c*324 + i*18 + j) by regrouping the weight as (C, 324, D_PAD) — the fused
    # kernel then needs no flatten/relayout at all.  Hidden dim zero-padded to 256.
    s2 = params["bn2_gamma"] / jnp.sqrt(params["bn2_var"] + BN_EPS)      # (200,)
    t2 = params["bn2_beta"] - params["bn2_mean"] * s2                    # (200,)
    wfc = (params["fc_w"] * s2[:, None]).T                               # (FEAT_DIM, 200)
    wfc = jnp.pad(wfc, ((0, 0), (0, D_PAD - ENTITY_DIM)))                # (FEAT_DIM, 256)
    wfc3 = wfc.reshape(C, N_PATCH, D_PAD).astype(jnp.bfloat16)           # (C, 324, 256)
    bfc = jnp.pad(params["fc_b"] * s2 + t2,
                  (0, D_PAD - ENTITY_DIM)).reshape(1, D_PAD)             # (1, 256) f32

    # Entity matrix for scoring: hidden padded 200->256 (zero rows) and entities
    # padded to a multiple of the scoring tile (zero cols + zero bias), so an
    # arbitrary E never degenerates into one huge full-extent VMEM block.
    ent_emb = params["ent_emb"]
    E = ent_emb.shape[0]
    et = min(SCORE_TILE_E, _round_up(E, 128))
    E_pad = _round_up(E, et)
    emb_t = jnp.pad(ent_emb.T, ((0, D_PAD - ENTITY_DIM),
                                (0, E_pad - E))).astype(jnp.bfloat16)    # (256, E_pad)
    bias_row = jnp.pad(params["b"], (0, E_pad - E)).reshape(1, E_pad)    # (1, E_pad) f32

    return dict(ent_emb=ent_emb, rel_emb=params["rel_emb"],
                w_taps=w_taps, b_taps=b_taps, wfc3=wfc3, bfc=bfc,
                emb_t=emb_t, bias_row=bias_row)


# ---------------- forward (thin JAX glue + Pallas hot path) ----------------

def conve_forward(prep, e1, r, *, num_entities):
    # TODO(synk): Dropout / training-mode BatchNorm batch statistics are
    # stochastic / stateful; eval-mode semantics are implemented instead
    # (dropout = identity, BN = running stats).  bn1 exists on the module but
    # is never called in its forward(), so it is intentionally omitted here.
    B = e1.shape[0]
    E1 = prep["ent_emb"][e1].reshape(B, EMB_2D_D1, EMB_2D_D2)
    R_ = prep["rel_emb"][r].reshape(B, EMB_2D_D1, EMB_2D_D2)
    x = jnp.concatenate([E1, R_], axis=1)                    # (B, 20, 20) f32
    # im2col on the tiny INPUT (not on the conv output): 9 shifted (B, 324) views.
    taps = jnp.stack(
        [x[:, kh:kh + H_OUT, kw:kw + W_OUT].reshape(B, N_PATCH)
         for kh in range(KERNEL_SIZE) for kw in range(KERNEL_SIZE)], axis=0)

    h = conv_fc_pallas(prep["w_taps"], prep["b_taps"], taps,
                       prep["wfc3"], prep["bfc"])             # (B, 256) bf16
    scores = score_pallas(h, prep["emb_t"], prep["bias_row"])  # (B, E_pad) f32
    return scores[:, :num_entities]


# ---------------- pure-JAX f32 reference (for correctness check) ----------------

def conve_reference(params, e1, r):
    ent_w = params["ent_emb"]
    rel_w = params["rel_emb"]
    B = e1.shape[0]
    E1 = ent_w[e1].reshape(B, 1, EMB_2D_D1, EMB_2D_D2)
    R_ = rel_w[r].reshape(B, 1, EMB_2D_D1, EMB_2D_D2)
    x = jnp.concatenate([E1, R_], axis=2)            # NCHW (B,1,20,20)
    s0 = params["bn0_gamma"] / jnp.sqrt(params["bn0_var"] + BN_EPS)
    t0 = params["bn0_beta"] - params["bn0_mean"] * s0
    x = x * s0.reshape(1, 1, 1, 1) + t0.reshape(1, 1, 1, 1)
    y = lax.conv_general_dilated(x, params["conv_w"], (1, 1), "VALID",
                                 dimension_numbers=("NCHW", "OIHW", "NCHW"))
    y = y + params["conv_b"].reshape(1, -1, 1, 1)
    y = jnp.maximum(y, 0.0)
    feat = y.reshape(B, FEAT_DIM)                    # channel-major (torch view order)
    h = feat @ params["fc_w"].T + params["fc_b"]
    s2 = params["bn2_gamma"] / jnp.sqrt(params["bn2_var"] + BN_EPS)
    t2 = params["bn2_beta"] - params["bn2_mean"] * s2
    h = jnp.maximum(h * s2 + t2, 0.0)
    scores = h @ ent_w.T + params["b"][None, :]
    return jax.nn.sigmoid(scores)


# ---------------- deterministic parameter init ----------------

def init_params(key, num_entities, num_relations):
    ks = jax.random.split(key, 15)
    xav_e = math.sqrt(2.0 / (num_entities + ENTITY_DIM))
    xav_r = math.sqrt(2.0 / (num_relations + ENTITY_DIM))
    return dict(
        ent_emb=jax.random.normal(ks[0], (num_entities, ENTITY_DIM), jnp.float32) * xav_e,
        rel_emb=jax.random.normal(ks[1], (num_relations, ENTITY_DIM), jnp.float32) * xav_r,
        conv_w=jax.random.normal(ks[2], (NUM_OUT_CHANNELS, 1, KERNEL_SIZE, KERNEL_SIZE),
                                 jnp.float32) / 3.0,
        conv_b=jax.random.normal(ks[3], (NUM_OUT_CHANNELS,), jnp.float32) * 0.1,
        fc_w=jax.random.normal(ks[4], (ENTITY_DIM, FEAT_DIM), jnp.float32)
             / math.sqrt(FEAT_DIM),
        fc_b=jax.random.normal(ks[5], (ENTITY_DIM,), jnp.float32) * 0.01,
        b=jax.random.normal(ks[6], (num_entities,), jnp.float32) * 0.01,
        # Non-trivial BN running stats so the folding paths are exercised.
        bn0_gamma=1.0 + 0.1 * jax.random.normal(ks[7], (1,), jnp.float32),
        bn0_beta=0.1 * jax.random.normal(ks[8], (1,), jnp.float32),
        bn0_mean=0.1 * jax.random.normal(ks[9], (1,), jnp.float32),
        bn0_var=1.0 + 0.1 * jax.random.uniform(ks[10], (1,), jnp.float32),
        bn2_gamma=1.0 + 0.1 * jax.random.normal(ks[11], (ENTITY_DIM,), jnp.float32),
        bn2_beta=0.1 * jax.random.normal(ks[12], (ENTITY_DIM,), jnp.float32),
        bn2_mean=0.1 * jax.random.normal(ks[13], (ENTITY_DIM,), jnp.float32),
        bn2_var=1.0 + 0.1 * jax.random.uniform(ks[14], (ENTITY_DIM,), jnp.float32),
    )


if __name__ == "__main__":
    NUM_ENTITIES = 4000     # not a multiple of 128/2048 -> exercises the padded tiling
    NUM_RELATIONS = 32
    BATCH = 16              # full bf16 sublane tile; larger serving batches scale ~linearly

    key = jax.random.PRNGKey(0)
    kp, ke, kr = jax.random.split(key, 3)
    params = init_params(kp, NUM_ENTITIES, NUM_RELATIONS)
    e1 = jax.random.randint(ke, (BATCH,), 0, NUM_ENTITIES, dtype=jnp.int32)
    r = jax.random.randint(kr, (BATCH,), 0, NUM_RELATIONS, dtype=jnp.int32)

    prep = prepare_params(params)                 # one-time folds / pads / casts
    fwd = jax.jit(conve_forward, static_argnames="num_entities")
    out = jax.block_until_ready(fwd(prep, e1, r, num_entities=NUM_ENTITIES))

    ref = jax.block_until_ready(conve_reference(params, e1, r))
    assert out.shape == (BATCH, NUM_ENTITIES)
    err = float(jnp.max(jnp.abs(out - ref)))
    # bf16-streamed weights/activations vs. f32 reference on post-sigmoid scores.
    assert err < 5e-3, f"max abs err {err}"

    print("KERNEL_OK")
</pallas_src>

<mosaic_0001>
module attributes {stable_mosaic.version = 11 : i64} {
  func.func @conv_fc_kernel(%arg0: i32, %arg1: memref<9x32xf32, #tpu.memory_space<smem>>, %arg2: memref<1x32xf32, #tpu.memory_space<smem>>, %arg3: memref<9x16x324xf32, #tpu.memory_space<vmem>>, %arg4: memref<8x324x256xbf16, #tpu.memory_space<vmem>>, %arg5: memref<1x256xf32, #tpu.memory_space<vmem>>, %arg6: memref<16x256xbf16, #tpu.memory_space<vmem>>, %arg7: memref<16x256xf32, #tpu.memory_space<vmem>>) attributes {dimension_semantics = [#tpu.dimension_semantics<arbitrary>], iteration_bounds = array<i64: 4>, scalar_prefetch = 0 : i64, scratch_operands = 1 : i64, tpu.core_type = #tpu.core_type<tc>, window_params = [{transform_indices = @transform_0, window_bounds = array<i64: 9, 32>}, {transform_indices = @transform_1, window_bounds = array<i64: 1, 32>}, {pipeline_mode = #tpu.pipeline_mode<synchronous>, transform_indices = @transform_2, window_bounds = array<i64: 9, 16, 324>}, {transform_indices = @transform_3, window_bounds = array<i64: 8, 324, 256>}, {pipeline_mode = #tpu.pipeline_mode<synchronous>, transform_indices = @transform_4, window_bounds = array<i64: 1, 256>}, {pipeline_mode = #tpu.pipeline_mode<synchronous>, transform_indices = @transform_5, window_bounds = array<i64: 16, 256>}]} {
    %c0_i32 = arith.constant 0 : i32
    %0 = arith.cmpi eq, %arg0, %c0_i32 : i32
    %1 = arith.extui %0 : i1 to i32
    %c0_i32_0 = arith.constant 0 : i32
    %2 = arith.cmpi ne, %1, %c0_i32_0 : i32
    scf.if %2 {
      %cst_153 = arith.constant 0.000000e+00 : f32
      %484 = vector.broadcast %cst_153 : f32 to vector<16x256xf32>
      %c0_154 = arith.constant 0 : index
      %c0_155 = arith.constant 0 : index
      %485 = vector.load %arg7[%c0_154, %c0_155] : memref<16x256xf32, #tpu.memory_space<vmem>>, vector<16x256xf32>
      tpu.vector_store %arg7[%c0_154, %c0_155], %484 {strides = array<i32>} : memref<16x256xf32, #tpu.memory_space<vmem>>, vector<16x256xf32>,
    } else {
    }
    %c0 = arith.constant 0 : index
    %c0_1 = arith.constant 0 : index
    %c0_2 = arith.constant 0 : index
    %3 = vector.load %arg3[%c0, %c0_1, %c0_2] : memref<9x16x324xf32, #tpu.memory_space<vmem>>, vector<1x16x324xf32>
    %4 = vector.shape_cast %3 : vector<1x16x324xf32> to vector<16x324xf32>
    %c1 = arith.constant 1 : index
    %c0_3 = arith.constant 0 : index
    %c0_4 = arith.constant 0 : index
    %5 = vector.load %arg3[%c1, %c0_3, %c0_4] : memref<9x16x324xf32, #tpu.memory_space<vmem>>, vector<1x16x324xf32>
    %6 = vector.shape_cast %5 : vector<1x16x324xf32> to vector<16x324xf32>
    %c2 = arith.constant 2 : index
    %c0_5 = arith.constant 0 : index
    %c0_6 = arith.constant 0 : index
    %7 = vector.load %arg3[%c2, %c0_5, %c0_6] : memref<9x16x324xf32, #tpu.memory_space<vmem>>, vector<1x16x324xf32>
    %8 = vector.shape_cast %7 : vector<1x16x324xf32> to vector<16x324xf32>
    %c3 = arith.constant 3 : index
    %c0_7 = arith.constant 0 : index
    %c0_8 = arith.constant 0 : index
    %9 = vector.load %arg3[%c3, %c0_7, %c0_8] : memref<9x16x324xf32, #tpu.memory_space<vmem>>, vector<1x16x324xf32>
    %10 = vector.shape_cast %9 : vector<1x16x324xf32> to vector<16x324xf32>
    %c4 = arith.constant 4 : index
    %c0_9 = arith.constant 0 : index
    %c0_10 = arith.constant 0 : index
    %11 = vector.load %arg3[%c4, %c0_9, %c0_10] : memref<9x16x324xf32, #tpu.memory_space<vmem>>, vector<1x16x324xf32>
    %12 = vector.shape_cast %11 : vector<1x16x324xf32> to vector<16x324xf32>
    %c5 = arith.constant 5 : index
    %c0_11 = arith.constant 0 : index
    %c0_12 = arith.constant 0 : index
    %13 = vector.load %arg3[%c5, %c0_11, %c0_12] : memref<9x16x324xf32, #tpu.memory_space<vmem>>, vector<1x16x324xf32>
    %14 = vector.shape_cast %13 : vector<1x16x324xf32> to vector<16x324xf32>
    %c6 = arith.constant 6 : index
    %c0_13 = arith.constant 0 : index
    %c0_14 = arith.constant 0 : index
    %15 = vector.load %arg3[%c6, %c0_13, %c0_14] : memref<9x16x324xf32, #tpu.memory_space<vmem>>, vector<1x16x324xf32>
    %16 = vector.shape_cast %15 : vector<1x16x324xf32> to vector<16x324xf32>
    %c7 = arith.constant 7 : index
    %c0_15 = arith.constant 0 : index
    %c0_16 = arith.constant 0 : index
    %17 = vector.load %arg3[%c7, %c0_15, %c0_16] : memref<9x16x324xf32, #tpu.memory_space<vmem>>, vector<1x16x324xf32>
    %18 = vector.shape_cast %17 : vector<1x16x324xf32> to vector<16x324xf32>
    %c8 = arith.constant 8 : index
    %c0_17 = arith.constant 0 : index
    %c0_18 = arith.constant 0 : index
    %19 = vector.load %arg3[%c8, %c0_17, %c0_18] : memref<9x16x324xf32, #tpu.memory_space<vmem>>, vector<1x16x324xf32>
    %20 = vector.shape_cast %19 : vector<1x16x324xf32> to vector<16x324xf32>
    %cst = arith.constant 0.000000e+00 : f32
    %21 = vector.broadcast %cst : f32 to vector<16x256xf32>
    %c8_i32 = arith.constant 8 : i32
    %22 = arith.muli %arg0, %c8_i32 : i32
    %c0_i32_19 = arith.constant 0 : i32
    %23 = arith.addi %22, %c0_i32_19 : i32
    %c0_20 = arith.constant 0 : index
    %24 = arith.index_cast %23 : i32 to index
    %25 = memref.load %arg1[%c0_20, %24] : memref<9x32xf32, #tpu.memory_space<smem>>
    %26 = vector.broadcast %25 : f32 to vector<16x324xf32>
    %27 = arith.mulf %4, %26 : vector<16x324xf32>
    %c1_21 = arith.constant 1 : index
    %28 = arith.index_cast %23 : i32 to index
    %29 = memref.load %arg1[%c1_21, %28] : memref<9x32xf32, #tpu.memory_space<smem>>
    %30 = vector.broadcast %29 : f32 to vector<16x324xf32>
    %31 = arith.mulf %6, %30 : vector<16x324xf32>
    %32 = arith.addf %27, %31 : vector<16x324xf32>
    %c2_22 = arith.constant 2 : index
    %33 = arith.index_cast %23 : i32 to index
    %34 = memref.load %arg1[%c2_22, %33] : memref<9x32xf32, #tpu.memory_space<smem>>
    %35 = vector.broadcast %34 : f32 to vector<16x324xf32>
    %36 = arith.mulf %8, %35 : vector<16x324xf32>
    %37 = arith.addf %32, %36 : vector<16x324xf32>
    %c3_23 = arith.constant 3 : index
    %38 = arith.index_cast %23 : i32 to index
    %39 = memref.load %arg1[%c3_23, %38] : memref<9x32xf32, #tpu.memory_space<smem>>
    %40 = vector.broadcast %39 : f32 to vector<16x324xf32>
    %41 = arith.mulf %10, %40 : vector<16x324xf32>
    %42 = arith.addf %37, %41 : vector<16x324xf32>
    %c4_24 = arith.constant 4 : index
    %43 = arith.index_cast %23 : i32 to index
    %44 = memref.load %arg1[%c4_24, %43] : memref<9x32xf32, #tpu.memory_space<smem>>
    %45 = vector.broadcast %44 : f32 to vector<16x324xf32>
    %46 = arith.mulf %12, %45 : vector<16x324xf32>
    %47 = arith.addf %42, %46 : vector<16x324xf32>
    %c5_25 = arith.constant 5 : index
    %48 = arith.index_cast %23 : i32 to index
    %49 = memref.load %arg1[%c5_25, %48] : memref<9x32xf32, #tpu.memory_space<smem>>
    %50 = vector.broadcast %49 : f32 to vector<16x324xf32>
    %51 = arith.mulf %14, %50 : vector<16x324xf32>
    %52 = arith.addf %47, %51 : vector<16x324xf32>
    %c6_26 = arith.constant 6 : index
    %53 = arith.index_cast %23 : i32 to index
    %54 = memref.load %arg1[%c6_26, %53] : memref<9x32xf32, #tpu.memory_space<smem>>
    %55 = vector.broadcast %54 : f32 to vector<16x324xf32>
    %56 = arith.mulf %16, %55 : vector<16x324xf32>
    %57 = arith.addf %52, %56 : vector<16x324xf32>
    %c7_27 = arith.constant 7 : index
    %58 = arith.index_cast %23 : i32 to index
    %59 = memref.load %arg1[%c7_27, %58] : memref<9x32xf32, #tpu.memory_space<smem>>
    %60 = vector.broadcast %59 : f32 to vector<16x324xf32>
    %61 = arith.mulf %18, %60 : vector<16x324xf32>
    %62 = arith.addf %57, %61 : vector<16x324xf32>
    %c8_28 = arith.constant 8 : index
    %63 = arith.index_cast %23 : i32 to index
    %64 = memref.load %arg1[%c8_28, %63] : memref<9x32xf32, #tpu.memory_space<smem>>
    %65 = vector.broadcast %64 : f32 to vector<16x324xf32>
    %66 = arith.mulf %20, %65 : vector<16x324xf32>
    %67 = arith.addf %62, %66 : vector<16x324xf32>
    %c0_29 = arith.constant 0 : index
    %68 = arith.index_cast %23 : i32 to index
    %69 = memref.load %arg2[%c0_29, %68] : memref<1x32xf32, #tpu.memory_space<smem>>
    %70 = vector.broadcast %69 : f32 to vector<16x324xf32>
    %71 = arith.addf %67, %70 : vector<16x324xf32>
    %cst_30 = arith.constant 0.000000e+00 : f32
    %72 = vector.broadcast %cst_30 : f32 to vector<16x324xf32>
    %73 = arith.maximumf %71, %72 : vector<16x324xf32>
    %74 = arith.truncf %73 : vector<16x324xf32> to vector<16x324xbf16>
    %c0_31 = arith.constant 0 : index
    %c0_32 = arith.constant 0 : index
    %c0_33 = arith.constant 0 : index
    %75 = vector.load %arg4[%c0_31, %c0_32, %c0_33] : memref<8x324x256xbf16, #tpu.memory_space<vmem>>, vector<1x324x256xbf16>
    %76 = vector.shape_cast %75 : vector<1x324x256xbf16> to vector<324x256xbf16>
    %cst_34 = arith.constant dense<0.000000e+00> : vector<16x256xf32>
    %77 = tpu.matmul %74, %76, %cst_34 {dimension_numbers = #tpu.dot_dimension_numbers<[1], [0], [0], [1], [0, 0, 1, 1], [], []>} : vector<16x324xbf16>, vector<324x256xbf16>, vector<16x256xf32> -> vector<16x256xf32>
    %78 = arith.addf %21, %77 : vector<16x256xf32>
    %c8_i32_35 = arith.constant 8 : i32
    %79 = arith.muli %arg0, %c8_i32_35 : i32
    %c1_i32 = arith.constant 1 : i32
    %80 = arith.addi %79, %c1_i32 : i32
    %c0_36 = arith.constant 0 : index
    %81 = arith.index_cast %80 : i32 to index
    %82 = memref.load %arg1[%c0_36, %81] : memref<9x32xf32, #tpu.memory_space<smem>>
    %83 = vector.broadcast %82 : f32 to vector<16x324xf32>
    %84 = arith.mulf %4, %83 : vector<16x324xf32>
    %c1_37 = arith.constant 1 : index
    %85 = arith.index_cast %80 : i32 to index
    %86 = memref.load %arg1[%c1_37, %85] : memref<9x32xf32, #tpu.memory_space<smem>>
    %87 = vector.broadcast %86 : f32 to vector<16x324xf32>
    %88 = arith.mulf %6, %87 : vector<16x324xf32>
    %89 = arith.addf %84, %88 : vector<16x324xf32>
    %c2_38 = arith.constant 2 : index
    %90 = arith.index_cast %80 : i32 to index
    %91 = memref.load %arg1[%c2_38, %90] : memref<9x32xf32, #tpu.memory_space<smem>>
    %92 = vector.broadcast %91 : f32 to vector<16x324xf32>
    %93 = arith.mulf %8, %92 : vector<16x324xf32>
    %94 = arith.addf %89, %93 : vector<16x324xf32>
    %c3_39 = arith.constant 3 : index
    %95 = arith.index_cast %80 : i32 to index
    %96 = memref.load %arg1[%c3_39, %95] : memref<9x32xf32, #tpu.memory_space<smem>>
    %97 = vector.broadcast %96 : f32 to vector<16x324xf32>
    %98 = arith.mulf %10, %97 : vector<16x324xf32>
    %99 = arith.addf %94, %98 : vector<16x324xf32>
    %c4_40 = arith.constant 4 : index
    %100 = arith.index_cast %80 : i32 to index
    %101 = memref.load %arg1[%c4_40, %100] : memref<9x32xf32, #tpu.memory_space<smem>>
    %102 = vector.broadcast %101 : f32 to vector<16x324xf32>
    %103 = arith.mulf %12, %102 : vector<16x324xf32>
    %104 = arith.addf %99, %103 : vector<16x324xf32>
    %c5_41 = arith.constant 5 : index
    %105 = arith.index_cast %80 : i32 to index
    %106 = memref.load %arg1[%c5_41, %105] : memref<9x32xf32, #tpu.memory_space<smem>>
    %107 = vector.broadcast %106 : f32 to vector<16x324xf32>
    %108 = arith.mulf %14, %107 : vector<16x324xf32>
    %109 = arith.addf %104, %108 : vector<16x324xf32>
    %c6_42 = arith.constant 6 : index
    %110 = arith.index_cast %80 : i32 to index
    %111 = memref.load %arg1[%c6_42, %110] : memref<9x32xf32, #tpu.memory_space<smem>>
    %112 = vector.broadcast %111 : f32 to vector<16x324xf32>
    %113 = arith.mulf %16, %112 : vector<16x324xf32>
    %114 = arith.addf %109, %113 : vector<16x324xf32>
    %c7_43 = arith.constant 7 : index
    %115 = arith.index_cast %80 : i32 to index
    %116 = memref.load %arg1[%c7_43, %115] : memref<9x32xf32, #tpu.memory_space<smem>>
    %117 = vector.broadcast %116 : f32 to vector<16x324xf32>
    %118 = arith.mulf %18, %117 : vector<16x324xf32>
    %119 = arith.addf %114, %118 : vector<16x324xf32>
    %c8_44 = arith.constant 8 : index
    %120 = arith.index_cast %80 : i32 to index
    %121 = memref.load %arg1[%c8_44, %120] : memref<9x32xf32, #tpu.memory_space<smem>>
    %122 = vector.broadcast %121 : f32 to vector<16x324xf32>
    %123 = arith.mulf %20, %122 : vector<16x324xf32>
    %124 = arith.addf %119, %123 : vector<16x324xf32>
    %c0_45 = arith.constant 0 : index
    %125 = arith.index_cast %80 : i32 to index
    %126 = memref.load %arg2[%c0_45, %125] : memref<1x32xf32, #tpu.memory_space<smem>>
    %127 = vector.broadcast %126 : f32 to vector<16x324xf32>
    %128 = arith.addf %124, %127 : vector<16x324xf32>
    %cst_46 = arith.constant 0.000000e+00 : f32
    %129 = vector.broadcast %cst_46 : f32 to vector<16x324xf32>
    %130 = arith.maximumf %128, %129 : vector<16x324xf32>
    %131 = arith.truncf %130 : vector<16x324xf32> to vector<16x324xbf16>
    %c1_47 = arith.constant 1 : index
    %c0_48 = arith.constant 0 : index
    %c0_49 = arith.constant 0 : index
    %132 = vector.load %arg4[%c1_47, %c0_48, %c0_49] : memref<8x324x256xbf16, #tpu.memory_space<vmem>>, vector<1x324x256xbf16>
    %133 = vector.shape_cast %132 : vector<1x324x256xbf16> to vector<324x256xbf16>
    %cst_50 = arith.constant dense<0.000000e+00> : vector<16x256xf32>
    %134 = tpu.matmul %131, %133, %cst_50 {dimension_numbers = #tpu.dot_dimension_numbers<[1], [0], [0], [1], [0, 0, 1, 1], [], []>} : vector<16x324xbf16>, vector<324x256xbf16>, vector<16x256xf32> -> vector<16x256xf32>
    %135 = arith.addf %78, %134 : vector<16x256xf32>
    %c8_i32_51 = arith.constant 8 : i32
    %136 = arith.muli %arg0, %c8_i32_51 : i32
    %c2_i32 = arith.constant 2 : i32
    %137 = arith.addi %136, %c2_i32 : i32
    %c0_52 = arith.constant 0 : index
    %138 = arith.index_cast %137 : i32 to index
    %139 = memref.load %arg1[%c0_52, %138] : memref<9x32xf32, #tpu.memory_space<smem>>
    %140 = vector.broadcast %139 : f32 to vector<16x324xf32>
    %141 = arith.mulf %4, %140 : vector<16x324xf32>
    %c1_53 = arith.constant 1 : index
    %142 = arith.index_cast %137 : i32 to index
    %143 = memref.load %arg1[%c1_53, %142] : memref<9x32xf32, #tpu.memory_space<smem>>
    %144 = vector.broadcast %143 : f32 to vector<16x324xf32>
    %145 = arith.mulf %6, %144 : vector<16x324xf32>
    %146 = arith.addf %141, %145 : vector<16x324xf32>
    %c2_54 = arith.constant 2 : index
    %147 = arith.index_cast %137 : i32 to index
    %148 = memref.load %arg1[%c2_54, %147] : memref<9x32xf32, #tpu.memory_space<smem>>
    %149 = vector.broadcast %148 : f32 to vector<16x324xf32>
    %150 = arith.mulf %8, %149 : vector<16x324xf32>
    %151 = arith.addf %146, %150 : vector<16x324xf32>
    %c3_55 = arith.constant 3 : index
    %152 = arith.index_cast %137 : i32 to index
    %153 = memref.load %arg1[%c3_55, %152] : memref<9x32xf32, #tpu.memory_space<smem>>
    %154 = vector.broadcast %153 : f32 to vector<16x324xf32>
    %155 = arith.mulf %10, %154 : vector<16x324xf32>
    %156 = arith.addf %151, %155 : vector<16x324xf32>
    %c4_56 = arith.constant 4 : index
    %157 = arith.index_cast %137 : i32 to index
    %158 = memref.load %arg1[%c4_56, %157] : memref<9x32xf32, #tpu.memory_space<smem>>
    %159 = vector.broadcast %158 : f32 to vector<16x324xf32>
    %160 = arith.mulf %12, %159 : vector<16x324xf32>
    %161 = arith.addf %156, %160 : vector<16x324xf32>
    %c5_57 = arith.constant 5 : index
    %162 = arith.index_cast %137 : i32 to index
    %163 = memref.load %arg1[%c5_57, %162] : memref<9x32xf32, #tpu.memory_space<smem>>
    %164 = vector.broadcast %163 : f32 to vector<16x324xf32>
    %165 = arith.mulf %14, %164 : vector<16x324xf32>
    %166 = arith.addf %161, %165 : vector<16x324xf32>
    %c6_58 = arith.constant 6 : index
    %167 = arith.index_cast %137 : i32 to index
    %168 = memref.load %arg1[%c6_58, %167] : memref<9x32xf32, #tpu.memory_space<smem>>
    %169 = vector.broadcast %168 : f32 to vector<16x324xf32>
    %170 = arith.mulf %16, %169 : vector<16x324xf32>
    %171 = arith.addf %166, %170 : vector<16x324xf32>
    %c7_59 = arith.constant 7 : index
    %172 = arith.index_cast %137 : i32 to index
    %173 = memref.load %arg1[%c7_59, %172] : memref<9x32xf32, #tpu.memory_space<smem>>
    %174 = vector.broadcast %173 : f32 to vector<16x324xf32>
    %175 = arith.mulf %18, %174 : vector<16x324xf32>
    %176 = arith.addf %171, %175 : vector<16x324xf32>
    %c8_60 = arith.constant 8 : index
    %177 = arith.index_cast %137 : i32 to index
    %178 = memref.load %arg1[%c8_60, %177] : memref<9x32xf32, #tpu.memory_space<smem>>
    %179 = vector.broadcast %178 : f32 to vector<16x324xf32>
    %180 = arith.mulf %20, %179 : vector<16x324xf32>
    %181 = arith.addf %176, %180 : vector<16x324xf32>
    %c0_61 = arith.constant 0 : index
    %182 = arith.index_cast %137 : i32 to index
    %183 = memref.load %arg2[%c0_61, %182] : memref<1x32xf32, #tpu.memory_space<smem>>
    %184 = vector.broadcast %183 : f32 to vector<16x324xf32>
    %185 = arith.addf %181, %184 : vector<16x324xf32>
    %cst_62 = arith.constant 0.000000e+00 : f32
    %186 = vector.broadcast %cst_62 : f32 to vector<16x324xf32>
    %187 = arith.maximumf %185, %186 : vector<16x324xf32>
    %188 = arith.truncf %187 : vector<16x324xf32> to vector<16x324xbf16>
    %c2_63 = arith.constant 2 : index
    %c0_64 = arith.constant 0 : index
    %c0_65 = arith.constant 0 : index
    %189 = vector.load %arg4[%c2_63, %c0_64, %c0_65] : memref<8x324x256xbf16, #tpu.memory_space<vmem>>, vector<1x324x256xbf16>
    %190 = vector.shape_cast %189 : vector<1x324x256xbf16> to vector<324x256xbf16>
    %cst_66 = arith.constant dense<0.000000e+00> : vector<16x256xf32>
    %191 = tpu.matmul %188, %190, %cst_66 {dimension_numbers = #tpu.dot_dimension_numbers<[1], [0], [0], [1], [0, 0, 1, 1], [], []>} : vector<16x324xbf16>, vector<324x256xbf16>, vector<16x256xf32> -> vector<16x256xf32>
    %192 = arith.addf %135, %191 : vector<16x256xf32>
    %c8_i32_67 = arith.constant 8 : i32
    %193 = arith.muli %arg0, %c8_i32_67 : i32
    %c3_i32 = arith.constant 3 : i32
    %194 = arith.addi %193, %c3_i32 : i32
    %c0_68 = arith.constant 0 : index
    %195 = arith.index_cast %194 : i32 to index
    %196 = memref.load %arg1[%c0_68, %195] : memref<9x32xf32, #tpu.memory_space<smem>>
    %197 = vector.broadcast %196 : f32 to vector<16x324xf32>
    %198 = arith.mulf %4, %197 : vector<16x324xf32>
    %c1_69 = arith.constant 1 : index
    %199 = arith.index_cast %194 : i32 to index
    %200 = memref.load %arg1[%c1_69, %199] : memref<9x32xf32, #tpu.memory_space<smem>>
    %201 = vector.broadcast %200 : f32 to vector<16x324xf32>
    %202 = arith.mulf %6, %201 : vector<16x324xf32>
    %203 = arith.addf %198, %202 : vector<16x324xf32>
    %c2_70 = arith.constant 2 : index
    %204 = arith.index_cast %194 : i32 to index
    %205 = memref.load %arg1[%c2_70, %204] : memref<9x32xf32, #tpu.memory_space<smem>>
    %206 = vector.broadcast %205 : f32 to vector<16x324xf32>
    %207 = arith.mulf %8, %206 : vector<16x324xf32>
    %208 = arith.addf %203, %207 : vector<16x324xf32>
    %c3_71 = arith.constant 3 : index
    %209 = arith.index_cast %194 : i32 to index
    %210 = memref.load %arg1[%c3_71, %209] : memref<9x32xf32, #tpu.memory_space<smem>>
    %211 = vector.broadcast %210 : f32 to vector<16x324xf32>
    %212 = arith.mulf %10, %211 : vector<16x324xf32>
    %213 = arith.addf %208, %212 : vector<16x324xf32>
    %c4_72 = arith.constant 4 : index
    %214 = arith.index_cast %194 : i32 to index
    %215 = memref.load %arg1[%c4_72, %214] : memref<9x32xf32, #tpu.memory_space<smem>>
    %216 = vector.broadcast %215 : f32 to vector<16x324xf32>
    %217 = arith.mulf %12, %216 : vector<16x324xf32>
    %218 = arith.addf %213, %217 : vector<16x324xf32>
    %c5_73 = arith.constant 5 : index
    %219 = arith.index_cast %194 : i32 to index
    %220 = memref.load %arg1[%c5_73, %219] : memref<9x32xf32, #tpu.memory_space<smem>>
    %221 = vector.broadcast %220 : f32 to vector<16x324xf32>
    %222 = arith.mulf %14, %221 : vector<16x324xf32>
    %223 = arith.addf %218, %222 : vector<16x324xf32>
    %c6_74 = arith.constant 6 : index
    %224 = arith.index_cast %194 : i32 to index
    %225 = memref.load %arg1[%c6_74, %224] : memref<9x32xf32, #tpu.memory_space<smem>>
    %226 = vector.broadcast %225 : f32 to vector<16x324xf32>
    %227 = arith.mulf %16, %226 : vector<16x324xf32>
    %228 = arith.addf %223, %227 : vector<16x324xf32>
    %c7_75 = arith.constant 7 : index
    %229 = arith.index_cast %194 : i32 to index
    %230 = memref.load %arg1[%c7_75, %229] : memref<9x32xf32, #tpu.memory_space<smem>>
    %231 = vector.broadcast %230 : f32 to vector<16x324xf32>
    %232 = arith.mulf %18, %231 : vector<16x324xf32>
    %233 = arith.addf %228, %232 : vector<16x324xf32>
    %c8_76 = arith.constant 8 : index
    %234 = arith.index_cast %194 : i32 to index
    %235 = memref.load %arg1[%c8_76, %234] : memref<9x32xf32, #tpu.memory_space<smem>>
    %236 = vector.broadcast %235 : f32 to vector<16x324xf32>
    %237 = arith.mulf %20, %236 : vector<16x324xf32>
    %238 = arith.addf %233, %237 : vector<16x324xf32>
    %c0_77 = arith.constant 0 : index
    %239 = arith.index_cast %194 : i32 to index
    %240 = memref.load %arg2[%c0_77, %239] : memref<1x32xf32, #tpu.memory_space<smem>>
    %241 = vector.broadcast %240 : f32 to vector<16x324xf32>
    %242 = arith.addf %238, %241 : vector<16x324xf32>
    %cst_78 = arith.constant 0.000000e+00 : f32
    %243 = vector.broadcast %cst_78 : f32 to vector<16x324xf32>
    %244 = arith.maximumf %242, %243 : vector<16x324xf32>
    %245 = arith.truncf %244 : vector<16x324xf32> to vector<16x324xbf16>
    %c3_79 = arith.constant 3 : index
    %c0_80 = arith.constant 0 : index
    %c0_81 = arith.constant 0 : index
    %246 = vector.load %arg4[%c3_79, %c0_80, %c0_81] : memref<8x324x256xbf16, #tpu.memory_space<vmem>>, vector<1x324x256xbf16>
    %247 = vector.shape_cast %246 : vector<1x324x256xbf16> to vector<324x256xbf16>
    %cst_82 = arith.constant dense<0.000000e+00> : vector<16x256xf32>
    %248 = tpu.matmul %245, %247, %cst_82 {dimension_numbers = #tpu.dot_dimension_numbers<[1], [0], [0], [1], [0, 0, 1, 1], [], []>} : vector<16x324xbf16>, vector<324x256xbf16>, vector<16x256xf32> -> vector<16x256xf32>
    %249 = arith.addf %192, %248 : vector<16x256xf32>
    %c8_i32_83 = arith.constant 8 : i32
    %250 = arith.muli %arg0, %c8_i32_83 : i32
    %c4_i32 = arith.constant 4 : i32
    %251 = arith.addi %250, %c4_i32 : i32
    %c0_84 = arith.constant 0 : index
    %252 = arith.index_cast %251 : i32 to index
    %253 = memref.load %arg1[%c0_84, %252] : memref<9x32xf32, #tpu.memory_space<smem>>
    %254 = vector.broadcast %253 : f32 to vector<16x324xf32>
    %255 = arith.mulf %4, %254 : vector<16x324xf32>
    %c1_85 = arith.constant 1 : index
    %256 = arith.index_cast %251 : i32 to index
    %257 = memref.load %arg1[%c1_85, %256] : memref<9x32xf32, #tpu.memory_space<smem>>
    %258 = vector.broadcast %257 : f32 to vector<16x324xf32>
    %259 = arith.mulf %6, %258 : vector<16x324xf32>
    %260 = arith.addf %255, %259 : vector<16x324xf32>
    %c2_86 = arith.constant 2 : index
    %261 = arith.index_cast %251 : i32 to index
    %262 = memref.load %arg1[%c2_86, %261] : memref<9x32xf32, #tpu.memory_space<smem>>
    %263 = vector.broadcast %262 : f32 to vector<16x324xf32>
    %264 = arith.mulf %8, %263 : vector<16x324xf32>
    %265 = arith.addf %260, %264 : vector<16x324xf32>
    %c3_87 = arith.constant 3 : index
    %266 = arith.index_cast %251 : i32 to index
    %267 = memref.load %arg1[%c3_87, %266] : memref<9x32xf32, #tpu.memory_space<smem>>
    %268 = vector.broadcast %267 : f32 to vector<16x324xf32>
    %269 = arith.mulf %10, %268 : vector<16x324xf32>
    %270 = arith.addf %265, %269 : vector<16x324xf32>
    %c4_88 = arith.constant 4 : index
    %271 = arith.index_cast %251 : i32 to index
    %272 = memref.load %arg1[%c4_88, %271] : memref<9x32xf32, #tpu.memory_space<smem>>
    %273 = vector.broadcast %272 : f32 to vector<16x324xf32>
    %274 = arith.mulf %12, %273 : vector<16x324xf32>
    %275 = arith.addf %270, %274 : vector<16x324xf32>
    %c5_89 = arith.constant 5 : index
    %276 = arith.index_cast %251 : i32 to index
    %277 = memref.load %arg1[%c5_89, %276] : memref<9x32xf32, #tpu.memory_space<smem>>
    %278 = vector.broadcast %277 : f32 to vector<16x324xf32>
    %279 = arith.mulf %14, %278 : vector<16x324xf32>
    %280 = arith.addf %275, %279 : vector<16x324xf32>
    %c6_90 = arith.constant 6 : index
    %281 = arith.index_cast %251 : i32 to index
    %282 = memref.load %arg1[%c6_90, %281] : memref<9x32xf32, #tpu.memory_space<smem>>
    %283 = vector.broadcast %282 : f32 to vector<16x324xf32>
    %284 = arith.mulf %16, %283 : vector<16x324xf32>
    %285 = arith.addf %280, %284 : vector<16x324xf32>
    %c7_91 = arith.constant 7 : index
    %286 = arith.index_cast %251 : i32 to index
    %287 = memref.load %arg1[%c7_91, %286] : memref<9x32xf32, #tpu.memory_space<smem>>
    %288 = vector.broadcast %287 : f32 to vector<16x324xf32>
    %289 = arith.mulf %18, %288 : vector<16x324xf32>
    %290 = arith.addf %285, %289 : vector<16x324xf32>
    %c8_92 = arith.constant 8 : index
    %291 = arith.index_cast %251 : i32 to index
    %292 = memref.load %arg1[%c8_92, %291] : memref<9x32xf32, #tpu.memory_space<smem>>
    %293 = vector.broadcast %292 : f32 to vector<16x324xf32>
    %294 = arith.mulf %20, %293 : vector<16x324xf32>
    %295 = arith.addf %290, %294 : vector<16x324xf32>
    %c0_93 = arith.constant 0 : index
    %296 = arith.index_cast %251 : i32 to index
    %297 = memref.load %arg2[%c0_93, %296] : memref<1x32xf32, #tpu.memory_space<smem>>
    %298 = vector.broadcast %297 : f32 to vector<16x324xf32>
    %299 = arith.addf %295, %298 : vector<16x324xf32>
    %cst_94 = arith.constant 0.000000e+00 : f32
    %300 = vector.broadcast %cst_94 : f32 to vector<16x324xf32>
    %301 = arith.maximumf %299, %300 : vector<16x324xf32>
    %302 = arith.truncf %301 : vector<16x324xf32> to vector<16x324xbf16>
    %c4_95 = arith.constant 4 : index
    %c0_96 = arith.constant 0 : index
    %c0_97 = arith.constant 0 : index
    %303 = vector.load %arg4[%c4_95, %c0_96, %c0_97] : memref<8x324x256xbf16, #tpu.memory_space<vmem>>, vector<1x324x256xbf16>
    %304 = vector.shape_cast %303 : vector<1x324x256xbf16> to vector<324x256xbf16>
    %cst_98 = arith.constant dense<0.000000e+00> : vector<16x256xf32>
    %305 = tpu.matmul %302, %304, %cst_98 {dimension_numbers = #tpu.dot_dimension_numbers<[1], [0], [0], [1], [0, 0, 1, 1], [], []>} : vector<16x324xbf16>, vector<324x256xbf16>, vector<16x256xf32> -> vector<16x256xf32>
    %306 = arith.addf %249, %305 : vector<16x256xf32>
    %c8_i32_99 = arith.constant 8 : i32
    %307 = arith.muli %arg0, %c8_i32_99 : i32
    %c5_i32 = arith.constant 5 : i32
    %308 = arith.addi %307, %c5_i32 : i32
    %c0_100 = arith.constant 0 : index
    %309 = arith.index_cast %308 : i32 to index
    %310 = memref.load %arg1[%c0_100, %309] : memref<9x32xf32, #tpu.memory_space<smem>>
    %311 = vector.broadcast %310 : f32 to vector<16x324xf32>
    %312 = arith.mulf %4, %311 : vector<16x324xf32>
    %c1_101 = arith.constant 1 : index
    %313 = arith.index_cast %308 : i32 to index
    %314 = memref.load %arg1[%c1_101, %313] : memref<9x32xf32, #tpu.memory_space<smem>>
    %315 = vector.broadcast %314 : f32 to vector<16x324xf32>
    %316 = arith.mulf %6, %315 : vector<16x324xf32>
    %317 = arith.addf %312, %316 : vector<16x324xf32>
    %c2_102 = arith.constant 2 : index
    %318 = arith.index_cast %308 : i32 to index
    %319 = memref.load %arg1[%c2_102, %318] : memref<9x32xf32, #tpu.memory_space<smem>>
    %320 = vector.broadcast %319 : f32 to vector<16x324xf32>
    %321 = arith.mulf %8, %320 : vector<16x324xf32>
    %322 = arith.addf %317, %321 : vector<16x324xf32>
    %c3_103 = arith.constant 3 : index
    %323 = arith.index_cast %308 : i32 to index
    %324 = memref.load %arg1[%c3_103, %323] : memref<9x32xf32, #tpu.memory_space<smem>>
    %325 = vector.broadcast %324 : f32 to vector<16x324xf32>
    %326 = arith.mulf %10, %325 : vector<16x324xf32>
    %327 = arith.addf %322, %326 : vector<16x324xf32>
    %c4_104 = arith.constant 4 : index
    %328 = arith.index_cast %308 : i32 to index
    %329 = memref.load %arg1[%c4_104, %328] : memref<9x32xf32, #tpu.memory_space<smem>>
    %330 = vector.broadcast %329 : f32 to vector<16x324xf32>
    %331 = arith.mulf %12, %330 : vector<16x324xf32>
    %332 = arith.addf %327, %331 : vector<16x324xf32>
    %c5_105 = arith.constant 5 : index
    %333 = arith.index_cast %308 : i32 to index
    %334 = memref.load %arg1[%c5_105, %333] : memref<9x32xf32, #tpu.memory_space<smem>>
    %335 = vector.broadcast %334 : f32 to vector<16x324xf32>
    %336 = arith.mulf %14, %335 : vector<16x324xf32>
    %337 = arith.addf %332, %336 : vector<16x324xf32>
    %c6_106 = arith.constant 6 : index
    %338 = arith.index_cast %308 : i32 to index
    %339 = memref.load %arg1[%c6_106, %338] : memref<9x32xf32, #tpu.memory_space<smem>>
    %340 = vector.broadcast %339 : f32 to vector<16x324xf32>
    %341 = arith.mulf %16, %340 : vector<16x324xf32>
    %342 = arith.addf %337, %341 : vector<16x324xf32>
    %c7_107 = arith.constant 7 : index
    %343 = arith.index_cast %308 : i32 to index
    %344 = memref.load %arg1[%c7_107, %343] : memref<9x32xf32, #tpu.memory_space<smem>>
    %345 = vector.broadcast %344 : f32 to vector<16x324xf32>
    %346 = arith.mulf %18, %345 : vector<16x324xf32>
    %347 = arith.addf %342, %346 : vector<16x324xf32>
    %c8_108 = arith.constant 8 : index
    %348 = arith.index_cast %308 : i32 to index
    %349 = memref.load %arg1[%c8_108, %348] : memref<9x32xf32, #tpu.memory_space<smem>>
    %350 = vector.broadcast %349 : f32 to vector<16x324xf32>
    %351 = arith.mulf %20, %350 : vector<16x324xf32>
    %352 = arith.addf %347, %351 : vector<16x324xf32>
    %c0_109 = arith.constant 0 : index
    %353 = arith.index_cast %308 : i32 to index
    %354 = memref.load %arg2[%c0_109, %353] : memref<1x32xf32, #tpu.memory_space<smem>>
    %355 = vector.broadcast %354 : f32 to vector<16x324xf32>
    %356 = arith.addf %352, %355 : vector<16x324xf32>
    %cst_110 = arith.constant 0.000000e+00 : f32
    %357 = vector.broadcast %cst_110 : f32 to vector<16x324xf32>
    %358 = arith.maximumf %356, %357 : vector<16x324xf32>
    %359 = arith.truncf %358 : vector<16x324xf32> to vector<16x324xbf16>
    %c5_111 = arith.constant 5 : index
    %c0_112 = arith.constant 0 : index
    %c0_113 = arith.constant 0 : index
    %360 = vector.load %arg4[%c5_111, %c0_112, %c0_113] : memref<8x324x256xbf16, #tpu.memory_space<vmem>>, vector<1x324x256xbf16>
    %361 = vector.shape_cast %360 : vector<1x324x256xbf16> to vector<324x256xbf16>
    %cst_114 = arith.constant dense<0.000000e+00> : vector<16x256xf32>
    %362 = tpu.matmul %359, %361, %cst_114 {dimension_numbers = #tpu.dot_dimension_numbers<[1], [0], [0], [1], [0, 0, 1, 1], [], []>} : vector<16x324xbf16>, vector<324x256xbf16>, vector<16x256xf32> -> vector<16x256xf32>
    %363 = arith.addf %306, %362 : vector<16x256xf32>
    %c8_i32_115 = arith.constant 8 : i32
    %364 = arith.muli %arg0, %c8_i32_115 : i32
    %c6_i32 = arith.constant 6 : i32
    %365 = arith.addi %364, %c6_i32 : i32
    %c0_116 = arith.constant 0 : index
    %366 = arith.index_cast %365 : i32 to index
    %367 = memref.load %arg1[%c0_116, %366] : memref<9x32xf32, #tpu.memory_space<smem>>
    %368 = vector.broadcast %367 : f32 to vector<16x324xf32>
    %369 = arith.mulf %4, %368 : vector<16x324xf32>
    %c1_117 = arith.constant 1 : index
    %370 = arith.index_cast %365 : i32 to index
    %371 = memref.load %arg1[%c1_117, %370] : memref<9x32xf32, #tpu.memory_space<smem>>
    %372 = vector.broadcast %371 : f32 to vector<16x324xf32>
    %373 = arith.mulf %6, %372 : vector<16x324xf32>
    %374 = arith.addf %369, %373 : vector<16x324xf32>
    %c2_118 = arith.constant 2 : index
    %375 = arith.index_cast %365 : i32 to index
    %376 = memref.load %arg1[%c2_118, %375] : memref<9x32xf32, #tpu.memory_space<smem>>
    %377 = vector.broadcast %376 : f32 to vector<16x324xf32>
    %378 = arith.mulf %8, %377 : vector<16x324xf32>
    %379 = arith.addf %374, %378 : vector<16x324xf32>
    %c3_119 = arith.constant 3 : index
    %380 = arith.index_cast %365 : i32 to index
    %381 = memref.load %arg1[%c3_119, %380] : memref<9x32xf32, #tpu.memory_space<smem>>
    %382 = vector.broadcast %381 : f32 to vector<16x324xf32>
    %383 = arith.mulf %10, %382 : vector<16x324xf32>
    %384 = arith.addf %379, %383 : vector<16x324xf32>
    %c4_120 = arith.constant 4 : index
    %385 = arith.index_cast %365 : i32 to index
    %386 = memref.load %arg1[%c4_120, %385] : memref<9x32xf32, #tpu.memory_space<smem>>
    %387 = vector.broadcast %386 : f32 to vector<16x324xf32>
    %388 = arith.mulf %12, %387 : vector<16x324xf32>
    %389 = arith.addf %384, %388 : vector<16x324xf32>
    %c5_121 = arith.constant 5 : index
    %390 = arith.index_cast %365 : i32 to index
    %391 = memref.load %arg1[%c5_121, %390] : memref<9x32xf32, #tpu.memory_space<smem>>
    %392 = vector.broadcast %391 : f32 to vector<16x324xf32>
    %393 = arith.mulf %14, %392 : vector<16x324xf32>
    %394 = arith.addf %389, %393 : vector<16x324xf32>
    %c6_122 = arith.constant 6 : index
    %395 = arith.index_cast %365 : i32 to index
    %396 = memref.load %arg1[%c6_122, %395] : memref<9x32xf32, #tpu.memory_space<smem>>
    %397 = vector.broadcast %396 : f32 to vector<16x324xf32>
    %398 = arith.mulf %16, %397 : vector<16x324xf32>
    %399 = arith.addf %394, %398 : vector<16x324xf32>
    %c7_123 = arith.constant 7 : index
    %400 = arith.index_cast %365 : i32 to index
    %401 = memref.load %arg1[%c7_123, %400] : memref<9x32xf32, #tpu.memory_space<smem>>
    %402 = vector.broadcast %401 : f32 to vector<16x324xf32>
    %403 = arith.mulf %18, %402 : vector<16x324xf32>
    %404 = arith.addf %399, %403 : vector<16x324xf32>
    %c8_124 = arith.constant 8 : index
    %405 = arith.index_cast %365 : i32 to index
    %406 = memref.load %arg1[%c8_124, %405] : memref<9x32xf32, #tpu.memory_space<smem>>
    %407 = vector.broadcast %406 : f32 to vector<16x324xf32>
    %408 = arith.mulf %20, %407 : vector<16x324xf32>
    %409 = arith.addf %404, %408 : vector<16x324xf32>
    %c0_125 = arith.constant 0 : index
    %410 = arith.index_cast %365 : i32 to index
    %411 = memref.load %arg2[%c0_125, %410] : memref<1x32xf32, #tpu.memory_space<smem>>
    %412 = vector.broadcast %411 : f32 to vector<16x324xf32>
    %413 = arith.addf %409, %412 : vector<16x324xf32>
    %cst_126 = arith.constant 0.000000e+00 : f32
    %414 = vector.broadcast %cst_126 : f32 to vector<16x324xf32>
    %415 = arith.maximumf %413, %414 : vector<16x324xf32>
    %416 = arith.truncf %415 : vector<16x324xf32> to vector<16x324xbf16>
    %c6_127 = arith.constant 6 : index
    %c0_128 = arith.constant 0 : index
    %c0_129 = arith.constant 0 : index
    %417 = vector.load %arg4[%c6_127, %c0_128, %c0_129] : memref<8x324x256xbf16, #tpu.memory_space<vmem>>, vector<1x324x256xbf16>
    %418 = vector.shape_cast %417 : vector<1x324x256xbf16> to vector<324x256xbf16>
    %cst_130 = arith.constant dense<0.000000e+00> : vector<16x256xf32>
    %419 = tpu.matmul %416, %418, %cst_130 {dimension_numbers = #tpu.dot_dimension_numbers<[1], [0], [0], [1], [0, 0, 1, 1], [], []>} : vector<16x324xbf16>, vector<324x256xbf16>, vector<16x256xf32> -> vector<16x256xf32>
    %420 = arith.addf %363, %419 : vector<16x256xf32>
    %c8_i32_131 = arith.constant 8 : i32
    %421 = arith.muli %arg0, %c8_i32_131 : i32
    %c7_i32 = arith.constant 7 : i32
    %422 = arith.addi %421, %c7_i32 : i32
    %c0_132 = arith.constant 0 : index
    %423 = arith.index_cast %422 : i32 to index
    %424 = memref.load %arg1[%c0_132, %423] : memref<9x32xf32, #tpu.memory_space<smem>>
    %425 = vector.broadcast %424 : f32 to vector<16x324xf32>
    %426 = arith.mulf %4, %425 : vector<16x324xf32>
    %c1_133 = arith.constant 1 : index
    %427 = arith.index_cast %422 : i32 to index
    %428 = memref.load %arg1[%c1_133, %427] : memref<9x32xf32, #tpu.memory_space<smem>>
    %429 = vector.broadcast %428 : f32 to vector<16x324xf32>
    %430 = arith.mulf %6, %429 : vector<16x324xf32>
    %431 = arith.addf %426, %430 : vector<16x324xf32>
    %c2_134 = arith.constant 2 : index
    %432 = arith.index_cast %422 : i32 to index
    %433 = memref.load %arg1[%c2_134, %432] : memref<9x32xf32, #tpu.memory_space<smem>>
    %434 = vector.broadcast %433 : f32 to vector<16x324xf32>
    %435 = arith.mulf %8, %434 : vector<16x324xf32>
    %436 = arith.addf %431, %435 : vector<16x324xf32>
    %c3_135 = arith.constant 3 : index
    %437 = arith.index_cast %422 : i32 to index
    %438 = memref.load %arg1[%c3_135, %437] : memref<9x32xf32, #tpu.memory_space<smem>>
    %439 = vector.broadcast %438 : f32 to vector<16x324xf32>
    %440 = arith.mulf %10, %439 : vector<16x324xf32>
    %441 = arith.addf %436, %440 : vector<16x324xf32>
    %c4_136 = arith.constant 4 : index
    %442 = arith.index_cast %422 : i32 to index
    %443 = memref.load %arg1[%c4_136, %442] : memref<9x32xf32, #tpu.memory_space<smem>>
    %444 = vector.broadcast %443 : f32 to vector<16x324xf32>
    %445 = arith.mulf %12, %444 : vector<16x324xf32>
    %446 = arith.addf %441, %445 : vector<16x324xf32>
    %c5_137 = arith.constant 5 : index
    %447 = arith.index_cast %422 : i32 to index
    %448 = memref.load %arg1[%c5_137, %447] : memref<9x32xf32, #tpu.memory_space<smem>>
    %449 = vector.broadcast %448 : f32 to vector<16x324xf32>
    %450 = arith.mulf %14, %449 : vector<16x324xf32>
    %451 = arith.addf %446, %450 : vector<16x324xf32>
    %c6_138 = arith.constant 6 : index
    %452 = arith.index_cast %422 : i32 to index
    %453 = memref.load %arg1[%c6_138, %452] : memref<9x32xf32, #tpu.memory_space<smem>>
    %454 = vector.broadcast %453 : f32 to vector<16x324xf32>
    %455 = arith.mulf %16, %454 : vector<16x324xf32>
    %456 = arith.addf %451, %455 : vector<16x324xf32>
    %c7_139 = arith.constant 7 : index
    %457 = arith.index_cast %422 : i32 to index
    %458 = memref.load %arg1[%c7_139, %457] : memref<9x32xf32, #tpu.memory_space<smem>>
    %459 = vector.broadcast %458 : f32 to vector<16x324xf32>
    %460 = arith.mulf %18, %459 : vector<16x324xf32>
    %461 = arith.addf %456, %460 : vector<16x324xf32>
    %c8_140 = arith.constant 8 : index
    %462 = arith.index_cast %422 : i32 to index
    %463 = memref.load %arg1[%c8_140, %462] : memref<9x32xf32, #tpu.memory_space<smem>>
    %464 = vector.broadcast %463 : f32 to vector<16x324xf32>
    %465 = arith.mulf %20, %464 : vector<16x324xf32>
    %466 = arith.addf %461, %465 : vector<16x324xf32>
    %c0_141 = arith.constant 0 : index
    %467 = arith.index_cast %422 : i32 to index
    %468 = memref.load %arg2[%c0_141, %467] : memref<1x32xf32, #tpu.memory_space<smem>>
    %469 = vector.broadcast %468 : f32 to vector<16x324xf32>
    %470 = arith.addf %466, %469 : vector<16x324xf32>
    %cst_142 = arith.constant 0.000000e+00 : f32
    %471 = vector.broadcast %cst_142 : f32 to vector<16x324xf32>
    %472 = arith.maximumf %470, %471 : vector<16x324xf32>
    %473 = arith.truncf %472 : vector<16x324xf32> to vector<16x324xbf16>
    %c7_143 = arith.constant 7 : index
    %c0_144 = arith.constant 0 : index
    %c0_145 = arith.constant 0 : index
    %474 = vector.load %arg4[%c7_143, %c0_144, %c0_145] : memref<8x324x256xbf16, #tpu.memory_space<vmem>>, vector<1x324x256xbf16>
    %475 = vector.shape_cast %474 : vector<1x324x256xbf16> to vector<324x256xbf16>
    %cst_146 = arith.constant dense<0.000000e+00> : vector<16x256xf32>
    %476 = tpu.matmul %473, %475, %cst_146 {dimension_numbers = #tpu.dot_dimension_numbers<[1], [0], [0], [1], [0, 0, 1, 1], [], []>} : vector<16x324xbf16>, vector<324x256xbf16>, vector<16x256xf32> -> vector<16x256xf32>
    %477 = arith.addf %420, %476 : vector<16x256xf32>
    %c0_147 = arith.constant 0 : index
    %c0_148 = arith.constant 0 : index
    %478 = vector.load %arg7[%c0_147, %c0_148] : memref<16x256xf32, #tpu.memory_space<vmem>>, vector<16x256xf32>
    %479 = arith.addf %478, %477 : vector<16x256xf32>
    %c0_149 = arith.constant 0 : index
    %c0_150 = arith.constant 0 : index
    %480 = vector.load %arg7[%c0_149, %c0_150] : memref<16x256xf32, #tpu.memory_space<vmem>>, vector<16x256xf32>
    tpu.vector_store %arg7[%c0_149, %c0_150], %479 {strides = array<i32>} : memref<16x256xf32, #tpu.memory_space<vmem>>, vector<16x256xf32>,
    %c3_i32_151 = arith.constant 3 : i32
    %481 = arith.cmpi eq, %arg0, %c3_i32_151 : i32
    %482 = arith.extui %481 : i1 to i32
    %c0_i32_152 = arith.constant 0 : i32
    %483 = arith.cmpi ne, %482, %c0_i32_152 : i32
    scf.if %483 {
      %c0_153 = arith.constant 0 : index
      %c0_154 = arith.constant 0 : index
      %484 = vector.load %arg7[%c0_153, %c0_154] : memref<16x256xf32, #tpu.memory_space<vmem>>, vector<16x256xf32>
      %c0_155 = arith.constant 0 : index
      %c0_156 = arith.constant 0 : index
      %485 = vector.load %arg5[%c0_155, %c0_156] : memref<1x256xf32, #tpu.memory_space<vmem>>, vector<1x256xf32>
      %486 = vector.broadcast %485 : vector<1x256xf32> to vector<16x256xf32>
      %487 = arith.addf %484, %486 : vector<16x256xf32>
      %cst_157 = arith.constant 0.000000e+00 : f32
      %488 = vector.broadcast %cst_157 : f32 to vector<16x256xf32>
      %489 = arith.maximumf %487, %488 : vector<16x256xf32>
      %490 = arith.truncf %489 : vector<16x256xf32> to vector<16x256xbf16>
      %c0_158 = arith.constant 0 : index
      %c0_159 = arith.constant 0 : index
      %491 = vector.load %arg6[%c0_158, %c0_159] : memref<16x256xbf16, #tpu.memory_space<vmem>>, vector<16x256xbf16>
      tpu.vector_store %arg6[%c0_158, %c0_159], %490 {strides = array<i32>} : memref<16x256xbf16, #tpu.memory_space<vmem>>, vector<16x256xbf16>,
    } else {
    }
    return
  }
  func.func @transform_0(%arg0: i32) -> (i32, i32) {
    %c0_i32 = arith.constant 0 : i32
    %c0_i32_0 = arith.constant 0 : i32
    %c0_i32_1 = arith.constant 0 : i32
    return %c0_i32, %c0_i32_0 : i32, i32
  }
  func.func @transform_1(%arg0: i32) -> (i32, i32) {
    %c0_i32 = arith.constant 0 : i32
    %c0_i32_0 = arith.constant 0 : i32
    %c0_i32_1 = arith.constant 0 : i32
    return %c0_i32, %c0_i32_0 : i32, i32
  }
  func.func @transform_2(%arg0: i32) -> (i32, i32, i32) {
    %c0_i32 = arith.constant 0 : i32
    %c0_i32_0 = arith.constant 0 : i32
    %c0_i32_1 = arith.constant 0 : i32
    %c0_i32_2 = arith.constant 0 : i32
    return %c0_i32, %c0_i32_0, %c0_i32_1 : i32, i32, i32
  }
  func.func @transform_3(%arg0: i32) -> (i32, i32, i32) {
    %c0_i32 = arith.constant 0 : i32
    %c0_i32_0 = arith.constant 0 : i32
    %c0_i32_1 = arith.constant 0 : i32
    return %arg0, %c0_i32, %c0_i32_0 : i32, i32, i32
  }
  func.func @transform_4(%arg0: i32) -> (i32, i32) {
    %c0_i32 = arith.constant 0 : i32
    %c0_i32_0 = arith.constant 0 : i32
    %c0_i32_1 = arith.constant 0 : i32
    return %c0_i32, %c0_i32_0 : i32, i32
  }
  func.func @transform_5(%arg0: i32) -> (i32, i32) {
    %c0_i32 = arith.constant 0 : i32
    %c0_i32_0 = arith.constant 0 : i32
    %c0_i32_1 = arith.constant 0 : i32
    return %c0_i32, %c0_i32_0 : i32, i32
  }
}

module attributes {stable_mosaic.version = 11 : i64} {
  func.func @score_kernel(%arg0: i32, %arg1: memref<16x256xbf16, #tpu.memory_space<vmem>>, %arg2: memref<256x2048xbf16, #tpu.memory_space<vmem>>, %arg3: memref<1x2048xf32, #tpu.memory_space<vmem>>, %arg4: memref<16x2048xf32, #tpu.memory_space<vmem>>) attributes {dimension_semantics = [#tpu.dimension_semantics<parallel>], iteration_bounds = array<i64: 2>, scalar_prefetch = 0 : i64, scratch_operands = 0 : i64, tpu.core_type = #tpu.core_type<tc>, window_params = [{pipeline_mode = #tpu.pipeline_mode<synchronous>, transform_indices = @transform_0, window_bounds = array<i64: 16, 256>}, {transform_indices = @transform_1, window_bounds = array<i64: 256, 2048>}, {transform_indices = @transform_2, window_bounds = array<i64: 1, 2048>}, {transform_indices = @transform_3, window_bounds = array<i64: 16, 2048>}]} {
    %c0 = arith.constant 0 : index
    %c0_0 = arith.constant 0 : index
    %0 = vector.load %arg1[%c0, %c0_0] : memref<16x256xbf16, #tpu.memory_space<vmem>>, vector<16x256xbf16>
    %c0_1 = arith.constant 0 : index
    %c0_2 = arith.constant 0 : index
    %1 = vector.load %arg2[%c0_1, %c0_2] : memref<256x2048xbf16, #tpu.memory_space<vmem>>, vector<256x2048xbf16>
    %cst = arith.constant dense<0.000000e+00> : vector<16x2048xf32>
    %2 = tpu.matmul %0, %1, %cst {dimension_numbers = #tpu.dot_dimension_numbers<[1], [0], [0], [1], [0, 0, 1, 1], [], []>} : vector<16x256xbf16>, vector<256x2048xbf16>, vector<16x2048xf32> -> vector<16x2048xf32>
    %c0_3 = arith.constant 0 : index
    %c0_4 = arith.constant 0 : index
    %3 = vector.load %arg3[%c0_3, %c0_4] : memref<1x2048xf32, #tpu.memory_space<vmem>>, vector<1x2048xf32>
    %4 = vector.broadcast %3 : vector<1x2048xf32> to vector<16x2048xf32>
    %5 = arith.addf %2, %4 : vector<16x2048xf32>
    %6 = arith.negf %5 : vector<16x2048xf32>
    %7 = math.exp %6 : vector<16x2048xf32>
    %cst_5 = arith.constant 1.000000e+00 : f32
    %8 = vector.broadcast %cst_5 : f32 to vector<16x2048xf32>
    %9 = arith.addf %8, %7 : vector<16x2048xf32>
    %10 = arith.divf %8, %9 : vector<16x2048xf32>
    %c0_6 = arith.constant 0 : index
    %c0_7 = arith.constant 0 : index
    %11 = vector.load %arg4[%c0_6, %c0_7] : memref<16x2048xf32, #tpu.memory_space<vmem>>, vector<16x2048xf32>
    tpu.vector_store %arg4[%c0_6, %c0_7], %10 {strides = array<i32>} : memref<16x2048xf32, #tpu.memory_space<vmem>>, vector<16x2048xf32>,
    return
  }
  func.func @transform_0(%arg0: i32) -> (i32, i32) {
    %c0_i32 = arith.constant 0 : i32
    %c0_i32_0 = arith.constant 0 : i32
    %c0_i32_1 = arith.constant 0 : i32
    return %c0_i32, %c0_i32_0 : i32, i32
  }
  func.func @transform_1(%arg0: i32) -> (i32, i32) {
    %c0_i32 = arith.constant 0 : i32
    %c0_i32_0 = arith.constant 0 : i32
    return %c0_i32, %arg0 : i32, i32
  }
  func.func @transform_2(%arg0: i32) -> (i32, i32) {
    %c0_i32 = arith.constant 0 : i32
    %c0_i32_0 = arith.constant 0 : i32
    return %c0_i32, %arg0 : i32, i32
  }
  func.func @transform_3(%arg0: i32) -> (i32, i32) {
    %c0_i32 = arith.constant 0 : i32
    %c0_i32_0 = arith.constant 0 : i32
    return %c0_i32, %arg0 : i32, i32
  }
}

</mosaic_0001>

<bundles_post_ra>
// kernel: conve_forward.3
= control target key start
LH: loop header
LB: loop body
LE: loop exit
PB: predicated region body
PF: predicated region fallthrough
CT: control target
= control target key end

     0   :  { %8 = vsyncpa [#allocation4], 0  ;;  %s4603_s0 = inlined_call_operand.vmem [shape: bf16[16,256], index: 0, kind: input, shape index: {}]   ;;  %s4604_s1 = inlined_call_operand.vmem [shape: bf16[256,4096], index: 1, kind: input, shape index: {}]   ;;  %s4605_s2 = inlined_call_operand.vmem [shape: f32[1,4096], index: 2, kind: input, shape index: {}]   ;;  %s4606_s3 = inlined_call_operand.hbm [shape: f32[16,4096], index: 3, kind: output, shape index: {}]  }
   0x1   :  { %10 = vsyncpa [#allocation4 + $0x1], 0  ;;  %s3579_s12 = smov 0   ;;  %s3581_s13 = smov 0  }
   0x2   :  { %s3583_s14 = smov 0   ;;  %s3585_s15 = smov 0  }
   0x3 LB: > { %s3600_s16 = sadd.s32 4294967295, %s3553_s15   ;;  %s3011_s17 = sadd.s32 4294967294, %s3553_s15   ;;  %s3553_s15 = sphi %s3585_s15, %s4613_s15   ;;  %s3549_s14 = sphi %s3583_s14, %s4612_s14   ;;  %s3545_s13 = sphi %s3581_s13, %s4611_s13   ;;  %s3541_s12 = sphi %s3579_s12, %s4610_s12  }
   0x4   : > { %s3604_s18 = sadd.s32 1, %s3553_s15   ;;  %s44_s19 = sadd.s32 1, %s3549_s14 }
   0x5   : > { %s41_s20 = ssub.s32 %s3553_s15, %s3604_s18  ;;  %p51_p0 = scmp.ne.s32.totalorder %s3549_s14, %s3545_s13 }
   0x6   : > { %p42_p1 = scmp.eq.s32.totalorder %s41_s20, 0  ;;  %p52_p2 = scmp.eq.s32.totalorder %s3553_s15, 0 }
   0x7   : > { %p107_p3 = scmp.eq.s32.totalorder %s3600_s16, 1  ;;  %p112_p4 = scmp.ne.s32.totalorder %s3545_s13, %s3541_s12 }
   0x8   : > { %s3616_s21 = scalar_select %p42_p1, %s3549_s14, %s44_s19  }
   0x9   : > { %p53_p5 = por %p52_p2, %p51_p0  ;;  %p3618_p6 = por %p107_p3, %p51_p0 }
   0xa   : > { %p113_p7 = scmp.eq.s32.totalorder %s3011_s17, 1  ;;  %p3013_p9 = scmp.ge.s32.totalorder %s3553_s15, 2 }
   0xc   : > { %p3622_p8 = por %p113_p7, %p112_p4  ;;  %132 = sbr.rel (%p3013_p9) target bundleno = 149 (0x95), region = 20 }
  0x11   : > { %135 = sbr.rel (!%p53_p5) target bundleno = 149 (0x95), region = 24  ;;  %s137_s24 = sand.u32 (%p53_p5), 1, %s3549_s14  }
  0x12   : > { %s3316_s25 = sshll.u32 (%p53_p5), %s3553_s15, 6  ;;  %s3014_s26 = sshll.u32 (%p53_p5), %s137_s24, 11 }
  0x13   : > { %s3634_s29 = scalar_lea.vmem (%p53_p5), %s4604_s1, %s3316_s25  ;;  %s3639_s30 = scalar_lea.vmem (%p53_p5), [#allocation2], %s3014_s26 }
  0x14   : > { %v155_v0 = vld [vmem:[%s3634_s29] sm:$0xff] (%p53_p5)  ;;  %v157_v1 = vld [vmem:[%s3634_s29 + $0x8] sm:$0xff] (%p53_p5)  ;;  %v159_v2 = vld [vmem:[%s3634_s29 + $0x10] sm:$0xff] (%p53_p5) }
  0x15   : > { %156 = vst [vmem:[%s3639_s30] sm:$0xff] (%p53_p5), %v155_v0  ;;  %158 = vst [vmem:[%s3639_s30 + $0x8] sm:$0xff] (%p53_p5), %v157_v1  ;;  %v161_v3 = vld [vmem:[%s3634_s29 + $0x18] sm:$0xff] (%p53_p5)  ;;  %v163_v4 = vld [vmem:[%s3634_s29 + $0x20] sm:$0xff] (%p53_p5) }
  0x16   : > { %160 = vst [vmem:[%s3639_s30 + $0x10] sm:$0xff] %v159_v2  ;;  %v165_v5 = vld [vmem:[%s3634_s29 + $0x28] sm:$0xff]  ;;  %162 = vst [vmem:[%s3639_s30 + $0x18] sm:$0xff] %v161_v3  ;;  %v167_v6 = vld [vmem:[%s3634_s29 + $0x30] sm:$0xff] }
  0x17   : > { %164 = vst [vmem:[%s3639_s30 + $0x20] sm:$0xff] %v163_v4  ;;  %166 = vst [vmem:[%s3639_s30 + $0x28] sm:$0xff] %v165_v5  ;;  %v169_v7 = vld [vmem:[%s3634_s29 + $0x38] sm:$0xff]  ;;  %v171_v8 = vld [vmem:[%s3634_s29 + $0x80] sm:$0xff] }
  0x18   : > { %168 = vst [vmem:[%s3639_s30 + $0x30] sm:$0xff] %v167_v6  ;;  %170 = vst [vmem:[%s3639_s30 + $0x38] sm:$0xff] %v169_v7  ;;  %v173_v9 = vld [vmem:[%s3634_s29 + $0x88] sm:$0xff]  ;;  %v175_v10 = vld [vmem:[%s3634_s29 + $0x90] sm:$0xff] }
  0x19   : > { %172 = vst [vmem:[%s3639_s30 + $0x40] sm:$0xff] %v171_v8  ;;  %v177_v11 = vld [vmem:[%s3634_s29 + $0x98] sm:$0xff]  ;;  %174 = vst [vmem:[%s3639_s30 + $0x48] sm:$0xff] %v173_v9  ;;  %v179_v12 = vld [vmem:[%s3634_s29 + $0xa0] sm:$0xff] }
  0x1a   : > { %176 = vst [vmem:[%s3639_s30 + $0x50] sm:$0xff] %v175_v10  ;;  %178 = vst [vmem:[%s3639_s30 + $0x58] sm:$0xff] %v177_v11  ;;  %v181_v13 = vld [vmem:[%s3634_s29 + $0xa8] sm:$0xff]  ;;  %v183_v14 = vld [vmem:[%s3634_s29 + $0xb0] sm:$0xff] }
  0x1b   : > { %180 = vst [vmem:[%s3639_s30 + $0x60] sm:$0xff] %v179_v12  ;;  %182 = vst [vmem:[%s3639_s30 + $0x68] sm:$0xff] %v181_v13  ;;  %v185_v15 = vld [vmem:[%s3634_s29 + $0xb8] sm:$0xff]  ;;  %v187_v16 = vld [vmem:[%s3634_s29 + $0x100] sm:$0xff] }
  0x1c   : > { %184 = vst [vmem:[%s3639_s30 + $0x70] sm:$0xff] %v183_v14  ;;  %v189_v17 = vld [vmem:[%s3634_s29 + $0x108] sm:$0xff]  ;;  %186 = vst [vmem:[%s3639_s30 + $0x78] sm:$0xff] %v185_v15  ;;  %v191_v18 = vld [vmem:[%s3634_s29 + $0x110] sm:$0xff] }
  0x1d   : > { %188 = vst [vmem:[%s3639_s30 + $0x80] sm:$0xff] %v187_v16  ;;  %190 = vst [vmem:[%s3639_s30 + $0x88] sm:$0xff] %v189_v17  ;;  %v193_v19 = vld [vmem:[%s3634_s29 + $0x118] sm:$0xff]  ;;  %v195_v20 = vld [vmem:[%s3634_s29 + $0x120] sm:$0xff] }
  0x1e   : > { %192 = vst [vmem:[%s3639_s30 + $0x90] sm:$0xff] %v191_v18  ;;  %194 = vst [vmem:[%s3639_s30 + $0x98] sm:$0xff] %v193_v19  ;;  %v197_v21 = vld [vmem:[%s3634_s29 + $0x128] sm:$0xff]  ;;  %v199_v22 = vld [vmem:[%s3634_s29 + $0x130] sm:$0xff] }
  0x1f   : > { %196 = vst [vmem:[%s3639_s30 + $0xa0] sm:$0xff] %v195_v20  ;;  %v201_v23 = vld [vmem:[%s3634_s29 + $0x138] sm:$0xff]  ;;  %198 = vst [vmem:[%s3639_s30 + $0xa8] sm:$0xff] %v197_v21  ;;  %v203_v24 = vld [vmem:[%s3634_s29 + $0x180] sm:$0xff] }
  0x20   : > { %200 = vst [vmem:[%s3639_s30 + $0xb0] sm:$0xff] %v199_v22  ;;  %202 = vst [vmem:[%s3639_s30 + $0xb8] sm:$0xff] %v201_v23  ;;  %v205_v25 = vld [vmem:[%s3634_s29 + $0x188] sm:$0xff]  ;;  %v207_v26 = vld [vmem:[%s3634_s29 + $0x190] sm:$0xff] }
  0x21   : > { %204 = vst [vmem:[%s3639_s30 + $0xc0] sm:$0xff] %v203_v24  ;;  %206 = vst [vmem:[%s3639_s30 + $0xc8] sm:$0xff] %v205_v25  ;;  %v209_v27 = vld [vmem:[%s3634_s29 + $0x198] sm:$0xff]  ;;  %v211_v28 = vld [vmem:[%s3634_s29 + $0x1a0] sm:$0xff] }
  0x22   : > { %208 = vst [vmem:[%s3639_s30 + $0xd0] sm:$0xff] %v207_v26  ;;  %v213_v29 = vld [vmem:[%s3634_s29 + $0x1a8] sm:$0xff]  ;;  %210 = vst [vmem:[%s3639_s30 + $0xd8] sm:$0xff] %v209_v27  ;;  %v215_v30 = vld [vmem:[%s3634_s29 + $0x1b0] sm:$0xff] }
  0x23   : > { %212 = vst [vmem:[%s3639_s30 + $0xe0] sm:$0xff] %v211_v28  ;;  %214 = vst [vmem:[%s3639_s30 + $0xe8] sm:$0xff] %v213_v29  ;;  %v217_v31 = vld [vmem:[%s3634_s29 + $0x1b8] sm:$0xff]  ;;  %v219_v32 = vld [vmem:[%s3634_s29 + $0x200] sm:$0xff] }
  0x24   : > { %216 = vst [vmem:[%s3639_s30 + $0xf0] sm:$0xff] %v215_v30  ;;  %218 = vst [vmem:[%s3639_s30 + $0xf8] sm:$0xff] %v217_v31  ;;  %v221_v33 = vld [vmem:[%s3634_s29 + $0x208] sm:$0xff]  ;;  %v223_v34 = vld [vmem:[%s3634_s29 + $0x210] sm:$0xff] }
  0x25   : > { %220 = vst [vmem:[%s3639_s30 + $0x100] sm:$0xff] %v219_v32  ;;  %v225_v35 = vld [vmem:[%s3634_s29 + $0x218] sm:$0xff]  ;;  %222 = vst [vmem:[%s3639_s30 + $0x108] sm:$0xff] %v221_v33  ;;  %v227_v36 = vld [vmem:[%s3634_s29 + $0x220] sm:$0xff] }
  0x26   : > { %224 = vst [vmem:[%s3639_s30 + $0x110] sm:$0xff] %v223_v34  ;;  %226 = vst [vmem:[%s3639_s30 + $0x118] sm:$0xff] %v225_v35  ;;  %v229_v37 = vld [vmem:[%s3634_s29 + $0x228] sm:$0xff]  ;;  %v231_v38 = vld [vmem:[%s3634_s29 + $0x230] sm:$0xff] }
  0x27   : > { %228 = vst [vmem:[%s3639_s30 + $0x120] sm:$0xff] %v227_v36  ;;  %230 = vst [vmem:[%s3639_s30 + $0x128] sm:$0xff] %v229_v37  ;;  %v233_v39 = vld [vmem:[%s3634_s29 + $0x238] sm:$0xff]  ;;  %v235_v40 = vld [vmem:[%s3634_s29 + $0x280] sm:$0xff] }
  0x28   : > { %232 = vst [vmem:[%s3639_s30 + $0x130] sm:$0xff] %v231_v38  ;;  %v237_v41 = vld [vmem:[%s3634_s29 + $0x288] sm:$0xff]  ;;  %234 = vst [vmem:[%s3639_s30 + $0x138] sm:$0xff] %v233_v39  ;;  %v239_v42 = vld [vmem:[%s3634_s29 + $0x290] sm:$0xff] }
  0x29   : > { %236 = vst [vmem:[%s3639_s30 + $0x140] sm:$0xff] %v235_v40  ;;  %238 = vst [vmem:[%s3639_s30 + $0x148] sm:$0xff] %v237_v41  ;;  %v241_v43 = vld [vmem:[%s3634_s29 + $0x298] sm:$0xff]  ;;  %v243_v44 = vld [vmem:[%s3634_s29 + $0x2a0] sm:$0xff] }
  0x2a   : > { %240 = vst [vmem:[%s3639_s30 + $0x150] sm:$0xff] %v239_v42  ;;  %242 = vst [vmem:[%s3639_s30 + $0x158] sm:$0xff] %v241_v43  ;;  %v245_v45 = vld [vmem:[%s3634_s29 + $0x2a8] sm:$0xff]  ;;  %v247_v46 = vld [vmem:[%s3634_s29 + $0x2b0] sm:$0xff] }
  0x2b   : > { %244 = vst [vmem:[%s3639_s30 + $0x160] sm:$0xff] %v243_v44  ;;  %v249_v47 = vld [vmem:[%s3634_s29 + $0x2b8] sm:$0xff]  ;;  %246 = vst [vmem:[%s3639_s30 + $0x168] sm:$0xff] %v245_v45  ;;  %v251_v48 = vld [vmem:[%s3634_s29 + $0x300] sm:$0xff] }
  0x2c   : > { %248 = vst [vmem:[%s3639_s30 + $0x170] sm:$0xff] %v247_v46  ;;  %250 = vst [vmem:[%s3639_s30 + $0x178] sm:$0xff] %v249_v47  ;;  %v253_v49 = vld [vmem:[%s3634_s29 + $0x308] sm:$0xff]  ;;  %v255_v50 = vld [vmem:[%s3634_s29 + $0x310] sm:$0xff] }
  0x2d   : > { %252 = vst [vmem:[%s3639_s30 + $0x180] sm:$0xff] %v251_v48  ;;  %254 = vst [vmem:[%s3639_s30 + $0x188] sm:$0xff] %v253_v49  ;;  %v257_v51 = vld [vmem:[%s3634_s29 + $0x318] sm:$0xff]  ;;  %v259_v52 = vld [vmem:[%s3634_s29 + $0x320] sm:$0xff] }
  0x2e   : > { %256 = vst [vmem:[%s3639_s30 + $0x190] sm:$0xff] %v255_v50  ;;  %v261_v53 = vld [vmem:[%s3634_s29 + $0x328] sm:$0xff]  ;;  %258 = vst [vmem:[%s3639_s30 + $0x198] sm:$0xff] %v257_v51  ;;  %v263_v54 = vld [vmem:[%s3634_s29 + $0x330] sm:$0xff] }
  0x2f   : > { %260 = vst [vmem:[%s3639_s30 + $0x1a0] sm:$0xff] %v259_v52  ;;  %262 = vst [vmem:[%s3639_s30 + $0x1a8] sm:$0xff] %v261_v53  ;;  %v265_v55 = vld [vmem:[%s3634_s29 + $0x338] sm:$0xff]  ;;  %v267_v56 = vld [vmem:[%s3634_s29 + $0x380] sm:$0xff] }
  0x30   : > { %264 = vst [vmem:[%s3639_s30 + $0x1b0] sm:$0xff] %v263_v54  ;;  %266 = vst [vmem:[%s3639_s30 + $0x1b8] sm:$0xff] %v265_v55  ;;  %v269_v57 = vld [vmem:[%s3634_s29 + $0x388] sm:$0xff]  ;;  %v271_v58 = vld [vmem:[%s3634_s29 + $0x390] sm:$0xff] }
  0x31   : > { %268 = vst [vmem:[%s3639_s30 + $0x1c0] sm:$0xff] %v267_v56  ;;  %v273_v59 = vld [vmem:[%s3634_s29 + $0x398] sm:$0xff]  ;;  %270 = vst [vmem:[%s3639_s30 + $0x1c8] sm:$0xff] %v269_v57  ;;  %v275_v60 = vld [vmem:[%s3634_s29 + $0x3a0] sm:$0xff] }
  0x32   : > { %272 = vst [vmem:[%s3639_s30 + $0x1d0] sm:$0xff] %v271_v58  ;;  %274 = vst [vmem:[%s3639_s30 + $0x1d8] sm:$0xff] %v273_v59  ;;  %v277_v61 = vld [vmem:[%s3634_s29 + $0x3a8] sm:$0xff]  ;;  %v279_v62 = vld [vmem:[%s3634_s29 + $0x3b0] sm:$0xff] }
  0x33   : > { %276 = vst [vmem:[%s3639_s30 + $0x1e0] sm:$0xff] %v275_v60  ;;  %278 = vst [vmem:[%s3639_s30 + $0x1e8] sm:$0xff] %v277_v61  ;;  %v281_v63 = vld [vmem:[%s3634_s29 + $0x3b8] sm:$0xff]  ;;  %v283_v0 = vld [vmem:[%s3634_s29 + $0x400] sm:$0xff] }
  0x34   : > { %280 = vst [vmem:[%s3639_s30 + $0x1f0] sm:$0xff] %v279_v62  ;;  %v285_v1 = vld [vmem:[%s3634_s29 + $0x408] sm:$0xff]  ;;  %282 = vst [vmem:[%s3639_s30 + $0x1f8] sm:$0xff] %v281_v63  ;;  %v287_v2 = vld [vmem:[%s3634_s29 + $0x410] sm:$0xff] }
  0x35   : > { %284 = vst [vmem:[%s3639_s30 + $0x200] sm:$0xff] %v283_v0  ;;  %286 = vst [vmem:[%s3639_s30 + $0x208] sm:$0xff] %v285_v1  ;;  %v289_v3 = vld [vmem:[%s3634_s29 + $0x418] sm:$0xff]  ;;  %v291_v4 = vld [vmem:[%s3634_s29 + $0x420] sm:$0xff] }
  0x36   : > { %288 = vst [vmem:[%s3639_s30 + $0x210] sm:$0xff] %v287_v2  ;;  %290 = vst [vmem:[%s3639_s30 + $0x218] sm:$0xff] %v289_v3  ;;  %v293_v5 = vld [vmem:[%s3634_s29 + $0x428] sm:$0xff]  ;;  %v295_v6 = vld [vmem:[%s3634_s29 + $0x430] sm:$0xff] }
  0x37   : > { %292 = vst [vmem:[%s3639_s30 + $0x220] sm:$0xff] %v291_v4  ;;  %v297_v7 = vld [vmem:[%s3634_s29 + $0x438] sm:$0xff]  ;;  %294 = vst [vmem:[%s3639_s30 + $0x228] sm:$0xff] %v293_v5  ;;  %v299_v8 = vld [vmem:[%s3634_s29 + $0x480] sm:$0xff] }
  0x38   : > { %296 = vst [vmem:[%s3639_s30 + $0x230] sm:$0xff] %v295_v6  ;;  %298 = vst [vmem:[%s3639_s30 + $0x238] sm:$0xff] %v297_v7  ;;  %v301_v9 = vld [vmem:[%s3634_s29 + $0x488] sm:$0xff]  ;;  %v303_v10 = vld [vmem:[%s3634_s29 + $0x490] sm:$0xff] }
  0x39   : > { %300 = vst [vmem:[%s3639_s30 + $0x240] sm:$0xff] %v299_v8  ;;  %302 = vst [vmem:[%s3639_s30 + $0x248] sm:$0xff] %v301_v9  ;;  %v305_v11 = vld [vmem:[%s3634_s29 + $0x498] sm:$0xff]  ;;  %v307_v12 = vld [vmem:[%s3634_s29 + $0x4a0] sm:$0xff] }
  0x3a   : > { %304 = vst [vmem:[%s3639_s30 + $0x250] sm:$0xff] %v303_v10  ;;  %v309_v13 = vld [vmem:[%s3634_s29 + $0x4a8] sm:$0xff]  ;;  %306 = vst [vmem:[%s3639_s30 + $0x258] sm:$0xff] %v305_v11  ;;  %v311_v14 = vld [vmem:[%s3634_s29 + $0x4b0] sm:$0xff] }
  0x3b   : > { %308 = vst [vmem:[%s3639_s30 + $0x260] sm:$0xff] %v307_v12  ;;  %310 = vst [vmem:[%s3639_s30 + $0x268] sm:$0xff] %v309_v13  ;;  %v313_v15 = vld [vmem:[%s3634_s29 + $0x4b8] sm:$0xff]  ;;  %v315_v16 = vld [vmem:[%s3634_s29 + $0x500] sm:$0xff] }
  0x3c   : > { %312 = vst [vmem:[%s3639_s30 + $0x270] sm:$0xff] %v311_v14  ;;  %314 = vst [vmem:[%s3639_s30 + $0x278] sm:$0xff] %v313_v15  ;;  %v317_v17 = vld [vmem:[%s3634_s29 + $0x508] sm:$0xff]  ;;  %v319_v18 = vld [vmem:[%s3634_s29 + $0x510] sm:$0xff] }
  0x3d   : > { %316 = vst [vmem:[%s3639_s30 + $0x280] sm:$0xff] %v315_v16  ;;  %v321_v19 = vld [vmem:[%s3634_s29 + $0x518] sm:$0xff]  ;;  %318 = vst [vmem:[%s3639_s30 + $0x288] sm:$0xff] %v317_v17  ;;  %v323_v20 = vld [vmem:[%s3634_s29 + $0x520] sm:$0xff] }
  0x3e   : > { %320 = vst [vmem:[%s3639_s30 + $0x290] sm:$0xff] %v319_v18  ;;  %322 = vst [vmem:[%s3639_s30 + $0x298] sm:$0xff] %v321_v19  ;;  %v325_v21 = vld [vmem:[%s3634_s29 + $0x528] sm:$0xff]  ;;  %v327_v22 = vld [vmem:[%s3634_s29 + $0x530] sm:$0xff] }
  0x3f   : > { %324 = vst [vmem:[%s3639_s30 + $0x2a0] sm:$0xff] %v323_v20  ;;  %326 = vst [vmem:[%s3639_s30 + $0x2a8] sm:$0xff] %v325_v21  ;;  %v329_v23 = vld [vmem:[%s3634_s29 + $0x538] sm:$0xff]  ;;  %v331_v24 = vld [vmem:[%s3634_s29 + $0x580] sm:$0xff] }
  0x40   : > { %328 = vst [vmem:[%s3639_s30 + $0x2b0] sm:$0xff] %v327_v22  ;;  %v333_v25 = vld [vmem:[%s3634_s29 + $0x588] sm:$0xff]  ;;  %330 = vst [vmem:[%s3639_s30 + $0x2b8] sm:$0xff] %v329_v23  ;;  %v335_v26 = vld [vmem:[%s3634_s29 + $0x590] sm:$0xff] }
  0x41   : > { %332 = vst [vmem:[%s3639_s30 + $0x2c0] sm:$0xff] %v331_v24  ;;  %334 = vst [vmem:[%s3639_s30 + $0x2c8] sm:$0xff] %v333_v25  ;;  %v337_v27 = vld [vmem:[%s3634_s29 + $0x598] sm:$0xff]  ;;  %v339_v28 = vld [vmem:[%s3634_s29 + $0x5a0] sm:$0xff] }
  0x42   : > { %336 = vst [vmem:[%s3639_s30 + $0x2d0] sm:$0xff] %v335_v26  ;;  %338 = vst [vmem:[%s3639_s30 + $0x2d8] sm:$0xff] %v337_v27  ;;  %v341_v29 = vld [vmem:[%s3634_s29 + $0x5a8] sm:$0xff]  ;;  %v343_v30 = vld [vmem:[%s3634_s29 + $0x5b0] sm:$0xff] }
  0x43   : > { %340 = vst [vmem:[%s3639_s30 + $0x2e0] sm:$0xff] %v339_v28  ;;  %v345_v31 = vld [vmem:[%s3634_s29 + $0x5b8] sm:$0xff]  ;;  %342 = vst [vmem:[%s3639_s30 + $0x2e8] sm:$0xff] %v341_v29  ;;  %v347_v32 = vld [vmem:[%s3634_s29 + $0x600] sm:$0xff] }
  0x44   : > { %344 = vst [vmem:[%s3639_s30 + $0x2f0] sm:$0xff] %v343_v30  ;;  %346 = vst [vmem:[%s3639_s30 + $0x2f8] sm:$0xff] %v345_v31  ;;  %v349_v33 = vld [vmem:[%s3634_s29 + $0x608] sm:$0xff]  ;;  %v351_v34 = vld [vmem:[%s3634_s29 + $0x610] sm:$0xff] }
  0x45   : > { %348 = vst [vmem:[%s3639_s30 + $0x300] sm:$0xff] %v347_v32  ;;  %350 = vst [vmem:[%s3639_s30 + $0x308] sm:$0xff] %v349_v33  ;;  %v353_v35 = vld [vmem:[%s3634_s29 + $0x618] sm:$0xff]  ;;  %v355_v36 = vld [vmem:[%s3634_s29 + $0x620] sm:$0xff] }
  0x46   : > { %352 = vst [vmem:[%s3639_s30 + $0x310] sm:$0xff] %v351_v34  ;;  %v357_v37 = vld [vmem:[%s3634_s29 + $0x628] sm:$0xff]  ;;  %354 = vst [vmem:[%s3639_s30 + $0x318] sm:$0xff] %v353_v35  ;;  %v359_v38 = vld [vmem:[%s3634_s29 + $0x630] sm:$0xff] }
  0x47   : > { %356 = vst [vmem:[%s3639_s30 + $0x320] sm:$0xff] %v355_v36  ;;  %358 = vst [vmem:[%s3639_s30 + $0x328] sm:$0xff] %v357_v37  ;;  %v361_v39 = vld [vmem:[%s3634_s29 + $0x638] sm:$0xff]  ;;  %v363_v40 = vld [vmem:[%s3634_s29 + $0x680] sm:$0xff] }
  0x48   : > { %360 = vst [vmem:[%s3639_s30 + $0x330] sm:$0xff] %v359_v38  ;;  %362 = vst [vmem:[%s3639_s30 + $0x338] sm:$0xff] %v361_v39  ;;  %v365_v41 = vld [vmem:[%s3634_s29 + $0x688] sm:$0xff]  ;;  %v367_v42 = vld [vmem:[%s3634_s29 + $0x690] sm:$0xff] }
  0x49   : > { %364 = vst [vmem:[%s3639_s30 + $0x340] sm:$0xff] %v363_v40  ;;  %v369_v43 = vld [vmem:[%s3634_s29 + $0x698] sm:$0xff]  ;;  %366 = vst [vmem:[%s3639_s30 + $0x348] sm:$0xff] %v365_v41  ;;  %v371_v44 = vld [vmem:[%s3634_s29 + $0x6a0] sm:$0xff] }
  0x4a   : > { %368 = vst [vmem:[%s3639_s30 + $0x350] sm:$0xff] %v367_v42  ;;  %370 = vst [vmem:[%s3639_s30 + $0x358] sm:$0xff] %v369_v43  ;;  %v373_v45 = vld [vmem:[%s3634_s29 + $0x6a8] sm:$0xff]  ;;  %v375_v46 = vld [vmem:[%s3634_s29 + $0x6b0] sm:$0xff] }
  0x4b   : > { %372 = vst [vmem:[%s3639_s30 + $0x360] sm:$0xff] %v371_v44  ;;  %374 = vst [vmem:[%s3639_s30 + $0x368] sm:$0xff] %v373_v45  ;;  %v377_v47 = vld [vmem:[%s3634_s29 + $0x6b8] sm:$0xff]  ;;  %v379_v48 = vld [vmem:[%s3634_s29 + $0x700] sm:$0xff] }
  0x4c   : > { %376 = vst [vmem:[%s3639_s30 + $0x370] sm:$0xff] %v375_v46  ;;  %v381_v49 = vld [vmem:[%s3634_s29 + $0x708] sm:$0xff]  ;;  %378 = vst [vmem:[%s3639_s30 + $0x378] sm:$0xff] %v377_v47  ;;  %v383_v50 = vld [vmem:[%s3634_s29 + $0x710] sm:$0xff] }
  0x4d   : > { %380 = vst [vmem:[%s3639_s30 + $0x380] sm:$0xff] %v379_v48  ;;  %382 = vst [vmem:[%s3639_s30 + $0x388] sm:$0xff] %v381_v49  ;;  %v385_v51 = vld [vmem:[%s3634_s29 + $0x718] sm:$0xff]  ;;  %v387_v52 = vld [vmem:[%s3634_s29 + $0x720] sm:$0xff] }
  0x4e   : > { %384 = vst [vmem:[%s3639_s30 + $0x390] sm:$0xff] %v383_v50  ;;  %386 = vst [vmem:[%s3639_s30 + $0x398] sm:$0xff] %v385_v51  ;;  %v389_v53 = vld [vmem:[%s3634_s29 + $0x728] sm:$0xff]  ;;  %v391_v54 = vld [vmem:[%s3634_s29 + $0x730] sm:$0xff] }
  0x4f   : > { %388 = vst [vmem:[%s3639_s30 + $0x3a0] sm:$0xff] %v387_v52  ;;  %v393_v55 = vld [vmem:[%s3634_s29 + $0x738] sm:$0xff]  ;;  %390 = vst [vmem:[%s3639_s30 + $0x3a8] sm:$0xff] %v389_v53  ;;  %v395_v56 = vld [vmem:[%s3634_s29 + $0x780] sm:$0xff] }
  0x50   : > { %392 = vst [vmem:[%s3639_s30 + $0x3b0] sm:$0xff] %v391_v54  ;;  %394 = vst [vmem:[%s3639_s30 + $0x3b8] sm:$0xff] %v393_v55  ;;  %v397_v57 = vld [vmem:[%s3634_s29 + $0x788] sm:$0xff]  ;;  %v399_v58 = vld [vmem:[%s3634_s29 + $0x790] sm:$0xff] }
  0x51   : > { %396 = vst [vmem:[%s3639_s30 + $0x3c0] sm:$0xff] %v395_v56  ;;  %398 = vst [vmem:[%s3639_s30 + $0x3c8] sm:$0xff] %v397_v57  ;;  %v401_v59 = vld [vmem:[%s3634_s29 + $0x798] sm:$0xff]  ;;  %v403_v60 = vld [vmem:[%s3634_s29 + $0x7a0] sm:$0xff] }
  0x52   : > { %400 = vst [vmem:[%s3639_s30 + $0x3d0] sm:$0xff] %v399_v58  ;;  %v405_v61 = vld [vmem:[%s3634_s29 + $0x7a8] sm:$0xff]  ;;  %402 = vst [vmem:[%s3639_s30 + $0x3d8] sm:$0xff] %v401_v59  ;;  %v407_v62 = vld [vmem:[%s3634_s29 + $0x7b0] sm:$0xff] }
  0x53   : > { %404 = vst [vmem:[%s3639_s30 + $0x3e0] sm:$0xff] %v403_v60  ;;  %406 = vst [vmem:[%s3639_s30 + $0x3e8] sm:$0xff] %v405_v61  ;;  %v409_v63 = vld [vmem:[%s3634_s29 + $0x7b8] sm:$0xff]  ;;  %v411_v0 = vld [vmem:[%s3634_s29 + $0x800] sm:$0xff] }
  0x54   : > { %408 = vst [vmem:[%s3639_s30 + $0x3f0] sm:$0xff] %v407_v62  ;;  %410 = vst [vmem:[%s3639_s30 + $0x3f8] sm:$0xff] %v409_v63  ;;  %v413_v1 = vld [vmem:[%s3634_s29 + $0x808] sm:$0xff]  ;;  %v415_v2 = vld [vmem:[%s3634_s29 + $0x810] sm:$0xff] }
  0x55   : > { %412 = vst [vmem:[%s3639_s30 + $0x400] sm:$0xff] %v411_v0  ;;  %v417_v3 = vld [vmem:[%s3634_s29 + $0x818] sm:$0xff]  ;;  %414 = vst [vmem:[%s3639_s30 + $0x408] sm:$0xff] %v413_v1  ;;  %v419_v4 = vld [vmem:[%s3634_s29 + $0x820] sm:$0xff] }
  0x56   : > { %416 = vst [vmem:[%s3639_s30 + $0x410] sm:$0xff] %v415_v2  ;;  %418 = vst [vmem:[%s3639_s30 + $0x418] sm:$0xff] %v417_v3  ;;  %v421_v5 = vld [vmem:[%s3634_s29 + $0x828] sm:$0xff]  ;;  %v423_v6 = vld [vmem:[%s3634_s29 + $0x830] sm:$0xff] }
  0x57   : > { %420 = vst [vmem:[%s3639_s30 + $0x420] sm:$0xff] %v419_v4  ;;  %422 = vst [vmem:[%s3639_s30 + $0x428] sm:$0xff] %v421_v5  ;;  %v425_v7 = vld [vmem:[%s3634_s29 + $0x838] sm:$0xff]  ;;  %v427_v8 = vld [vmem:[%s3634_s29 + $0x880] sm:$0xff] }
  0x58   : > { %424 = vst [vmem:[%s3639_s30 + $0x430] sm:$0xff] %v423_v6  ;;  %v429_v9 = vld [vmem:[%s3634_s29 + $0x888] sm:$0xff]  ;;  %426 = vst [vmem:[%s3639_s30 + $0x438] sm:$0xff] %v425_v7  ;;  %v431_v10 = vld [vmem:[%s3634_s29 + $0x890] sm:$0xff] }
  0x59   : > { %428 = vst [vmem:[%s3639_s30 + $0x440] sm:$0xff] %v427_v8  ;;  %430 = vst [vmem:[%s3639_s30 + $0x448] sm:$0xff] %v429_v9  ;;  %v433_v11 = vld [vmem:[%s3634_s29 + $0x898] sm:$0xff]  ;;  %v435_v12 = vld [vmem:[%s3634_s29 + $0x8a0] sm:$0xff] }
  0x5a   : > { %432 = vst [vmem:[%s3639_s30 + $0x450] sm:$0xff] %v431_v10  ;;  %434 = vst [vmem:[%s3639_s30 + $0x458] sm:$0xff] %v433_v11  ;;  %v437_v13 = vld [vmem:[%s3634_s29 + $0x8a8] sm:$0xff]  ;;  %v439_v14 = vld [vmem:[%s3634_s29 + $0x8b0] sm:$0xff] }
  0x5b   : > { %436 = vst [vmem:[%s3639_s30 + $0x460] sm:$0xff] %v435_v12  ;;  %v441_v15 = vld [vmem:[%s3634_s29 + $0x8b8] sm:$0xff]  ;;  %438 = vst [vmem:[%s3639_s30 + $0x468] sm:$0xff] %v437_v13  ;;  %v443_v16 = vld [vmem:[%s3634_s29 + $0x900] sm:$0xff] }
  0x5c   : > { %440 = vst [vmem:[%s3639_s30 + $0x470] sm:$0xff] %v439_v14  ;;  %442 = vst [vmem:[%s3639_s30 + $0x478] sm:$0xff] %v441_v15  ;;  %v445_v17 = vld [vmem:[%s3634_s29 + $0x908] sm:$0xff]  ;;  %v447_v18 = vld [vmem:[%s3634_s29 + $0x910] sm:$0xff] }
  0x5d   : > { %444 = vst [vmem:[%s3639_s30 + $0x480] sm:$0xff] %v443_v16  ;;  %446 = vst [vmem:[%s3639_s30 + $0x488] sm:$0xff] %v445_v17  ;;  %v449_v19 = vld [vmem:[%s3634_s29 + $0x918] sm:$0xff]  ;;  %v451_v20 = vld [vmem:[%s3634_s29 + $0x920] sm:$0xff] }
  0x5e   : > { %448 = vst [vmem:[%s3639_s30 + $0x490] sm:$0xff] %v447_v18  ;;  %v453_v21 = vld [vmem:[%s3634_s29 + $0x928] sm:$0xff]  ;;  %450 = vst [vmem:[%s3639_s30 + $0x498] sm:$0xff] %v449_v19  ;;  %v455_v22 = vld [vmem:[%s3634_s29 + $0x930] sm:$0xff] }
  0x5f   : > { %452 = vst [vmem:[%s3639_s30 + $0x4a0] sm:$0xff] %v451_v20  ;;  %454 = vst [vmem:[%s3639_s30 + $0x4a8] sm:$0xff] %v453_v21  ;;  %v457_v23 = vld [vmem:[%s3634_s29 + $0x938] sm:$0xff]  ;;  %v459_v24 = vld [vmem:[%s3634_s29 + $0x980] sm:$0xff] }
  0x60   : > { %456 = vst [vmem:[%s3639_s30 + $0x4b0] sm:$0xff] %v455_v22  ;;  %458 = vst [vmem:[%s3639_s30 + $0x4b8] sm:$0xff] %v457_v23  ;;  %v461_v25 = vld [vmem:[%s3634_s29 + $0x988] sm:$0xff]  ;;  %v463_v26 = vld [vmem:[%s3634_s29 + $0x990] sm:$0xff] }
  0x61   : > { %460 = vst [vmem:[%s3639_s30 + $0x4c0] sm:$0xff] %v459_v24  ;;  %v465_v27 = vld [vmem:[%s3634_s29 + $0x998] sm:$0xff]  ;;  %462 = vst [vmem:[%s3639_s30 + $0x4c8] sm:$0xff] %v461_v25  ;;  %v467_v28 = vld [vmem:[%s3634_s29 + $0x9a0] sm:$0xff] }
  0x62   : > { %464 = vst [vmem:[%s3639_s30 + $0x4d0] sm:$0xff] %v463_v26  ;;  %466 = vst [vmem:[%s3639_s30 + $0x4d8] sm:$0xff] %v465_v27  ;;  %v469_v29 = vld [vmem:[%s3634_s29 + $0x9a8] sm:$0xff]  ;;  %v471_v30 = vld [vmem:[%s3634_s29 + $0x9b0] sm:$0xff] }
  0x63   : > { %468 = vst [vmem:[%s3639_s30 + $0x4e0] sm:$0xff] %v467_v28  ;;  %470 = vst [vmem:[%s3639_s30 + $0x4e8] sm:$0xff] %v469_v29  ;;  %v473_v31 = vld [vmem:[%s3634_s29 + $0x9b8] sm:$0xff]  ;;  %v475_v32 = vld [vmem:[%s3634_s29 + $0xa00] sm:$0xff] }
  0x64   : > { %472 = vst [vmem:[%s3639_s30 + $0x4f0] sm:$0xff] %v471_v30  ;;  %v477_v33 = vld [vmem:[%s3634_s29 + $0xa08] sm:$0xff]  ;;  %474 = vst [vmem:[%s3639_s30 + $0x4f8] sm:$0xff] %v473_v31  ;;  %v479_v34 = vld [vmem:[%s3634_s29 + $0xa10] sm:$0xff] }
  0x65   : > { %476 = vst [vmem:[%s3639_s30 + $0x500] sm:$0xff] %v475_v32  ;;  %478 = vst [vmem:[%s3639_s30 + $0x508] sm:$0xff] %v477_v33  ;;  %v481_v35 = vld [vmem:[%s3634_s29 + $0xa18] sm:$0xff]  ;;  %v483_v36 = vld [vmem:[%s3634_s29 + $0xa20] sm:$0xff] }
  0x66   : > { %480 = vst [vmem:[%s3639_s30 + $0x510] sm:$0xff] %v479_v34  ;;  %482 = vst [vmem:[%s3639_s30 + $0x518] sm:$0xff] %v481_v35  ;;  %v485_v37 = vld [vmem:[%s3634_s29 + $0xa28] sm:$0xff]  ;;  %v487_v38 = vld [vmem:[%s3634_s29 + $0xa30] sm:$0xff] }
  0x67   : > { %484 = vst [vmem:[%s3639_s30 + $0x520] sm:$0xff] %v483_v36  ;;  %v489_v39 = vld [vmem:[%s3634_s29 + $0xa38] sm:$0xff]  ;;  %486 = vst [vmem:[%s3639_s30 + $0x528] sm:$0xff] %v485_v37  ;;  %v491_v40 = vld [vmem:[%s3634_s29 + $0xa80] sm:$0xff] }
  0x68   : > { %488 = vst [vmem:[%s3639_s30 + $0x530] sm:$0xff] %v487_v38  ;;  %490 = vst [vmem:[%s3639_s30 + $0x538] sm:$0xff] %v489_v39  ;;  %v493_v41 = vld [vmem:[%s3634_s29 + $0xa88] sm:$0xff]  ;;  %v495_v42 = vld [vmem:[%s3634_s29 + $0xa90] sm:$0xff] }
  0x69   : > { %492 = vst [vmem:[%s3639_s30 + $0x540] sm:$0xff] %v491_v40  ;;  %494 = vst [vmem:[%s3639_s30 + $0x548] sm:$0xff] %v493_v41  ;;  %v497_v43 = vld [vmem:[%s3634_s29 + $0xa98] sm:$0xff]  ;;  %v499_v44 = vld [vmem:[%s3634_s29 + $0xaa0] sm:$0xff] }
  0x6a   : > { %496 = vst [vmem:[%s3639_s30 + $0x550] sm:$0xff] %v495_v42  ;;  %v501_v45 = vld [vmem:[%s3634_s29 + $0xaa8] sm:$0xff]  ;;  %498 = vst [vmem:[%s3639_s30 + $0x558] sm:$0xff] %v497_v43  ;;  %v503_v46 = vld [vmem:[%s3634_s29 + $0xab0] sm:$0xff] }
  0x6b   : > { %500 = vst [vmem:[%s3639_s30 + $0x560] sm:$0xff] %v499_v44  ;;  %502 = vst [vmem:[%s3639_s30 + $0x568] sm:$0xff] %v501_v45  ;;  %v505_v47 = vld [vmem:[%s3634_s29 + $0xab8] sm:$0xff]  ;;  %v507_v48 = vld [vmem:[%s3634_s29 + $0xb00] sm:$0xff] }
  0x6c   : > { %504 = vst [vmem:[%s3639_s30 + $0x570] sm:$0xff] %v503_v46  ;;  %506 = vst [vmem:[%s3639_s30 + $0x578] sm:$0xff] %v505_v47  ;;  %v509_v49 = vld [vmem:[%s3634_s29 + $0xb08] sm:$0xff]  ;;  %v511_v50 = vld [vmem:[%s3634_s29 + $0xb10] sm:$0xff] }
  0x6d   : > { %508 = vst [vmem:[%s3639_s30 + $0x580] sm:$0xff] %v507_v48  ;;  %v513_v51 = vld [vmem:[%s3634_s29 + $0xb18] sm:$0xff]  ;;  %510 = vst [vmem:[%s3639_s30 + $0x588] sm:$0xff] %v509_v49  ;;  %v515_v52 = vld [vmem:[%s3634_s29 + $0xb20] sm:$0xff] }
  0x6e   : > { %512 = vst [vmem:[%s3639_s30 + $0x590] sm:$0xff] %v511_v50  ;;  %514 = vst [vmem:[%s3639_s30 + $0x598] sm:$0xff] %v513_v51  ;;  %v517_v53 = vld [vmem:[%s3634_s29 + $0xb28] sm:$0xff]  ;;  %v519_v54 = vld [vmem:[%s3634_s29 + $0xb30] sm:$0xff] }
  0x6f   : > { %516 = vst [vmem:[%s3639_s30 + $0x5a0] sm:$0xff] %v515_v52  ;;  %518 = vst [vmem:[%s3639_s30 + $0x5a8] sm:$0xff] %v517_v53  ;;  %v521_v55 = vld [vmem:[%s3634_s29 + $0xb38] sm:$0xff]  ;;  %v523_v56 = vld [vmem:[%s3634_s29 + $0xb80] sm:$0xff] }
  0x70   : > { %520 = vst [vmem:[%s3639_s30 + $0x5b0] sm:$0xff] %v519_v54  ;;  %v525_v57 = vld [vmem:[%s3634_s29 + $0xb88] sm:$0xff]  ;;  %522 = vst [vmem:[%s3639_s30 + $0x5b8] sm:$0xff] %v521_v55  ;;  %v527_v58 = vld [vmem:[%s3634_s29 + $0xb90] sm:$0xff] }
  0x71   : > { %524 = vst [vmem:[%s3639_s30 + $0x5c0] sm:$0xff] %v523_v56  ;;  %526 = vst [vmem:[%s3639_s30 + $0x5c8] sm:$0xff] %v525_v57  ;;  %v529_v59 = vld [vmem:[%s3634_s29 + $0xb98] sm:$0xff]  ;;  %v531_v60 = vld [vmem:[%s3634_s29 + $0xba0] sm:$0xff] }
  0x72   : > { %528 = vst [vmem:[%s3639_s30 + $0x5d0] sm:$0xff] %v527_v58  ;;  %530 = vst [vmem:[%s3639_s30 + $0x5d8] sm:$0xff] %v529_v59  ;;  %v533_v61 = vld [vmem:[%s3634_s29 + $0xba8] sm:$0xff]  ;;  %v535_v62 = vld [vmem:[%s3634_s29 + $0xbb0] sm:$0xff] }
  0x73   : > { %532 = vst [vmem:[%s3639_s30 + $0x5e0] sm:$0xff] %v531_v60  ;;  %v537_v63 = vld [vmem:[%s3634_s29 + $0xbb8] sm:$0xff]  ;;  %534 = vst [vmem:[%s3639_s30 + $0x5e8] sm:$0xff] %v533_v61  ;;  %v539_v0 = vld [vmem:[%s3634_s29 + $0xc00] sm:$0xff] }
  0x74   : > { %536 = vst [vmem:[%s3639_s30 + $0x5f0] sm:$0xff] %v535_v62  ;;  %538 = vst [vmem:[%s3639_s30 + $0x5f8] sm:$0xff] %v537_v63  ;;  %v541_v1 = vld [vmem:[%s3634_s29 + $0xc08] sm:$0xff]  ;;  %v543_v2 = vld [vmem:[%s3634_s29 + $0xc10] sm:$0xff] }
  0x75   : > { %540 = vst [vmem:[%s3639_s30 + $0x600] sm:$0xff] %v539_v0  ;;  %542 = vst [vmem:[%s3639_s30 + $0x608] sm:$0xff] %v541_v1  ;;  %v545_v3 = vld [vmem:[%s3634_s29 + $0xc18] sm:$0xff]  ;;  %v547_v4 = vld [vmem:[%s3634_s29 + $0xc20] sm:$0xff] }
  0x76   : > { %544 = vst [vmem:[%s3639_s30 + $0x610] sm:$0xff] %v543_v2  ;;  %v549_v5 = vld [vmem:[%s3634_s29 + $0xc28] sm:$0xff]  ;;  %546 = vst [vmem:[%s3639_s30 + $0x618] sm:$0xff] %v545_v3  ;;  %v551_v6 = vld [vmem:[%s3634_s29 + $0xc30] sm:$0xff] }
  0x77   : > { %548 = vst [vmem:[%s3639_s30 + $0x620] sm:$0xff] %v547_v4  ;;  %550 = vst [vmem:[%s3639_s30 + $0x628] sm:$0xff] %v549_v5  ;;  %v553_v7 = vld [vmem:[%s3634_s29 + $0xc38] sm:$0xff]  ;;  %v555_v8 = vld [vmem:[%s3634_s29 + $0xc80] sm:$0xff] }
  0x78   : > { %552 = vst [vmem:[%s3639_s30 + $0x630] sm:$0xff] %v551_v6  ;;  %554 = vst [vmem:[%s3639_s30 + $0x638] sm:$0xff] %v553_v7  ;;  %v557_v9 = vld [vmem:[%s3634_s29 + $0xc88] sm:$0xff]  ;;  %v559_v10 = vld [vmem:[%s3634_s29 + $0xc90] sm:$0xff] }
  0x79   : > { %556 = vst [vmem:[%s3639_s30 + $0x640] sm:$0xff] %v555_v8  ;;  %v561_v11 = vld [vmem:[%s3634_s29 + $0xc98] sm:$0xff]  ;;  %558 = vst [vmem:[%s3639_s30 + $0x648] sm:$0xff] %v557_v9  ;;  %v563_v12 = vld [vmem:[%s3634_s29 + $0xca0] sm:$0xff] }
  0x7a   : > { %560 = vst [vmem:[%s3639_s30 + $0x650] sm:$0xff] %v559_v10  ;;  %562 = vst [vmem:[%s3639_s30 + $0x658] sm:$0xff] %v561_v11  ;;  %v565_v13 = vld [vmem:[%s3634_s29 + $0xca8] sm:$0xff]  ;;  %v567_v14 = vld [vmem:[%s3634_s29 + $0xcb0] sm:$0xff] }
  0x7b   : > { %564 = vst [vmem:[%s3639_s30 + $0x660] sm:$0xff] %v563_v12  ;;  %566 = vst [vmem:[%s3639_s30 + $0x668] sm:$0xff] %v565_v13  ;;  %v569_v15 = vld [vmem:[%s3634_s29 + $0xcb8] sm:$0xff]  ;;  %v571_v16 = vld [vmem:[%s3634_s29 + $0xd00] sm:$0xff] }
  0x7c   : > { %568 = vst [vmem:[%s3639_s30 + $0x670] sm:$0xff] %v567_v14  ;;  %v573_v17 = vld [vmem:[%s3634_s29 + $0xd08] sm:$0xff]  ;;  %570 = vst [vmem:[%s3639_s30 + $0x678] sm:$0xff] %v569_v15  ;;  %v575_v18 = vld [vmem:[%s3634_s29 + $0xd10] sm:$0xff] }
  0x7d   : > { %572 = vst [vmem:[%s3639_s30 + $0x680] sm:$0xff] %v571_v16  ;;  %574 = vst [vmem:[%s3639_s30 + $0x688] sm:$0xff] %v573_v17  ;;  %v577_v19 = vld [vmem:[%s3634_s29 + $0xd18] sm:$0xff]  ;;  %v579_v20 = vld [vmem:[%s3634_s29 + $0xd20] sm:$0xff] }
  0x7e   : > { %576 = vst [vmem:[%s3639_s30 + $0x690] sm:$0xff] %v575_v18  ;;  %578 = vst [vmem:[%s3639_s30 + $0x698] sm:$0xff] %v577_v19  ;;  %v581_v21 = vld [vmem:[%s3634_s29 + $0xd28] sm:$0xff]  ;;  %v583_v22 = vld [vmem:[%s3634_s29 + $0xd30] sm:$0xff] }
  0x7f   : > { %580 = vst [vmem:[%s3639_s30 + $0x6a0] sm:$0xff] %v579_v20  ;;  %v585_v23 = vld [vmem:[%s3634_s29 + $0xd38] sm:$0xff]  ;;  %582 = vst [vmem:[%s3639_s30 + $0x6a8] sm:$0xff] %v581_v21  ;;  %v587_v24 = vld [vmem:[%s3634_s29 + $0xd80] sm:$0xff] }
  0x80   : > { %584 = vst [vmem:[%s3639_s30 + $0x6b0] sm:$0xff] %v583_v22  ;;  %586 = vst [vmem:[%s3639_s30 + $0x6b8] sm:$0xff] %v585_v23  ;;  %v589_v25 = vld [vmem:[%s3634_s29 + $0xd88] sm:$0xff]  ;;  %v591_v26 = vld [vmem:[%s3634_s29 + $0xd90] sm:$0xff] }
  0x81   : > { %588 = vst [vmem:[%s3639_s30 + $0x6c0] sm:$0xff] %v587_v24  ;;  %590 = vst [vmem:[%s3639_s30 + $0x6c8] sm:$0xff] %v589_v25  ;;  %v593_v27 = vld [vmem:[%s3634_s29 + $0xd98] sm:$0xff]  ;;  %v595_v28 = vld [vmem:[%s3634_s29 + $0xda0] sm:$0xff] }
  0x82   : > { %592 = vst [vmem:[%s3639_s30 + $0x6d0] sm:$0xff] %v591_v26  ;;  %v597_v29 = vld [vmem:[%s3634_s29 + $0xda8] sm:$0xff]  ;;  %594 = vst [vmem:[%s3639_s30 + $0x6d8] sm:$0xff] %v593_v27  ;;  %v599_v30 = vld [vmem:[%s3634_s29 + $0xdb0] sm:$0xff] }
  0x83   : > { %596 = vst [vmem:[%s3639_s30 + $0x6e0] sm:$0xff] %v595_v28  ;;  %598 = vst [vmem:[%s3639_s30 + $0x6e8] sm:$0xff] %v597_v29  ;;  %v601_v31 = vld [vmem:[%s3634_s29 + $0xdb8] sm:$0xff]  ;;  %v603_v32 = vld [vmem:[%s3634_s29 + $0xe00] sm:$0xff] }
  0x84   : > { %600 = vst [vmem:[%s3639_s30 + $0x6f0] sm:$0xff] %v599_v30  ;;  %602 = vst [vmem:[%s3639_s30 + $0x6f8] sm:$0xff] %v601_v31  ;;  %v605_v33 = vld [vmem:[%s3634_s29 + $0xe08] sm:$0xff]  ;;  %v607_v34 = vld [vmem:[%s3634_s29 + $0xe10] sm:$0xff] }
  0x85   : > { %604 = vst [vmem:[%s3639_s30 + $0x700] sm:$0xff] %v603_v32  ;;  %v609_v35 = vld [vmem:[%s3634_s29 + $0xe18] sm:$0xff]  ;;  %606 = vst [vmem:[%s3639_s30 + $0x708] sm:$0xff] %v605_v33  ;;  %v611_v36 = vld [vmem:[%s3634_s29 + $0xe20] sm:$0xff] }
  0x86   : > { %608 = vst [vmem:[%s3639_s30 + $0x710] sm:$0xff] %v607_v34  ;;  %610 = vst [vmem:[%s3639_s30 + $0x718] sm:$0xff] %v609_v35  ;;  %v613_v37 = vld [vmem:[%s3634_s29 + $0xe28] sm:$0xff]  ;;  %v615_v38 = vld [vmem:[%s3634_s29 + $0xe30] sm:$0xff] }
  0x87   : > { %612 = vst [vmem:[%s3639_s30 + $0x720] sm:$0xff] %v611_v36  ;;  %614 = vst [vmem:[%s3639_s30 + $0x728] sm:$0xff] %v613_v37  ;;  %v617_v39 = vld [vmem:[%s3634_s29 + $0xe38] sm:$0xff]  ;;  %v619_v40 = vld [vmem:[%s3634_s29 + $0xe80] sm:$0xff] }
  0x88   : > { %616 = vst [vmem:[%s3639_s30 + $0x730] sm:$0xff] %v615_v38  ;;  %v621_v41 = vld [vmem:[%s3634_s29 + $0xe88] sm:$0xff]  ;;  %618 = vst [vmem:[%s3639_s30 + $0x738] sm:$0xff] %v617_v39  ;;  %v623_v42 = vld [vmem:[%s3634_s29 + $0xe90] sm:$0xff] }
  0x89   : > { %620 = vst [vmem:[%s3639_s30 + $0x740] sm:$0xff] %v619_v40  ;;  %622 = vst [vmem:[%s3639_s30 + $0x748] sm:$0xff] %v621_v41  ;;  %v625_v43 = vld [vmem:[%s3634_s29 + $0xe98] sm:$0xff]  ;;  %v627_v44 = vld [vmem:[%s3634_s29 + $0xea0] sm:$0xff] }
  0x8a   : > { %624 = vst [vmem:[%s3639_s30 + $0x750] sm:$0xff] %v623_v42  ;;  %626 = vst [vmem:[%s3639_s30 + $0x758] sm:$0xff] %v625_v43  ;;  %v629_v45 = vld [vmem:[%s3634_s29 + $0xea8] sm:$0xff]  ;;  %v631_v46 = vld [vmem:[%s3634_s29 + $0xeb0] sm:$0xff] }
  0x8b   : > { %628 = vst [vmem:[%s3639_s30 + $0x760] sm:$0xff] %v627_v44  ;;  %v633_v47 = vld [vmem:[%s3634_s29 + $0xeb8] sm:$0xff]  ;;  %630 = vst [vmem:[%s3639_s30 + $0x768] sm:$0xff] %v629_v45  ;;  %v635_v48 = vld [vmem:[%s3634_s29 + $0xf00] sm:$0xff] }
  0x8c   : > { %632 = vst [vmem:[%s3639_s30 + $0x770] sm:$0xff] %v631_v46  ;;  %634 = vst [vmem:[%s3639_s30 + $0x778] sm:$0xff] %v633_v47  ;;  %v637_v49 = vld [vmem:[%s3634_s29 + $0xf08] sm:$0xff]  ;;  %v639_v50 = vld [vmem:[%s3634_s29 + $0xf10] sm:$0xff] }
  0x8d   : > { %636 = vst [vmem:[%s3639_s30 + $0x780] sm:$0xff] %v635_v48  ;;  %638 = vst [vmem:[%s3639_s30 + $0x788] sm:$0xff] %v637_v49  ;;  %v641_v51 = vld [vmem:[%s3634_s29 + $0xf18] sm:$0xff]  ;;  %v643_v52 = vld [vmem:[%s3634_s29 + $0xf20] sm:$0xff] }
  0x8e   : > { %640 = vst [vmem:[%s3639_s30 + $0x790] sm:$0xff] %v639_v50  ;;  %v645_v53 = vld [vmem:[%s3634_s29 + $0xf28] sm:$0xff]  ;;  %642 = vst [vmem:[%s3639_s30 + $0x798] sm:$0xff] %v641_v51  ;;  %v647_v54 = vld [vmem:[%s3634_s29 + $0xf30] sm:$0xff] }
  0x8f   : > { %644 = vst [vmem:[%s3639_s30 + $0x7a0] sm:$0xff] %v643_v52  ;;  %646 = vst [vmem:[%s3639_s30 + $0x7a8] sm:$0xff] %v645_v53  ;;  %v649_v55 = vld [vmem:[%s3634_s29 + $0xf38] sm:$0xff]  ;;  %v651_v56 = vld [vmem:[%s3634_s29 + $0xf80] sm:$0xff] }
  0x90   : > { %648 = vst [vmem:[%s3639_s30 + $0x7b0] sm:$0xff] %v647_v54  ;;  %650 = vst [vmem:[%s3639_s30 + $0x7b8] sm:$0xff] %v649_v55  ;;  %v653_v57 = vld [vmem:[%s3634_s29 + $0xf88] sm:$0xff]  ;;  %v655_v58 = vld [vmem:[%s3634_s29 + $0xf90] sm:$0xff] }
  0x91   : > { %652 = vst [vmem:[%s3639_s30 + $0x7c0] sm:$0xff] %v651_v56  ;;  %v657_v59 = vld [vmem:[%s3634_s29 + $0xf98] sm:$0xff]  ;;  %654 = vst [vmem:[%s3639_s30 + $0x7c8] sm:$0xff] %v653_v57  ;;  %v659_v60 = vld [vmem:[%s3634_s29 + $0xfa0] sm:$0xff] }
  0x92   : > { %656 = vst [vmem:[%s3639_s30 + $0x7d0] sm:$0xff] %v655_v58  ;;  %658 = vst [vmem:[%s3639_s30 + $0x7d8] sm:$0xff] %v657_v59  ;;  %v661_v61 = vld [vmem:[%s3634_s29 + $0xfa8] sm:$0xff]  ;;  %v663_v62 = vld [vmem:[%s3634_s29 + $0xfb0] sm:$0xff] }
  0x93   : > { %660 = vst [vmem:[%s3639_s30 + $0x7e0] sm:$0xff] %v659_v60  ;;  %662 = vst [vmem:[%s3639_s30 + $0x7e8] sm:$0xff] %v661_v61  ;;  %v665_v63 = vld [vmem:[%s3634_s29 + $0xfb8] sm:$0xff] }
  0x94   : > { %664 = vst [vmem:[%s3639_s30 + $0x7f0] sm:$0xff] %v663_v62  ;;  %666 = vst [vmem:[%s3639_s30 + $0x7f8] sm:$0xff] %v665_v63 }
  0x95 PF: > { %p3017_p10 = scmp.ge.s32.totalorder %s3553_s15, 1  ;;  %p679_p11 = scmp.lt.s32.totalorder %s3553_s15, 3 }
  0x97   : > { %p680_p12 = pnand %p3017_p10, %p679_p11 }
  0x98   : > { %s4153_s4 = sand.u32 (!%p680_p12), 1, %s3545_s13   ;;  %s3020_s19 = sshll.u32 (!%p680_p12), %s3600_s16, 4 }
  0x99   : > { %683 = sbr.rel (%p680_p12) target bundleno = 668 (0x29c), region = 51  ;;  %s3018_s7 = sshll.u32 (!%p680_p12), %s4153_s4, 11 }
  0x9a   : > { %s4163_s8 = scalar_lea.vmem (!%p680_p12), [#allocation2], %s3018_s7  ;;  %p4434_p13 = scmp.lt.s32.totalorder (!%p680_p12), %s3020_s19, 31 }
  0x9b   : > { %s3019_s29 = sshll.u32 (!%p680_p12), %s4153_s4, 8  ;;  %s3317_s5 = sshll.u32 (!%p680_p12), %s3600_s16, 11 }
  0x9c   : > { %s4476_s30 = scalar_lea.vmem (!%p680_p12), [#allocation3], %s3019_s29  ;;  %s4554_s9 = scalar_lea.hbm (!%p680_p12), %s4606_s3, %s3317_s5 }
  0x9d   : > { %s2934_s6 = sshll.u32 (!%p680_p12), %s4476_s30, 4  ;;  %s2921_s16 = scalar_lea.sflag (!%p680_p12), [#allocation4], %s4153_s4  ;;  %s4557_s6 = int_to_ptr.vmem [resolvable:$true] %s2934_s6 }
  0x9e   : > { %v4158_v0 = vld [vmem:[%s4603_s0 + $0x4] ss:$8 sps:$4 sm:$0xff]   ;;  %s4615_s19 = smov (!%p4434_p13, %s3020_s19), 31  ;;  %s3493_s10 = scalar_lea.vmem %s4557_s6, 4096 }
  0x9f   : > { %2384 = vmatprep.mubr.bf16.mxu0 %v4158_v0  ;;  %2427 = vmatprep.mubr.bf16.mxu1 %v4158_v0  ;;  %v834_v1 = vld [vmem:[%s4163_s8 + $0x380] sm:$0xff]  ;;  %v835_v3 = vld [vmem:[%s4163_s8 + $0x388] sm:$0xff]  ;;  %s4451_s26 = scalar_lea.vmem %s4605_s2, %s4615_s19  ;;  %p3494_p0 = scmp.ne.s32.totalorder %s4557_s6, %s3493_s10 }
  0xa0   : > { %v842_v2 = vld [vmem:[%s4163_s8 + $0x3c0] sm:$0xff]  ;;  %v843_v5 = vld [vmem:[%s4163_s8 + $0x3c8] sm:$0xff]  ;;  %s3555_s11 = smov [#allocation3]  }
  0xa1   : > { %v3136_v4 = vcombine.high %v834_v1, %v842_v2  ;;  %v3135_v6 = vcombine.low %v834_v1, %v842_v2  ;;  %v818_v7 = vld [vmem:[%s4163_s8 + $0x300] sm:$0xff]  ;;  %v3138_v9 = vcombine.high %v835_v3, %v843_v5  ;;  %v3137_v10 = vcombine.low %v835_v3, %v843_v5  ;;  %v819_v12 = vld [vmem:[%s4163_s8 + $0x308] sm:$0xff]  ;;  %p3495_p1 = pnand %p3494_p0, %p3618_p6  ;;  %s3497_s17 = sshll.u32 %s3555_s11, 4  ;;  %s3498_s17 = int_to_ptr.vmem [resolvable:$false] %s3497_s17 }
  0xa2   : > { %v826_v8 = vld [vmem:[%s4163_s8 + $0x340] sm:$0xff]  ;;  %v827_v13 = vld [vmem:[%s4163_s8 + $0x348] sm:$0xff]  ;;  %s3499_s19 = scalar_lea.vmem %s3498_s17, 8192  ;;  %p3500_p3 = scmp.lt.s32.totalorder %s4557_s6, %s3498_s17 }
  0xa3   : > { %v3120_v11 = vcombine.high %v818_v7, %v826_v8  ;;  %v802_v14 = vld [vmem:[%s4163_s8 + $0x280] sm:$0xff]  ;;  %2352 = vmatprep.subr.bf16.mxu0 %v3136_v4  ;;  %v3122_v15 = vcombine.high %v819_v12, %v827_v13  ;;  %v803_v17 = vld [vmem:[%s4163_s8 + $0x288] sm:$0xff]  ;;  %2395 = vmatprep.subr.bf16.mxu1 %v3138_v9  ;;  %v3119_v19 = vcombine.low %v818_v7, %v826_v8  ;;  %p3496_p2 = pneg %p3495_p1  ;;  %p3501_p4 = scmp.lt.s32.totalorder %s3499_s19, %s3493_s10 }
  0xa4   : > { %v810_v16 = vld [vmem:[%s4163_s8 + $0x2c0] sm:$0xff]  ;;  %v811_v18 = vld [vmem:[%s4163_s8 + $0x2c8] sm:$0xff]  ;;  %2353 = vmatpush1.bf16.msra.mxu0 %v3135_v6  ;;  %2396 = vmatpush1.bf16.msra.mxu1 %v3137_v10  ;;  %v3121_v20 = vcombine.low %v819_v12, %v827_v13 }
  0xa5   : > { %2354 = vmatprep.subr.bf16.mxu0 %v3120_v11  ;;  %v3104_v21 = vcombine.high %v802_v14, %v810_v16  ;;  %2397 = vmatprep.subr.bf16.mxu1 %v3122_v15  ;;  %v3106_v22 = vcombine.high %v803_v17, %v811_v18  ;;  %v786_v23 = vld [vmem:[%s4163_s8 + $0x200] sm:$0xff]  ;;  %v787_v25 = vld [vmem:[%s4163_s8 + $0x208] sm:$0xff]  ;;  %v3103_v27 = vcombine.low %v802_v14, %v810_v16  ;;  %p3502_p5 = por %p3501_p4, %p3500_p3 }
  0xa6   : > { %v794_v24 = vld [vmem:[%s4163_s8 + $0x240] sm:$0xff]  ;;  %v795_v26 = vld [vmem:[%s4163_s8 + $0x248] sm:$0xff]  ;;  %v3105_v28 = vcombine.low %v803_v17, %v811_v18 }
  0xa7   : > { %v3088_v29 = vcombine.high %v786_v23, %v794_v24  ;;  %v3090_v30 = vcombine.high %v787_v25, %v795_v26  ;;  %v770_v31 = vld [vmem:[%s4163_s8 + $0x180] sm:$0xff]  ;;  %v771_v33 = vld [vmem:[%s4163_s8 + $0x188] sm:$0xff]  ;;  %v3087_v35 = vcombine.low %v786_v23, %v794_v24  ;;  %v3089_v36 = vcombine.low %v787_v25, %v795_v26  ;;  %p3503_p7 = pnand %p3502_p5, %p3496_p2 }
  0xa8   : > { %2355 = vmatpush1.bf16.msra.mxu0 %v3119_v19  ;;  %2398 = vmatpush1.bf16.msra.mxu1 %v3121_v20  ;;  %v778_v32 = vld [vmem:[%s4163_s8 + $0x1c0] sm:$0xff]  ;;  %v779_v34 = vld [vmem:[%s4163_s8 + $0x1c8] sm:$0xff] }
  0xa9   : > { %2356 = vmatprep.subr.bf16.mxu0 %v3104_v21  ;;  %2399 = vmatprep.subr.bf16.mxu1 %v3106_v22  ;;  %v3072_v37 = vcombine.high %v770_v31, %v778_v32  ;;  %v3074_v38 = vcombine.high %v771_v33, %v779_v34  ;;  %v754_v39 = vld [vmem:[%s4163_s8 + $0x100] sm:$0xff]  ;;  %v755_v41 = vld [vmem:[%s4163_s8 + $0x108] sm:$0xff]  ;;  %v3071_v43 = vcombine.low %v770_v31, %v778_v32 }
  0xaa   : > { %v762_v40 = vld [vmem:[%s4163_s8 + $0x140] sm:$0xff]  ;;  %v763_v42 = vld [vmem:[%s4163_s8 + $0x148] sm:$0xff]  ;;  %v3073_v44 = vcombine.low %v771_v33, %v779_v34 }
  0xab   : > { %v3056_v45 = vcombine.high %v754_v39, %v762_v40  ;;  %v3058_v46 = vcombine.high %v755_v41, %v763_v42  ;;  %v738_v47 = vld [vmem:[%s4163_s8 + $0x80] sm:$0xff]  ;;  %v739_v49 = vld [vmem:[%s4163_s8 + $0x88] sm:$0xff]  ;;  %v3055_v51 = vcombine.low %v754_v39, %v762_v40  ;;  %v3057_v52 = vcombine.low %v755_v41, %v763_v42 }
  0xac   : > { %2357 = vmatpush1.bf16.msra.mxu0 %v3103_v27  ;;  %2400 = vmatpush1.bf16.msra.mxu1 %v3105_v28  ;;  %v746_v48 = vld [vmem:[%s4163_s8 + $0xc0] sm:$0xff]  ;;  %v747_v50 = vld [vmem:[%s4163_s8 + $0xc8] sm:$0xff] }
  0xad   : > { %2358 = vmatprep.subr.bf16.mxu0 %v3088_v29  ;;  %2401 = vmatprep.subr.bf16.mxu1 %v3090_v30  ;;  %v3040_v53 = vcombine.high %v738_v47, %v746_v48  ;;  %v3042_v54 = vcombine.high %v739_v49, %v747_v50  ;;  %v722_v55 = vld [vmem:[%s4163_s8] sm:$0xff]  ;;  %v723_v57 = vld [vmem:[%s4163_s8 + $0x8] sm:$0xff]  ;;  %v3039_v59 = vcombine.low %v738_v47, %v746_v48 }
  0xae   : > { %v730_v56 = vld [vmem:[%s4163_s8 + $0x40] sm:$0xff]  ;;  %v731_v58 = vld [vmem:[%s4163_s8 + $0x48] sm:$0xff]  ;;  %v3041_v60 = vcombine.low %v739_v49, %v747_v50 }
  0xaf   : > { %v3024_v61 = vcombine.high %v722_v55, %v730_v56  ;;  %v3026_v62 = vcombine.high %v723_v57, %v731_v58  ;;  %v962_v63 = vld [vmem:[%s4163_s8 + $0x780] sm:$0xff]  ;;  %v963_v2 = vld [vmem:[%s4163_s8 + $0x788] sm:$0xff]  ;;  %v3023_v4 = vcombine.low %v722_v55, %v730_v56  ;;  %v3025_v5 = vcombine.low %v723_v57, %v731_v58 }
  0xb0   : > { %2359 = vmatpush1.bf16.msra.mxu0 %v3087_v35  ;;  %2402 = vmatpush1.bf16.msra.mxu1 %v3089_v36  ;;  %v970_v1 = vld [vmem:[%s4163_s8 + $0x7c0] sm:$0xff]  ;;  %v971_v3 = vld [vmem:[%s4163_s8 + $0x7c8] sm:$0xff] }
  0xb1   : > { %2360 = vmatprep.subr.bf16.mxu0 %v3072_v37  ;;  %2403 = vmatprep.subr.bf16.mxu1 %v3074_v38  ;;  %v3264_v6 = vcombine.high %v962_v63, %v970_v1  ;;  %v3266_v7 = vcombine.high %v963_v2, %v971_v3  ;;  %v946_v8 = vld [vmem:[%s4163_s8 + $0x700] sm:$0xff]  ;;  %v947_v10 = vld [vmem:[%s4163_s8 + $0x708] sm:$0xff]  ;;  %v3263_v12 = vcombine.low %v962_v63, %v970_v1  ;;  %v836_v1 = vld [vmem:[%s4163_s8 + $0x390] sm:$0xff] }
  0xb2   : > { %v954_v9 = vld [vmem:[%s4163_s8 + $0x740] sm:$0xff]  ;;  %v955_v11 = vld [vmem:[%s4163_s8 + $0x748] sm:$0xff]  ;;  %v3265_v13 = vcombine.low %v963_v2, %v971_v3  ;;  %v844_v2 = vld [vmem:[%s4163_s8 + $0x3d0] sm:$0xff] }
  0xb3   : > { %v3248_v14 = vcombine.high %v946_v8, %v954_v9  ;;  %v3250_v15 = vcombine.high %v947_v10, %v955_v11  ;;  %v930_v16 = vld [vmem:[%s4163_s8 + $0x680] sm:$0xff]  ;;  %v931_v18 = vld [vmem:[%s4163_s8 + $0x688] sm:$0xff]  ;;  %v3247_v20 = vcombine.low %v946_v8, %v954_v9  ;;  %v3249_v21 = vcombine.low %v947_v10, %v955_v11  ;;  %v837_v3 = vld [vmem:[%s4163_s8 + $0x398] sm:$0xff] }
  0xb4   : > { %2361 = vmatpush1.bf16.msra.mxu0 %v3071_v43  ;;  %2404 = vmatpush1.bf16.msra.mxu1 %v3073_v44  ;;  %v938_v17 = vld [vmem:[%s4163_s8 + $0x6c0] sm:$0xff]  ;;  %v939_v19 = vld [vmem:[%s4163_s8 + $0x6c8] sm:$0xff]  ;;  %v820_v9 = vld [vmem:[%s4163_s8 + $0x310] sm:$0xff] }
  0xb5   : > { %2362 = vmatprep.subr.bf16.mxu0 %v3056_v45  ;;  %2405 = vmatprep.subr.bf16.mxu1 %v3058_v46  ;;  %v3232_v22 = vcombine.high %v930_v16, %v938_v17  ;;  %v3234_v23 = vcombine.high %v931_v18, %v939_v19  ;;  %v914_v24 = vld [vmem:[%s4163_s8 + $0x600] sm:$0xff]  ;;  %v915_v26 = vld [vmem:[%s4163_s8 + $0x608] sm:$0xff]  ;;  %v3231_v28 = vcombine.low %v930_v16, %v938_v17  ;;  %v828_v10 = vld [vmem:[%s4163_s8 + $0x350] sm:$0xff] }
  0xb6   : > { %v922_v25 = vld [vmem:[%s4163_s8 + $0x640] sm:$0xff]  ;;  %v923_v27 = vld [vmem:[%s4163_s8 + $0x648] sm:$0xff]  ;;  %v3233_v29 = vcombine.low %v931_v18, %v939_v19  ;;  %v3124_v16 = vcombine.high %v820_v9, %v828_v10  ;;  %v804_v18 = vld [vmem:[%s4163_s8 + $0x290] sm:$0xff] }
  0xb7   : > { %v3216_v30 = vcombine.high %v914_v24, %v922_v25  ;;  %v3218_v31 = vcombine.high %v915_v26, %v923_v27  ;;  %v898_v32 = vld [vmem:[%s4163_s8 + $0x580] sm:$0xff]  ;;  %v899_v34 = vld [vmem:[%s4163_s8 + $0x588] sm:$0xff]  ;;  %v3215_v36 = vcombine.low %v914_v24, %v922_v25  ;;  %v3217_v37 = vcombine.low %v915_v26, %v923_v27  ;;  %v812_v19 = vld [vmem:[%s4163_s8 + $0x2d0] sm:$0xff] }
  0xb8   : > { %2363 = vmatpush1.bf16.msra.mxu0 %v3055_v51  ;;  %2406 = vmatpush1.bf16.msra.mxu1 %v3057_v52  ;;  %v906_v33 = vld [vmem:[%s4163_s8 + $0x5c0] sm:$0xff]  ;;  %v907_v35 = vld [vmem:[%s4163_s8 + $0x5c8] sm:$0xff]  ;;  %v3108_v24 = vcombine.high %v804_v18, %v812_v19  ;;  %v788_v26 = vld [vmem:[%s4163_s8 + $0x210] sm:$0xff] }
  0xb9   : > { %2364 = vmatprep.subr.bf16.mxu0 %v3040_v53  ;;  %2407 = vmatprep.subr.bf16.mxu1 %v3042_v54  ;;  %v3200_v38 = vcombine.high %v898_v32, %v906_v33  ;;  %v3202_v39 = vcombine.high %v899_v34, %v907_v35  ;;  %v882_v40 = vld [vmem:[%s4163_s8 + $0x500] sm:$0xff]  ;;  %v883_v42 = vld [vmem:[%s4163_s8 + $0x508] sm:$0xff]  ;;  %v3199_v44 = vcombine.low %v898_v32, %v906_v33  ;;  %v796_v27 = vld [vmem:[%s4163_s8 + $0x250] sm:$0xff] }
  0xba   : > { %v890_v41 = vld [vmem:[%s4163_s8 + $0x540] sm:$0xff]  ;;  %v891_v43 = vld [vmem:[%s4163_s8 + $0x548] sm:$0xff]  ;;  %v3201_v45 = vcombine.low %v899_v34, %v907_v35  ;;  %v3092_v32 = vcombine.high %v788_v26, %v796_v27  ;;  %v772_v34 = vld [vmem:[%s4163_s8 + $0x190] sm:$0xff] }
  0xbb   : > { %v3184_v46 = vcombine.high %v882_v40, %v890_v41  ;;  %v3186_v47 = vcombine.high %v883_v42, %v891_v43  ;;  %v866_v48 = vld [vmem:[%s4163_s8 + $0x480] sm:$0xff]  ;;  %v867_v50 = vld [vmem:[%s4163_s8 + $0x488] sm:$0xff]  ;;  %v3183_v52 = vcombine.low %v882_v40, %v890_v41  ;;  %v3185_v53 = vcombine.low %v883_v42, %v891_v43  ;;  %v780_v35 = vld [vmem:[%s4163_s8 + $0x1d0] sm:$0xff] }
  0xbc   : > { %2365 = vmatpush1.bf16.msra.mxu0 %v3039_v59  ;;  %2408 = vmatpush1.bf16.msra.mxu1 %v3041_v60  ;;  %v874_v49 = vld [vmem:[%s4163_s8 + $0x4c0] sm:$0xff]  ;;  %v875_v51 = vld [vmem:[%s4163_s8 + $0x4c8] sm:$0xff]  ;;  %v3076_v40 = vcombine.high %v772_v34, %v780_v35  ;;  %v756_v42 = vld [vmem:[%s4163_s8 + $0x110] sm:$0xff] }
  0xbd   : > { %2366 = vmatprep.subr.bf16.mxu0 %v3024_v61  ;;  %2409 = vmatprep.subr.bf16.mxu1 %v3026_v62  ;;  %v3168_v54 = vcombine.high %v866_v48, %v874_v49  ;;  %v3170_v55 = vcombine.high %v867_v50, %v875_v51  ;;  %v850_v56 = vld [vmem:[%s4163_s8 + $0x400] sm:$0xff]  ;;  %v851_v58 = vld [vmem:[%s4163_s8 + $0x408] sm:$0xff]  ;;  %v3167_v60 = vcombine.low %v866_v48, %v874_v49  ;;  %v764_v43 = vld [vmem:[%s4163_s8 + $0x150] sm:$0xff] }
  0xbe   : > { %v858_v57 = vld [vmem:[%s4163_s8 + $0x440] sm:$0xff]  ;;  %v859_v59 = vld [vmem:[%s4163_s8 + $0x448] sm:$0xff]  ;;  %v3169_v61 = vcombine.low %v867_v50, %v875_v51  ;;  %v3060_v48 = vcombine.high %v756_v42, %v764_v43  ;;  %v740_v50 = vld [vmem:[%s4163_s8 + $0x90] sm:$0xff] }
  0xbf   : > { %v3152_v62 = vcombine.high %v850_v56, %v858_v57  ;;  %v3154_v63 = vcombine.high %v851_v58, %v859_v59  ;;  %v4238_v11 = vld [vmem:[%s4603_s0] ss:$8 sps:$4 sm:$0xff]   ;;  %v748_v51 = vld [vmem:[%s4163_s8 + $0xd0] sm:$0xff] }
  0xc0   : > { %2367 = vmatpush1.bf16.msra.mxu0 %v3023_v4  ;;  %2410 = vmatpush1.bf16.msra.mxu1 %v3025_v5  ;;  %v845_v4 = vld [vmem:[%s4163_s8 + $0x3d8] sm:$0xff]  ;;  %v3151_v5 = vcombine.low %v850_v56, %v858_v57  ;;  %v3044_v56 = vcombine.high %v740_v50, %v748_v51 }
  0xc1   : > { %2368 = vmatprep.subr.bf16.mxu0 %v3264_v6  ;;  %2411 = vmatprep.subr.bf16.mxu1 %v3266_v7  ;;  %v3153_v6 = vcombine.low %v851_v58, %v859_v59  ;;  %v3140_v7 = vcombine.high %v836_v1, %v844_v2  ;;  %v3142_v8 = vcombine.high %v837_v3, %v845_v4  ;;  %v724_v58 = vld [vmem:[%s4163_s8 + $0x10] sm:$0xff] }
  0xc2   : > { %v732_v59 = vld [vmem:[%s4163_s8 + $0x50] sm:$0xff] }
  0xc4   : > { %2369 = vmatpush2.bf16.msra.mxu0 %v3263_v12  ;;  %2412 = vmatpush2.bf16.msra.mxu1 %v3265_v13  ;;  %v821_v12 = vld [vmem:[%s4163_s8 + $0x318] sm:$0xff] }
  0xc5   : > { %2370 = vmatprep.subr.bf16.mxu0 %v3248_v14  ;;  %2413 = vmatprep.subr.bf16.mxu1 %v3250_v15  ;;  %v829_v13 = vld [vmem:[%s4163_s8 + $0x358] sm:$0xff]  ;;  %v3139_v14 = vcombine.low %v836_v1, %v844_v2  ;;  %v3141_v15 = vcombine.low %v837_v3, %v845_v4  ;;  %v3028_v1 = vcombine.high %v724_v58, %v732_v59  ;;  %v964_v3 = vld [vmem:[%s4163_s8 + $0x790] sm:$0xff] }
  0xc6   : > { %v3126_v17 = vcombine.high %v821_v12, %v829_v13  ;;  %v972_v4 = vld [vmem:[%s4163_s8 + $0x7d0] sm:$0xff] }
  0xc8   : > { %2371 = vmatpush2.bf16.msra.mxu0 %v3247_v20  ;;  %2414 = vmatpush2.bf16.msra.mxu1 %v3249_v21  ;;  %v805_v20 = vld [vmem:[%s4163_s8 + $0x298] sm:$0xff] }
  0xc9   : > { %2372 = vmatprep.subr.bf16.mxu0 %v3232_v22  ;;  %2415 = vmatprep.subr.bf16.mxu1 %v3234_v23  ;;  %v813_v21 = vld [vmem:[%s4163_s8 + $0x2d8] sm:$0xff]  ;;  %v3123_v22 = vcombine.low %v820_v9, %v828_v10  ;;  %v3125_v23 = vcombine.low %v821_v12, %v829_v13  ;;  %v3268_v9 = vcombine.high %v964_v3, %v972_v4  ;;  %v948_v12 = vld [vmem:[%s4163_s8 + $0x710] sm:$0xff] }
  0xca   : > { %v3110_v25 = vcombine.high %v805_v20, %v813_v21  ;;  %v956_v13 = vld [vmem:[%s4163_s8 + $0x750] sm:$0xff] }
  0xcc   : > { %2373 = vmatpush2.bf16.msra.mxu0 %v3231_v28  ;;  %2416 = vmatpush2.bf16.msra.mxu1 %v3233_v29  ;;  %v789_v28 = vld [vmem:[%s4163_s8 + $0x218] sm:$0xff] }
  0xcd   : > { %2374 = vmatprep.subr.bf16.mxu0 %v3216_v30  ;;  %2417 = vmatprep.subr.bf16.mxu1 %v3218_v31  ;;  %v797_v29 = vld [vmem:[%s4163_s8 + $0x258] sm:$0xff]  ;;  %v3107_v30 = vcombine.low %v804_v18, %v812_v19  ;;  %v3109_v31 = vcombine.low %v805_v20, %v813_v21  ;;  %v3252_v18 = vcombine.high %v948_v12, %v956_v13  ;;  %v932_v20 = vld [vmem:[%s4163_s8 + $0x690] sm:$0xff] }
  0xce   : > { %v3094_v33 = vcombine.high %v789_v28, %v797_v29  ;;  %v940_v21 = vld [vmem:[%s4163_s8 + $0x6d0] sm:$0xff] }
  0xd0   : > { %2375 = vmatpush2.bf16.msra.mxu0 %v3215_v36  ;;  %2418 = vmatpush2.bf16.msra.mxu1 %v3217_v37  ;;  %v773_v36 = vld [vmem:[%s4163_s8 + $0x198] sm:$0xff] }
  0xd1   : > { %2376 = vmatprep.subr.bf16.mxu0 %v3200_v38  ;;  %2419 = vmatprep.subr.bf16.mxu1 %v3202_v39  ;;  %v781_v37 = vld [vmem:[%s4163_s8 + $0x1d8] sm:$0xff]  ;;  %v3091_v38 = vcombine.low %v788_v26, %v796_v27  ;;  %v3093_v39 = vcombine.low %v789_v28, %v797_v29  ;;  %v3236_v26 = vcombine.high %v932_v20, %v940_v21  ;;  %v916_v28 = vld [vmem:[%s4163_s8 + $0x610] sm:$0xff] }
  0xd2   : > { %v3078_v41 = vcombine.high %v773_v36, %v781_v37  ;;  %v924_v29 = vld [vmem:[%s4163_s8 + $0x650] sm:$0xff] }
  0xd4   : > { %2377 = vmatpush2.bf16.msra.mxu0 %v3199_v44  ;;  %2420 = vmatpush2.bf16.msra.mxu1 %v3201_v45  ;;  %v757_v44 = vld [vmem:[%s4163_s8 + $0x118] sm:$0xff] }
  0xd5   : > { %2378 = vmatprep.subr.bf16.mxu0 %v3184_v46  ;;  %2421 = vmatprep.subr.bf16.mxu1 %v3186_v47  ;;  %v765_v45 = vld [vmem:[%s4163_s8 + $0x158] sm:$0xff]  ;;  %v3075_v46 = vcombine.low %v772_v34, %v780_v35  ;;  %v3077_v47 = vcombine.low %v773_v36, %v781_v37  ;;  %v3220_v34 = vcombine.high %v916_v28, %v924_v29  ;;  %v900_v36 = vld [vmem:[%s4163_s8 + $0x590] sm:$0xff] }
  0xd6   : > { %v3062_v49 = vcombine.high %v757_v44, %v765_v45  ;;  %v908_v37 = vld [vmem:[%s4163_s8 + $0x5d0] sm:$0xff] }
  0xd8   : > { %2379 = vmatpush2.bf16.msra.mxu0 %v3183_v52  ;;  %2422 = vmatpush2.bf16.msra.mxu1 %v3185_v53  ;;  %v741_v52 = vld [vmem:[%s4163_s8 + $0x98] sm:$0xff] }
  0xd9   : > { %2380 = vmatprep.subr.bf16.mxu0 %v3168_v54  ;;  %2423 = vmatprep.subr.bf16.mxu1 %v3170_v55  ;;  %v749_v53 = vld [vmem:[%s4163_s8 + $0xd8] sm:$0xff]  ;;  %v3059_v54 = vcombine.low %v756_v42, %v764_v43  ;;  %v3061_v55 = vcombine.low %v757_v44, %v765_v45  ;;  %v3204_v42 = vcombine.high %v900_v36, %v908_v37  ;;  %v884_v44 = vld [vmem:[%s4163_s8 + $0x510] sm:$0xff] }
  0xda   : > { %v3046_v57 = vcombine.high %v741_v52, %v749_v53  ;;  %v892_v45 = vld [vmem:[%s4163_s8 + $0x550] sm:$0xff] }
  0xdc   : > { %2381 = vmatpush2.bf16.msra.mxu0 %v3167_v60  ;;  %2424 = vmatpush2.bf16.msra.mxu1 %v3169_v61  ;;  %v725_v60 = vld [vmem:[%s4163_s8 + $0x18] sm:$0xff] }
  0xdd   : > { %2382 = vmatprep.subr.bf16.mxu0 %v3152_v62  ;;  %2425 = vmatprep.subr.bf16.mxu1 %v3154_v63  ;;  %v733_v61 = vld [vmem:[%s4163_s8 + $0x58] sm:$0xff]  ;;  %v3043_v62 = vcombine.low %v740_v50, %v748_v51  ;;  %v3045_v63 = vcombine.low %v741_v52, %v749_v53  ;;  %v3188_v50 = vcombine.high %v884_v44, %v892_v45  ;;  %v868_v52 = vld [vmem:[%s4163_s8 + $0x490] sm:$0xff] }
  0xde   : > { %v3030_v2 = vcombine.high %v725_v60, %v733_v61  ;;  %v876_v53 = vld [vmem:[%s4163_s8 + $0x4d0] sm:$0xff] }
  0xe0   : > { %2383 = vmatpush2.bf16.msra.mxu0 %v3151_v5  ;;  %2426 = vmatpush2.bf16.msra.mxu1 %v3153_v6  ;;  %v965_v5 = vld [vmem:[%s4163_s8 + $0x798] sm:$0xff] }
  0xe1   : > { %2438 = vmatprep.subr.bf16.mxu0 %v3140_v7  ;;  %2481 = vmatprep.subr.bf16.mxu1 %v3142_v8  ;;  %v973_v6 = vld [vmem:[%s4163_s8 + $0x7d8] sm:$0xff]  ;;  %v3027_v7 = vcombine.low %v724_v58, %v732_v59  ;;  %v3029_v8 = vcombine.low %v725_v60, %v733_v61  ;;  %v3172_v58 = vcombine.high %v868_v52, %v876_v53  ;;  %v852_v60 = vld [vmem:[%s4163_s8 + $0x410] sm:$0xff] }
  0xe2   : > { %v3270_v10 = vcombine.high %v965_v5, %v973_v6  ;;  %v860_v61 = vld [vmem:[%s4163_s8 + $0x450] sm:$0xff] }
  0xe3   : > { %2385 = vmatmul.mubr.bf16.vlgmr.msra.gmra.mxu0 %v4238_v11  ;;  %2428 = vmatmul.mubr.bf16.vlgmr.msra.gmra.mxu1 %v4238_v11 }
  0xe4   : > { %2439 = vmatpush1.bf16.msra.mxu0 %v3139_v14  ;;  %2482 = vmatpush1.bf16.msra.mxu1 %v3141_v15  ;;  %v949_v14 = vld [vmem:[%s4163_s8 + $0x718] sm:$0xff] }
  0xe5   : > { %2440 = vmatprep.subr.bf16.mxu0 %v3124_v16  ;;  %2483 = vmatprep.subr.bf16.mxu1 %v3126_v17  ;;  %v957_v15 = vld [vmem:[%s4163_s8 + $0x758] sm:$0xff]  ;;  %v3267_v16 = vcombine.low %v964_v3, %v972_v4  ;;  %v3269_v17 = vcombine.low %v965_v5, %v973_v6  ;;  %v3156_v3 = vcombine.high %v852_v60, %v860_v61  ;;  %v838_v5 = vld [vmem:[%s4163_s8 + $0x3a0] sm:$0xff] }
  0xe6   : > { %2470 = vmatprep.mubr.bf16.mxu0 %v4158_v0  ;;  %2513 = vmatprep.mubr.bf16.mxu1 %v4158_v0  ;;  %v3254_v19 = vcombine.high %v949_v14, %v957_v15  ;;  %v846_v6 = vld [vmem:[%s4163_s8 + $0x3e0] sm:$0xff] }
  0xe8   : > { %2441 = vmatpush1.bf16.msra.mxu0 %v3123_v22  ;;  %2484 = vmatpush1.bf16.msra.mxu1 %v3125_v23  ;;  %v933_v22 = vld [vmem:[%s4163_s8 + $0x698] sm:$0xff] }
  0xe9   : > { %2442 = vmatprep.subr.bf16.mxu0 %v3108_v24  ;;  %2485 = vmatprep.subr.bf16.mxu1 %v3110_v25  ;;  %v941_v23 = vld [vmem:[%s4163_s8 + $0x6d8] sm:$0xff]  ;;  %v3251_v24 = vcombine.low %v948_v12, %v956_v13  ;;  %v3253_v25 = vcombine.low %v949_v14, %v957_v15  ;;  %v3144_v12 = vcombine.high %v838_v5, %v846_v6  ;;  %v822_v14 = vld [vmem:[%s4163_s8 + $0x320] sm:$0xff] }
  0xea   : > { %v3238_v27 = vcombine.high %v933_v22, %v941_v23  ;;  %v830_v15 = vld [vmem:[%s4163_s8 + $0x360] sm:$0xff] }
  0xec   : > { %2443 = vmatpush1.bf16.msra.mxu0 %v3107_v30  ;;  %2486 = vmatpush1.bf16.msra.mxu1 %v3109_v31  ;;  %v917_v30 = vld [vmem:[%s4163_s8 + $0x618] sm:$0xff] }
  0xed   : > { %2444 = vmatprep.subr.bf16.mxu0 %v3092_v32  ;;  %2487 = vmatprep.subr.bf16.mxu1 %v3094_v33  ;;  %v925_v31 = vld [vmem:[%s4163_s8 + $0x658] sm:$0xff]  ;;  %v3235_v32 = vcombine.low %v932_v20, %v940_v21  ;;  %v3237_v33 = vcombine.low %v933_v22, %v941_v23  ;;  %v3128_v20 = vcombine.high %v822_v14, %v830_v15  ;;  %v806_v22 = vld [vmem:[%s4163_s8 + $0x2a0] sm:$0xff] }
  0xee   : > { %v3222_v35 = vcombine.high %v917_v30, %v925_v31  ;;  %v814_v23 = vld [vmem:[%s4163_s8 + $0x2e0] sm:$0xff] }
  0xf0   : > { %2445 = vmatpush1.bf16.msra.mxu0 %v3091_v38  ;;  %2488 = vmatpush1.bf16.msra.mxu1 %v3093_v39  ;;  %v901_v38 = vld [vmem:[%s4163_s8 + $0x598] sm:$0xff] }
  0xf1   : > { %2446 = vmatprep.subr.bf16.mxu0 %v3076_v40  ;;  %2489 = vmatprep.subr.bf16.mxu1 %v3078_v41  ;;  %v909_v39 = vld [vmem:[%s4163_s8 + $0x5d8] sm:$0xff]  ;;  %v3219_v40 = vcombine.low %v916_v28, %v924_v29  ;;  %v3221_v41 = vcombine.low %v917_v30, %v925_v31  ;;  %v3112_v28 = vcombine.high %v806_v22, %v814_v23  ;;  %v790_v30 = vld [vmem:[%s4163_s8 + $0x220] sm:$0xff] }
  0xf2   : > { %v3206_v43 = vcombine.high %v901_v38, %v909_v39  ;;  %v798_v31 = vld [vmem:[%s4163_s8 + $0x260] sm:$0xff] }
  0xf4   : > { %2447 = vmatpush1.bf16.msra.mxu0 %v3075_v46  ;;  %2490 = vmatpush1.bf16.msra.mxu1 %v3077_v47  ;;  %v885_v46 = vld [vmem:[%s4163_s8 + $0x518] sm:$0xff] }
  0xf5   : > { %2448 = vmatprep.subr.bf16.mxu0 %v3060_v48  ;;  %2491 = vmatprep.subr.bf16.mxu1 %v3062_v49  ;;  %v893_v47 = vld [vmem:[%s4163_s8 + $0x558] sm:$0xff]  ;;  %v3203_v48 = vcombine.low %v900_v36, %v908_v37  ;;  %v3205_v49 = vcombine.low %v901_v38, %v909_v39  ;;  %v3096_v36 = vcombine.high %v790_v30, %v798_v31  ;;  %v774_v38 = vld [vmem:[%s4163_s8 + $0x1a0] sm:$0xff] }
  0xf6   : > { %v3190_v51 = vcombine.high %v885_v46, %v893_v47  ;;  %v782_v39 = vld [vmem:[%s4163_s8 + $0x1e0] sm:$0xff] }
  0xf8   : > { %2449 = vmatpush1.bf16.msra.mxu0 %v3059_v54  ;;  %2492 = vmatpush1.bf16.msra.mxu1 %v3061_v55  ;;  %v869_v54 = vld [vmem:[%s4163_s8 + $0x498] sm:$0xff] }
  0xf9   : > { %2450 = vmatprep.subr.bf16.mxu0 %v3044_v56  ;;  %2493 = vmatprep.subr.bf16.mxu1 %v3046_v57  ;;  %v877_v55 = vld [vmem:[%s4163_s8 + $0x4d8] sm:$0xff]  ;;  %v3187_v56 = vcombine.low %v884_v44, %v892_v45  ;;  %v3189_v57 = vcombine.low %v885_v46, %v893_v47  ;;  %v758_v45 = vld [vmem:[%s4163_s8 + $0x120] sm:$0xff]  ;;  %v759_v47 = vld [vmem:[%s4163_s8 + $0x128] sm:$0xff] }
  0xfa   : > { %v3174_v59 = vcombine.high %v869_v54, %v877_v55  ;;  %v766_v46 = vld [vmem:[%s4163_s8 + $0x160] sm:$0xff] }
  0xfc   : > { %2451 = vmatpush1.bf16.msra.mxu0 %v3043_v62  ;;  %2494 = vmatpush1.bf16.msra.mxu1 %v3045_v63  ;;  %v853_v62 = vld [vmem:[%s4163_s8 + $0x418] sm:$0xff] }
  0xfd   : > { %2452 = vmatprep.subr.bf16.mxu0 %v3028_v1  ;;  %2495 = vmatprep.subr.bf16.mxu1 %v3030_v2  ;;  %v861_v63 = vld [vmem:[%s4163_s8 + $0x458] sm:$0xff]  ;;  %v3171_v1 = vcombine.low %v868_v52, %v876_v53  ;;  %v3173_v2 = vcombine.low %v869_v54, %v877_v55  ;;  %v742_v53 = vld [vmem:[%s4163_s8 + $0xa0] sm:$0xff]  ;;  %v743_v55 = vld [vmem:[%s4163_s8 + $0xa8] sm:$0xff] }
  0xfe   : > { %v3158_v4 = vcombine.high %v853_v62, %v861_v63  ;;  %v750_v54 = vld [vmem:[%s4163_s8 + $0xe0] sm:$0xff] }
 0x100   : > { %2453 = vmatpush1.bf16.msra.mxu0 %v3027_v7  ;;  %2496 = vmatpush1.bf16.msra.mxu1 %v3029_v8  ;;  %v839_v7 = vld [vmem:[%s4163_s8 + $0x3a8] sm:$0xff] }
 0x101   : > { %2454 = vmatprep.subr.bf16.mxu0 %v3268_v9  ;;  %2497 = vmatprep.subr.bf16.mxu1 %v3270_v10  ;;  %v847_v8 = vld [vmem:[%s4163_s8 + $0x3e8] sm:$0xff]  ;;  %v3155_v9 = vcombine.low %v852_v60, %v860_v61  ;;  %v3157_v10 = vcombine.low %v853_v62, %v861_v63  ;;  %v726_v61 = vld [vmem:[%s4163_s8 + $0x20] sm:$0xff] }
 0x102   : > { %v3146_v13 = vcombine.high %v839_v7, %v847_v8  ;;  %v734_v62 = vld [vmem:[%s4163_s8 + $0x60] sm:$0xff]  ;;  %v727_v63 = vld [vmem:[%s4163_s8 + $0x28] sm:$0xff] }
 0x104   : > { %2455 = vmatpush2.bf16.msra.mxu0 %v3267_v16  ;;  %2498 = vmatpush2.bf16.msra.mxu1 %v3269_v17  ;;  %v823_v16 = vld [vmem:[%s4163_s8 + $0x328] sm:$0xff] }
 0x105   : > { %2456 = vmatprep.subr.bf16.mxu0 %v3252_v18  ;;  %2499 = vmatprep.subr.bf16.mxu1 %v3254_v19  ;;  %v831_v17 = vld [vmem:[%s4163_s8 + $0x368] sm:$0xff]  ;;  %v3143_v18 = vcombine.low %v838_v5, %v846_v6  ;;  %v3145_v19 = vcombine.low %v839_v7, %v847_v8  ;;  %v966_v6 = vld [vmem:[%s4163_s8 + $0x7a0] sm:$0xff] }
 0x106   : > { %v3130_v21 = vcombine.high %v823_v16, %v831_v17  ;;  %v974_v7 = vld [vmem:[%s4163_s8 + $0x7e0] sm:$0xff]  ;;  %v967_v8 = vld [vmem:[%s4163_s8 + $0x7a8] sm:$0xff] }
 0x108   : > { %2457 = vmatpush2.bf16.msra.mxu0 %v3251_v24  ;;  %2500 = vmatpush2.bf16.msra.mxu1 %v3253_v25  ;;  %v807_v24 = vld [vmem:[%s4163_s8 + $0x2a8] sm:$0xff] }
 0x109   : > { %2458 = vmatprep.subr.bf16.mxu0 %v3236_v26  ;;  %2501 = vmatprep.subr.bf16.mxu1 %v3238_v27  ;;  %v815_v25 = vld [vmem:[%s4163_s8 + $0x2e8] sm:$0xff]  ;;  %v3127_v26 = vcombine.low %v822_v14, %v830_v15  ;;  %v3129_v27 = vcombine.low %v823_v16, %v831_v17  ;;  %v950_v15 = vld [vmem:[%s4163_s8 + $0x720] sm:$0xff] }
 0x10a   : > { %v3114_v29 = vcombine.high %v807_v24, %v815_v25  ;;  %v958_v16 = vld [vmem:[%s4163_s8 + $0x760] sm:$0xff]  ;;  %v951_v17 = vld [vmem:[%s4163_s8 + $0x728] sm:$0xff] }
 0x10c   : > { %2459 = vmatpush2.bf16.msra.mxu0 %v3235_v32  ;;  %2502 = vmatpush2.bf16.msra.mxu1 %v3237_v33  ;;  %v791_v32 = vld [vmem:[%s4163_s8 + $0x228] sm:$0xff] }
 0x10d   : > { %2460 = vmatprep.subr.bf16.mxu0 %v3220_v34  ;;  %2503 = vmatprep.subr.bf16.mxu1 %v3222_v35  ;;  %v799_v33 = vld [vmem:[%s4163_s8 + $0x268] sm:$0xff]  ;;  %v3111_v34 = vcombine.low %v806_v22, %v814_v23  ;;  %v3113_v35 = vcombine.low %v807_v24, %v815_v25  ;;  %v934_v23 = vld [vmem:[%s4163_s8 + $0x6a0] sm:$0xff] }
 0x10e   : > { %v3098_v37 = vcombine.high %v791_v32, %v799_v33  ;;  %v942_v24 = vld [vmem:[%s4163_s8 + $0x6e0] sm:$0xff]  ;;  %v935_v25 = vld [vmem:[%s4163_s8 + $0x6a8] sm:$0xff] }
 0x110   : > { %2461 = vmatpush2.bf16.msra.mxu0 %v3219_v40  ;;  %2504 = vmatpush2.bf16.msra.mxu1 %v3221_v41  ;;  %v775_v40 = vld [vmem:[%s4163_s8 + $0x1a8] sm:$0xff] }
 0x111   : > { %2462 = vmatprep.subr.bf16.mxu0 %v3204_v42  ;;  %2505 = vmatprep.subr.bf16.mxu1 %v3206_v43  ;;  %v783_v41 = vld [vmem:[%s4163_s8 + $0x1e8] sm:$0xff]  ;;  %v3095_v42 = vcombine.low %v790_v30, %v798_v31  ;;  %v3080_v43 = vcombine.high %v774_v38, %v782_v39  ;;  %v918_v31 = vld [vmem:[%s4163_s8 + $0x620] sm:$0xff] }
 0x112   : > { %v3082_v44 = vcombine.high %v775_v40, %v783_v41 }
 0x114   : > { %2463 = vmatpush2.bf16.msra.mxu0 %v3203_v48  ;;  %2506 = vmatpush2.bf16.msra.mxu1 %v3205_v49  ;;  %v767_v48 = vld [vmem:[%s4163_s8 + $0x168] sm:$0xff]  ;;  %v3079_v49 = vcombine.low %v774_v38, %v782_v39  ;;  %v902_v39 = vld [vmem:[%s4163_s8 + $0x5a0] sm:$0xff] }
 0x115   : > { %2464 = vmatprep.subr.bf16.mxu0 %v3188_v50  ;;  %2507 = vmatprep.subr.bf16.mxu1 %v3190_v51  ;;  %v3081_v50 = vcombine.low %v775_v40, %v783_v41  ;;  %v3064_v51 = vcombine.high %v758_v45, %v766_v46  ;;  %v3066_v52 = vcombine.high %v759_v47, %v767_v48  ;;  %v910_v40 = vld [vmem:[%s4163_s8 + $0x5e0] sm:$0xff]  ;;  %v903_v41 = vld [vmem:[%s4163_s8 + $0x5a8] sm:$0xff] }
 0x118   : > { %2465 = vmatpush2.bf16.msra.mxu0 %v3187_v56  ;;  %2508 = vmatpush2.bf16.msra.mxu1 %v3189_v57  ;;  %v751_v56 = vld [vmem:[%s4163_s8 + $0xe8] sm:$0xff]  ;;  %v3063_v57 = vcombine.low %v758_v45, %v766_v46  ;;  %v886_v46 = vld [vmem:[%s4163_s8 + $0x520] sm:$0xff] }
 0x119   : > { %2466 = vmatprep.subr.bf16.mxu0 %v3172_v58  ;;  %2509 = vmatprep.subr.bf16.mxu1 %v3174_v59  ;;  %v3065_v58 = vcombine.low %v759_v47, %v767_v48  ;;  %v3048_v59 = vcombine.high %v742_v53, %v750_v54  ;;  %v3050_v60 = vcombine.high %v743_v55, %v751_v56  ;;  %v894_v47 = vld [vmem:[%s4163_s8 + $0x560] sm:$0xff]  ;;  %v887_v48 = vld [vmem:[%s4163_s8 + $0x528] sm:$0xff] }
 0x11c   : > { %2467 = vmatpush2.bf16.msra.mxu0 %v3171_v1  ;;  %2510 = vmatpush2.bf16.msra.mxu1 %v3173_v2  ;;  %v735_v1 = vld [vmem:[%s4163_s8 + $0x68] sm:$0xff]  ;;  %v3047_v2 = vcombine.low %v742_v53, %v750_v54  ;;  %v870_v54 = vld [vmem:[%s4163_s8 + $0x4a0] sm:$0xff] }
 0x11d   : > { %2468 = vmatprep.subr.bf16.mxu0 %v3156_v3  ;;  %2511 = vmatprep.subr.bf16.mxu1 %v3158_v4  ;;  %v3049_v3 = vcombine.low %v743_v55, %v751_v56  ;;  %v3032_v4 = vcombine.high %v726_v61, %v734_v62  ;;  %v3034_v5 = vcombine.high %v727_v63, %v735_v1  ;;  %v878_v55 = vld [vmem:[%s4163_s8 + $0x4e0] sm:$0xff]  ;;  %v871_v56 = vld [vmem:[%s4163_s8 + $0x4a8] sm:$0xff] }
 0x120   : > { %2469 = vmatpush2.bf16.msra.mxu0 %v3155_v9  ;;  %2512 = vmatpush2.bf16.msra.mxu1 %v3157_v10  ;;  %v975_v9 = vld [vmem:[%s4163_s8 + $0x7e8] sm:$0xff]  ;;  %v3031_v10 = vcombine.low %v726_v61, %v734_v62  ;;  %v854_v62 = vld [vmem:[%s4163_s8 + $0x420] sm:$0xff] }
 0x121   : > { %2524 = vmatprep.subr.bf16.mxu0 %v3144_v12  ;;  %2567 = vmatprep.subr.bf16.mxu1 %v3146_v13  ;;  %v3033_v12 = vcombine.low %v727_v63, %v735_v1  ;;  %v3272_v13 = vcombine.high %v966_v6, %v974_v7  ;;  %v3274_v14 = vcombine.high %v967_v8, %v975_v9  ;;  %v862_v63 = vld [vmem:[%s4163_s8 + $0x460] sm:$0xff]  ;;  %v855_v1 = vld [vmem:[%s4163_s8 + $0x428] sm:$0xff] }
 0x123   : > { %2471 = vmatmul.mubr.bf16.vlgmr.msra.gmra.mxu0 %v4238_v11  ;;  %2514 = vmatmul.mubr.bf16.vlgmr.msra.gmra.mxu1 %v4238_v11 }
 0x124   : > { %2525 = vmatpush1.bf16.msra.mxu0 %v3143_v18  ;;  %2568 = vmatpush1.bf16.msra.mxu1 %v3145_v19  ;;  %v959_v18 = vld [vmem:[%s4163_s8 + $0x768] sm:$0xff]  ;;  %v3271_v19 = vcombine.low %v966_v6, %v974_v7  ;;  %v840_v7 = vld [vmem:[%s4163_s8 + $0x3b0] sm:$0xff] }
 0x125   : > { %2526 = vmatprep.subr.bf16.mxu0 %v3128_v20  ;;  %2569 = vmatprep.subr.bf16.mxu1 %v3130_v21  ;;  %v3273_v20 = vcombine.low %v967_v8, %v975_v9  ;;  %v3256_v21 = vcombine.high %v950_v15, %v958_v16  ;;  %v3258_v22 = vcombine.high %v951_v17, %v959_v18  ;;  %v848_v8 = vld [vmem:[%s4163_s8 + $0x3f0] sm:$0xff]  ;;  %v841_v9 = vld [vmem:[%s4163_s8 + $0x3b8] sm:$0xff] }
 0x126   : > { %2556 = vmatprep.mubr.bf16.mxu0 %v4158_v0  ;;  %2599 = vmatprep.mubr.bf16.mxu1 %v4158_v0  ;;  %v3097_v0 = vcombine.low %v791_v32, %v799_v33  ;;  %v926_v32 = vld [vmem:[%s4163_s8 + $0x660] sm:$0xff]  ;;  %v919_v33 = vld [vmem:[%s4163_s8 + $0x628] sm:$0xff] }
 0x128   : > { %2527 = vmatpush1.bf16.msra.mxu0 %v3127_v26  ;;  %2570 = vmatpush1.bf16.msra.mxu1 %v3129_v27  ;;  %v943_v26 = vld [vmem:[%s4163_s8 + $0x6e8] sm:$0xff]  ;;  %v3255_v27 = vcombine.low %v950_v15, %v958_v16  ;;  %v824_v16 = vld [vmem:[%s4163_s8 + $0x330] sm:$0xff] }
 0x129   : > { %2528 = vmatprep.subr.bf16.mxu0 %v3112_v28  ;;  %2571 = vmatprep.subr.bf16.mxu1 %v3114_v29  ;;  %v3257_v28 = vcombine.low %v951_v17, %v959_v18  ;;  %v3240_v29 = vcombine.high %v934_v23, %v942_v24  ;;  %v3242_v30 = vcombine.high %v935_v25, %v943_v26  ;;  %v832_v17 = vld [vmem:[%s4163_s8 + $0x370] sm:$0xff]  ;;  %v825_v18 = vld [vmem:[%s4163_s8 + $0x338] sm:$0xff] }
 0x12c   : > { %2529 = vmatpush1.bf16.msra.mxu0 %v3111_v34  ;;  %2572 = vmatpush1.bf16.msra.mxu1 %v3113_v35  ;;  %v927_v34 = vld [vmem:[%s4163_s8 + $0x668] sm:$0xff]  ;;  %v3239_v35 = vcombine.low %v934_v23, %v942_v24  ;;  %v808_v24 = vld [vmem:[%s4163_s8 + $0x2b0] sm:$0xff] }
 0x12d   : > { %2530 = vmatprep.subr.bf16.mxu0 %v3096_v36  ;;  %2573 = vmatprep.subr.bf16.mxu1 %v3098_v37  ;;  %v3241_v36 = vcombine.low %v935_v25, %v943_v26  ;;  %v3224_v37 = vcombine.high %v918_v31, %v926_v32  ;;  %v3226_v38 = vcombine.high %v919_v33, %v927_v34  ;;  %v816_v25 = vld [vmem:[%s4163_s8 + $0x2f0] sm:$0xff]  ;;  %v809_v26 = vld [vmem:[%s4163_s8 + $0x2b8] sm:$0xff] }
 0x130   : > { %2531 = vmatpush1.bf16.msra.mxu0 %v3095_v42  ;;  %2574 = vmatpush1.bf16.msra.mxu1 %v3097_v0  ;;  %v911_v42 = vld [vmem:[%s4163_s8 + $0x5e8] sm:$0xff]  ;;  %v3223_v0 = vcombine.low %v918_v31, %v926_v32  ;;  %v792_v32 = vld [vmem:[%s4163_s8 + $0x230] sm:$0xff] }
 0x131   : > { %2532 = vmatprep.subr.bf16.mxu0 %v3080_v43  ;;  %2575 = vmatprep.subr.bf16.mxu1 %v3082_v44  ;;  %v3225_v43 = vcombine.low %v919_v33, %v927_v34  ;;  %v3208_v44 = vcombine.high %v902_v39, %v910_v40  ;;  %v3210_v45 = vcombine.high %v903_v41, %v911_v42  ;;  %v800_v33 = vld [vmem:[%s4163_s8 + $0x270] sm:$0xff]  ;;  %v3491_v34 = vld [vmem:[%s4603_s0 + $0x4] ss:$8 sps:$4 sm:$0xff]  }
 0x134   : > { %2533 = vmatpush1.bf16.msra.mxu0 %v3079_v49  ;;  %2576 = vmatpush1.bf16.msra.mxu1 %v3081_v50  ;;  %v895_v49 = vld [vmem:[%s4163_s8 + $0x568] sm:$0xff]  ;;  %v3207_v50 = vcombine.low %v902_v39, %v910_v40  ;;  %v776_v40 = vld [vmem:[%s4163_s8 + $0x1b0] sm:$0xff] }
 0x135   : > { %2534 = vmatprep.subr.bf16.mxu0 %v3064_v51  ;;  %2577 = vmatprep.subr.bf16.mxu1 %v3066_v52  ;;  %v3209_v51 = vcombine.low %v903_v41, %v911_v42  ;;  %v3192_v52 = vcombine.high %v886_v46, %v894_v47  ;;  %v3194_v53 = vcombine.high %v887_v48, %v895_v49  ;;  %v784_v41 = vld [vmem:[%s4163_s8 + $0x1f0] sm:$0xff]  ;;  %v777_v42 = vld [vmem:[%s4163_s8 + $0x1b8] sm:$0xff] }
 0x138   : > { %2535 = vmatpush1.bf16.msra.mxu0 %v3063_v57  ;;  %2578 = vmatpush1.bf16.msra.mxu1 %v3065_v58  ;;  %v879_v57 = vld [vmem:[%s4163_s8 + $0x4e8] sm:$0xff]  ;;  %v3191_v58 = vcombine.low %v886_v46, %v894_v47  ;;  %v760_v47 = vld [vmem:[%s4163_s8 + $0x130] sm:$0xff] }
 0x139   : > { %2536 = vmatprep.subr.bf16.mxu0 %v3048_v59  ;;  %2579 = vmatprep.subr.bf16.mxu1 %v3050_v60  ;;  %v3193_v59 = vcombine.low %v887_v48, %v895_v49  ;;  %v3176_v60 = vcombine.high %v870_v54, %v878_v55  ;;  %v3178_v61 = vcombine.high %v871_v56, %v879_v57  ;;  %v768_v48 = vld [vmem:[%s4163_s8 + $0x170] sm:$0xff]  ;;  %v761_v49 = vld [vmem:[%s4163_s8 + $0x138] sm:$0xff] }
 0x13c   : > { %2537 = vmatpush1.bf16.msra.mxu0 %v3047_v2  ;;  %2580 = vmatpush1.bf16.msra.mxu1 %v3049_v3  ;;  %v863_v2 = vld [vmem:[%s4163_s8 + $0x468] sm:$0xff]  ;;  %v3175_v3 = vcombine.low %v870_v54, %v878_v55  ;;  %v744_v55 = vld [vmem:[%s4163_s8 + $0xb0] sm:$0xff] }
 0x13d   : > { %2538 = vmatprep.subr.bf16.mxu0 %v3032_v4  ;;  %2581 = vmatprep.subr.bf16.mxu1 %v3034_v5  ;;  %v3177_v4 = vcombine.low %v871_v56, %v879_v57  ;;  %v3160_v5 = vcombine.high %v854_v62, %v862_v63  ;;  %v3162_v6 = vcombine.high %v855_v1, %v863_v2  ;;  %v752_v56 = vld [vmem:[%s4163_s8 + $0xf0] sm:$0xff]  ;;  %v745_v57 = vld [vmem:[%s4163_s8 + $0xb8] sm:$0xff] }
 0x140   : > { %2539 = vmatpush1.bf16.msra.mxu0 %v3031_v10  ;;  %2582 = vmatpush1.bf16.msra.mxu1 %v3033_v12  ;;  %v849_v10 = vld [vmem:[%s4163_s8 + $0x3f8] sm:$0xff]  ;;  %v3159_v12 = vcombine.low %v854_v62, %v862_v63  ;;  %v728_v63 = vld [vmem:[%s4163_s8 + $0x30] sm:$0xff] }
 0x141   : > { %2540 = vmatprep.subr.bf16.mxu0 %v3272_v13  ;;  %2583 = vmatprep.subr.bf16.mxu1 %v3274_v14  ;;  %v3161_v13 = vcombine.low %v855_v1, %v863_v2  ;;  %v3148_v14 = vcombine.high %v840_v7, %v848_v8  ;;  %v3150_v15 = vcombine.high %v841_v9, %v849_v10  ;;  %v736_v1 = vld [vmem:[%s4163_s8 + $0x70] sm:$0xff]  ;;  %v729_v2 = vld [vmem:[%s4163_s8 + $0x38] sm:$0xff] }
 0x144   : > { %2541 = vmatpush2.bf16.msra.mxu0 %v3271_v19  ;;  %2584 = vmatpush2.bf16.msra.mxu1 %v3273_v20  ;;  %v833_v19 = vld [vmem:[%s4163_s8 + $0x378] sm:$0xff]  ;;  %v3147_v20 = vcombine.low %v840_v7, %v848_v8  ;;  %v968_v8 = vld [vmem:[%s4163_s8 + $0x7b0] sm:$0xff] }
 0x145   : > { %2542 = vmatprep.subr.bf16.mxu0 %v3256_v21  ;;  %2585 = vmatprep.subr.bf16.mxu1 %v3258_v22  ;;  %v3149_v21 = vcombine.low %v841_v9, %v849_v10  ;;  %v3132_v22 = vcombine.high %v824_v16, %v832_v17  ;;  %v3134_v23 = vcombine.high %v825_v18, %v833_v19  ;;  %v976_v9 = vld [vmem:[%s4163_s8 + $0x7f0] sm:$0xff]  ;;  %v969_v10 = vld [vmem:[%s4163_s8 + $0x7b8] sm:$0xff] }
 0x148   : > { %2543 = vmatpush2.bf16.msra.mxu0 %v3255_v27  ;;  %2586 = vmatpush2.bf16.msra.mxu1 %v3257_v28  ;;  %v817_v27 = vld [vmem:[%s4163_s8 + $0x2f8] sm:$0xff]  ;;  %v3131_v28 = vcombine.low %v824_v16, %v832_v17  ;;  %v952_v17 = vld [vmem:[%s4163_s8 + $0x730] sm:$0xff] }
 0x149   : > { %2544 = vmatprep.subr.bf16.mxu0 %v3240_v29  ;;  %2587 = vmatprep.subr.bf16.mxu1 %v3242_v30  ;;  %v3133_v29 = vcombine.low %v825_v18, %v833_v19  ;;  %v3116_v30 = vcombine.high %v808_v24, %v816_v25  ;;  %v3118_v31 = vcombine.high %v809_v26, %v817_v27  ;;  %v960_v18 = vld [vmem:[%s4163_s8 + $0x770] sm:$0xff]  ;;  %v953_v19 = vld [vmem:[%s4163_s8 + $0x738] sm:$0xff] }
 0x14c   : > { %2545 = vmatpush2.bf16.msra.mxu0 %v3239_v35  ;;  %2588 = vmatpush2.bf16.msra.mxu1 %v3241_v36  ;;  %v801_v35 = vld [vmem:[%s4163_s8 + $0x278] sm:$0xff]  ;;  %v3115_v36 = vcombine.low %v808_v24, %v816_v25  ;;  %v936_v25 = vld [vmem:[%s4163_s8 + $0x6b0] sm:$0xff] }
 0x14d   : > { %2546 = vmatprep.subr.bf16.mxu0 %v3224_v37  ;;  %2589 = vmatprep.subr.bf16.mxu1 %v3226_v38  ;;  %v3117_v37 = vcombine.low %v809_v26, %v817_v27  ;;  %v3100_v38 = vcombine.high %v792_v32, %v800_v33  ;;  %v944_v26 = vld [vmem:[%s4163_s8 + $0x6f0] sm:$0xff]  ;;  %v937_v27 = vld [vmem:[%s4163_s8 + $0x6b8] sm:$0xff] }
 0x150   : > { %2547 = vmatpush2.bf16.msra.mxu0 %v3223_v0  ;;  %2590 = vmatpush2.bf16.msra.mxu1 %v3225_v43  ;;  %v785_v0 = vld [vmem:[%s4163_s8 + $0x1f8] sm:$0xff]  ;;  %v3099_v43 = vcombine.low %v792_v32, %v800_v33  ;;  %v920_v33 = vld [vmem:[%s4163_s8 + $0x630] sm:$0xff] }
 0x151   : > { %2548 = vmatprep.subr.bf16.mxu0 %v3208_v44  ;;  %2591 = vmatprep.subr.bf16.mxu1 %v3210_v45  ;;  %v3084_v45 = vcombine.high %v776_v40, %v784_v41  ;;  %v3086_v46 = vcombine.high %v777_v42, %v785_v0 }
 0x154   : > { %2549 = vmatpush2.bf16.msra.mxu0 %v3207_v50  ;;  %2592 = vmatpush2.bf16.msra.mxu1 %v3209_v51  ;;  %v769_v50 = vld [vmem:[%s4163_s8 + $0x178] sm:$0xff]  ;;  %v3083_v51 = vcombine.low %v776_v40, %v784_v41  ;;  %v904_v40 = vld [vmem:[%s4163_s8 + $0x5b0] sm:$0xff] }
 0x155   : > { %2550 = vmatprep.subr.bf16.mxu0 %v3192_v52  ;;  %2593 = vmatprep.subr.bf16.mxu1 %v3194_v53  ;;  %v3085_v52 = vcombine.low %v777_v42, %v785_v0  ;;  %v3068_v53 = vcombine.high %v760_v47, %v768_v48  ;;  %v3070_v54 = vcombine.high %v761_v49, %v769_v50  ;;  %v912_v41 = vld [vmem:[%s4163_s8 + $0x5f0] sm:$0xff]  ;;  %v905_v42 = vld [vmem:[%s4163_s8 + $0x5b8] sm:$0xff] }
 0x156   : > { %v913_v0 = vld [vmem:[%s4163_s8 + $0x5f8] sm:$0xff] }
 0x158   : > { %2551 = vmatpush2.bf16.msra.mxu0 %v3191_v58  ;;  %2594 = vmatpush2.bf16.msra.mxu1 %v3193_v59  ;;  %v753_v58 = vld [vmem:[%s4163_s8 + $0xf8] sm:$0xff]  ;;  %v3067_v59 = vcombine.low %v760_v47, %v768_v48  ;;  %v888_v47 = vld [vmem:[%s4163_s8 + $0x530] sm:$0xff] }
 0x159   : > { %2552 = vmatprep.subr.bf16.mxu0 %v3176_v60  ;;  %2595 = vmatprep.subr.bf16.mxu1 %v3178_v61  ;;  %v3069_v60 = vcombine.low %v761_v49, %v769_v50  ;;  %v3052_v61 = vcombine.high %v744_v55, %v752_v56  ;;  %v3054_v62 = vcombine.high %v745_v57, %v753_v58  ;;  %v896_v48 = vld [vmem:[%s4163_s8 + $0x570] sm:$0xff]  ;;  %v889_v49 = vld [vmem:[%s4163_s8 + $0x538] sm:$0xff] }
 0x15a   : > { %v897_v50 = vld [vmem:[%s4163_s8 + $0x578] sm:$0xff] }
 0x15c   : > { %2553 = vmatpush2.bf16.msra.mxu0 %v3175_v3  ;;  %2596 = vmatpush2.bf16.msra.mxu1 %v3177_v4  ;;  %v737_v3 = vld [vmem:[%s4163_s8 + $0x78] sm:$0xff]  ;;  %v3051_v4 = vcombine.low %v744_v55, %v752_v56  ;;  %v872_v55 = vld [vmem:[%s4163_s8 + $0x4b0] sm:$0xff] }
 0x15d   : > { %2554 = vmatprep.subr.bf16.mxu0 %v3160_v5  ;;  %2597 = vmatprep.subr.bf16.mxu1 %v3162_v6  ;;  %v3053_v5 = vcombine.low %v745_v57, %v753_v58  ;;  %v3036_v6 = vcombine.high %v728_v63, %v736_v1  ;;  %v3038_v7 = vcombine.high %v729_v2, %v737_v3  ;;  %v880_v56 = vld [vmem:[%s4163_s8 + $0x4f0] sm:$0xff]  ;;  %v873_v57 = vld [vmem:[%s4163_s8 + $0x4b8] sm:$0xff] }
 0x15e   : > { %v881_v58 = vld [vmem:[%s4163_s8 + $0x4f8] sm:$0xff] }
 0x160   : > { %2555 = vmatpush2.bf16.msra.mxu0 %v3159_v12  ;;  %2598 = vmatpush2.bf16.msra.mxu1 %v3161_v13  ;;  %v977_v12 = vld [vmem:[%s4163_s8 + $0x7f8] sm:$0xff]  ;;  %v3035_v13 = vcombine.low %v728_v63, %v736_v1  ;;  %v3182_v63 = vcombine.high %v873_v57, %v881_v58  ;;  %v856_v1 = vld [vmem:[%s4163_s8 + $0x430] sm:$0xff] }
 0x161   : > { %2610 = vmatprep.subr.bf16.mxu0 %v3148_v14  ;;  %2653 = vmatprep.subr.bf16.mxu1 %v3150_v15  ;;  %v3037_v14 = vcombine.low %v729_v2, %v737_v3  ;;  %v3276_v15 = vcombine.high %v968_v8, %v976_v9  ;;  %v3278_v16 = vcombine.high %v969_v10, %v977_v12  ;;  %v864_v2 = vld [vmem:[%s4163_s8 + $0x470] sm:$0xff]  ;;  %v857_v3 = vld [vmem:[%s4163_s8 + $0x438] sm:$0xff] }
 0x163   : > { %2557 = vmatmul.mubr.bf16.vlgmr.msra.gmra.mxu0 %v4238_v11  ;;  %2600 = vmatmul.mubr.bf16.vlgmr.msra.gmra.mxu1 %v4238_v11  ;;  %v793_v11 = vld [vmem:[%s4163_s8 + $0x238] sm:$0xff] }
 0x164   : > { %2611 = vmatpush1.bf16.msra.mxu0 %v3147_v20  ;;  %2654 = vmatpush1.bf16.msra.mxu1 %v3149_v21  ;;  %v3102_v39 = vcombine.high %v793_v11, %v801_v35  ;;  %v3101_v44 = vcombine.low %v793_v11, %v801_v35  ;;  %v961_v20 = vld [vmem:[%s4163_s8 + $0x778] sm:$0xff]  ;;  %v3275_v21 = vcombine.low %v968_v8, %v976_v9 }
 0x165   : > { %2612 = vmatprep.subr.bf16.mxu0 %v3132_v22  ;;  %2655 = vmatprep.subr.bf16.mxu1 %v3134_v23  ;;  %v3277_v22 = vcombine.low %v969_v10, %v977_v12  ;;  %v3260_v23 = vcombine.high %v952_v17, %v960_v18  ;;  %v3262_v24 = vcombine.high %v953_v19, %v961_v20  ;;  %v921_v11 = vld [vmem:[%s4163_s8 + $0x638] sm:$0xff] }
 0x166   : > { %2642 = vmatprep.mubr.bf16.mxu0 %v3491_v34  ;;  %2685 = vmatprep.mubr.bf16.mxu1 %v3491_v34  ;;  %v928_v34 = vld [vmem:[%s4163_s8 + $0x670] sm:$0xff]  ;;  %v929_v35 = vld [vmem:[%s4163_s8 + $0x678] sm:$0xff]  ;;  %v3164_v8 = vcombine.high %v856_v1, %v864_v2  ;;  %v3163_v10 = vcombine.low %v856_v1, %v864_v2 }
 0x168   : > { %2613 = vmatpush1.bf16.msra.mxu0 %v3131_v28  ;;  %2656 = vmatpush1.bf16.msra.mxu1 %v3133_v29  ;;  %v945_v28 = vld [vmem:[%s4163_s8 + $0x6f8] sm:$0xff]  ;;  %v3259_v29 = vcombine.low %v952_v17, %v960_v18 }
 0x169   : > { %2614 = vmatprep.subr.bf16.mxu0 %v3116_v30  ;;  %2657 = vmatprep.subr.bf16.mxu1 %v3118_v31  ;;  %v3261_v30 = vcombine.low %v953_v19, %v961_v20  ;;  %v3244_v31 = vcombine.high %v936_v25, %v944_v26  ;;  %v3246_v32 = vcombine.high %v937_v27, %v945_v28 }
 0x16c   : > { %2615 = vmatpush1.bf16.msra.mxu0 %v3115_v36  ;;  %2658 = vmatpush1.bf16.msra.mxu1 %v3117_v37  ;;  %v3243_v36 = vcombine.low %v936_v25, %v944_v26  ;;  %v3245_v37 = vcombine.low %v937_v27, %v945_v28 }
 0x16d   : > { %2616 = vmatprep.subr.bf16.mxu0 %v3100_v38  ;;  %2659 = vmatprep.subr.bf16.mxu1 %v3102_v39  ;;  %v3228_v38 = vcombine.high %v920_v33, %v928_v34  ;;  %v3230_v39 = vcombine.high %v921_v11, %v929_v35 }
 0x170   : > { %2617 = vmatpush1.bf16.msra.mxu0 %v3099_v43  ;;  %2660 = vmatpush1.bf16.msra.mxu1 %v3101_v44  ;;  %v3227_v43 = vcombine.low %v920_v33, %v928_v34  ;;  %v3229_v44 = vcombine.low %v921_v11, %v929_v35 }
 0x171   : > { %2618 = vmatprep.subr.bf16.mxu0 %v3084_v45  ;;  %2661 = vmatprep.subr.bf16.mxu1 %v3086_v46  ;;  %v3212_v45 = vcombine.high %v904_v40, %v912_v41  ;;  %v3214_v46 = vcombine.high %v905_v42, %v913_v0 }
 0x174   : > { %2619 = vmatpush1.bf16.msra.mxu0 %v3083_v51  ;;  %2662 = vmatpush1.bf16.msra.mxu1 %v3085_v52  ;;  %v3211_v51 = vcombine.low %v904_v40, %v912_v41  ;;  %v3213_v52 = vcombine.low %v905_v42, %v913_v0 }
 0x175   : > { %2620 = vmatprep.subr.bf16.mxu0 %v3068_v53  ;;  %2663 = vmatprep.subr.bf16.mxu1 %v3070_v54  ;;  %v3196_v53 = vcombine.high %v888_v47, %v896_v48  ;;  %v3198_v54 = vcombine.high %v889_v49, %v897_v50 }
 0x178   : > { %2621 = vmatpush1.bf16.msra.mxu0 %v3067_v59  ;;  %2664 = vmatpush1.bf16.msra.mxu1 %v3069_v60  ;;  %v3195_v59 = vcombine.low %v888_v47, %v896_v48  ;;  %v982_v60 = vlaneseq }
 0x179   : > { %2622 = vmatprep.subr.bf16.mxu0 %v3052_v61  ;;  %2665 = vmatprep.subr.bf16.mxu1 %v3054_v62  ;;  %v3197_v61 = vcombine.low %v889_v49, %v897_v50  ;;  %v3180_v62 = vcombine.high %v872_v55, %v880_v56 }
 0x17c   : > { %2623 = vmatpush1.bf16.msra.mxu0 %v3051_v4  ;;  %2666 = vmatpush1.bf16.msra.mxu1 %v3053_v5  ;;  %v865_v4 = vld [vmem:[%s4163_s8 + $0x478] sm:$0xff]  ;;  %v3179_v5 = vcombine.low %v872_v55, %v880_v56 }
 0x17d   : > { %2624 = vmatprep.subr.bf16.mxu0 %v3036_v6  ;;  %2667 = vmatprep.subr.bf16.mxu1 %v3038_v7  ;;  %v4446_v6 = vshrl.u32 %v982_v60, 7  ;;  %v3181_v7 = vcombine.low %v873_v57, %v881_v58  ;;  %v3166_v9 = vcombine.high %v857_v3, %v865_v4 }
 0x17f   : > { %v984_v12 = vsub.s32 0, %v4446_v6  ;;  %v996_v17 = vsub.s32 3, %v4446_v6 }
 0x180   : > { %2625 = vmatpush1.bf16.msra.mxu0 %v3035_v13  ;;  %2668 = vmatpush1.bf16.msra.mxu1 %v3037_v14  ;;  %v3165_v13 = vcombine.low %v857_v3, %v865_v4  ;;  %v4455_v14 = vld [vmem:[%s4451_s26] sm:$0xff] }
 0x181   : > { %2626 = vmatprep.subr.bf16.mxu0 %v3276_v15  ;;  %2669 = vmatprep.subr.bf16.mxu1 %v3278_v16  ;;  %v992_v15 = vsub.s32 2, %v4446_v6  ;;  %v988_v16 = vsub.s32 1, %v4446_v6  ;;  %v985_v18 = vrot.slane %v4455_v14, %v984_v12 }
 0x183   : > { %v993_v19 = vrot.slane %v4455_v14, %v992_v15  ;;  %v989_v20 = vrot.slane %v4455_v14, %v988_v16 }
 0x184   : > { %2627 = vmatpush2.bf16.msra.mxu0 %v3275_v21  ;;  %2670 = vmatpush2.bf16.msra.mxu1 %v3277_v22  ;;  %v3492_v22 = vld [vmem:[%s4603_s0] ss:$8 sps:$4 sm:$0xff]  }
 0x185   : > { %2628 = vmatprep.subr.bf16.mxu0 %v3260_v23  ;;  %2671 = vmatprep.subr.bf16.mxu1 %v3262_v24  ;;  %v997_v23 = vrot.slane %v4455_v14, %v996_v17 }
 0x188   : > { %2629 = vmatpush2.bf16.msra.mxu0 %v3259_v29  ;;  %2672 = vmatpush2.bf16.msra.mxu1 %v3261_v30 }
 0x189   : > { %2630 = vmatprep.subr.bf16.mxu0 %v3244_v31  ;;  %2673 = vmatprep.subr.bf16.mxu1 %v3246_v32 }
 0x18c   : > { %2631 = vmatpush2.bf16.msra.mxu0 %v3243_v36  ;;  %2674 = vmatpush2.bf16.msra.mxu1 %v3245_v37 }
 0x18d   : > { %2632 = vmatprep.subr.bf16.mxu0 %v3228_v38  ;;  %2675 = vmatprep.subr.bf16.mxu1 %v3230_v39 }
 0x190   : > { %2633 = vmatpush2.bf16.msra.mxu0 %v3227_v43  ;;  %2676 = vmatpush2.bf16.msra.mxu1 %v3229_v44 }
 0x191   : > { %2634 = vmatprep.subr.bf16.mxu0 %v3212_v45  ;;  %2677 = vmatprep.subr.bf16.mxu1 %v3214_v46 }
 0x194   : > { %2635 = vmatpush2.bf16.msra.mxu0 %v3211_v51  ;;  %2678 = vmatpush2.bf16.msra.mxu1 %v3213_v52 }
 0x195   : > { %2636 = vmatprep.subr.bf16.mxu0 %v3196_v53  ;;  %2679 = vmatprep.subr.bf16.mxu1 %v3198_v54 }
 0x198   : > { %2637 = vmatpush2.bf16.msra.mxu0 %v3195_v59  ;;  %2680 = vmatpush2.bf16.msra.mxu1 %v3197_v61 }
 0x199   : > { %2638 = vmatprep.subr.bf16.mxu0 %v3180_v62  ;;  %2681 = vmatprep.subr.bf16.mxu1 %v3182_v63 }
 0x19c   : > { %2639 = vmatpush2.bf16.msra.mxu0 %v3179_v5  ;;  %2682 = vmatpush2.bf16.msra.mxu1 %v3181_v7  ;;  %v1000_v7 = vsub.s32 4, %v4446_v6 }
 0x19d   : > { %2640 = vmatprep.subr.bf16.mxu0 %v3164_v8  ;;  %2683 = vmatprep.subr.bf16.mxu1 %v3166_v9  ;;  %v1008_v8 = vsub.s32 6, %v4446_v6  ;;  %v1004_v9 = vsub.s32 5, %v4446_v6 }
 0x1a0   : > { %2641 = vmatpush2.bf16.msra.mxu0 %v3163_v10  ;;  %2684 = vmatpush2.bf16.msra.mxu1 %v3165_v13  ;;  %v1012_v10 = vsub.s32 7, %v4446_v6  ;;  %v1001_v13 = vrot.slane %v4455_v14, %v1000_v7 }
 0x1a3   : > { %v2386_v21 = vpop.f32.mrf.mxu0  ;;  %2643 = vmatmul.mubr.bf16.vlgmr.msra.gmra.mxu0 %v3492_v22  ;;  %v2429_v25 = vpop.f32.mrf.mxu1  ;;  %2686 = vmatmul.mubr.bf16.vlgmr.msra.gmra.mxu1 %v3492_v22 }
 0x1a4   : > { %v2387_v24 = vadd.f32 %v2386_v21, %v985_v18  ;;  %v2430_v26 = vadd.f32 %v2429_v25, %v993_v19  ;;  %v1013_v21 = vrot.slane %v4455_v14, %v1012_v10 }
 0x1a5   : > { %v2388_v27 = vpop.f32.mrf.mxu0  ;;  %v2431_v30 = vpop.f32.mrf.mxu1 }
 0x1a6   : > { %v3279_v28 = vmul.f32 -1.442695, %v2387_v24  ;;  %v2389_v29 = vadd.f32 %v2388_v27, %v989_v20  ;;  %v3281_v31 = vmul.f32 -1.442695, %v2430_v26  ;;  %v2432_v32 = vadd.f32 %v2431_v30, %v997_v23 }
 0x1a7   : > { %v2390_v33 = vpop.f32.mrf.mxu0  ;;  %v2433_v35 = vpop.f32.mrf.mxu1 }
 0x1a8   : > { %3363 = vpow2.f32 %v3279_v28  ;;  %v3280_v34 = vmul.f32 -1.442695, %v2389_v29  ;;  %v2391_v11 = vadd.f32 %v2390_v33, %v985_v18  ;;  %v3282_v36 = vmul.f32 -1.442695, %v2432_v32 }
 0x1a9   : > { %3365 = vpow2.f32 %v3281_v31  ;;  %v2434_v37 = vadd.f32 %v2433_v35, %v993_v19  ;;  %v2392_v38 = vpop.f32.mrf.mxu0  ;;  %v2435_v41 = vpop.f32.mrf.mxu1  ;;  %v1009_v18 = vrot.slane %v4455_v14, %v1008_v8  ;;  %v1005_v19 = vrot.slane %v4455_v14, %v1004_v9 }
 0x1aa   : > { %3367 = vpow2.f32 %v3280_v34  ;;  %v3295_v39 = vmul.f32 -1.442695, %v2391_v11  ;;  %v2393_v40 = vadd.f32 %v2392_v38, %v989_v20  ;;  %v2436_v0 = vadd.f32 %v2435_v41, %v997_v23 }
 0x1ab   : > { %3369 = vpow2.f32 %v3282_v36  ;;  %v3297_v42 = vmul.f32 -1.442695, %v2434_v37 }
 0x1ac   : > { %3371 = vpow2.f32 %v3295_v39  ;;  %v3296_v43 = vmul.f32 -1.442695, %v2393_v40  ;;  %v3298_v44 = vmul.f32 -1.442695, %v2436_v0 }
 0x1ad   : > { %3373 = vpow2.f32 %v3297_v42 }
 0x1ae   : > { %3375 = vpow2.f32 %v3296_v43 }
 0x1af   : > { %3377 = vpow2.f32 %v3298_v44 }
 0x1b5   : > { %v3364_v45 = vpop.eup %3363 }
 0x1b6   : > { %v3366_v46 = vpop.eup %3365  ;;  %v2792_v47 = vadd.f32 1.0, %v3364_v45 }
 0x1b7   : > { %v3368_v48 = vpop.eup %3367  ;;  %v2794_v49 = vadd.f32 1.0, %v3366_v46 }
 0x1b8   : > { %v3370_v50 = vpop.eup %3369  ;;  %3379 = vrcp.f32 %v2792_v47  ;;  %v2793_v51 = vadd.f32 1.0, %v3368_v48 }
 0x1b9   : > { %v3372_v52 = vpop.eup %3371  ;;  %3381 = vrcp.f32 %v2794_v49  ;;  %v2795_v53 = vadd.f32 1.0, %v3370_v50 }
 0x1ba   : > { %v3374_v54 = vpop.eup %3373  ;;  %3383 = vrcp.f32 %v2793_v51  ;;  %v2808_v55 = vadd.f32 1.0, %v3372_v52 }
 0x1bb   : > { %v3376_v56 = vpop.eup %3375  ;;  %3385 = vrcp.f32 %v2795_v53  ;;  %v2810_v57 = vadd.f32 1.0, %v3374_v54 }
 0x1bc   : > { %v3378_v58 = vpop.eup %3377  ;;  %3387 = vrcp.f32 %v2808_v55  ;;  %v2809_v59 = vadd.f32 1.0, %v3376_v56 }
 0x1bd   : > { %3389 = vrcp.f32 %v2810_v57  ;;  %v2811_v60 = vadd.f32 1.0, %v3378_v58 }
 0x1be   : > { %3391 = vrcp.f32 %v2809_v59 }
 0x1bf   : > { %3393 = vrcp.f32 %v2811_v60 }
 0x1c5   : > { %v3380_v61 = vpop.eup %3379 }
 0x1c6   : > { %v3382_v62 = vpop.eup %3381  ;;  %2888 = vst [vmem:[%s4476_s30] sm:$0xff] %v3380_v61 }
 0x1c7   : > { %v3384_v63 = vpop.eup %3383  ;;  %2890 = vst [vmem:[%s4476_s30 + $0x10] sm:$0xff] %v3382_v62 }
 0x1c8   : > { %v3386_v1 = vpop.eup %3385  ;;  %2889 = vst [vmem:[%s4476_s30 + $0x8] sm:$0xff] %v3384_v63 }
 0x1c9   : > { %v3388_v2 = vpop.eup %3387  ;;  %2891 = vst [vmem:[%s4476_s30 + $0x18] sm:$0xff] %v3386_v1 }
 0x1ca   : > { %v3390_v3 = vpop.eup %3389  ;;  %2904 = vst [vmem:[%s4476_s30 + $0x80] sm:$0xff] %v3388_v2 }
 0x1cb   : > { %v3392_v4 = vpop.eup %3391  ;;  %2906 = vst [vmem:[%s4476_s30 + $0x90] sm:$0xff] %v3390_v3  ;;  %v4511_v3 = vld [vmem:[%s4451_s26 + $0x8] sm:$0xff] }
 0x1cc   : > { %v3394_v5 = vpop.eup %3393  ;;  %2905 = vst [vmem:[%s4476_s30 + $0x88] sm:$0xff] %v3392_v4  ;;  %v1017_v4 = vrot.slane %v4511_v3, %v984_v12 }
 0x1cd   : > { %2907 = vst [vmem:[%s4476_s30 + $0x98] sm:$0xff] %v3394_v5  ;;  %v1025_v5 = vrot.slane %v4511_v3, %v992_v15 }
 0x1e3   : > { %v2472_v20 = vpop.f32.mrf.mxu0  ;;  %v2515_v23 = vpop.f32.mrf.mxu1 }
 0x1e4   : > { %v2473_v22 = vadd.f32 %v2472_v20, %v1001_v13  ;;  %v2516_v24 = vadd.f32 %v2515_v23, %v1009_v18 }
 0x1e5   : > { %v2474_v25 = vpop.f32.mrf.mxu0  ;;  %v2517_v28 = vpop.f32.mrf.mxu1 }
 0x1e6   : > { %v3283_v26 = vmul.f32 -1.442695, %v2473_v22  ;;  %v2475_v27 = vadd.f32 %v2474_v25, %v1005_v19  ;;  %v3285_v29 = vmul.f32 -1.442695, %v2516_v24  ;;  %v2518_v30 = vadd.f32 %v2517_v28, %v1013_v21 }
 0x1e7   : > { %v2476_v31 = vpop.f32.mrf.mxu0  ;;  %v2519_v34 = vpop.f32.mrf.mxu1 }
 0x1e8   : > { %3395 = vpow2.f32 %v3283_v26  ;;  %v3284_v32 = vmul.f32 -1.442695, %v2475_v27  ;;  %v2477_v33 = vadd.f32 %v2476_v31, %v1001_v13  ;;  %v3286_v11 = vmul.f32 -1.442695, %v2518_v30 }
 0x1e9   : > { %3397 = vpow2.f32 %v3285_v29  ;;  %v2520_v35 = vadd.f32 %v2519_v34, %v1009_v18  ;;  %v2478_v36 = vpop.f32.mrf.mxu0  ;;  %v2521_v38 = vpop.f32.mrf.mxu1  ;;  %v1021_v13 = vrot.slane %v4511_v3, %v988_v16 }
 0x1ea   : > { %3399 = vpow2.f32 %v3284_v32  ;;  %v3299_v14 = vmul.f32 -1.442695, %v2477_v33  ;;  %v2479_v37 = vadd.f32 %v2478_v36, %v1005_v19  ;;  %v2522_v40 = vadd.f32 %v2521_v38, %v1013_v21 }
 0x1eb   : > { %3401 = vpow2.f32 %v3286_v11  ;;  %v3301_v39 = vmul.f32 -1.442695, %v2520_v35  ;;  %v1029_v19 = vrot.slane %v4511_v3, %v996_v17 }
 0x1ec   : > { %3403 = vpow2.f32 %v3299_v14  ;;  %v3300_v41 = vmul.f32 -1.442695, %v2479_v37  ;;  %v3302_v42 = vmul.f32 -1.442695, %v2522_v40 }
 0x1ed   : > { %3405 = vpow2.f32 %v3301_v39 }
 0x1ee   : > { %3407 = vpow2.f32 %v3300_v41 }
 0x1ef   : > { %3409 = vpow2.f32 %v3302_v42 }
 0x1f5   : > { %v3396_v0 = vpop.eup %3395 }
 0x1f6   : > { %v3398_v43 = vpop.eup %3397  ;;  %v2796_v44 = vadd.f32 1.0, %v3396_v0 }
 0x1f7   : > { %v3400_v45 = vpop.eup %3399  ;;  %v2798_v46 = vadd.f32 1.0, %v3398_v43 }
 0x1f8   : > { %v3402_v47 = vpop.eup %3401  ;;  %3411 = vrcp.f32 %v2796_v44  ;;  %v2797_v48 = vadd.f32 1.0, %v3400_v45 }
 0x1f9   : > { %v3404_v49 = vpop.eup %3403  ;;  %3413 = vrcp.f32 %v2798_v46  ;;  %v2799_v50 = vadd.f32 1.0, %v3402_v47 }
 0x1fa   : > { %v3406_v51 = vpop.eup %3405  ;;  %3415 = vrcp.f32 %v2797_v48  ;;  %v2812_v52 = vadd.f32 1.0, %v3404_v49 }
 0x1fb   : > { %v3408_v53 = vpop.eup %3407  ;;  %3417 = vrcp.f32 %v2799_v50  ;;  %v2814_v54 = vadd.f32 1.0, %v3406_v51 }
 0x1fc   : > { %v3410_v55 = vpop.eup %3409  ;;  %3419 = vrcp.f32 %v2812_v52  ;;  %v2813_v56 = vadd.f32 1.0, %v3408_v53 }
 0x1fd   : > { %3421 = vrcp.f32 %v2814_v54  ;;  %v2815_v57 = vadd.f32 1.0, %v3410_v55 }
 0x1fe   : > { %3423 = vrcp.f32 %v2813_v56 }
 0x1ff   : > { %3425 = vrcp.f32 %v2815_v57 }
 0x205   : > { %v3412_v58 = vpop.eup %3411 }
 0x206   : > { %v3414_v59 = vpop.eup %3413  ;;  %2892 = vst [vmem:[%s4476_s30 + $0x20] sm:$0xff] %v3412_v58 }
 0x207   : > { %v3416_v60 = vpop.eup %3415  ;;  %2894 = vst [vmem:[%s4476_s30 + $0x30] sm:$0xff] %v3414_v59 }
 0x208   : > { %v3418_v61 = vpop.eup %3417  ;;  %2893 = vst [vmem:[%s4476_s30 + $0x28] sm:$0xff] %v3416_v60  ;;  %v1033_v60 = vrot.slane %v4511_v3, %v1000_v7 }
 0x209   : > { %v3420_v62 = vpop.eup %3419  ;;  %2895 = vst [vmem:[%s4476_s30 + $0x38] sm:$0xff] %v3418_v61  ;;  %v1041_v61 = vrot.slane %v4511_v3, %v1008_v8 }
 0x20a   : > { %v3422_v63 = vpop.eup %3421  ;;  %2908 = vst [vmem:[%s4476_s30 + $0xa0] sm:$0xff] %v3420_v62  ;;  %v1037_v62 = vrot.slane %v4511_v3, %v1004_v9 }
 0x20b   : > { %v3424_v1 = vpop.eup %3423  ;;  %2910 = vst [vmem:[%s4476_s30 + $0xb0] sm:$0xff] %v3422_v63 }
 0x20c   : > { %v3426_v2 = vpop.eup %3425  ;;  %2909 = vst [vmem:[%s4476_s30 + $0xa8] sm:$0xff] %v3424_v1  ;;  %v1045_v1 = vrot.slane %v4511_v3, %v1012_v10 }
 0x20d   : > { %2911 = vst [vmem:[%s4476_s30 + $0xb8] sm:$0xff] %v3426_v2 }
 0x223   : > { %v2558_v18 = vpop.f32.mrf.mxu0  ;;  %v2601_v21 = vpop.f32.mrf.mxu1 }
 0x224   : > { %v2559_v20 = vadd.f32 %v2558_v18, %v1017_v4  ;;  %v2602_v22 = vadd.f32 %v2601_v21, %v1025_v5 }
 0x225   : > { %v2560_v23 = vpop.f32.mrf.mxu0  ;;  %v2603_v12 = vpop.f32.mrf.mxu1 }
 0x226   : > { %v3287_v24 = vmul.f32 -1.442695, %v2559_v20  ;;  %v2561_v25 = vadd.f32 %v2560_v23, %v1021_v13  ;;  %v3289_v26 = vmul.f32 -1.442695, %v2602_v22  ;;  %v2604_v27 = vadd.f32 %v2603_v12, %v1029_v19 }
 0x227   : > { %v2562_v28 = vpop.f32.mrf.mxu0  ;;  %v2605_v30 = vpop.f32.mrf.mxu1 }
 0x228   : > { %3427 = vpow2.f32 %v3287_v24  ;;  %v3288_v15 = vmul.f32 -1.442695, %v2561_v25  ;;  %v2563_v29 = vadd.f32 %v2562_v28, %v1017_v4  ;;  %v3290_v16 = vmul.f32 -1.442695, %v2604_v27 }
 0x229   : > { %3429 = vpow2.f32 %v3289_v26  ;;  %v2606_v31 = vadd.f32 %v2605_v30, %v1025_v5  ;;  %v2564_v32 = vpop.f32.mrf.mxu0  ;;  %v2607_v34 = vpop.f32.mrf.mxu1 }
 0x22a   : > { %3431 = vpow2.f32 %v3288_v15  ;;  %v3303_v17 = vmul.f32 -1.442695, %v2563_v29  ;;  %v2565_v33 = vadd.f32 %v2564_v32, %v1021_v13  ;;  %v2608_v35 = vadd.f32 %v2607_v34, %v1029_v19 }
 0x22b   : > { %3433 = vpow2.f32 %v3290_v16  ;;  %v3305_v11 = vmul.f32 -1.442695, %v2606_v31 }
 0x22c   : > { %3435 = vpow2.f32 %v3303_v17  ;;  %v3304_v36 = vmul.f32 -1.442695, %v2565_v33  ;;  %v3306_v14 = vmul.f32 -1.442695, %v2608_v35 }
 0x22d   : > { %3437 = vpow2.f32 %v3305_v11 }
 0x22e   : > { %3439 = vpow2.f32 %v3304_v36 }
 0x22f   : > { %3441 = vpow2.f32 %v3306_v14 }
 0x235   : > { %v3428_v37 = vpop.eup %3427 }
 0x236   : > { %v3430_v38 = vpop.eup %3429  ;;  %v2800_v39 = vadd.f32 1.0, %v3428_v37 }
 0x237   : > { %v3432_v40 = vpop.eup %3431  ;;  %v2802_v41 = vadd.f32 1.0, %v3430_v38 }
 0x238   : > { %v3434_v42 = vpop.eup %3433  ;;  %3443 = vrcp.f32 %v2800_v39  ;;  %v2801_v0 = vadd.f32 1.0, %v3432_v40 }
 0x239   : > { %v3436_v43 = vpop.eup %3435  ;;  %3445 = vrcp.f32 %v2802_v41  ;;  %v2803_v44 = vadd.f32 1.0, %v3434_v42 }
 0x23a   : > { %v3438_v45 = vpop.eup %3437  ;;  %3447 = vrcp.f32 %v2801_v0  ;;  %v2816_v46 = vadd.f32 1.0, %v3436_v43 }
 0x23b   : > { %v3440_v47 = vpop.eup %3439  ;;  %3449 = vrcp.f32 %v2803_v44  ;;  %v2818_v48 = vadd.f32 1.0, %v3438_v45 }
 0x23c   : > { %v3442_v49 = vpop.eup %3441  ;;  %3451 = vrcp.f32 %v2816_v46  ;;  %v2817_v50 = vadd.f32 1.0, %v3440_v47 }
 0x23d   : > { %3453 = vrcp.f32 %v2818_v48  ;;  %v2819_v51 = vadd.f32 1.0, %v3442_v49 }
 0x23e   : > { %3455 = vrcp.f32 %v2817_v50 }
 0x23f   : > { %3457 = vrcp.f32 %v2819_v51 }
 0x245   : > { %v3444_v52 = vpop.eup %3443 }
 0x246   : > { %v3446_v53 = vpop.eup %3445  ;;  %2896 = vst [vmem:[%s4476_s30 + $0x40] sm:$0xff] %v3444_v52 }
 0x247   : > { %v3448_v54 = vpop.eup %3447  ;;  %2898 = vst [vmem:[%s4476_s30 + $0x50] sm:$0xff] %v3446_v53 }
 0x248   : > { %v3450_v55 = vpop.eup %3449  ;;  %2897 = vst [vmem:[%s4476_s30 + $0x48] sm:$0xff] %v3448_v54 }
 0x249   : > { %v3452_v56 = vpop.eup %3451  ;;  %2899 = vst [vmem:[%s4476_s30 + $0x58] sm:$0xff] %v3450_v55 }
 0x24a   : > { %v3454_v57 = vpop.eup %3453  ;;  %2912 = vst [vmem:[%s4476_s30 + $0xc0] sm:$0xff] %v3452_v56 }
 0x24b   : > { %v3456_v58 = vpop.eup %3455  ;;  %2914 = vst [vmem:[%s4476_s30 + $0xd0] sm:$0xff] %v3454_v57 }
 0x24c   : > { %v3458_v59 = vpop.eup %3457  ;;  %2913 = vst [vmem:[%s4476_s30 + $0xc8] sm:$0xff] %v3456_v58 }
 0x24d   : > { %2915 = vst [vmem:[%s4476_s30 + $0xd8] sm:$0xff] %v3458_v59 }
 0x263   : > { %v2644_v63 = vpop.f32.mrf.mxu0  ;;  %v2687_v4 = vpop.f32.mrf.mxu1 }
 0x264   : > { %v2645_v2 = vadd.f32 %v2644_v63, %v1033_v60  ;;  %v2688_v5 = vadd.f32 %v2687_v4, %v1041_v61 }
 0x265   : > { %v2646_v13 = vpop.f32.mrf.mxu0  ;;  %v2689_v7 = vpop.f32.mrf.mxu1 }
 0x266   : > { %v3291_v18 = vmul.f32 -1.442695, %v2645_v2  ;;  %v2647_v19 = vadd.f32 %v2646_v13, %v1037_v62  ;;  %v3293_v20 = vmul.f32 -1.442695, %v2688_v5  ;;  %v2690_v21 = vadd.f32 %v2689_v7, %v1045_v1 }
 0x267   : > { %v2648_v22 = vpop.f32.mrf.mxu0  ;;  %v2691_v24 = vpop.f32.mrf.mxu1 }
 0x268   : > { %3459 = vpow2.f32 %v3291_v18  ;;  %v3292_v8 = vmul.f32 -1.442695, %v2647_v19  ;;  %v2649_v23 = vadd.f32 %v2648_v22, %v1033_v60  ;;  %v3294_v9 = vmul.f32 -1.442695, %v2690_v21 }
 0x269   : > { %3461 = vpow2.f32 %v3293_v20  ;;  %v2692_v25 = vadd.f32 %v2691_v24, %v1041_v61  ;;  %v2650_v6 = vpop.f32.mrf.mxu0  ;;  %v2693_v12 = vpop.f32.mrf.mxu1 }
 0x26a   : > { %3463 = vpow2.f32 %v3292_v8  ;;  %v3307_v10 = vmul.f32 -1.442695, %v2649_v23  ;;  %v2651_v3 = vadd.f32 %v2650_v6, %v1037_v62  ;;  %v2694_v27 = vadd.f32 %v2693_v12, %v1045_v1 }
 0x26b   : > { %3465 = vpow2.f32 %v3294_v9  ;;  %v3309_v26 = vmul.f32 -1.442695, %v2692_v25 }
 0x26c   : > { %3467 = vpow2.f32 %v3307_v10  ;;  %v3308_v28 = vmul.f32 -1.442695, %v2651_v3  ;;  %v3310_v15 = vmul.f32 -1.442695, %v2694_v27 }
 0x26d   : > { %3469 = vpow2.f32 %v3309_v26 }
 0x26e   : > { %3471 = vpow2.f32 %v3308_v28 }
 0x26f   : > { %3473 = vpow2.f32 %v3310_v15 }
 0x275   : > { %v3460_v29 = vpop.eup %3459 }
 0x276   : > { %v3462_v30 = vpop.eup %3461  ;;  %v2804_v16 = vadd.f32 1.0, %v3460_v29 }
 0x277   : > { %v3464_v31 = vpop.eup %3463  ;;  %v2806_v32 = vadd.f32 1.0, %v3462_v30 }
 0x278   : > { %v3466_v17 = vpop.eup %3465  ;;  %3475 = vrcp.f32 %v2804_v16  ;;  %v2805_v33 = vadd.f32 1.0, %v3464_v31 }
 0x279   : > { %v3468_v34 = vpop.eup %3467  ;;  %3477 = vrcp.f32 %v2806_v32  ;;  %v2807_v11 = vadd.f32 1.0, %v3466_v17 }
 0x27a   : > { %v3470_v35 = vpop.eup %3469  ;;  %3479 = vrcp.f32 %v2805_v33  ;;  %v2820_v36 = vadd.f32 1.0, %v3468_v34 }
 0x27b   : > { %v3472_v14 = vpop.eup %3471  ;;  %3481 = vrcp.f32 %v2807_v11  ;;  %v2822_v37 = vadd.f32 1.0, %v3470_v35 }
 0x27c   : > { %v3474_v38 = vpop.eup %3473  ;;  %3483 = vrcp.f32 %v2820_v36  ;;  %v2821_v39 = vadd.f32 1.0, %v3472_v14 }
 0x27d   : > { %3485 = vrcp.f32 %v2822_v37  ;;  %v2823_v40 = vadd.f32 1.0, %v3474_v38 }
 0x27e   : > { %3487 = vrcp.f32 %v2821_v39 }
 0x27f   : > { %3489 = vrcp.f32 %v2823_v40 }
 0x285   : > { %v3476_v41 = vpop.eup %3475 }
 0x286   : > { %v3478_v42 = vpop.eup %3477  ;;  %2900 = vst [vmem:[%s4476_s30 + $0x60] sm:$0xff] %v3476_v41 }
 0x287   : > { %v3480_v0 = vpop.eup %3479  ;;  %2902 = vst [vmem:[%s4476_s30 + $0x70] sm:$0xff] %v3478_v42 }
 0x288   : > { %v3482_v43 = vpop.eup %3481  ;;  %2901 = vst [vmem:[%s4476_s30 + $0x68] sm:$0xff] %v3480_v0 }
 0x289   : > { %v3484_v44 = vpop.eup %3483  ;;  %2903 = vst [vmem:[%s4476_s30 + $0x78] sm:$0xff] %v3482_v43 }
 0x28a   : > { %v3486_v45 = vpop.eup %3485  ;;  %2916 = vst [vmem:[%s4476_s30 + $0xe0] sm:$0xff] %v3484_v44 }
 0x28b   : > { %v3488_v46 = vpop.eup %3487  ;;  %2918 = vst [vmem:[%s4476_s30 + $0xf0] sm:$0xff] %v3486_v45 }
 0x28c   : > { %v3490_v47 = vpop.eup %3489  ;;  %2917 = vst [vmem:[%s4476_s30 + $0xe8] sm:$0xff] %v3488_v46 }
 0x28d   : > { %2919 = vst [vmem:[%s4476_s30 + $0xf8] sm:$0xff] %v3490_v47 }
 0x28e   : > { %3506 = shalt.err (!%p3503_p7)
}
 0x28f   : > { %s3507_s20 = scalar_lea.hbm %s4554_s9, 4096  ;;  %s3511_s26 = scalar_lea.hbm %s4606_s3, 8192 }
 0x290   : > { %p3508_p10 = scmp.ne.s32.totalorder %s4554_s9, %s3507_s20  ;;  %p3512_p13 = scmp.lt.s32.totalorder %s4554_s9, %s4606_s3 }
 0x291   : > { %p3513_p0 = scmp.lt.s32.totalorder %s3511_s26, %s3507_s20 }
 0x292   : > { %p3509_p11 = pnand %p3508_p10, %p3618_p6 }
 0x293   : > { %p3514_p1 = por %p3513_p0, %p3512_p13 }
 0x294   : > { %p3510_p12 = pneg %p3509_p11 }
 0x296   : > { %p3515_p2 = pnand %p3514_p1, %p3510_p12 }
 0x298   : > { %3518 = shalt.err (!%p3515_p2)
}
 0x299   : > { %s3556_s29 = smov 2048   ;;  %s3557_s30 = smov 4096  }
 0x29a   : > { %s3558_s5 = smov 128  }
 0x29b   : > { %3318 = dma.vmem_to_hbm [thread:$0]  (%p3618_p6), %s4557_s6, 4096, %s4554_s9, %s2921_s16, %s3556_s29, %s3557_s30, %s3558_s5  }
 0x29c PF: > { %s2949_s7 = sand.u32 1, %s3541_s12   ;;  %p3321_p3 = pnand %p3013_p9, %p3622_p8 }
 0x29d   : > { %s2950_s8 = scalar_lea.sflag [#allocation4], %s2949_s7 }
 0x29e   : > { %p3322_p4 = pneg %p3321_p3 }
 0x2a0   : > { %3536 = dma.done.wait (%p3322_p4), %s2950_s8, 4096  }
 0x2a1   : > { %3538 = vsyncadd (%p3322_p4), %s2950_s8, 4294963200  ;;  %p13_p5 = scmp.ge.s32.totalorder %s3604_s18, 4   ;;  %s4610_s12 = smov %s3545_s13 }
 0x2a2   : > { %s4611_s13 = smov %s3549_s14  ;;  %s4612_s14 = smov %s3616_s21 }
 0x2a3   : > { %s4613_s15 = smov %s3604_s18  ;;  %15 = sbr.rel (!%p13_p5) target bundleno = 3 (0x3), region = 98 }
 0x2a8   :  { %2955 = vsyncpa [#allocation4], 1 }
 0x2a9   :  { %2957 = vsyncpa [#allocation4 + $0x1], 1 }

// kernel: conve_forward.2
= control target key start
LH: loop header
LB: loop body
LE: loop exit
PB: predicated region body
PF: predicated region fallthrough
CT: control target
= control target key end

     0   :  { %10 = vsyncpa [#allocation4], 0  ;;  %s9186_s0 = inlined_call_operand.vmem [shape: f32[9,32], index: 0, kind: input, shape index: {}]   ;;  %s9187_s1 = inlined_call_operand.vmem [shape: f32[1,32], index: 1, kind: input, shape index: {}]   ;;  %s9188_s2 = inlined_call_operand.vmem [shape: f32[9,16,324], index: 2, kind: input, shape index: {}]   ;;  %s9189_s3 = inlined_call_operand.vmem [shape: bf16[32,324,256], index: 3, kind: input, shape index: {}]   ;;  %s9190_s4 = inlined_call_operand.vmem [shape: f32[1,256], index: 4, kind: input, shape index: {}]   ;;  %s9191_s5 = inlined_call_operand.vmem [shape: bf16[16,256], index: 5, kind: output, shape index: {}]  }
   0x1   :  { %11 = vsyncpa [#allocation6], 0  ;;  %s6153_s18 = smov 0  }
   0x2 LB: > { %s165_s21 = sshll.u32 %s9186_s0, 4  ;;  %s6162_s22 = sadd.s32 4294967295, %s6115_s18   ;;  %s6115_s18 = sphi %s6153_s18, %s17_s18   ;;  %s166_s21 = int_to_ptr.vmem [resolvable:$true] %s165_s21 }
   0x3   : > { %p4509_p0 = scmp.ge.s32.totalorder %s6115_s18, 1  ;;  %p153_p1 = scmp.lt.s32.totalorder %s6115_s18, 5 }
   0x4   : > { %p9192_p4 = scmp.eq.s32.totalorder %s6162_s22, 0  ;;  %s179_s26 = sshll.u32 %s9187_s1, 4  ;;  %s180_s26 = int_to_ptr.vmem [resolvable:$true] %s179_s26 }
   0x5   : > { %p6167_p3 = pnand %p4509_p0, %p153_p1  ;;  %s6071_s28 = scalar_lea.vmem %s166_s21, 256 }
   0x6   : > { %p6072_p7 = scmp.ne.s32.totalorder %s166_s21, %s6071_s28  ;;  %p6079_p11 = scmp.lt.s32.totalorder %s166_s21, %s166_s21 }
   0x7   : > { %s9283_s23 = scalar_select %p6167_p3, 1, 0 }
   0x8   : > { %p5415_p5 = pneg %p6167_p3  ;;  %p6080_p12 = scmp.lt.s32.totalorder %s6071_s28, %s6071_s28 }
   0xa   : > { %p6179_p6 = pnand %p9192_p4, %p5415_p5  ;;  %p6081_p13 = por %p6080_p12, %p6079_p11 }
   0xc   : > { %p6073_p8 = pneg %p6179_p6 }
   0xe   : > { %p6074_p9 = pnand %p6073_p8, %p6072_p7 }
  0x10   : > { %p6075_p10 = pneg %p6074_p9 }
  0x12   : > { %p6082_p0 = pnand %p6081_p13, %p6075_p10 }
  0x14   : > { %6085 = shalt.err (!%p6082_p0)
}
  0x15   : > { %s6117_s29 = smov [#allocation3]   ;;  %s6118_s30 = smov 128  }
  0x16   : > { %s6119_s6 = smov 8   ;;  %s6086_s7 = scalar_lea.vmem %s180_s26, 16 }
  0x17   : > { %5418 = dma.vmem_to_smem (!%p6179_p6), %s166_s21, 256, %s6117_s29, [#allocation4], %s6118_s30, %s6118_s30, %s6119_s6  }
  0x18   : > { %p6087_p1 = scmp.ne.s32.totalorder %s180_s26, %s6086_s7  ;;  %p6094_p7 = scmp.lt.s32.totalorder %s180_s26, %s180_s26 }
  0x19   : > { %p6095_p9 = scmp.lt.s32.totalorder %s6086_s7, %s6086_s7 }
  0x1a   : > { %p6089_p5 = pnand %p6087_p1, %p6073_p8 }
  0x1b   : > { %p6096_p4 = por %p6095_p9, %p6094_p7 }
  0x1c   : > { %p6090_p2 = pneg %p6089_p5 }
  0x1e   : > { %p6097_p3 = pnand %p6096_p4, %p6090_p2 }
  0x20   : > { %6100 = shalt.err (!%p6097_p3)
}
  0x21   : > { %s6120_s8 = smov [#allocation5]   ;;  %p9285_p10 = scmp.ne.s32.totalorder %s9283_s23, 0 }
  0x22   : > { %5421 = dma.vmem_to_smem (!%p6179_p6), %s180_s26, 16, %s6120_s8, [#allocation6]  }
  0x23   : > { %208 = sbr.rel (%p9285_p10) target bundleno = 640 (0x280), region = 40 }
  0x28   : > { %p9286_p11 = scmp.eq.s32.totalorder %s6162_s22, 0 }
  0x2a   : > { %6106 = dma.done.wait (%p9286_p11), [#allocation4], 256   ;;  %p9287_p12 = pmov %p9286_p11 }
  0x2b   : > { %p9288_p8 = pmov %p9286_p11 }
  0x2c   : > { %6108 = vsyncadd (%p9287_p12), [#allocation4], 4294967040 }
  0x2d   : > { %6110 = dma.done.wait (%p9288_p8), [#allocation6], 16   ;;  %p9289_p13 = pmov %p9288_p8 }
  0x2f   : > { %6112 = vsyncadd (%p9289_p13), [#allocation6], 4294967280 }
  0x30   : > { %218 = sfence }
  0x31   : > { %s6206_s9 = sshll.u32 %s6162_s22, 3  ;;  %p9290_p3 = scmp.ne.s32.totalorder %s6162_s22, 0 }
  0x32   : > { %p238_p2 = scmp.lt.s32.totalorder %s6206_s9, 31 }
  0x34   : > { %s239_s10 = scalar_select %p238_p2, %s6206_s9, 31 }
  0x35   : > { %248 = sbr.rel (%p9290_p3) target bundleno = 61 (0x3d), region = 52 }
  0x36   : > { %s5406_s11 = smul.u32 328, %s239_s10 }
  0x38   : > { %s6213_s14 = scalar_lea.vmem %s9189_s3, %s5406_s11 }
  0x3a   : > { %v6121_v0 = vmov 0.0  }
  0x3b   : > { %249 = vst [vmem:[#allocation2 + $0x10] sm:$0xff] %v6121_v0  ;;  %250 = vst [vmem:[#allocation2] sm:$0xff] %v6121_v0 }
  0x3c   : > { %251 = vst [vmem:[#allocation2 + $0x18] sm:$0xff] %v6121_v0  ;;  %252 = vst [vmem:[#allocation2 + $0x8] sm:$0xff] %v6121_v0 }
  0x3d PF: > { %v5440_v1 = vld [vmem:[%s6213_s14 + $0x1bc] ss:$8 sps:$4 sm:$0xff]   ;;  %v5442_v2 = vld [vmem:[%s6213_s14 + $0x1b8] ss:$8 sps:$4 sm:$0xff]   ;;  %v9194_v3 = vmov 0   ;;  %s6221_s15 = sadd.s32 1, %s6206_s9 }
  0x3e   : > { %1021 = vmatprep.mubr.bf16.mxu1 %v9194_v3  ;;  %946 = vmatprep.subr.bf16.mxu0 %v5440_v1  ;;  %v5443_v4 = vld [vmem:[%s6213_s14 + $0x1ac] ss:$8 sps:$4 sm:$0xff]   ;;  %v5445_v5 = vld [vmem:[%s6213_s14 + $0x1a8] ss:$8 sps:$4 sm:$0xff]   ;;  %s531_s16 = sshra.s32 %s6221_s15, 7  ;;  %s6230_s19 = sand.u32 127, %s6221_s15 }
  0x3f   : > { %947 = vmatpush1.bf16.msra.mxu0 %v5442_v2  ;;  %v5446_v6 = vld [vmem:[%s6213_s14 + $0x19c] ss:$8 sps:$4 sm:$0xff]   ;;  %s6227_s17 = sshll.u32 %s531_s16, 7  ;;  %v4624_v7 = vld [vmem:[%s6213_s14 + $0x288] sm:$0x33]  ;;  %vm939_vm0 = vcmask 1041408  }
  0x40   : > { %948 = vmatprep.subr.bf16.mxu0 %v5443_v4  ;;  %s6234_s20 = sld [smem:[#allocation3 + %s6221_s15]]  ;;  %s5293_s21 = sadd.s32 128, %s6227_s17  ;;  %v4666_v8 = vcombine.high %v4624_v7, %v4624_v7  ;;  %v4665_v9 = vcombine.low %v4624_v7, %v4624_v7  ;;  %v5448_v10 = vld [vmem:[%s6213_s14 + $0x198] ss:$8 sps:$4 sm:$0xff]   ;;  %v5456_v11 = vld [vmem:[%s6213_s14 + $0x27c] ss:$8 sps:$4 sm:$0xff]  }
  0x41   : > { %s537_s23 = sadd.s32 %s5293_s21, %s6230_s19  ;;  %s5295_s24 = sadd.s32 256, %s6227_s17  ;;  %v5449_v12 = vld [vmem:[%s6213_s14 + $0x18c] ss:$8 sps:$4 sm:$0xff]   ;;  %v5459_v14 = vld [vmem:[%s6213_s14 + $0x278] ss:$8 sps:$4 sm:$0xff]   ;;  %vm935_vm1 = vcmask 556032  }
  0x42   : > { %s6241_s25 = sld [smem:[#allocation3 + %s537_s23]]  ;;  %s554_s26 = sadd.s32 %s5295_s24, %s6230_s19  ;;  %4667 = vmatprep.subr.msk.bf16.mxu1 %vm939_vm0, %v4666_v8  ;;  %v941_v13 = vsel %vm939_vm0, %v4665_v9, 0  ;;  %v5462_v15 = vld [vmem:[%s6213_s14 + $0x26c] ss:$8 sps:$4 sm:$0xff]   ;;  %v5452_v16 = vld [vmem:[%s6213_s14 + $0x188] ss:$8 sps:$4 sm:$0xff]  }
  0x43   : > { %949 = vmatpush1.bf16.msra.mxu0 %v5445_v5  ;;  %s6247_s27 = sld [smem:[#allocation3 + %s554_s26]]  ;;  %996 = vmatpush1.bf16.msra.mxu1 %v941_v13  ;;  %s5297_s28 = sadd.s32 384, %s6227_s17  ;;  %v5454_v17 = vld [vmem:[%s6213_s14 + $0x17c] ss:$8 sps:$4 sm:$0xff]   ;;  %v5465_v18 = vld [vmem:[%s6213_s14 + $0x268] ss:$8 sps:$4 sm:$0xff]  }
  0x44   : > { %950 = vmatprep.subr.bf16.mxu0 %v5446_v6  ;;  %s5299_s29 = sadd.s32 512, %s6227_s17  ;;  %997 = vmatprep.subr.bf16.mxu1 %v5456_v11  ;;  %s571_s30 = sadd.s32 %s5297_s28, %s6230_s19  ;;  %v5468_v19 = vld [vmem:[%s6213_s14 + $0x25c] ss:$8 sps:$4 sm:$0xff]   ;;  %v5458_v20 = vld [vmem:[%s6213_s14 + $0x178] ss:$8 sps:$4 sm:$0xff]   ;;  %v6296_v30 = vld [vmem:[%s9188_s2 + $0x10] sm:$0xff] }
  0x45   : > { %s588_s6 = sadd.s32 %s5299_s29, %s6230_s19  ;;  %s6256_s7 = sld [smem:[#allocation3 + %s571_s30]]  ;;  %v5460_v21 = vld [vmem:[%s6213_s14 + $0x16c] ss:$8 sps:$4 sm:$0xff]   ;;  %v5471_v23 = vld [vmem:[%s6213_s14 + $0x258] ss:$8 sps:$4 sm:$0xff]  }
  0x46   : > { %s5301_s8 = sadd.s32 640, %s6227_s17  ;;  %s6260_s10 = sld [smem:[#allocation3 + %s588_s6]]  ;;  %v6274_v22 = vstv %s6234_s20  ;;  %v5464_v25 = vld [vmem:[%s6213_s14 + $0x168] ss:$8 sps:$4 sm:$0xff]   ;;  %v5466_v26 = vld [vmem:[%s6213_s14 + $0x15c] ss:$8 sps:$4 sm:$0xff]  }
  0x47   : > { %951 = vmatpush1.bf16.msra.mxu0 %v5448_v10  ;;  %s605_s11 = sadd.s32 %s5301_s8, %s6230_s19  ;;  %998 = vmatpush1.bf16.msra.mxu1 %v5459_v14  ;;  %s5303_s13 = sadd.s32 768, %s6227_s17  ;;  %v5474_v27 = vld [vmem:[%s6213_s14 + $0x24c] ss:$8 sps:$4 sm:$0xff]   ;;  %v5477_v29 = vld [vmem:[%s6213_s14 + $0x248] ss:$8 sps:$4 sm:$0xff]   ;;  %v6306_v32 = vld [vmem:[%s9188_s2 + $0x40] sm:$0xff]  ;;  %v527_v37 = vmul.f32 %v6274_v22, %v6296_v30 }
  0x48   : > { %952 = vmatprep.subr.bf16.mxu0 %v5449_v12  ;;  %s6264_s12 = sld [smem:[#allocation3 + %s605_s11]]  ;;  %999 = vmatprep.subr.bf16.mxu1 %v5462_v15  ;;  %s5305_s16 = sadd.s32 896, %s6227_s17  ;;  %v6281_v24 = vstv %s6241_s25  ;;  %v6301_v31 = vld [vmem:[%s9188_s2 + $0x28] sm:$0xff]  ;;  %v6317_v34 = vld [vmem:[%s9188_s2 + $0x58] sm:$0xff]  ;;  %v6322_v35 = vld [vmem:[%s9188_s2 + $0x70] sm:$0xff] }
  0x49   : > { %s622_s21 = sadd.s32 %s5303_s13, %s6230_s19  ;;  %s639_s23 = sadd.s32 %s5305_s16, %s6230_s19  ;;  %v6290_v28 = vstv %s6247_s27  ;;  %v6327_v36 = vld [vmem:[%s9188_s2 + $0x88] sm:$0xff]  ;;  %v530_v38 = vmul.f32 %v6274_v22, %v6301_v31  ;;  %v542_v39 = vmul.f32 %v6306_v32, %v6281_v24  ;;  %v6343_v40 = vld [vmem:[%s9188_s2 + $0xa0] sm:$0xff]  ;;  %v6348_v41 = vld [vmem:[%s9188_s2 + $0xb8] sm:$0xff]  ;;  %v545_v43 = vmul.f32 %v6317_v34, %v6281_v24 }
  0x4a   : > { %s6276_s24 = sld [smem:[#allocation3 + %s622_s21]]  ;;  %s5307_s26 = sadd.s32 1024, %s6227_s17  ;;  %v6353_v42 = vld [vmem:[%s9188_s2 + $0xd0] sm:$0xff]  ;;  %v559_v44 = vmul.f32 %v6322_v35, %v6290_v28  ;;  %v562_v45 = vmul.f32 %v6327_v36, %v6290_v28  ;;  %v6372_v48 = vld [vmem:[%s9188_s2 + $0xe8] sm:$0xff]  ;;  %v5470_v51 = vld [vmem:[%s6213_s14 + $0x158] ss:$8 sps:$4 sm:$0xff]  }
  0x4b   : > { %953 = vmatpush1.bf16.msra.mxu0 %v5452_v16  ;;  %1000 = vmatpush1.bf16.msra.mxu1 %v5465_v18  ;;  %s6283_s28 = sld [smem:[#allocation3 + %s639_s23]]  ;;  %s656_s29 = sadd.s32 %s5307_s26, %s6230_s19  ;;  %v6309_v33 = vstv %s6256_s7  ;;  %v5482_v47 = vld [vmem:[%s6213_s14 + $0x74] ss:$8 sps:$4 sm:$0xff]   ;;  %v548_v49 = vadd.f32 %v542_v39, %v527_v37  ;;  %v6385_v53 = vld [vmem:[%s9188_s2 + $0x100] sm:$0xff]  ;;  %v551_v54 = vadd.f32 %v545_v43, %v530_v38  ;;  %v6407_v59 = vld [vmem:[%s9188_s2 + $0x148] sm:$0xff] }
  0x4c   : > { %954 = vmatprep.subr.bf16.mxu0 %v5454_v17  ;;  %1001 = vmatprep.subr.bf16.mxu1 %v5468_v19  ;;  %s6311_s27 = sld [smem:[#allocation3 + %s656_s29]]  ;;  %s324_s8 = sshra.s32 %s6206_s9, 7  ;;  %v6362_v46 = vstv %s6260_s10  ;;  %v576_v50 = vmul.f32 %v6343_v40, %v6309_v33  ;;  %v5472_v52 = vld [vmem:[%s6213_s14 + $0x14c] ss:$8 sps:$4 sm:$0xff]   ;;  %v579_v55 = vmul.f32 %v6348_v41, %v6309_v33  ;;  %v6397_v57 = vld [vmem:[%s9188_s2 + $0x118] sm:$0xff]  ;;  %v6421_v0 = vld [vmem:[%s9188_s2 + $0x160] sm:$0xff] }
  0x4d   : > { %s6336_s7 = sld [smem:[#allocation5 + %s6221_s15]]  ;;  %s6338_s29 = sshll.u32 %s324_s8, 7  ;;  %v6402_v58 = vld [vmem:[%s9188_s2 + $0x130] sm:$0xff]  ;;  %v565_v60 = vadd.f32 %v559_v44, %v548_v49  ;;  %v593_v61 = vmul.f32 %v6353_v42, %v6362_v46  ;;  %v568_v1 = vadd.f32 %v562_v45, %v551_v54  ;;  %v596_v2 = vmul.f32 %v6372_v48, %v6362_v46  ;;  %v6434_v5 = vld [vmem:[%s9188_s2 + $0x178] sm:$0xff]  ;;  %v6449_v9 = vld [vmem:[%s9188_s2 + $0x1a8] sm:$0xff] }
  0x4e   : > { %s6365_s15 = sld [smem:[#allocation3 + %s6206_s9]]  ;;  %s5277_s8 = sadd.s32 128, %s6338_s29  ;;  %v6390_v56 = vstv %s6264_s12  ;;  %v5476_v63 = vld [vmem:[%s6213_s14 + $0x148] ss:$8 sps:$4 sm:$0xff]   ;;  %v5478_v14 = vld [vmem:[%s6213_s14 + $0x23c] ss:$8 sps:$4 sm:$0xff]  }
  0x4f   : > { %955 = vmatpush1.bf16.msra.mxu0 %v5458_v20  ;;  %1002 = vmatpush1.bf16.msra.mxu1 %v5471_v23  ;;  %s6377_s16 = sand.u32 127, %s6206_s9  ;;  %s5279_s10 = sadd.s32 256, %s6338_s29  ;;  %v582_v6 = vadd.f32 %v576_v50, %v565_v60  ;;  %v610_v7 = vmul.f32 %v6385_v53, %v6390_v56  ;;  %v6444_v8 = vld [vmem:[%s9188_s2 + $0x190] sm:$0xff]  ;;  %v585_v10 = vadd.f32 %v579_v55, %v568_v1 }
  0x50   : > { %956 = vmatprep.subr.bf16.mxu0 %v5460_v21  ;;  %1003 = vmatprep.subr.bf16.mxu1 %v5474_v27  ;;  %s330_s26 = sadd.s32 %s5277_s8, %s6377_s16  ;;  %s347_s20 = sadd.s32 %s5279_s10, %s6377_s16  ;;  %v6412_v62 = vstv %s6276_s24  ;;  %v613_v11 = vmul.f32 %v6397_v57, %v6390_v56  ;;  %v5484_v44 = vld [vmem:[%s6213_s14 + $0x22c] ss:$8 sps:$4 sm:$0xff]   ;;  %v5489_v60 = vld [vmem:[%s6213_s14 + $0x228] ss:$8 sps:$4 sm:$0xff]  }
  0x51   : > { %s6414_s12 = sld [smem:[#allocation3 + %s330_s26]]  ;;  %s5281_s8 = sadd.s32 384, %s6338_s29  ;;  %v6426_v4 = vstv %s6283_s28  ;;  %v627_v12 = vmul.f32 %v6402_v58, %v6412_v62  ;;  %v599_v15 = vadd.f32 %v593_v61, %v582_v6  ;;  %v630_v16 = vmul.f32 %v6407_v59, %v6412_v62 }
  0x52   : > { %s6428_s24 = sld [smem:[#allocation3 + %s347_s20]]  ;;  %s364_s21 = sadd.s32 %s5281_s8, %s6377_s16  ;;  %v6456_v13 = vstv %s6311_s27  ;;  %v644_v17 = vmul.f32 %v6421_v0, %v6426_v4  ;;  %v602_v19 = vadd.f32 %v596_v2, %v585_v10  ;;  %v647_v20 = vmul.f32 %v6434_v5, %v6426_v4 }
  0x53   : > { %957 = vmatpush1.bf16.msra.mxu0 %v5464_v25  ;;  %1004 = vmatpush1.bf16.msra.mxu1 %v5477_v29  ;;  %s6438_s17 = sld [smem:[#allocation3 + %s364_s21]]  ;;  %s5283_s28 = sadd.s32 512, %s6338_s29  ;;  %v616_v25 = vadd.f32 %v610_v7, %v599_v15  ;;  %v664_v27 = vmul.f32 %v6449_v9, %v6456_v13  ;;  %v6512_v54 = vstv %s6336_s7 }
  0x54   : > { %958 = vmatprep.subr.bf16.mxu0 %v5466_v26  ;;  %1246 = vmatprep.subr.bf16.mxu1 %v5482_v47  ;;  %s381_s6 = sadd.s32 %s5283_s28, %s6377_s16  ;;  %s5285_s11 = sadd.s32 640, %s6338_s29  ;;  %v6466_v18 = vstv %s6365_s15  ;;  %v661_v26 = vmul.f32 %v6444_v8, %v6456_v13  ;;  %v619_v37 = vadd.f32 %v613_v11, %v602_v19 }
  0x55   : > { %s6468_s8 = sld [smem:[#allocation3 + %s381_s6]]  ;;  %s398_s27 = sadd.s32 %s5285_s11, %s6377_s16  ;;  %v320_v21 = vmul.f32 %v6466_v18, %v6296_v30  ;;  %v323_v23 = vmul.f32 %v6466_v18, %v6301_v31  ;;  %v5483_v30 = vld [vmem:[%s6213_s14 + $0x238] ss:$8 sps:$4 sm:$0xff]   ;;  %v633_v43 = vadd.f32 %v627_v12, %v616_v25 }
  0x56   : > { %s6477_s13 = sld [smem:[#allocation3 + %s398_s27]]  ;;  %s5287_s15 = sadd.s32 768, %s6338_s29  ;;  %v5480_v25 = vld [vmem:[%s6213_s14 + $0x70] ss:$8 sps:$4 sm:$0xff]  }
  0x57   : > { %959 = vmatpush1.bf16.msra.mxu0 %v5470_v51  ;;  %v6484_v29 = vstv %s6414_s12  ;;  %s5289_s10 = sadd.s32 896, %s6338_s29  ;;  %s415_s21 = sadd.s32 %s5287_s15, %s6377_s16 }
  0x58   : > { %960 = vmatprep.subr.bf16.mxu0 %v5472_v52  ;;  %v335_v31 = vmul.f32 %v6306_v32, %v6484_v29  ;;  %v338_v38 = vmul.f32 %v6317_v34, %v6484_v29  ;;  %v6494_v39 = vstv %s6428_s24  ;;  %s432_s23 = sadd.s32 %s5289_s10, %s6377_s16  ;;  %v636_v34 = vadd.f32 %v630_v16, %v619_v37  ;;  %s6508_s12 = sld [smem:[#allocation3 + %s415_s21]]  ;;  %v5488_v37 = vld [vmem:[%s6213_s14 + $0x64] ss:$8 sps:$4 sm:$0xff]  }
  0x59   : > { %v352_v45 = vmul.f32 %v6322_v35, %v6494_v39  ;;  %v355_v32 = vmul.f32 %v6327_v36, %v6494_v39  ;;  %v6504_v47 = vstv %s6438_s17  ;;  %s5291_s24 = sadd.s32 1024, %s6338_s29  ;;  %v650_v52 = vadd.f32 %v644_v17, %v633_v43  ;;  %s6519_s26 = sld [smem:[#allocation3 + %s432_s23]]  ;;  %v5501_v43 = vld [vmem:[%s6213_s14 + $0x208] ss:$8 sps:$4 sm:$0xff]  }
  0x5a   : > { %v341_v49 = vadd.f32 %v335_v31, %v320_v21  ;;  %v344_v50 = vadd.f32 %v338_v38, %v323_v23  ;;  %v369_v51 = vmul.f32 %v6343_v40, %v6504_v47  ;;  %v372_v35 = vmul.f32 %v6348_v41, %v6504_v47  ;;  %s449_s17 = sadd.s32 %s5291_s24, %s6377_s16  ;;  %v5490_v41 = vld [vmem:[%s6213_s14 + $0x21c] ss:$8 sps:$4 sm:$0xff]   ;;  %s6745_s19 = sld [smem:[#allocation5 + %s6206_s9]] }
  0x5b   : > { %961 = vmatpush1.bf16.msra.mxu0 %v5476_v63  ;;  %v6517_v36 = vstv %s6468_s8  ;;  %v653_v55 = vadd.f32 %v647_v20, %v636_v34  ;;  %s6525_s7 = sld [smem:[#allocation3 + %s449_s17]]  ;;  %v667_v1 = vadd.f32 %v661_v26, %v650_v52  ;;  %v6571_v34 = vld [vmem:[%s9188_s2 + $0x20] sm:$0xff]  ;;  %s6799_s17 = sadd.s32 2, %s6206_s9 }
  0x5c   : > { %962 = vmatprep.subr.bf16.mxu0 %v5478_v14  ;;  %v358_v40 = vadd.f32 %v352_v45, %v341_v49  ;;  %v361_v61 = vadd.f32 %v355_v32, %v344_v50  ;;  %v386_v63 = vmul.f32 %v6353_v42, %v6517_v36  ;;  %v389_v2 = vmul.f32 %v6372_v48, %v6517_v36  ;;  %v5495_v48 = vld [vmem:[%s6213_s14 + $0x218] ss:$8 sps:$4 sm:$0xff]   ;;  %v6581_v50 = vld [vmem:[%s9188_s2 + $0x50] sm:$0xff]  ;;  %s6814_s20 = sld [smem:[#allocation3 + %s6799_s17]]  ;;  %s1341_s8 = sshra.s32 %s6799_s17, 7 }
  0x5d   : > { %v6531_v6 = vstv %s6477_s13  ;;  %v670_v7 = vadd.f32 %v664_v27, %v653_v55  ;;  %v675_v12 = vadd.f32 %v6512_v54, %v667_v1  ;;  %v5486_v32 = vld [vmem:[%s6213_s14 + $0x60] ss:$8 sps:$4 sm:$0xff]   ;;  %v6576_v49 = vld [vmem:[%s9188_s2 + $0x38] sm:$0xff]  ;;  %v544_v1 = vmul.f32 %v6581_v50, %v6281_v24  ;;  %s6862_s21 = sshll.u32 %s1341_s8, 7  ;;  %s6881_s23 = sand.u32 127, %s6799_s17 }
  0x5e   : > { %v375_v10 = vadd.f32 %v369_v51, %v358_v40  ;;  %v378_v11 = vadd.f32 %v372_v35, %v361_v61  ;;  %v403_v42 = vmul.f32 %v6385_v53, %v6531_v6  ;;  %v406_v14 = vmul.f32 %v6397_v57, %v6531_v6  ;;  %v5496_v53 = vld [vmem:[%s6213_s14 + $0x20c] ss:$8 sps:$4 sm:$0xff]   ;;  %v5507_v55 = vld [vmem:[%s6213_s14 + $0x1f8] ss:$8 sps:$4 sm:$0xff]   ;;  %s5315_s30 = sadd.s32 512, %s6862_s21  ;;  %s5317_s6 = sadd.s32 640, %s6862_s21 }
  0x5f   : > { %963 = vmatpush2.bf16.msra.mxu0 %v5483_v30  ;;  %v678_v15 = vadd.f32 %v6512_v54, %v670_v7  ;;  %v6541_v19 = vstv %s6508_s12  ;;  %v681_v20 = vmax.f32 %v675_v12, 0.0  ;;  %v6549_v23 = vstv %s6519_s26  ;;  %v5494_v35 = vld [vmem:[%s6213_s14 + $0x54] ss:$8 sps:$4 sm:$0xff]   ;;  %v6600_v40 = vld [vmem:[%s9188_s2 + $0x80] sm:$0xff]  ;;  %s5311_s12 = sadd.s32 256, %s6862_s21  ;;  %s5313_s26 = sadd.s32 384, %s6862_s21 }
  0x60   : > { %964 = vmatprep.subr.bf16.mxu0 %v5484_v44  ;;  %v392_v16 = vadd.f32 %v386_v63, %v375_v10  ;;  %v395_v17 = vadd.f32 %v389_v2, %v378_v11  ;;  %9291 = vst [vmem:[#allocation9_spill] sm:$0xff] %v6541_v19  ;;  %v420_v21 = vmul.f32 %v6402_v58, %v6541_v19  ;;  %9292 = vst [vmem:[#allocation10_spill] sm:$0xff] %v6549_v23  ;;  %v5502_v58 = vld [vmem:[%s6213_s14 + $0x1fc] ss:$8 sps:$4 sm:$0xff]   ;;  %v5508_v2 = vld [vmem:[%s6213_s14 + $0x1ec] ss:$8 sps:$4 sm:$0xff]   ;;  %s1381_s16 = sadd.s32 %s5313_s26, %s6881_s23  ;;  %s1398_s25 = sadd.s32 %s5315_s30, %s6881_s23 }
  0x61   : > { %v423_v57 = vmul.f32 %v6407_v59, %v6541_v19  ;;  %v684_v26 = vmax.f32 %v678_v15, 0.0  ;;  %v6554_v31 = vstv %s6525_s7  ;;  %v6561_v59 = vld [vmem:[%s9188_s2 + $0x8] sm:$0xff]  ;;  %v437_v44 = vmul.f32 %v6421_v0, %v6549_v23  ;;  %v6605_v61 = vld [vmem:[%s9188_s2 + $0x98] sm:$0xff]  ;;  %v6621_v7 = vld [vmem:[%s9188_s2 + $0xb0] sm:$0xff]  ;;  %s1364_s7 = sadd.s32 %s5311_s12, %s6881_s23  ;;  %s5319_s11 = sadd.s32 768, %s6862_s21 }
  0x62   : > { %v409_v27 = vadd.f32 %v403_v42, %v392_v16  ;;  %v412_v30 = vadd.f32 %v406_v14, %v395_v17  ;;  %9293 = vst [vmem:[#allocation11_spill] sm:$0xff] %v6554_v31  ;;  %9294 = vst [vmem:[#allocation12_spill] sm:$0xff] %v6561_v59  ;;  %v440_v45 = vmul.f32 %v6434_v5, %v6549_v23  ;;  %v6626_v10 = vld [vmem:[%s9188_s2 + $0xc8] sm:$0xff]  ;;  %v6631_v11 = vld [vmem:[%s9188_s2 + $0xe0] sm:$0xff]  ;;  %s6924_s28 = sld [smem:[#allocation3 + %s1364_s7]]  ;;  %s1415_s27 = sadd.s32 %s5317_s6, %s6881_s23 }
  0x63   : > { %965 = vmatpush2.bf16.msra.mxu0 %v5489_v60  ;;  %v687_v38 = vpack.c.bf16 %v684_v26, %v681_v20  ;;  %v526_v0 = vmul.f32 %v6274_v22, %v6561_v59  ;;  %v6587_v52 = vmul.f32 %v6444_v8, %v6554_v31  ;;  %v6595_v60 = vld [vmem:[%s9188_s2 + $0x68] sm:$0xff]  ;;  %v529_v8 = vmul.f32 %v6274_v22, %v6571_v34  ;;  %v6646_v15 = vld [vmem:[%s9188_s2 + $0xf8] sm:$0xff]  ;;  %v6674_v26 = vld [vmem:[%s9188_s2 + $0x170] sm:$0xff]  ;;  %s6981_s8 = sld [smem:[#allocation3 + %s1398_s25]]  ;;  %s1432_s13 = sadd.s32 %s5319_s11, %s6881_s23 }
  0x64   : > { %966 = vmatprep.subr.bf16.mxu0 %v5490_v41  ;;  %v426_v5 = vadd.f32 %v420_v21, %v409_v27  ;;  %v429_v51 = vadd.f32 %v423_v57, %v412_v30  ;;  %v541_v63 = vmul.f32 %v6576_v49, %v6281_v24  ;;  %v6615_v41 = vmul.f32 %v6449_v9, %v6554_v31  ;;  %v6656_v16 = vld [vmem:[%s9188_s2 + $0x128] sm:$0xff]  ;;  %v5492_v21 = vld [vmem:[%s6213_s14 + $0x50] ss:$8 sps:$4 sm:$0xff]   ;;  %v6664_v57 = vld [vmem:[%s9188_s2 + $0x140] sm:$0xff]  ;;  %s6997_s15 = sld [smem:[#allocation3 + %s1415_s27]]  ;;  %s5323_s12 = sadd.s32 1024, %s6862_s21 }
  0x65   : > { %4668 = vmatmul.mubr.msk.bf16.vlgmr.msra.gmra.mxu1 %vm935_vm1, %v687_v38  ;;  %v558_v9 = vmul.f32 %v6595_v60, %v6290_v28  ;;  %v561_v42 = vmul.f32 %v6600_v40, %v6290_v28  ;;  %v575_v12 = vmul.f32 %v6605_v61, %v6309_v33  ;;  %v6641_v14 = vmul.f32 %v6466_v18, %v6561_v59  ;;  %v6730_v31 = vld [vmem:[%s9188_s2 + $0x60] sm:$0xff]  ;;  %s7011_s10 = sld [smem:[#allocation3 + %s1432_s13]]  ;;  %s1466_s11 = sadd.s32 %s5323_s12, %s6881_s23 }
  0x66   : > { %1247 = vmatpush1.bf16.msra.mxu1 %v5480_v25  ;;  %9295 = vst [vmem:[#allocation13_spill] sm:$0xff] %v6646_v15  ;;  %9297 = vst [vmem:[#allocation15_spill] sm:$0xff] %v6656_v16  ;;  %v547_v17 = vadd.f32 %v541_v63, %v526_v0  ;;  %v550_v20 = vadd.f32 %v544_v1, %v529_v8  ;;  %v6669_v25 = vld [vmem:[%s9188_s2 + $0x158] sm:$0xff]  ;;  %v592_v27 = vmul.f32 %v6626_v10, %v6362_v46  ;;  %v6689_v0 = vld [vmem:[%s9188_s2 + $0x188] sm:$0xff]  ;;  %p5271_p4 = scmp.ne.s32.totalorder %s6162_s22, 3 }
  0x67   : > { %967 = vmatpush2.bf16.msra.mxu0 %v5495_v48  ;;  %1248 = vmatprep.subr.bf16.mxu1 %v5488_v37  ;;  %v6651_v48 = vld [vmem:[%s9188_s2 + $0x110] sm:$0xff]  ;;  %9298 = vst [vmem:[#allocation16_spill] sm:$0xff] %v6664_v57  ;;  %9299 = vst [vmem:[#allocation17_spill] sm:$0xff] %v6669_v25  ;;  %v595_v30 = vmul.f32 %v6631_v11, %v6362_v46  ;;  %v6680_v37 = vadd.f32 %v437_v44, %v426_v5  ;;  %v6698_v44 = vld [vmem:[%s9188_s2] sm:$0xff] }
  0x68   : > { %968 = vmatprep.subr.bf16.mxu0 %v5496_v53  ;;  %9296 = vst [vmem:[#allocation14_spill] sm:$0xff] %v6651_v48  ;;  %v578_v53 = vmul.f32 %v6621_v7, %v6309_v33  ;;  %9300 = vst [vmem:[#allocation18_spill] sm:$0xff] %v6674_v26  ;;  %v6682_v38 = vadd.f32 %v440_v45, %v429_v51  ;;  %v564_v8 = vadd.f32 %v558_v9, %v547_v17  ;;  %v6725_v17 = vld [vmem:[%s9188_s2 + $0x48] sm:$0xff] }
  0x69   : > { %9301 = vst [vmem:[#allocation19_spill] sm:$0xff] %v6689_v0  ;;  %v567_v63 = vadd.f32 %v561_v42, %v550_v20  ;;  %v609_v1 = vmul.f32 %v6646_v15, %v6390_v56  ;;  %v612_v3 = vmul.f32 %v6651_v48, %v6390_v56  ;;  %9302 = vst [vmem:[#allocation20_spill] sm:$0xff] %v6698_v44  ;;  %v6720_v42 = vld [vmem:[%s9188_s2 + $0x30] sm:$0xff] }
  0x6a   : > { %1249 = vmatpush1.bf16.msra.mxu1 %v5486_v32  ;;  %v626_v45 = vmul.f32 %v6656_v16, %v6412_v62  ;;  %v629_v5 = vmul.f32 %v6664_v57, %v6412_v62  ;;  %v6706_v51 = vmul.f32 %v6669_v25, %v6426_v4  ;;  %v6710_v9 = vmul.f32 %v6674_v26, %v6426_v4  ;;  %v6715_v32 = vld [vmem:[%s9188_s2 + $0x18] sm:$0xff]  ;;  %v6740_v25 = vld [vmem:[%s9188_s2 + $0x90] sm:$0xff] }
  0x6b   : > { %969 = vmatpush2.bf16.msra.mxu0 %v5501_v43  ;;  %v5500_v43 = vld [vmem:[%s6213_s14 + $0x44] ss:$8 sps:$4 sm:$0xff]   ;;  %9303 = vst [vmem:[#allocation21_spill] sm:$0xff] %v6715_v32  ;;  %9304 = vst [vmem:[#allocation22_spill] sm:$0xff] %v6720_v42  ;;  %1250 = vmatprep.subr.bf16.mxu1 %v5494_v35  ;;  %v581_v20 = vadd.f32 %v575_v12, %v564_v8  ;;  %v584_v59 = vadd.f32 %v578_v53, %v567_v63  ;;  %v6735_v26 = vld [vmem:[%s9188_s2 + $0x78] sm:$0xff] }
  0x6c   : > { %970 = vmatprep.subr.bf16.mxu0 %v5502_v58  ;;  %v5513_v58 = vld [vmem:[%s6213_s14 + $0x1e8] ss:$8 sps:$4 sm:$0xff]   ;;  %9305 = vst [vmem:[#allocation23_spill] sm:$0xff] %v6725_v17  ;;  %9306 = vst [vmem:[#allocation24_spill] sm:$0xff] %v6730_v31  ;;  %v525_v35 = vmul.f32 %v6274_v22, %v6698_v44  ;;  %v5514_v12 = vld [vmem:[%s6213_s14 + $0x1dc] ss:$8 sps:$4 sm:$0xff]   ;;  %v528_v63 = vmul.f32 %v6274_v22, %v6715_v32  ;;  %v540_v44 = vmul.f32 %v6720_v42, %v6281_v24 }
  0x6d   : > { %9307 = vst [vmem:[#allocation25_spill] sm:$0xff] %v6735_v26  ;;  %9308 = vst [vmem:[#allocation26_spill] sm:$0xff] %v6740_v25  ;;  %v6752_v53 = vld [vmem:[%s9188_s2 + $0x1a0] sm:$0xff]  ;;  %v6757_v8 = vld [vmem:[%s9188_s2 + $0xa8] sm:$0xff]  ;;  %v557_v23 = vmul.f32 %v6730_v31, %v6290_v28  ;;  %v598_v19 = vadd.f32 %v592_v27, %v581_v20  ;;  %v601_v48 = vadd.f32 %v595_v30, %v584_v59 }
  0x6e   : > { %9309 = vst [vmem:[#allocation27_spill] sm:$0xff] %v6752_v53  ;;  %9310 = vst [vmem:[#allocation28_spill] sm:$0xff] %v6757_v8  ;;  %v5506_v57 = vld [vmem:[%s6213_s14 + $0x34] ss:$8 sps:$4 sm:$0xff]   ;;  %v5519_v16 = vld [vmem:[%s6213_s14 + $0x1d8] ss:$8 sps:$4 sm:$0xff]   ;;  %v660_v15 = vmul.f32 %v6689_v0, %v6456_v13  ;;  %v560_v31 = vmul.f32 %v6735_v26, %v6290_v28  ;;  %1251 = vmatpush1.bf16.msra.mxu1 %v5492_v21  ;;  %v546_v30 = vadd.f32 %v540_v44, %v525_v35 }
  0x6f   : > { %971 = vmatpush2.bf16.msra.mxu0 %v5507_v55  ;;  %v5498_v55 = vld [vmem:[%s6213_s14 + $0x40] ss:$8 sps:$4 sm:$0xff]   ;;  %v6787_v59 = vld [vmem:[%s9188_s2 + $0xf0] sm:$0xff]  ;;  %v574_v42 = vmul.f32 %v6740_v25, %v6309_v33  ;;  %v577_v28 = vmul.f32 %v6757_v8, %v6309_v33  ;;  %1252 = vmatprep.subr.bf16.mxu1 %v5500_v43  ;;  %v615_v21 = vadd.f32 %v609_v1, %v598_v19  ;;  %v6811_v33 = vld [vmem:[%s9188_s2 + $0x138] sm:$0xff] }
  0x70   : > { %972 = vmatprep.subr.bf16.mxu0 %v5508_v2  ;;  %v543_v2 = vmul.f32 %v6725_v17, %v6281_v24  ;;  %v6774_v22 = vld [vmem:[%s9188_s2 + $0xc0] sm:$0xff]  ;;  %v6779_v24 = vld [vmem:[%s9188_s2 + $0xd8] sm:$0xff]  ;;  %v5520_v17 = vld [vmem:[%s6213_s14 + $0x1cc] ss:$8 sps:$4 sm:$0xff]   ;;  %v618_v26 = vadd.f32 %v612_v3, %v601_v48  ;;  %v663_v32 = vmul.f32 %v6752_v53, %v6456_v13  ;;  %v563_v48 = vadd.f32 %v557_v23, %v546_v30 }
  0x71   : > { %v6792_v27 = vld [vmem:[%s9188_s2 + $0x108] sm:$0xff]  ;;  %v6806_v44 = vld [vmem:[%s9188_s2 + $0x120] sm:$0xff]  ;;  %v5504_v43 = vld [vmem:[%s6213_s14 + $0x30] ss:$8 sps:$4 sm:$0xff]   ;;  %v591_v1 = vmul.f32 %v6774_v22, %v6362_v46  ;;  %v594_v35 = vmul.f32 %v6779_v24, %v6362_v46 }
  0x72   : > { %v549_v20 = vadd.f32 %v543_v2, %v528_v63  ;;  %v6820_v3 = vld [vmem:[%s9188_s2 + $0x150] sm:$0xff]  ;;  %v6825_v19 = vld [vmem:[%s9188_s2 + $0x168] sm:$0xff]  ;;  %v635_v63 = vadd.f32 %v629_v5, %v618_v26  ;;  %v608_v2 = vmul.f32 %v6787_v59, %v6390_v56  ;;  %v611_v8 = vmul.f32 %v6792_v27, %v6390_v56  ;;  %v521_v25 = vld [vmem:[%s6213_s14 + $0x140] sm:$0x33]  ;;  %1253 = vmatpush1.bf16.msra.mxu1 %v5498_v55 }
  0x73   : > { %973 = vmatpush2.bf16.msra.mxu0 %v5513_v58  ;;  %v6840_v23 = vld [vmem:[%s9188_s2 + $0x180] sm:$0xff]  ;;  %v6845_v46 = vld [vmem:[%s9188_s2 + $0x198] sm:$0xff]  ;;  %v628_v56 = vmul.f32 %v6811_v33, %v6412_v62  ;;  %1254 = vmatprep.subr.bf16.mxu1 %v5506_v57  ;;  %v5525_v55 = vld [vmem:[%s6213_s14 + $0x1c8] ss:$8 sps:$4 sm:$0xff]   ;;  %v4710_v57 = vcombine.high %v521_v25, %v521_v25 }
  0x74   : > { %974 = vmatprep.subr.bf16.mxu0 %v5514_v12  ;;  %v566_v58 = vadd.f32 %v560_v31, %v549_v20  ;;  %v632_v12 = vadd.f32 %v626_v45, %v615_v21  ;;  %v580_v31 = vadd.f32 %v574_v42, %v563_v48  ;;  %v625_v45 = vmul.f32 %v6806_v44, %v6412_v62  ;;  %v5512_v5 = vld [vmem:[%s6213_s14 + $0x24] ss:$8 sps:$4 sm:$0xff]  }
  0x75   : > { %v652_v20 = vadd.f32 %v6710_v9, %v635_v63  ;;  %v642_v21 = vmul.f32 %v6820_v3, %v6426_v4  ;;  %v6858_v42 = vstv %s6745_s19  ;;  %v645_v62 = vmul.f32 %v6825_v19, %v6426_v4  ;;  %s5309_s19 = sadd.s32 128, %s6862_s21 }
  0x76   : > { %v583_v26 = vadd.f32 %v577_v28, %v566_v58  ;;  %v649_v30 = vadd.f32 %v6706_v51, %v632_v12  ;;  %v597_v28 = vadd.f32 %v591_v1, %v580_v31  ;;  %v659_v9 = vmul.f32 %v6840_v23, %v6456_v13  ;;  %1255 = vmatpush1.bf16.msra.mxu1 %v5504_v43  ;;  %v5510_v58 = vld [vmem:[%s6213_s14 + $0x20] ss:$8 sps:$4 sm:$0xff]   ;;  %s1347_s24 = sadd.s32 %s5309_s19, %s6881_s23  ;;  %s5321_s19 = sadd.s32 896, %s6862_s21 }
  0x77   : > { %975 = vmatpush2.bf16.msra.mxu0 %v5519_v16  ;;  %v669_v51 = vadd.f32 %v663_v32, %v652_v20  ;;  %v4709_v12 = vcombine.low %v521_v25, %v521_v25  ;;  %v460_v4 = vadd.f32 %v6587_v52, %v6680_v37  ;;  %1256 = vmatprep.subr.bf16.mxu1 %v5512_v5  ;;  %v6877_v43 = vstv %s6814_s20  ;;  %s6916_s29 = sld [smem:[#allocation3 + %s1347_s24]]  ;;  %s1449_s30 = sadd.s32 %s5321_s19, %s6881_s23 }
  0x78   : > { %976 = vmatprep.subr.bf16.mxu0 %v5520_v17  ;;  %v600_v48 = vadd.f32 %v594_v35, %v583_v26  ;;  %v666_v16 = vadd.f32 %v660_v15, %v649_v30  ;;  %v662_v17 = vmul.f32 %v6845_v46, %v6456_v13  ;;  %v614_v1 = vadd.f32 %v608_v2, %v597_v28  ;;  %v5518_v15 = vld [vmem:[%s6213_s14 + $0x14] ss:$8 sps:$4 sm:$0xff]   ;;  %v5524_v30 = vld [vmem:[%s6213_s14 + $0x4] ss:$8 sps:$4 sm:$0xff]   ;;  %s6935_s20 = sld [smem:[#allocation3 + %s1381_s16]] }
  0x79   : > { %v677_v63 = vadd.f32 %v6512_v54, %v669_v51  ;;  %v322_v13 = vmul.f32 %v6466_v18, %v6571_v34  ;;  %v463_v52 = vadd.f32 %v6615_v41, %v6682_v38  ;;  %v334_v37 = vmul.f32 %v6576_v49, %v6484_v29  ;;  %s7090_s24 = sld [smem:[#allocation3 + %s1449_s30]] }
  0x7a   : > { %v617_v35 = vadd.f32 %v611_v8, %v600_v48  ;;  %v674_v32 = vadd.f32 %v6512_v54, %v666_v16  ;;  %v631_v25 = vadd.f32 %v625_v45, %v614_v1  ;;  %v337_v26 = vmul.f32 %v6581_v50, %v6484_v29  ;;  %1257 = vmatpush1.bf16.msra.mxu1 %v5510_v58 }
  0x7b   : > { %977 = vmatpush2.bf16.msra.mxu0 %v5525_v55  ;;  %v683_v31 = vmax.f32 %v677_v63, 0.0  ;;  %v351_v45 = vmul.f32 %v6595_v60, %v6494_v39  ;;  %v6895_v41 = vsel %vm939_vm0, %v4709_v12, 0  ;;  %v340_v38 = vadd.f32 %v334_v37, %v6641_v14  ;;  %1258 = vmatprep.subr.bf16.mxu1 %v5518_v15  ;;  %v9313_v37 = vld [vmem:[#allocation9_spill] sm:$0xff] }
  0x7c   : > { %v634_v8 = vadd.f32 %v628_v56, %v617_v35  ;;  %4711 = vmatprep.subr.msk.bf16.mxu0 %vm939_vm0, %v4710_v57  ;;  %v680_v2 = vmax.f32 %v674_v32, 0.0  ;;  %v5516_v56 = vld [vmem:[%s6213_s14 + $0x10] ss:$8 sps:$4 sm:$0xff]   ;;  %v648_v5 = vadd.f32 %v642_v21, %v631_v25  ;;  %v6902_v28 = vadd.f32 %v6858_v42, %v460_v4  ;;  %v5528_v32 = vld [vmem:[%s6213_s14 + $0xf4] ss:$8 sps:$4 sm:$0xff]  }
  0x7d   : > { %v343_v48 = vadd.f32 %v337_v26, %v322_v13  ;;  %v354_v21 = vmul.f32 %v6600_v40, %v6494_v39  ;;  %v357_v16 = vadd.f32 %v351_v45, %v340_v38  ;;  %v368_v14 = vmul.f32 %v6605_v61, %v6504_v47  ;;  %v9311_v13 = vld [vmem:[#allocation13_spill] sm:$0xff]  ;;  %v9316_v38 = vld [vmem:[#allocation10_spill] sm:$0xff] }
  0x7e   : > { %v651_v55 = vadd.f32 %v645_v62, %v634_v8  ;;  %v686_v20 = vpack.c.bf16 %v683_v31, %v680_v2  ;;  %v665_v62 = vadd.f32 %v659_v9, %v648_v5  ;;  %v6910_v51 = vadd.f32 %v6858_v42, %v463_v52  ;;  %1259 = vmatpush1.bf16.msra.mxu1 %v5516_v56  ;;  %v5522_v9 = vld [vmem:[%s6213_s14] ss:$8 sps:$4 sm:$0xff]   ;;  %v9314_v2 = vld [vmem:[#allocation15_spill] sm:$0xff]  ;;  %v9315_v56 = vld [vmem:[#allocation16_spill] sm:$0xff] }
  0x7f   : > { %v360_v58 = vadd.f32 %v354_v21, %v343_v48  ;;  %v371_v1 = vmul.f32 %v6621_v7, %v6504_v47  ;;  %v385_v35 = vmul.f32 %v6626_v10, %v6517_v36  ;;  %v374_v4 = vadd.f32 %v368_v14, %v357_v16  ;;  %1260 = vmatprep.subr.bf16.mxu1 %v5524_v30  ;;  %v9312_v8 = vld [vmem:[#allocation14_spill] sm:$0xff]  ;;  %v9317_v30 = vld [vmem:[#allocation17_spill] sm:$0xff]  ;;  %v5526_v14 = vld [vmem:[%s6213_s14 + $0xf0] ss:$8 sps:$4 sm:$0xff]  }
  0x80   : > { %v668_v57 = vadd.f32 %v662_v17, %v651_v55  ;;  %978 = vmatprep.mubr.bf16.mxu0 %v686_v20  ;;  %v673_v17 = vadd.f32 %v6512_v54, %v665_v62  ;;  %v388_v15 = vmul.f32 %v6631_v11, %v6517_v36  ;;  %v402_v25 = vmul.f32 %v9311_v13, %v6531_v6  ;;  %v9318_v48 = vld [vmem:[#allocation18_spill] sm:$0xff]  ;;  %v9319_v62 = vld [vmem:[#allocation11_spill] sm:$0xff] }
  0x81   : > { %v377_v63 = vadd.f32 %v371_v1, %v360_v58  ;;  %v405_v52 = vmul.f32 %v9312_v8, %v6531_v6  ;;  %v391_v45 = vadd.f32 %v385_v35, %v374_v4  ;;  %v422_v5 = vmul.f32 %v9315_v56, %v9313_v37  ;;  %v5536_v58 = vld [vmem:[%s6213_s14 + $0x134] ss:$8 sps:$4 sm:$0xff]   ;;  %v5533_v4 = vld [vmem:[%s6213_s14 + $0xe4] ss:$8 sps:$4 sm:$0xff]  }
  0x82   : > { %v676_v12 = vadd.f32 %v6512_v54, %v668_v57  ;;  %v419_v54 = vmul.f32 %v9314_v2, %v9313_v37  ;;  %v679_v31 = vmax.f32 %v673_v17, 0.0  ;;  %v436_v20 = vmul.f32 %v9317_v30, %v9316_v38  ;;  %1261 = vmatpush1.bf16.msra.mxu1 %v5522_v9  ;;  %v9320_v17 = vld [vmem:[#allocation20_spill] sm:$0xff] }
  0x83   : > { %v394_v55 = vadd.f32 %v388_v15, %v377_v63  ;;  %v439_v21 = vmul.f32 %v9318_v48, %v9316_v38  ;;  %v453_v57 = vmul.f32 %v6689_v0, %v9319_v62  ;;  %v408_v1 = vadd.f32 %v402_v25, %v391_v45  ;;  %1262 = vmatprep.subr.bf16.mxu1 %v5528_v32  ;;  %v9321_v63 = vld [vmem:[#allocation21_spill] sm:$0xff]  ;;  %v9322_v0 = vld [vmem:[#allocation22_spill] sm:$0xff]  ;;  %v9324_v32 = vld [vmem:[#allocation24_spill] sm:$0xff] }
  0x84   : > { %v682_v26 = vmax.f32 %v676_v12, 0.0  ;;  %v456_v35 = vmul.f32 %v6752_v53, %v9319_v62  ;;  %v318_v12 = vmul.f32 %v6466_v18, %v9320_v17  ;;  %v321_v48 = vmul.f32 %v6466_v18, %v9321_v63  ;;  %v9325_v45 = vld [vmem:[#allocation25_spill] sm:$0xff]  ;;  %v5534_v63 = vld [vmem:[%s6213_s14 + $0x130] ss:$8 sps:$4 sm:$0xff]  }
  0x85   : > { %v411_v15 = vadd.f32 %v405_v52, %v394_v55  ;;  %v333_v9 = vmul.f32 %v9322_v0, %v6484_v29  ;;  %v350_v52 = vmul.f32 %v9324_v32, %v6494_v39  ;;  %v353_v18 = vmul.f32 %v9325_v45, %v6494_v39  ;;  %v9326_v55 = vld [vmem:[#allocation26_spill] sm:$0xff]  ;;  %v9328_v45 = vld [vmem:[#allocation28_spill] sm:$0xff] }
  0x86   : > { %v685_v16 = vpack.c.bf16 %v682_v26, %v679_v31  ;;  %v9323_v31 = vld [vmem:[#allocation23_spill] sm:$0xff]  ;;  %v425_v26 = vadd.f32 %v419_v54, %v408_v1  ;;  %v367_v53 = vmul.f32 %v9326_v55, %v6504_v47  ;;  %v6969_v1 = vstv %s6916_s29  ;;  %1263 = vmatpush2.bf16.msra.mxu1 %v5526_v14  ;;  %v5531_v32 = vld [vmem:[%s6213_s14 + $0xe0] ss:$8 sps:$4 sm:$0xff]   ;;  %v5542_v39 = vld [vmem:[%s6213_s14 + $0x124] ss:$8 sps:$4 sm:$0xff]  }
  0x87   : > { %v336_v25 = vmul.f32 %v9323_v31, %v6484_v29  ;;  %v9327_v29 = vmov 0   ;;  %v428_v31 = vadd.f32 %v422_v5, %v411_v15  ;;  %v6979_v5 = vstv %s6924_s28  ;;  %1264 = vmatprep.subr.bf16.mxu1 %v5533_v4  ;;  %v5540_v4 = vld [vmem:[%s6213_s14 + $0x120] ss:$8 sps:$4 sm:$0xff]  }
  0x88   : > { %979 = vmatmul.mubr.bf16.vlgmr.msra.gmra.mxu0 %v685_v16  ;;  %v339_v16 = vadd.f32 %v333_v9, %v318_v12  ;;  %v442_v55 = vadd.f32 %v436_v20, %v425_v26  ;;  %v387_v20 = vmul.f32 %v6779_v24, %v6517_v36  ;;  %v401_v9 = vmul.f32 %v6787_v59, %v6531_v6  ;;  %v5548_v24 = vld [vmem:[%s6213_s14 + $0x114] ss:$8 sps:$4 sm:$0xff]  }
  0x89   : > { %1296 = vmatpush1.bf16.msra.mxu0 %v6895_v41  ;;  %1321 = vmatprep.mubr.bf16.mxu0 %v9327_v29  ;;  %v342_v54 = vadd.f32 %v336_v25, %v321_v48  ;;  %v370_v41 = vmul.f32 %v9328_v45, %v6504_v47  ;;  %v384_v29 = vmul.f32 %v6774_v22, %v6517_v36  ;;  %v5539_v48 = vld [vmem:[%s6213_s14 + $0xd4] ss:$8 sps:$4 sm:$0xff]   ;;  %v474_v47 = vmax.f32 %v6902_v28, 0.0  ;;  %v5537_v36 = vld [vmem:[%s6213_s14 + $0xd0] ss:$8 sps:$4 sm:$0xff]  }
  0x8a   : > { %1297 = vmatprep.subr.bf16.mxu0 %v5536_v58  ;;  %v445_v14 = vadd.f32 %v439_v21, %v428_v31  ;;  %v356_v58 = vadd.f32 %v350_v52, %v339_v16  ;;  %v459_v15 = vadd.f32 %v453_v57, %v442_v55  ;;  %v6991_v25 = vstv %s6935_s20  ;;  %1265 = vmatpush2.bf16.msra.mxu1 %v5531_v32  ;;  %s7129_s20 = sadd.s32 3, %s6206_s9 }
  0x8b   : > { %v359_v12 = vadd.f32 %v353_v18, %v342_v54  ;;  %v404_v52 = vmul.f32 %v6792_v27, %v6531_v6  ;;  %v477_v59 = vmax.f32 %v6910_v51, 0.0  ;;  %1266 = vmatprep.subr.bf16.mxu1 %v5539_v48  ;;  %v5545_v6 = vld [vmem:[%s6213_s14 + $0xc4] ss:$8 sps:$4 sm:$0xff]   ;;  %v435_v18 = vmul.f32 %v6820_v3, %v9316_v38 }
  0x8c   : > { %v462_v21 = vadd.f32 %v456_v35, %v445_v14  ;;  %v373_v31 = vadd.f32 %v367_v53, %v356_v58  ;;  %v467_v57 = vadd.f32 %v6858_v42, %v459_v15  ;;  %v418_v35 = vmul.f32 %v6806_v44, %v9313_v37  ;;  %v7048_v14 = vld [vmem:[%s9188_s2 + $0x58] sm:$0xff] }
  0x8d   : > { %1298 = vmatpush1.bf16.msra.mxu0 %v5534_v63  ;;  %v376_v26 = vadd.f32 %v370_v41, %v359_v12  ;;  %v421_v53 = vmul.f32 %v6811_v33, %v9313_v37  ;;  %v438_v44 = vmul.f32 %v6825_v19, %v9316_v38  ;;  %v452_v33 = vmul.f32 %v6840_v23, %v9319_v62  ;;  %v5543_v23 = vld [vmem:[%s6213_s14 + $0xc0] ss:$8 sps:$4 sm:$0xff]  }
  0x8e   : > { %1299 = vmatprep.subr.bf16.mxu0 %v5542_v39  ;;  %v470_v27 = vadd.f32 %v6858_v42, %v462_v21  ;;  %v390_v63 = vadd.f32 %v384_v29, %v373_v31  ;;  %v473_v55 = vmax.f32 %v467_v57, 0.0  ;;  %v455_v37 = vmul.f32 %v6845_v46, %v9319_v62  ;;  %v5546_v29 = vld [vmem:[%s6213_s14 + $0x110] ss:$8 sps:$4 sm:$0xff]   ;;  %1267 = vmatpush2.bf16.msra.mxu1 %v5537_v36  ;;  %v5554_v46 = vld [vmem:[%s6213_s14 + $0x104] ss:$8 sps:$4 sm:$0xff]  }
  0x8f   : > { %v393_v32 = vadd.f32 %v387_v20, %v376_v26  ;;  %v7025_v39 = vld [vmem:[%s9188_s2 + $0x10] sm:$0xff]  ;;  %v7034_v38 = vld [vmem:[%s9188_s2 + $0x28] sm:$0xff]  ;;  %v7041_v41 = vld [vmem:[%s9188_s2 + $0x40] sm:$0xff]  ;;  %v1355_v58 = vmul.f32 %v7048_v14, %v6969_v1  ;;  %v7053_v12 = vstv %s6981_s8  ;;  %1268 = vmatprep.subr.bf16.mxu1 %v5545_v6 }
  0x90   : > { %v476_v3 = vmax.f32 %v470_v27, 0.0  ;;  %v407_v16 = vadd.f32 %v401_v9, %v390_v63  ;;  %v1337_v19 = vmul.f32 %v7025_v39, %v6877_v43  ;;  %v1340_v62 = vmul.f32 %v7034_v38, %v6877_v43  ;;  %v5551_v20 = vld [vmem:[%s6213_s14 + $0xb4] ss:$8 sps:$4 sm:$0xff]   ;;  %v7068_v36 = vld [vmem:[%s9188_s2 + $0x88] sm:$0xff]  ;;  %v7075_v57 = vld [vmem:[%s9188_s2 + $0xa0] sm:$0xff] }
  0x91   : > { %1300 = vmatpush1.bf16.msra.mxu0 %v5540_v4  ;;  %v410_v54 = vadd.f32 %v404_v52, %v393_v32  ;;  %v1352_v48 = vmul.f32 %v7041_v41, %v6969_v1  ;;  %v7060_v21 = vld [vmem:[%s9188_s2 + $0x70] sm:$0xff]  ;;  %v7083_v63 = vld [vmem:[%s9188_s2 + $0xb8] sm:$0xff] }
  0x92   : > { %1301 = vmatprep.subr.bf16.mxu0 %v5548_v24  ;;  %v479_v15 = vpack.c.bf16 %v476_v3, %v473_v55  ;;  %v424_v9 = vadd.f32 %v418_v35, %v407_v16  ;;  %v1369_v31 = vmul.f32 %v7060_v21, %v6979_v5  ;;  %v1361_v52 = vadd.f32 %v1355_v58, %v1340_v62  ;;  %v7097_v16 = vld [vmem:[%s9188_s2 + $0xd0] sm:$0xff]  ;;  %v7111_v62 = vld [vmem:[%s9188_s2 + $0xe8] sm:$0xff] }
  0x93   : > { %v427_v4 = vadd.f32 %v421_v53, %v410_v54  ;;  %v1358_v26 = vadd.f32 %v1352_v48, %v1337_v19  ;;  %v1372_v24 = vmul.f32 %v7068_v36, %v6979_v5  ;;  %v1386_v35 = vmul.f32 %v7075_v57, %v6991_v25  ;;  %v5552_v53 = vld [vmem:[%s6213_s14 + $0x100] ss:$8 sps:$4 sm:$0xff]   ;;  %1269 = vmatpush2.bf16.msra.mxu1 %v5543_v23  ;;  %v5557_v19 = vld [vmem:[%s6213_s14 + $0xa4] ss:$8 sps:$4 sm:$0xff]  }
  0x94   : > { %1278 = vmatprep.mubr.bf16.mxu1 %v479_v15  ;;  %v441_v6 = vadd.f32 %v435_v18, %v424_v9  ;;  %v1389_v32 = vmul.f32 %v7083_v63, %v6991_v25  ;;  %v7088_v55 = vstv %s6997_s15  ;;  %v5560_v18 = vld [vmem:[%s6213_s14 + $0x304] ss:$8 sps:$4 sm:$0xff]   ;;  %v1403_v54 = vmul.f32 %v7097_v16, %v7053_v12  ;;  %s7101_s15 = sld [smem:[#allocation3 + %s1466_s11]]  ;;  %1270 = vmatprep.subr.bf16.mxu1 %v5551_v20  ;;  %v7119_v15 = vld [vmem:[%s6213_s14 + $0x3d0] sm:$0x33]  ;;  %s1853_s11 = sshra.s32 %s7129_s20, 7 }
  0x95   : > { %1302 = vmatpush1.bf16.msra.mxu0 %v5546_v29  ;;  %v444_v27 = vadd.f32 %v438_v44, %v427_v4  ;;  %v5549_v29 = vld [vmem:[%s6213_s14 + $0xb0] ss:$8 sps:$4 sm:$0xff]   ;;  %v1375_v3 = vadd.f32 %v1369_v31, %v1358_v26  ;;  %v1378_v44 = vadd.f32 %v1372_v24, %v1361_v52  ;;  %v480_v23 = vpack.c.bf16 %v477_v59, %v474_v47  ;;  %v7124_v47 = vld [vmem:[%s9188_s2 + $0x100] sm:$0xff]  ;;  %v5566_v9 = vld [vmem:[%s6213_s14 + $0x2f4] ss:$8 sps:$4 sm:$0xff]   ;;  %s7185_s13 = sshll.u32 %s1853_s11, 7 }
  0x96   : > { %1303 = vmatprep.subr.bf16.mxu0 %v5554_v46  ;;  %v458_v46 = vadd.f32 %v452_v33, %v441_v6  ;;  %v1406_v48 = vmul.f32 %v7111_v62, %v7053_v12  ;;  %v7116_v58 = vstv %s7011_s10  ;;  %v1420_v59 = vmul.f32 %v7124_v47, %v7088_v55  ;;  %v5558_v33 = vld [vmem:[%s6213_s14 + $0x300] ss:$8 sps:$4 sm:$0xff]   ;;  %v7137_v26 = vld [vmem:[%s9188_s2 + $0x118] sm:$0xff]  ;;  %s5325_s12 = sadd.s32 128, %s7185_s13  ;;  %s7242_s10 = sld [smem:[#allocation5 + %s6799_s17]] }
  0x97   : > { %v461_v20 = vadd.f32 %v455_v37, %v444_v27  ;;  %v1392_v28 = vadd.f32 %v1386_v35, %v1375_v3  ;;  %v1395_v51 = vadd.f32 %v1389_v32, %v1378_v44  ;;  %1271 = vmatpush2.bf16.msra.mxu1 %v5549_v29  ;;  %v5555_v37 = vld [vmem:[%s6213_s14 + $0xa0] ss:$8 sps:$4 sm:$0xff]   ;;  %v1423_v52 = vmul.f32 %v7137_v26, %v7088_v55  ;;  %v5563_v24 = vld [vmem:[%s6213_s14 + $0x94] ss:$8 sps:$4 sm:$0xff]   ;;  %s5327_s30 = sadd.s32 256, %s7185_s13  ;;  %s7259_s17 = sld [smem:[#allocation3 + %s7129_s20]] }
  0x98   : > { %1272 = vmatprep.subr.bf16.mxu1 %v5557_v19  ;;  %v466_v35 = vadd.f32 %v6858_v42, %v458_v46  ;;  %v4802_v6 = vcombine.low %v7119_v15, %v7119_v15  ;;  %v7150_v27 = vld [vmem:[%s9188_s2 + $0x130] sm:$0xff]  ;;  %v9329_v3 = vld [vmem:[#allocation12_spill] sm:$0xff]  ;;  %v7163_v46 = vstv %s7090_s24  ;;  %s7206_s24 = sand.u32 127, %s7129_s20  ;;  %s5329_s11 = sadd.s32 384, %s7185_s13 }
  0x99   : > { %1304 = vmatpush1.bf16.msra.mxu0 %v5552_v53  ;;  %v1409_v4 = vadd.f32 %v1403_v54, %v1392_v28  ;;  %v1412_v31 = vadd.f32 %v1406_v48, %v1395_v51  ;;  %v4803_v53 = vcombine.high %v7119_v15, %v7119_v15  ;;  %v1437_v32 = vmul.f32 %v7150_v27, %v7116_v58  ;;  %v5564_v19 = vld [vmem:[%s6213_s14 + $0x2f0] ss:$8 sps:$4 sm:$0xff]   ;;  %v5572_v28 = vld [vmem:[%s6213_s14 + $0x2e4] ss:$8 sps:$4 sm:$0xff]   ;;  %s1859_s28 = sadd.s32 %s5325_s12, %s7206_s24  ;;  %s1876_s6 = sadd.s32 %s5327_s30, %s7206_s24 }
  0x9a   : > { %1754 = vmatprep.subr.bf16.mxu0 %v5560_v18  ;;  %v469_v29 = vadd.f32 %v6858_v42, %v461_v20  ;;  %v1336_v44 = vmul.f32 %v6877_v43, %v9329_v3  ;;  %v1339_v54 = vmul.f32 %v6877_v43, %v6571_v34  ;;  %v1351_v48 = vmul.f32 %v6576_v49, %v6969_v1  ;;  %v5561_v20 = vld [vmem:[%s6213_s14 + $0x90] ss:$8 sps:$4 sm:$0xff]   ;;  %v7176_v34 = vld [vmem:[%s9188_s2 + $0x148] sm:$0xff]  ;;  %s7270_s25 = sld [smem:[#allocation3 + %s1859_s28]]  ;;  %s1893_s27 = sadd.s32 %s5329_s11, %s7206_s24 }
  0x9b   : > { %v1426_v18 = vadd.f32 %v1420_v59, %v1409_v4  ;;  %v1368_v42 = vmul.f32 %v6595_v60, %v6979_v5  ;;  %1273 = vmatpush2.bf16.msra.mxu1 %v5555_v37  ;;  %v1429_v51 = vadd.f32 %v1423_v52, %v1412_v31  ;;  %v1440_v59 = vmul.f32 %v7176_v34, %v7116_v58  ;;  %v5569_v60 = vld [vmem:[%s6213_s14 + $0x84] ss:$8 sps:$4 sm:$0xff]   ;;  %v9333_v15 = vld [vmem:[#allocation23_spill] sm:$0xff]  ;;  %s7287_s8 = sld [smem:[#allocation3 + %s1876_s6]]  ;;  %s5331_s19 = sadd.s32 512, %s7185_s13 }
  0x9c   : > { %4712 = vmatmul.mubr.msk.bf16.vlgmr.msra.gmra.mxu0 %vm935_vm1, %v480_v23  ;;  %v1354_v23 = vmul.f32 %v6581_v50, %v6969_v1  ;;  %v7181_v49 = vstv %s7101_s15  ;;  %v1371_v50 = vmul.f32 %v6600_v40, %v6979_v5  ;;  %1274 = vmatprep.subr.bf16.mxu1 %v5563_v24  ;;  %v1388_v4 = vmul.f32 %v6621_v7, %v6991_v25  ;;  %v7195_v40 = vld [vmem:[%s9188_s2 + $0x160] sm:$0xff]  ;;  %s7311_s23 = sld [smem:[#allocation3 + %s1893_s27]]  ;;  %s1910_s12 = sadd.s32 %s5331_s19, %s7206_s24 }
  0x9d   : > { %1755 = vmatpush1.bf16.msra.mxu0 %v5558_v33  ;;  %v1357_v33 = vadd.f32 %v1351_v48, %v1336_v44  ;;  %v472_v31 = vmax.f32 %v466_v35, 0.0  ;;  %v475_v52 = vmax.f32 %v469_v29, 0.0  ;;  %v1443_v3 = vadd.f32 %v1437_v32, %v1426_v18  ;;  %v5570_v44 = vld [vmem:[%s6213_s14 + $0x2e0] ss:$8 sps:$4 sm:$0xff]   ;;  %v5575_v32 = vld [vmem:[%s6213_s14 + $0x2d4] ss:$8 sps:$4 sm:$0xff]  }
  0x9e   : > { %1756 = vmatprep.subr.bf16.mxu0 %v5566_v9  ;;  %v1360_v37 = vadd.f32 %v1354_v23, %v1339_v54  ;;  %v1385_v9 = vmul.f32 %v6605_v61, %v6991_v25  ;;  %v1454_v24 = vmul.f32 %v7195_v40, %v7163_v46  ;;  %v1402_v48 = vmul.f32 %v6626_v10, %v7053_v12  ;;  %v5567_v35 = vld [vmem:[%s6213_s14 + $0x80] ss:$8 sps:$4 sm:$0xff]   ;;  %v7213_v18 = vld [vmem:[%s9188_s2 + $0x178] sm:$0xff]  ;;  %s5333_s26 = sadd.s32 640, %s7185_s13  ;;  %s7324_s21 = sld [smem:[#allocation3 + %s1910_s12]] }
  0x9f   : > { %v1374_v54 = vadd.f32 %v1368_v42, %v1357_v33  ;;  %v1405_v7 = vmul.f32 %v6631_v11, %v7053_v12  ;;  %1275 = vmatpush2.bf16.msra.mxu1 %v5561_v20  ;;  %v1446_v29 = vadd.f32 %v1440_v59, %v1429_v51  ;;  %v1457_v10 = vmul.f32 %v7213_v18, %v7163_v46  ;;  %v7220_v11 = vld [vmem:[%s9188_s2 + $0x190] sm:$0xff]  ;;  %s1927_s15 = sadd.s32 %s5333_s26, %s7206_s24  ;;  %s5339_s19 = sadd.s32 1024, %s7185_s13 }
  0xa0   : > { %v1377_v61 = vadd.f32 %v1371_v50, %v1360_v37  ;;  %1276 = vmatprep.subr.bf16.mxu1 %v5569_v60  ;;  %v1419_v20 = vmul.f32 %v9311_v13, %v7088_v55  ;;  %v478_v51 = vpack.c.bf16 %v475_v52, %v472_v31  ;;  %v1460_v59 = vadd.f32 %v1454_v24, %v1443_v3  ;;  %v7233_v50 = vld [vmem:[%s9188_s2 + $0x1a8] sm:$0xff]  ;;  %v5573_v13 = vld [vmem:[%s6213_s14 + $0x2d0] ss:$8 sps:$4 sm:$0xff]   ;;  %s7357_s30 = sld [smem:[#allocation3 + %s1927_s15]]  ;;  %s7512_s6 = sadd.s32 4, %s6206_s9 }
  0xa1   : > { %1757 = vmatpush1.bf16.msra.mxu0 %v5564_v19  ;;  %v7224_v19 = vmul.f32 %v7220_v11, %v7181_v49  ;;  %v1391_v23 = vadd.f32 %v1385_v9, %v1374_v54  ;;  %v1474_v60 = vmul.f32 %v7233_v50, %v7181_v49  ;;  %v1436_v33 = vmul.f32 %v9314_v2, %v7116_v58  ;;  %v5580_v31 = vld [vmem:[%s6213_s14 + $0x2c4] ss:$8 sps:$4 sm:$0xff]   ;;  %s2365_s12 = sshra.s32 %s7512_s6, 7 }
  0xa2   : > { %1758 = vmatprep.subr.bf16.mxu0 %v5572_v28  ;;  %v1394_v42 = vadd.f32 %v1388_v4, %v1377_v61  ;;  %v1422_v28 = vmul.f32 %v9312_v8, %v7088_v55  ;;  %v1439_v9 = vmul.f32 %v9315_v56, %v7116_v58  ;;  %v1335_v4 = vmul.f32 %v6877_v43, %v9320_v17  ;;  %v5583_v17 = vld [vmem:[%s6213_s14 + $0x3c4] ss:$8 sps:$4 sm:$0xff]   ;;  %s7586_s28 = sshll.u32 %s2365_s12, 7 }
  0xa3   : > { %v1408_v8 = vadd.f32 %v1402_v48, %v1391_v23  ;;  %1277 = vmatpush2.bf16.msra.mxu1 %v5567_v35  ;;  %v1749_v2 = vsel %vm939_vm0, %v4802_v6, 0  ;;  %v1463_v52 = vadd.f32 %v1457_v10, %v1446_v29  ;;  %v1453_v3 = vmul.f32 %v9317_v30, %v7163_v46  ;;  %v9331_v30 = vld [vmem:[#allocation19_spill] sm:$0xff]  ;;  %v9334_v35 = vld [vmem:[#allocation24_spill] sm:$0xff]  ;;  %v5578_v29 = vld [vmem:[%s6213_s14 + $0x2c0] ss:$8 sps:$4 sm:$0xff]  }
  0xa4   : > { %v1411_v37 = vadd.f32 %v1405_v7, %v1394_v42  ;;  %v1350_v56 = vmul.f32 %v9322_v0, %v6969_v1  ;;  %4804 = vmatprep.subr.msk.bf16.mxu1 %vm939_vm0, %v4803_v53  ;;  %v1470_v61 = vmul.f32 %v9331_v30, %v7181_v49  ;;  %v9332_v0 = vld [vmem:[#allocation21_spill] sm:$0xff]  ;;  %v1353_v53 = vmul.f32 %v9333_v15, %v6969_v1  ;;  %v9335_v42 = vld [vmem:[#allocation27_spill] sm:$0xff] }
  0xa5   : > { %1759 = vmatpush1.bf16.msra.mxu0 %v5570_v44  ;;  %v1425_v24 = vadd.f32 %v1419_v20, %v1408_v8  ;;  %v9330_v44 = vld [vmem:[#allocation18_spill] sm:$0xff]  ;;  %v1338_v48 = vmul.f32 %v6877_v43, %v9332_v0  ;;  %v1473_v20 = vmul.f32 %v9335_v42, %v7181_v49  ;;  %v5586_v1 = vld [vmem:[%s6213_s14 + $0x2b4] ss:$8 sps:$4 sm:$0xff]   ;;  %v7301_v30 = vstv %s7242_s10  ;;  %s5335_s10 = sadd.s32 768, %s7185_s13 }
  0xa6   : > { %1760 = vmatprep.subr.bf16.mxu0 %v5575_v32  ;;  %v1428_v6 = vadd.f32 %v1422_v28, %v1411_v37  ;;  %v1456_v54 = vmul.f32 %v9330_v44, %v7163_v46  ;;  %v1356_v7 = vadd.f32 %v1350_v56, %v1335_v4  ;;  %v1367_v32 = vmul.f32 %v9334_v35, %v6979_v5  ;;  %v5581_v43 = vld [vmem:[%s6213_s14 + $0x3c0] ss:$8 sps:$4 sm:$0xff]   ;;  %v5589_v28 = vld [vmem:[%s6213_s14 + $0x3b4] ss:$8 sps:$4 sm:$0xff]  }
  0xa7   : > { %1279 = vmatmul.mubr.bf16.vlgmr.msra.gmra.mxu1 %v478_v51  ;;  %v1442_v10 = vadd.f32 %v1436_v33, %v1425_v24  ;;  %v9336_v51 = vmov 0   ;;  %v5584_v33 = vld [vmem:[%s6213_s14 + $0x2b0] ss:$8 sps:$4 sm:$0xff]   ;;  %v1359_v37 = vadd.f32 %v1353_v53, %v1338_v48  ;;  %v1477_v24 = vadd.f32 %v7224_v19, %v1460_v59 }
  0xa8   : > { %v1445_v23 = vadd.f32 %v1439_v9, %v1428_v6  ;;  %1804 = vmatpush1.bf16.msra.mxu1 %v1749_v2  ;;  %1829 = vmatprep.mubr.bf16.mxu1 %v9336_v51  ;;  %v9337_v9 = vld [vmem:[#allocation25_spill] sm:$0xff]  ;;  %v1373_v2 = vadd.f32 %v1367_v32, %v1356_v7  ;;  %v1480_v6 = vadd.f32 %v1474_v60, %v1463_v52  ;;  %v7306_v15 = vstv %s7259_s17  ;;  %s5337_s17 = sadd.s32 896, %s7185_s13  ;;  %s7577_s13 = sld [smem:[#allocation5 + %s7129_s20]] }
  0xa9   : > { %1761 = vmatpush1.bf16.msra.mxu0 %v5573_v13  ;;  %1805 = vmatprep.subr.bf16.mxu1 %v5583_v17  ;;  %v1459_v13 = vadd.f32 %v1453_v3, %v1442_v10  ;;  %v1370_v4 = vmul.f32 %v9337_v9, %v6979_v5  ;;  %v5587_v3 = vld [vmem:[%s6213_s14 + $0x3b0] ss:$8 sps:$4 sm:$0xff]   ;;  %v5592_v17 = vld [vmem:[%s6213_s14 + $0x2a4] ss:$8 sps:$4 sm:$0xff]   ;;  %v7309_v53 = vstv %s7270_s25  ;;  %v1387_v59 = vmul.f32 %v9328_v45, %v6991_v25  ;;  %v5593_v45 = vld [vmem:[%s6213_s14 + $0x3a0] ss:$8 sps:$4 sm:$0xff]   ;;  %s1944_s25 = sadd.s32 %s5335_s10, %s7206_s24  ;;  %s1961_s26 = sadd.s32 %s5337_s17, %s7206_s24 }
  0xaa   : > { %1762 = vmatprep.subr.bf16.mxu0 %v5580_v31  ;;  %v1462_v8 = vadd.f32 %v1456_v54, %v1445_v23  ;;  %v9338_v31 = vld [vmem:[#allocation26_spill] sm:$0xff]  ;;  %v1401_v52 = vmul.f32 %v6774_v22, %v7053_v12  ;;  %v1485_v7 = vadd.f32 %v7301_v30, %v1477_v24  ;;  %v1488_v35 = vadd.f32 %v7301_v30, %v1480_v6  ;;  %v5601_v22 = vld [vmem:[%s6213_s14 + $0x394] ss:$8 sps:$4 sm:$0xff]   ;;  %s7405_s7 = sld [smem:[#allocation3 + %s1944_s25]] }
  0xab   : > { %v1384_v56 = vmul.f32 %v9338_v31, %v6991_v25  ;;  %v1476_v44 = vadd.f32 %v1470_v61, %v1459_v13  ;;  %v5595_v5 = vld [vmem:[%s6213_s14 + $0x3a4] ss:$8 sps:$4 sm:$0xff]   ;;  %v1376_v19 = vadd.f32 %v1370_v4, %v1359_v37  ;;  %v5590_v61 = vld [vmem:[%s6213_s14 + $0x2a0] ss:$8 sps:$4 sm:$0xff]   ;;  %v5598_v25 = vld [vmem:[%s6213_s14 + $0x294] ss:$8 sps:$4 sm:$0xff]   ;;  %v1849_v23 = vmul.f32 %v7025_v39, %v7306_v15 }
  0xac   : > { %v1479_v54 = vadd.f32 %v1473_v20, %v1462_v8  ;;  %1806 = vmatpush1.bf16.msra.mxu1 %v5581_v43  ;;  %v1864_v42 = vmul.f32 %v7041_v41, %v7309_v53  ;;  %v7332_v20 = vstv %s7287_s8  ;;  %v5596_v43 = vld [vmem:[%s6213_s14 + $0x290] ss:$8 sps:$4 sm:$0xff]   ;;  %v1491_v37 = vmax.f32 %v1485_v7, 0.0  ;;  %v5607_v31 = vld [vmem:[%s6213_s14 + $0x44c] ss:$8 sps:$4 sm:$0xff]   ;;  %s7429_s17 = sld [smem:[#allocation3 + %s1961_s26]] }
  0xad   : > { %1763 = vmatpush1.bf16.msra.mxu0 %v5578_v29  ;;  %1807 = vmatprep.subr.bf16.mxu1 %v5589_v28  ;;  %v1484_v0 = vadd.f32 %v7301_v30, %v1476_v44  ;;  %v1390_v60 = vadd.f32 %v1384_v56, %v1373_v2  ;;  %v7339_v28 = vld [vmem:[%s9188_s2 + $0xd8] sm:$0xff]  ;;  %v7346_v39 = vld [vmem:[%s9188_s2 + $0xf0] sm:$0xff]  ;;  %v1494_v9 = vmax.f32 %v1488_v35, 0.0  ;;  %v1852_v4 = vmul.f32 %v7034_v38, %v7306_v15  ;;  %v7377_v44 = vld [vmem:[%s9188_s2 + $0x120] sm:$0xff]  ;;  %s5345_s8 = sadd.s32 384, %s7586_s28  ;;  %s5347_s26 = sadd.s32 512, %s7586_s28 }
  0xae   : > { %1764 = vmatprep.subr.bf16.mxu0 %v5586_v1  ;;  %v1487_v48 = vadd.f32 %v7301_v30, %v1479_v54  ;;  %v1393_v1 = vadd.f32 %v1387_v59, %v1376_v19  ;;  %v1404_v13 = vmul.f32 %v7339_v28, %v7053_v12  ;;  %v1418_v41 = vmul.f32 %v7346_v39, %v7088_v55  ;;  %v5604_v12 = vld [vmem:[%s6213_s14 + $0x384] ss:$8 sps:$4 sm:$0xff]   ;;  %v5602_v54 = vld [vmem:[%s6213_s14 + $0x380] ss:$8 sps:$4 sm:$0xff]   ;;  %v5610_v19 = vld [vmem:[%s6213_s14 + $0x374] ss:$8 sps:$4 sm:$0xff]  }
  0xaf   : > { %v1490_v32 = vmax.f32 %v1484_v0, 0.0  ;;  %v1407_v8 = vadd.f32 %v1401_v52, %v1390_v60  ;;  %v1867_v2 = vmul.f32 %v7048_v14, %v7309_v53  ;;  %v1870_v56 = vadd.f32 %v1864_v42, %v1849_v23  ;;  %v7370_v14 = vld [vmem:[%s9188_s2 + $0x108] sm:$0xff]  ;;  %v7396_v59 = vld [vmem:[%s9188_s2 + $0x150] sm:$0xff]  ;;  %v7441_v42 = vld [vmem:[%s9188_s2 + $0x20] sm:$0xff] }
  0xb0   : > { %v1493_v29 = vmax.f32 %v1487_v48, 0.0  ;;  %1808 = vmatpush1.bf16.msra.mxu1 %v5587_v3  ;;  %v1881_v3 = vmul.f32 %v7060_v21, %v7332_v20  ;;  %v1410_v38 = vadd.f32 %v1404_v13, %v1393_v1  ;;  %v1421_v24 = vmul.f32 %v7370_v14, %v7088_v55  ;;  %v5605_v0 = vld [vmem:[%s6213_s14 + $0x448] ss:$8 sps:$4 sm:$0xff]   ;;  %v7387_v55 = vld [vmem:[%s9188_s2 + $0x138] sm:$0xff] }
  0xb1   : > { %1765 = vmatpush1.bf16.msra.mxu0 %v5584_v33  ;;  %1809 = vmatprep.subr.bf16.mxu1 %v5595_v5  ;;  %v5599_v33 = vld [vmem:[%s6213_s14 + $0x390] ss:$8 sps:$4 sm:$0xff]   ;;  %v1424_v6 = vadd.f32 %v1418_v41, %v1407_v8  ;;  %v1435_v21 = vmul.f32 %v7377_v44, %v7116_v58  ;;  %v1497_v5 = vpack.c.bf16 %v1494_v9, %v1491_v37  ;;  %v7403_v7 = vstv %s7324_s21  ;;  %v7411_v35 = vld [vmem:[%s9188_s2 + $0x168] sm:$0xff]  ;;  %s1978_s21 = sadd.s32 %s5339_s19, %s7206_s24  ;;  %s7686_s24 = sld [smem:[#allocation3 + %s7512_s6]] }
  0xb2   : > { %1766 = vmatprep.subr.bf16.mxu0 %v5592_v17  ;;  %v1496_v10 = vpack.c.bf16 %v1493_v29, %v1490_v32  ;;  %v7364_v17 = vstv %s7311_s23  ;;  %v1438_v48 = vmul.f32 %v7387_v55, %v7116_v58  ;;  %v1452_v60 = vmul.f32 %v7396_v59, %v7163_v46  ;;  %v5613_v58 = vld [vmem:[%s6213_s14 + $0x43c] ss:$8 sps:$4 sm:$0xff]   ;;  %v5611_v1 = vld [vmem:[%s6213_s14 + $0x438] ss:$8 sps:$4 sm:$0xff]   ;;  %s7463_s19 = sld [smem:[#allocation3 + %s1978_s21]]  ;;  %s5343_s21 = sadd.s32 256, %s7586_s28 }
  0xb3   : > { %v1873_v52 = vadd.f32 %v1867_v2, %v1852_v4  ;;  %v7415_v32 = vmul.f32 %v7411_v35, %v7163_v46  ;;  %v7434_v46 = vld [vmem:[%s9188_s2 + $0x8] sm:$0xff]  ;;  %v1901_v13 = vmul.f32 %v7083_v63, %v7364_v17  ;;  %v1915_v8 = vmul.f32 %v7097_v16, %v7403_v7  ;;  %v7455_v41 = vld [vmem:[%s9188_s2 + $0x38] sm:$0xff]  ;;  %v7468_v63 = vld [vmem:[%s9188_s2 + $0x50] sm:$0xff] }
  0xb4   : > { %1786 = vmatprep.mubr.bf16.mxu0 %v1496_v10  ;;  %1810 = vmatpush1.bf16.msra.mxu1 %v5593_v45  ;;  %v1887_v45 = vadd.f32 %v1881_v3, %v1870_v56  ;;  %v1441_v10 = vadd.f32 %v1435_v21, %v1424_v6  ;;  %v1848_v23 = vmul.f32 %v7434_v46, %v7306_v15  ;;  %v5616_v37 = vld [vmem:[%s6213_s14 + $0x364] ss:$8 sps:$4 sm:$0xff]   ;;  %v7490_v6 = vld [vmem:[%s9188_s2 + $0x98] sm:$0xff] }
  0xb5   : > { %1767 = vmatpush1.bf16.msra.mxu0 %v5590_v61  ;;  %1811 = vmatprep.subr.bf16.mxu1 %v5601_v22  ;;  %v1884_v61 = vmul.f32 %v7068_v36, %v7332_v20  ;;  %v7420_v36 = vld [vmem:[%s9188_s2 + $0x180] sm:$0xff]  ;;  %v1427_v22 = vadd.f32 %v1421_v24, %v1410_v38  ;;  %v1866_v16 = vmul.f32 %v7468_v63, %v7309_v53  ;;  %v7475_v4 = vld [vmem:[%s9188_s2 + $0x68] sm:$0xff] }
  0xb6   : > { %1768 = vmatprep.subr.bf16.mxu0 %v5598_v25  ;;  %v7424_v29 = vmul.f32 %v7420_v36, %v7181_v49  ;;  %v1898_v25 = vmul.f32 %v7075_v57, %v7364_v17  ;;  %v1851_v57 = vmul.f32 %v7441_v42, %v7306_v15  ;;  %v1880_v2 = vmul.f32 %v7475_v4, %v7332_v20  ;;  %v7483_v38 = vld [vmem:[%s9188_s2 + $0x80] sm:$0xff] }
  0xb7   : > { %v1890_v9 = vadd.f32 %v1884_v61, %v1873_v52  ;;  %v1883_v24 = vmul.f32 %v7483_v38, %v7332_v20  ;;  %v1897_v21 = vmul.f32 %v7490_v6, %v7364_v17  ;;  %v7507_v61 = vld [vmem:[%s9188_s2 + $0xb0] sm:$0xff] }
  0xb8   : > { %1812 = vmatpush1.bf16.msra.mxu1 %v5599_v33  ;;  %v1863_v33 = vmul.f32 %v7455_v41, %v7309_v53  ;;  %v1904_v56 = vadd.f32 %v1898_v25, %v1887_v45  ;;  %v1872_v52 = vadd.f32 %v1866_v16, %v1851_v57  ;;  %v7515_v45 = vadd.f32 %v1452_v60, %v1441_v10  ;;  %v5622_v57 = vld [vmem:[%s6213_s14 + $0x354] ss:$8 sps:$4 sm:$0xff]  }
  0xb9   : > { %1769 = vmatpush1.bf16.msra.mxu0 %v5596_v43  ;;  %2266 = vmatprep.subr.bf16.mxu1 %v5607_v31  ;;  %v5608_v43 = vld [vmem:[%s6213_s14 + $0x370] ss:$8 sps:$4 sm:$0xff]   ;;  %v5619_v31 = vld [vmem:[%s6213_s14 + $0x42c] ss:$8 sps:$4 sm:$0xff]   ;;  %v1907_v60 = vadd.f32 %v1901_v13, %v1890_v9  ;;  %v7528_v10 = vstv %s7405_s7  ;;  %v5625_v16 = vld [vmem:[%s6213_s14 + $0x41c] ss:$8 sps:$4 sm:$0xff]  }
  0xba   : > { %1770 = vmatprep.subr.bf16.mxu0 %v5604_v12  ;;  %v7461_v12 = vstv %s7357_s30  ;;  %v1869_v3 = vadd.f32 %v1863_v33, %v1848_v23  ;;  %v7543_v13 = vld [vmem:[%s9188_s2 + $0xf8] sm:$0xff]  ;;  %s7644_s30 = sand.u32 127, %s7512_s6 }
  0xbb   : > { %4805 = vmatmul.mubr.msk.bf16.vlgmr.msra.gmra.mxu1 %vm935_vm1, %v1497_v5  ;;  %v1444_v5 = vadd.f32 %v1438_v48, %v1427_v22  ;;  %v1900_v48 = vmul.f32 %v7507_v61, %v7364_v17  ;;  %v7522_v22 = vld [vmem:[%s9188_s2 + $0xc8] sm:$0xff]  ;;  %v1931_v9 = vmul.f32 %v7543_v13, %v7461_v12  ;;  %s2388_s23 = sadd.s32 %s5343_s21, %s7644_s30  ;;  %s2405_s12 = sadd.s32 %s5345_s8, %s7644_s30 }
  0xbc   : > { %2267 = vmatpush1.bf16.msra.mxu1 %v5605_v0  ;;  %v7498_v0 = vld [vmem:[%s9188_s2 + $0x198] sm:$0xff]  ;;  %v1886_v25 = vadd.f32 %v1880_v2, %v1869_v3  ;;  %v1914_v23 = vmul.f32 %v7522_v22, %v7403_v7  ;;  %s7719_s29 = sld [smem:[#allocation3 + %s2388_s23]]  ;;  %s2422_s20 = sadd.s32 %s5347_s26, %s7644_s30 }
  0xbd   : > { %1771 = vmatpush2.bf16.msra.mxu0 %v5602_v54  ;;  %2268 = vmatprep.subr.bf16.mxu1 %v5613_v58  ;;  %v5614_v54 = vld [vmem:[%s6213_s14 + $0x360] ss:$8 sps:$4 sm:$0xff]   ;;  %v5620_v3 = vld [vmem:[%s6213_s14 + $0x350] ss:$8 sps:$4 sm:$0xff]   ;;  %s7723_s16 = sld [smem:[#allocation3 + %s2405_s12]]  ;;  %s5351_s8 = sadd.s32 768, %s7586_s28 }
  0xbe   : > { %1772 = vmatprep.subr.bf16.mxu0 %v5610_v19  ;;  %v7502_v19 = vmul.f32 %v7498_v0, %v7181_v49  ;;  %v5617_v58 = vld [vmem:[%s6213_s14 + $0x428] ss:$8 sps:$4 sm:$0xff]   ;;  %v1918_v49 = vmul.f32 %v7111_v62, %v7403_v7  ;;  %v7533_v62 = vld [vmem:[%s9188_s2 + $0xe0] sm:$0xff]  ;;  %v1903_v2 = vadd.f32 %v1897_v21, %v1886_v25  ;;  %s7738_s25 = sld [smem:[#allocation3 + %s2422_s20]]  ;;  %s5353_s23 = sadd.s32 896, %s7586_s28 }
  0xbf   : > { %v1917_v33 = vmul.f32 %v7533_v62, %v7403_v7  ;;  %v5623_v21 = vld [vmem:[%s6213_s14 + $0x418] ss:$8 sps:$4 sm:$0xff]   ;;  %s2473_s15 = sadd.s32 %s5353_s23, %s7644_s30 }
  0xc0   : > { %2269 = vmatpush1.bf16.msra.mxu1 %v5611_v1  ;;  %v1921_v1 = vadd.f32 %v1915_v8, %v1904_v56 }
  0xc1   : > { %1773 = vmatpush2.bf16.msra.mxu0 %v5608_v43  ;;  %v1889_v43 = vadd.f32 %v1883_v24, %v1872_v52  ;;  %2270 = vmatprep.subr.bf16.mxu1 %v5619_v31  ;;  %v1461_v24 = vadd.f32 %v7415_v32, %v1444_v5  ;;  %v7551_v31 = vstv %s7429_s17  ;;  %v1935_v52 = vmul.f32 %v7137_v26, %v7461_v12  ;;  %s5341_s17 = sadd.s32 128, %s7586_s28 }
  0xc2   : > { %1774 = vmatprep.subr.bf16.mxu0 %v5616_v37  ;;  %v1932_v37 = vmul.f32 %v7124_v47, %v7461_v12  ;;  %v7556_v47 = vld [vmem:[%s9188_s2 + $0x110] sm:$0xff]  ;;  %v1949_v32 = vmul.f32 %v7150_v27, %v7528_v10  ;;  %v1920_v5 = vadd.f32 %v1914_v23, %v1903_v2  ;;  %v7582_v27 = vld [vmem:[%s9188_s2 + $0x140] sm:$0xff]  ;;  %s2371_s10 = sadd.s32 %s5341_s17, %s7644_s30 }
  0xc3   : > { %v1906_v8 = vadd.f32 %v1900_v48, %v1889_v43  ;;  %9339 = vst [vmem:[#allocation13_spill] sm:$0xff] %v7556_v47  ;;  %v1934_v56 = vmul.f32 %v7556_v47, %v7461_v12  ;;  %v7568_v48 = vld [vmem:[%s9188_s2 + $0x128] sm:$0xff]  ;;  %v1924_v43 = vadd.f32 %v1918_v49, %v1907_v60  ;;  %v7574_v47 = vstv %s7463_s19  ;;  %9341 = vst [vmem:[#allocation9_spill] sm:$0xff] %v7582_v27  ;;  %s7692_s27 = sld [smem:[#allocation3 + %s2371_s10]]  ;;  %s5349_s19 = sadd.s32 640, %s7586_s28 }
  0xc4   : > { %9340 = vst [vmem:[#allocation14_spill] sm:$0xff] %v7568_v48  ;;  %v1948_v25 = vmul.f32 %v7568_v48, %v7528_v10  ;;  %2271 = vmatpush1.bf16.msra.mxu1 %v5617_v58  ;;  %v1951_v23 = vmul.f32 %v7582_v27, %v7528_v10  ;;  %v5631_v58 = vld [vmem:[%s6213_s14 + $0x40c] ss:$8 sps:$4 sm:$0xff]   ;;  %v1952_v49 = vmul.f32 %v7176_v34, %v7528_v10  ;;  %s2439_s11 = sadd.s32 %s5349_s19, %s7644_s30 }
  0xc5   : > { %1775 = vmatpush2.bf16.msra.mxu0 %v5614_v54  ;;  %v5628_v54 = vld [vmem:[%s6213_s14 + $0x344] ss:$8 sps:$4 sm:$0xff]   ;;  %v1923_v26 = vadd.f32 %v1917_v33, %v1906_v8  ;;  %2272 = vmatprep.subr.bf16.mxu1 %v5625_v16  ;;  %v1937_v60 = vadd.f32 %v1931_v9, %v1920_v5  ;;  %v7594_v33 = vld [vmem:[%s9188_s2 + $0x158] sm:$0xff]  ;;  %v5626_v8 = vld [vmem:[%s6213_s14 + $0x340] ss:$8 sps:$4 sm:$0xff]  }
  0xc6   : > { %1776 = vmatprep.subr.bf16.mxu0 %v5622_v57  ;;  %v1938_v57 = vadd.f32 %v1932_v37, %v1921_v1  ;;  %9342 = vst [vmem:[#allocation15_spill] sm:$0xff] %v7594_v33  ;;  %v1965_v2 = vmul.f32 %v7594_v33, %v7551_v31  ;;  %v7602_v16 = vld [vmem:[%s9188_s2 + $0x170] sm:$0xff]  ;;  %v7609_v1 = vld [vmem:[%s9188_s2 + $0x188] sm:$0xff]  ;;  %v7616_v9 = vld [vmem:[%s9188_s2] sm:$0xff] }
  0xc7   : > { %v1940_v27 = vadd.f32 %v1934_v56, %v1923_v26  ;;  %9343 = vst [vmem:[#allocation16_spill] sm:$0xff] %v7602_v16  ;;  %v1968_v34 = vmul.f32 %v7602_v16, %v7551_v31  ;;  %9344 = vst [vmem:[#allocation10_spill] sm:$0xff] %v7609_v1  ;;  %v1982_v37 = vmul.f32 %v7609_v1, %v7574_v47  ;;  %v5629_v5 = vld [vmem:[%s6213_s14 + $0x408] ss:$8 sps:$4 sm:$0xff]   ;;  %v7624_v16 = vld [vmem:[%s9188_s2 + $0x18] sm:$0xff] }
  0xc8   : > { %9345 = vst [vmem:[#allocation17_spill] sm:$0xff] %v7616_v9  ;;  %v1847_v56 = vmul.f32 %v7616_v9, %v7306_v15  ;;  %v1954_v26 = vadd.f32 %v1948_v25, %v1937_v60  ;;  %9346 = vst [vmem:[#allocation11_spill] sm:$0xff] %v7624_v16  ;;  %v1850_v1 = vmul.f32 %v7624_v16, %v7306_v15  ;;  %v7631_v33 = vld [vmem:[%s9188_s2 + $0x30] sm:$0xff]  ;;  %2273 = vmatpush1.bf16.msra.mxu1 %v5623_v21 }
  0xc9   : > { %1777 = vmatpush2.bf16.msra.mxu0 %v5620_v3  ;;  %9347 = vst [vmem:[#allocation20_spill] sm:$0xff] %v7631_v33  ;;  %v1862_v9 = vmul.f32 %v7631_v33, %v7309_v53  ;;  %v7638_v3 = vld [vmem:[%s9188_s2 + $0x48] sm:$0xff]  ;;  %v5634_v15 = vld [vmem:[%s6213_s14 + $0x334] ss:$8 sps:$4 sm:$0xff]   ;;  %v1941_v60 = vadd.f32 %v1935_v52, %v1924_v43  ;;  %v1957_v16 = vadd.f32 %v1951_v23, %v1940_v27  ;;  %v7650_v33 = vld [vmem:[%s9188_s2 + $0x1a0] sm:$0xff] }
  0xca   : > { %9348 = vst [vmem:[#allocation22_spill] sm:$0xff] %v7638_v3  ;;  %v1865_v25 = vmul.f32 %v7638_v3, %v7309_v53  ;;  %1778 = vmatprep.subr.bf16.mxu0 %v5628_v54  ;;  %9349 = vst [vmem:[#allocation28_spill] sm:$0xff] %v7650_v33  ;;  %v1985_v48 = vmul.f32 %v7650_v33, %v7574_v47  ;;  %2274 = vmatprep.subr.bf16.mxu1 %v5631_v58  ;;  %v5637_v53 = vld [vmem:[%s6213_s14 + $0x3fc] ss:$8 sps:$4 sm:$0xff]   ;;  %v5632_v52 = vld [vmem:[%s6213_s14 + $0x330] ss:$8 sps:$4 sm:$0xff]  }
  0xcb   : > { %v1475_v21 = vadd.f32 %v7424_v29, %v7515_v45  ;;  %v1478_v54 = vadd.f32 %v7502_v19, %v1461_v24  ;;  %v1971_v3 = vadd.f32 %v1965_v2, %v1954_v26  ;;  %v1955_v43 = vadd.f32 %v1949_v32, %v1938_v57  ;;  %v7664_v33 = vld [vmem:[%s9188_s2 + $0x60] sm:$0xff]  ;;  %v7674_v24 = vld [vmem:[%s9188_s2 + $0x78] sm:$0xff]  ;;  %v5641_v26 = vld [vmem:[%s6213_s14 + $0x3e8] ss:$8 sps:$4 sm:$0xff]  }
  0xcc   : > { %v1966_v27 = vmul.f32 %v7195_v40, %v7551_v31  ;;  %v1974_v23 = vadd.f32 %v1968_v34, %v1957_v16  ;;  %v1879_v58 = vmul.f32 %v7664_v33, %v7332_v20  ;;  %v5635_v29 = vld [vmem:[%s6213_s14 + $0x3f8] ss:$8 sps:$4 sm:$0xff]   ;;  %v1868_v45 = vadd.f32 %v1862_v9, %v1847_v56  ;;  %2275 = vmatpush1.bf16.msra.mxu1 %v5629_v5  ;;  %v5640_v57 = vld [vmem:[%s6213_s14 + $0x324] ss:$8 sps:$4 sm:$0xff]   ;;  %v7702_v5 = vld [vmem:[%s9188_s2 + $0x90] sm:$0xff] }
  0xcd   : > { %1779 = vmatpush2.bf16.msra.mxu0 %v5626_v8  ;;  %v1988_v19 = vadd.f32 %v1982_v37, %v1971_v3  ;;  %v1871_v40 = vadd.f32 %v1865_v25, %v1850_v1  ;;  %v1882_v32 = vmul.f32 %v7674_v24, %v7332_v20  ;;  %v1958_v2 = vadd.f32 %v1952_v49, %v1941_v60  ;;  %v5643_v20 = vld [vmem:[%s6213_s14 + $0x3ec] ss:$8 sps:$4 sm:$0xff]  }
  0xce   : > { %1780 = vmatprep.subr.bf16.mxu0 %v5634_v15  ;;  %v1969_v8 = vmul.f32 %v7213_v18, %v7551_v31  ;;  %v7683_v16 = vstv %s7577_s13  ;;  %v1991_v34 = vadd.f32 %v1985_v48, %v1974_v23  ;;  %2276 = vmatprep.subr.bf16.mxu1 %v5637_v53  ;;  %v1483_v1 = vadd.f32 %v7301_v30, %v1475_v21  ;;  %v5638_v18 = vld [vmem:[%s6213_s14 + $0x320] ss:$8 sps:$4 sm:$0xff]   ;;  %v5646_v53 = vld [vmem:[%s6213_s14 + $0x314] ss:$8 sps:$4 sm:$0xff]   ;;  %s5355_s13 = sadd.s32 1024, %s7586_s28  ;;  %s7917_s28 = sld [smem:[#allocation5 + %s7512_s6]] }
  0xcf   : > { %v1486_v37 = vadd.f32 %v7301_v30, %v1478_v54  ;;  %v1996_v9 = vadd.f32 %v7683_v16, %v1988_v19  ;;  %v1972_v49 = vadd.f32 %v1966_v27, %v1955_v43  ;;  %v1983_v48 = vmul.f32 %v7220_v11, %v7574_v47  ;;  %v7712_v15 = vld [vmem:[%s9188_s2 + $0xa8] sm:$0xff]  ;;  %v5649_v43 = vld [vmem:[%s6213_s14 + $0x3dc] ss:$8 sps:$4 sm:$0xff]   ;;  %v5644_v19 = vld [vmem:[%s6213_s14 + $0x310] ss:$8 sps:$4 sm:$0xff]   ;;  %s2490_s20 = sadd.s32 %s5355_s13, %s7644_s30  ;;  %s7898_s13 = sadd.s32 5, %s6206_s9 }
  0xd0   : > { %v1999_v56 = vadd.f32 %v7683_v16, %v1991_v34  ;;  %v1896_v30 = vmul.f32 %v7702_v5, %v7364_v17  ;;  %v1885_v25 = vadd.f32 %v1879_v58, %v1868_v45  ;;  %v1888_v11 = vadd.f32 %v1882_v32, %v1871_v40  ;;  %2277 = vmatpush1.bf16.msra.mxu1 %v5635_v29  ;;  %v4854_v27 = vld [vmem:[%s6213_s14 + $0x518] sm:$0x33]  ;;  %v7731_v40 = vld [vmem:[%s9188_s2 + $0xc0] sm:$0xff]  ;;  %s2877_s6 = sshra.s32 %s7898_s13, 7 }
  0xd1   : > { %1781 = vmatpush2.bf16.msra.mxu0 %v5632_v52  ;;  %v2002_v3 = vmax.f32 %v1996_v9, 0.0  ;;  %v1899_v60 = vmul.f32 %v7712_v15, %v7364_v17  ;;  %v1975_v21 = vadd.f32 %v1969_v8, %v1958_v2  ;;  %v1986_v54 = vmul.f32 %v7233_v50, %v7574_v47  ;;  %2278 = vmatprep.subr.bf16.mxu1 %v5643_v20  ;;  %v5647_v2 = vld [vmem:[%s6213_s14 + $0x3d8] ss:$8 sps:$4 sm:$0xff]   ;;  %s7961_s19 = sshll.u32 %s2877_s6, 7 }
  0xd2   : > { %1782 = vmatprep.subr.bf16.mxu0 %v5640_v57  ;;  %v2005_v52 = vmax.f32 %v1999_v56, 0.0  ;;  %v1489_v17 = vmax.f32 %v1483_v1, 0.0  ;;  %v1492_v23 = vmax.f32 %v1486_v37, 0.0  ;;  %v1989_v58 = vadd.f32 %v1983_v48, %v1972_v49  ;;  %v5652_v1 = vld [vmem:[%s6213_s14 + $0x4cc] ss:$8 sps:$4 sm:$0xff]   ;;  %s5359_s23 = sadd.s32 256, %s7961_s19 }
  0xd3   : > { %v1902_v50 = vadd.f32 %v1896_v30, %v1885_v25  ;;  %v1905_v45 = vadd.f32 %v1899_v60, %v1888_v11  ;;  %v1913_v32 = vmul.f32 %v7731_v40, %v7403_v7  ;;  %v1916_v57 = vmul.f32 %v7339_v28, %v7403_v7  ;;  %s5369_s26 = sadd.s32 896, %s7961_s19 }
  0xd4   : > { %v2008_v29 = vpack.c.bf16 %v2005_v52, %v2002_v3  ;;  %2279 = vmatpush1.bf16.msra.mxu1 %v5641_v26  ;;  %v4896_v8 = vcombine.high %v4854_v27, %v4854_v27  ;;  %v4895_v34 = vcombine.low %v4854_v27, %v4854_v27  ;;  %v1992_v20 = vadd.f32 %v1986_v54, %v1975_v21  ;;  %v5660_v3 = vld [vmem:[%s6213_s14 + $0x50c] ss:$8 sps:$4 sm:$0xff]   ;;  %v5655_v21 = vld [vmem:[%s6213_s14 + $0x4b8] ss:$8 sps:$4 sm:$0xff]  }
  0xd5   : > { %1783 = vmatpush2.bf16.msra.mxu0 %v5638_v18  ;;  %2280 = vmatprep.subr.bf16.mxu1 %v5649_v43  ;;  %v1495_v37 = vpack.c.bf16 %v1492_v23, %v1489_v17  ;;  %v7744_v28 = vadd.f32 %v7683_v16, %v1989_v58  ;;  %v7747_v7 = vstv %s7686_s24  ;;  %v7750_v9 = vstv %s7692_s27  ;;  %v5650_v18 = vld [vmem:[%s6213_s14 + $0x4c8] ss:$8 sps:$4 sm:$0xff]   ;;  %s7767_s24 = sld [smem:[#allocation3 + %s2439_s11]]  ;;  %s2456_s27 = sadd.s32 %s5351_s8, %s7644_s30  ;;  %v5666_v17 = vld [vmem:[%s6213_s14 + $0x4fc] ss:$8 sps:$4 sm:$0xff]  }
  0xd6   : > { %1784 = vmatprep.subr.bf16.mxu0 %v5646_v53  ;;  %2298 = vmatprep.mubr.bf16.mxu1 %v2008_v29  ;;  %v1919_v49 = vadd.f32 %v1913_v32, %v1902_v50  ;;  %v1922_v48 = vadd.f32 %v1916_v57, %v1905_v45  ;;  %v1930_v56 = vmul.f32 %v7346_v39, %v7461_v12  ;;  %v2261_v26 = vsel %vm939_vm0, %v4895_v34, 0  ;;  %v5657_v39 = vld [vmem:[%s6213_s14 + $0x4bc] ss:$8 sps:$4 sm:$0xff]   ;;  %s7810_s17 = sld [smem:[#allocation3 + %s2456_s27]]  ;;  %v7818_v23 = vld [vmem:[%s9188_s2 + $0x28] sm:$0xff] }
  0xd7   : > { %v1933_v30 = vmul.f32 %v7370_v14, %v7461_v12  ;;  %v7762_v25 = vadd.f32 %v7683_v16, %v1992_v20  ;;  %v7765_v11 = vstv %s7719_s29  ;;  %v1947_v14 = vmul.f32 %v7377_v44, %v7528_v10  ;;  %v7795_v44 = vld [vmem:[%s9188_s2 + $0x10] sm:$0xff]  ;;  %v7834_v32 = vld [vmem:[%s9188_s2 + $0x58] sm:$0xff]  ;;  %s7845_s30 = sld [smem:[#allocation3 + %s2473_s15]] }
  0xd8   : > { %2281 = vmatpush1.bf16.msra.mxu1 %v5647_v2  ;;  %v1950_v12 = vmul.f32 %v7387_v55, %v7528_v10  ;;  %v7777_v60 = vmul.f32 %v7396_v59, %v7551_v31  ;;  %v7780_v53 = vstv %s7723_s16  ;;  %v7786_v54 = vmul.f32 %v7411_v35, %v7551_v31  ;;  %v7802_v59 = vld [vmem:[%s9188_s2 + $0x40] sm:$0xff]  ;;  %v5663_v45 = vld [vmem:[%s6213_s14 + $0x4ac] ss:$8 sps:$4 sm:$0xff]   ;;  %s7860_s11 = sld [smem:[#allocation3 + %s2490_s20]]  ;;  %s5365_s20 = sadd.s32 640, %s7961_s19 }
  0xd9   : > { %1785 = vmatpush2.bf16.msra.mxu0 %v5644_v19  ;;  %2282 = vmatprep.subr.bf16.mxu1 %v5652_v1  ;;  %v7790_v52 = vmul.f32 %v7420_v36, %v7574_v47  ;;  %v2361_v55 = vmul.f32 %v7795_v44, %v7747_v7  ;;  %v2376_v35 = vmul.f32 %v7802_v59, %v7750_v9  ;;  %v5658_v36 = vld [vmem:[%s6213_s14 + $0x508] ss:$8 sps:$4 sm:$0xff]   ;;  %v2003_v10 = vmax.f32 %v7744_v28, 0.0 }
  0xda   : > { %4897 = vmatprep.subr.msk.bf16.mxu0 %vm939_vm0, %v4896_v8  ;;  %v1936_v31 = vadd.f32 %v1930_v56, %v1919_v49  ;;  %v1939_v43 = vadd.f32 %v1933_v30, %v1922_v48  ;;  %v2360_v27 = vmul.f32 %v7434_v46, %v7747_v7  ;;  %v2364_v58 = vmul.f32 %v7818_v23, %v7747_v7  ;;  %v7841_v2 = vld [vmem:[%s9188_s2 + $0x70] sm:$0xff] }
  0xdb   : > { %v7823_v29 = vstv %s7738_s25  ;;  %v2363_v19 = vmul.f32 %v7441_v42, %v7747_v7  ;;  %v2375_v50 = vmul.f32 %v7455_v41, %v7750_v9  ;;  %v2379_v57 = vmul.f32 %v7834_v32, %v7750_v9  ;;  %v5661_v56 = vld [vmem:[%s6213_s14 + $0x4a8] ss:$8 sps:$4 sm:$0xff]   ;;  %v5672_v30 = vld [vmem:[%s6213_s14 + $0x4ec] ss:$8 sps:$4 sm:$0xff]   ;;  %s5357_s25 = sadd.s32 128, %s7961_s19 }
  0xdc   : > { %1787 = vmatmul.mubr.bf16.vlgmr.msra.gmra.mxu0 %v1495_v37  ;;  %2283 = vmatpush2.bf16.msra.mxu1 %v5650_v18  ;;  %v2393_v42 = vmul.f32 %v7841_v2, %v7765_v11  ;;  %v2378_v41 = vmul.f32 %v7468_v63, %v7750_v9  ;;  %v2392_v8 = vmul.f32 %v7475_v4, %v7765_v11  ;;  %v5664_v18 = vld [vmem:[%s6213_s14 + $0x4f8] ss:$8 sps:$4 sm:$0xff]  }
  0xdd   : > { %2316 = vmatpush1.bf16.msra.mxu0 %v2261_v26  ;;  %2341 = vmatprep.mubr.bf16.mxu0 %v9336_v51  ;;  %v2382_v34 = vadd.f32 %v2376_v35, %v2361_v55  ;;  %v2381_v20 = vadd.f32 %v2375_v50, %v2360_v27  ;;  %v2395_v1 = vmul.f32 %v7483_v38, %v7765_v11  ;;  %v7884_v55 = vld [vmem:[%s9188_s2 + $0xa0] sm:$0xff] }
  0xde   : > { %2317 = vmatprep.subr.bf16.mxu0 %v5660_v3  ;;  %2284 = vmatprep.subr.bf16.mxu1 %v5657_v39  ;;  %v2409_v37 = vmul.f32 %v7490_v6, %v7780_v53  ;;  %v1953_v49 = vadd.f32 %v1947_v14, %v1936_v31  ;;  %v7858_v63 = vmul.f32 %v7498_v0, %v7574_v47  ;;  %v7867_v6 = vstv %s7767_s24  ;;  %v5669_v0 = vld [vmem:[%s6213_s14 + $0x49c] ss:$8 sps:$4 sm:$0xff]   ;;  %v5667_v50 = vld [vmem:[%s6213_s14 + $0x498] ss:$8 sps:$4 sm:$0xff]   ;;  %s5361_s24 = sadd.s32 384, %s7961_s19 }
  0xdf   : > { %v2384_v4 = vadd.f32 %v2378_v41, %v2363_v19  ;;  %v2412_v48 = vmul.f32 %v7507_v61, %v7780_v53  ;;  %v1956_v26 = vadd.f32 %v1950_v12, %v1939_v43  ;;  %v2398_v3 = vadd.f32 %v2392_v8, %v2381_v20  ;;  %v7875_v61 = vld [vmem:[%s9188_s2 + $0x88] sm:$0xff] }
  0xe0   : > { %2285 = vmatpush2.bf16.msra.mxu1 %v5655_v21  ;;  %v2426_v39 = vmul.f32 %v7522_v22, %v7823_v29  ;;  %v2385_v47 = vadd.f32 %v2379_v57, %v2364_v58  ;;  %v2396_v14 = vmul.f32 %v7875_v61, %v7765_v11  ;;  %v2429_v21 = vmul.f32 %v7533_v62, %v7823_v29  ;;  %v5670_v43 = vld [vmem:[%s6213_s14 + $0x4e8] ss:$8 sps:$4 sm:$0xff]   ;;  %v9350_v58 = vld [vmem:[#allocation13_spill] sm:$0xff] }
  0xe1   : > { %2318 = vmatpush1.bf16.msra.mxu0 %v5658_v36  ;;  %2286 = vmatprep.subr.bf16.mxu1 %v5663_v45  ;;  %v2401_v12 = vadd.f32 %v2395_v1, %v2384_v4  ;;  %v2399_v22 = vadd.f32 %v2393_v42, %v2382_v34  ;;  %v2410_v35 = vmul.f32 %v7884_v55, %v7780_v53  ;;  %v7893_v62 = vstv %s7810_s17  ;;  %v5678_v45 = vld [vmem:[%s6213_s14 + $0x4dc] ss:$8 sps:$4 sm:$0xff]   ;;  %v9351_v41 = vld [vmem:[#allocation14_spill] sm:$0xff]  ;;  %v7924_v4 = vld [vmem:[%s9188_s2 + $0xd0] sm:$0xff]  ;;  %s5363_s17 = sadd.s32 512, %s7961_s19 }
  0xe2   : > { %2319 = vmatprep.subr.bf16.mxu0 %v5666_v17  ;;  %v2415_v36 = vadd.f32 %v2409_v37, %v2398_v3  ;;  %v2443_v31 = vmul.f32 %v7543_v13, %v7867_v6  ;;  %v1970_v27 = vadd.f32 %v7777_v60, %v1953_v49  ;;  %v2446_v19 = vmul.f32 %v9350_v58, %v7867_v6  ;;  %v7906_v60 = vld [vmem:[%s9188_s2 + $0xb8] sm:$0xff]  ;;  %v5675_v34 = vld [vmem:[%s6213_s14 + $0x48c] ss:$8 sps:$4 sm:$0xff]   ;;  %v9352_v37 = vld [vmem:[#allocation9_spill] sm:$0xff] }
  0xe3   : > { %v2418_v17 = vadd.f32 %v2412_v48, %v2401_v12  ;;  %v2006_v13 = vmax.f32 %v7762_v25, 0.0  ;;  %v2413_v57 = vmul.f32 %v7906_v60, %v7780_v53  ;;  %v2460_v8 = vmul.f32 %v9351_v41, %v7893_v62  ;;  %v9354_v12 = vld [vmem:[#allocation16_spill] sm:$0xff] }
  0xe4   : > { %2287 = vmatpush2.bf16.msra.mxu1 %v5661_v56  ;;  %v2432_v42 = vadd.f32 %v2426_v39, %v2415_v36  ;;  %v2402_v20 = vadd.f32 %v2396_v14, %v2385_v47  ;;  %v7914_v1 = vstv %s7845_s30  ;;  %v2416_v49 = vadd.f32 %v2410_v35, %v2399_v22  ;;  %v5676_v39 = vld [vmem:[%s6213_s14 + $0x4d8] ss:$8 sps:$4 sm:$0xff]   ;;  %v5673_v22 = vld [vmem:[%s6213_s14 + $0x488] ss:$8 sps:$4 sm:$0xff]   ;;  %v5684_v35 = vld [vmem:[%s6213_s14 + $0x594] ss:$8 sps:$4 sm:$0xff]  }
  0xe5   : > { %2320 = vmatpush1.bf16.msra.mxu0 %v5664_v18  ;;  %2288 = vmatprep.subr.bf16.mxu1 %v5669_v0  ;;  %v2435_v25 = vadd.f32 %v2429_v21, %v2418_v17  ;;  %v2463_v18 = vmul.f32 %v9352_v37, %v7893_v62  ;;  %v2427_v48 = vmul.f32 %v7924_v4, %v7823_v29  ;;  %v7933_v47 = vstv %s7860_s11  ;;  %v5690_v37 = vld [vmem:[%s6213_s14 + $0x584] ss:$8 sps:$4 sm:$0xff]   ;;  %s7981_s30 = sand.u32 127, %s7898_s13 }
  0xe6   : > { %2321 = vmatprep.subr.bf16.mxu0 %v5672_v30  ;;  %v2449_v56 = vadd.f32 %v2443_v31, %v2432_v42  ;;  %v9353_v30 = vld [vmem:[#allocation15_spill] sm:$0xff]  ;;  %v1973_v0 = vadd.f32 %v7786_v54, %v1956_v26  ;;  %v2480_v21 = vmul.f32 %v9354_v12, %v7914_v1  ;;  %v9355_v31 = vld [vmem:[#allocation10_spill] sm:$0xff]  ;;  %v2419_v58 = vadd.f32 %v2413_v57, %v2402_v20  ;;  %v7957_v57 = vld [vmem:[%s9188_s2 + $0x100] sm:$0xff]  ;;  %s2883_s27 = sadd.s32 %s5357_s25, %s7981_s30  ;;  %s2900_s6 = sadd.s32 %s5359_s23, %s7981_s30 }
  0xe7   : > { %v2477_v3 = vmul.f32 %v9353_v30, %v7914_v1  ;;  %v2452_v14 = vadd.f32 %v2446_v19, %v2435_v25  ;;  %v2494_v17 = vmul.f32 %v9355_v31, %v7933_v47  ;;  %v7946_v54 = vld [vmem:[%s9188_s2 + $0xe8] sm:$0xff]  ;;  %v2009_v42 = vpack.c.bf16 %v2006_v13, %v2003_v10  ;;  %v5682_v20 = vld [vmem:[%s6213_s14 + $0x590] ss:$8 sps:$4 sm:$0xff]   ;;  %v5696_v31 = vld [vmem:[%s6213_s14 + $0x574] ss:$8 sps:$4 sm:$0xff]   ;;  %s8029_s29 = sld [smem:[#allocation3 + %s2883_s27]]  ;;  %s2917_s16 = sadd.s32 %s5361_s24, %s7981_s30 }
  0xe8   : > { %2289 = vmatpush2.bf16.msra.mxu1 %v5667_v50  ;;  %v2466_v36 = vadd.f32 %v2460_v8, %v2449_v56  ;;  %v2430_v26 = vmul.f32 %v7946_v54, %v7823_v29  ;;  %v9356_v50 = vld [vmem:[#allocation28_spill] sm:$0xff]  ;;  %v2433_v41 = vadd.f32 %v2427_v48, %v2416_v49  ;;  %v2444_v8 = vmul.f32 %v7957_v57, %v7867_v6  ;;  %v5687_v49 = vld [vmem:[%s6213_s14 + $0x46c] ss:$8 sps:$4 sm:$0xff]   ;;  %v5688_v30 = vld [vmem:[%s6213_s14 + $0x580] ss:$8 sps:$4 sm:$0xff]   ;;  %s8050_s25 = sld [smem:[#allocation3 + %s2900_s6]]  ;;  %s2934_s11 = sadd.s32 %s5363_s17, %s7981_s30 }
  0xe9   : > { %2322 = vmatpush1.bf16.msra.mxu0 %v5670_v43  ;;  %2290 = vmatprep.subr.bf16.mxu1 %v5675_v34  ;;  %v5681_v43 = vld [vmem:[%s6213_s14 + $0x47c] ss:$8 sps:$4 sm:$0xff]   ;;  %v2469_v19 = vadd.f32 %v2463_v18, %v2452_v14  ;;  %v1987_v28 = vadd.f32 %v7790_v52, %v1970_v27  ;;  %v1990_v10 = vadd.f32 %v7858_v63, %v1973_v0  ;;  %v5679_v25 = vld [vmem:[%s6213_s14 + $0x478] ss:$8 sps:$4 sm:$0xff]   ;;  %v7977_v63 = vstv %s7917_s28  ;;  %s8013_s28 = sld [smem:[#allocation3 + %s7898_s13]]  ;;  %s5367_s27 = sadd.s32 768, %s7961_s19 }
  0xea   : > { %2323 = vmatprep.subr.bf16.mxu0 %v5678_v45  ;;  %v2497_v45 = vmul.f32 %v9356_v50, %v7933_v47  ;;  %v2483_v34 = vadd.f32 %v2477_v3, %v2466_v36  ;;  %v2436_v48 = vadd.f32 %v2430_v26, %v2419_v58  ;;  %v7972_v56 = vld [vmem:[%s9188_s2 + $0x118] sm:$0xff]  ;;  %v2450_v3 = vadd.f32 %v2444_v8, %v2433_v41  ;;  %v5685_v36 = vld [vmem:[%s6213_s14 + $0x468] ss:$8 sps:$4 sm:$0xff]   ;;  %s8060_s24 = sld [smem:[#allocation3 + %s2917_s16]]  ;;  %s2951_s7 = sadd.s32 %s5365_s20, %s7981_s30 }
  0xeb   : > { %v2486_v13 = vadd.f32 %v2480_v21, %v2469_v19  ;;  %v2447_v52 = vmul.f32 %v7972_v56, %v7867_v6  ;;  %v1995_v12 = vadd.f32 %v7683_v16, %v1987_v28  ;;  %v1998_v21 = vadd.f32 %v7683_v16, %v1990_v10  ;;  %v8008_v16 = vld [vmem:[%s9188_s2 + $0x148] sm:$0xff]  ;;  %v5694_v8 = vld [vmem:[%s6213_s14 + $0x570] ss:$8 sps:$4 sm:$0xff]   ;;  %v9357_v10 = vld [vmem:[#allocation17_spill] sm:$0xff]  ;;  %s8070_s12 = sld [smem:[#allocation3 + %s2934_s11]]  ;;  %s2968_s17 = sadd.s32 %s5367_s27, %s7981_s30 }
  0xec   : > { %2291 = vmatpush2.bf16.msra.mxu1 %v5673_v22  ;;  %v2500_v18 = vadd.f32 %v2494_v17, %v2483_v34  ;;  %v7996_v22 = vld [vmem:[%s6213_s14 + $0x660] sm:$0x33]  ;;  %v2464_v26 = vmul.f32 %v8008_v16, %v7893_v62  ;;  %s8089_s16 = sld [smem:[#allocation3 + %s2951_s7]]  ;;  %s5371_s20 = sadd.s32 1024, %s7961_s19 }
  0xed   : > { %2324 = vmatpush1.bf16.msra.mxu0 %v5676_v39  ;;  %2292 = vmatprep.subr.bf16.mxu1 %v5681_v43  ;;  %v2503_v27 = vadd.f32 %v2497_v45, %v2486_v13  ;;  %v7988_v39 = vld [vmem:[%s9188_s2 + $0x130] sm:$0xff]  ;;  %v5693_v43 = vld [vmem:[%s6213_s14 + $0x45c] ss:$8 sps:$4 sm:$0xff]   ;;  %v2453_v58 = vadd.f32 %v2447_v52, %v2436_v48  ;;  %v4989_v50 = vcombine.high %v7996_v22, %v7996_v22  ;;  %v2001_v34 = vmax.f32 %v1995_v12, 0.0  ;;  %s2985_s10 = sadd.s32 %s5369_s26, %s7981_s30  ;;  %s8105_s19 = sld [smem:[#allocation3 + %s2968_s17]] }
  0xee   : > { %2778 = vmatprep.subr.bf16.mxu0 %v5684_v35  ;;  %v2461_v0 = vmul.f32 %v7988_v39, %v7893_v62  ;;  %v2508_v14 = vadd.f32 %v7977_v63, %v2500_v18  ;;  %v2359_v13 = vmul.f32 %v9357_v10, %v7747_v7  ;;  %v9358_v18 = vld [vmem:[#allocation11_spill] sm:$0xff]  ;;  %v9359_v48 = vld [vmem:[#allocation20_spill] sm:$0xff]  ;;  %v5710_v10 = vld [vmem:[%s6213_s14 + $0x544] ss:$8 sps:$4 sm:$0xff]   ;;  %s8270_s11 = sld [smem:[#allocation5 + %s7898_s13]] }
  0xef   : > { %v2511_v35 = vadd.f32 %v7977_v63, %v2503_v27  ;;  %v2374_v52 = vmul.f32 %v9359_v48, %v7750_v9  ;;  %v9360_v27 = vld [vmem:[#allocation22_spill] sm:$0xff]  ;;  %v8056_v12 = vld [vmem:[%s9188_s2 + $0x190] sm:$0xff] }
  0xf0   : > { %4898 = vmatmul.mubr.msk.bf16.vlgmr.msra.gmra.mxu0 %vm935_vm1, %v2009_v42  ;;  %2293 = vmatpush2.bf16.msra.mxu1 %v5679_v25  ;;  %v2514_v17 = vmax.f32 %v2508_v14, 0.0  ;;  %v2467_v45 = vadd.f32 %v2461_v0, %v2450_v3  ;;  %v8020_v42 = vld [vmem:[%s9188_s2 + $0x160] sm:$0xff]  ;;  %v4988_v3 = vcombine.low %v7996_v22, %v7996_v22  ;;  %v2470_v0 = vadd.f32 %v2464_v26, %v2453_v58  ;;  %v8046_v14 = vld [vmem:[%s9188_s2 + $0x178] sm:$0xff] }
  0xf1   : > { %2779 = vmatpush1.bf16.msra.mxu0 %v5682_v20  ;;  %2294 = vmatprep.subr.bf16.mxu1 %v5687_v49  ;;  %v2517_v19 = vmax.f32 %v2511_v35, 0.0  ;;  %v2478_v41 = vmul.f32 %v8020_v42, %v7914_v1  ;;  %v2004_v20 = vmax.f32 %v1998_v21, 0.0  ;;  %v5691_v25 = vld [vmem:[%s6213_s14 + $0x458] ss:$8 sps:$4 sm:$0xff]   ;;  %v2362_v49 = vmul.f32 %v9358_v18, %v7747_v7  ;;  %9361 = vst [vmem:[#allocation12_spill] sm:$0xff] %v8056_v12 }
  0xf2   : > { %2780 = vmatprep.subr.bf16.mxu0 %v5690_v37  ;;  %v5699_v37 = vld [vmem:[%s6213_s14 + $0x564] ss:$8 sps:$4 sm:$0xff]   ;;  %v2481_v7 = vmul.f32 %v8046_v14, %v7914_v1  ;;  %v2495_v21 = vmul.f32 %v8056_v12, %v7933_v47  ;;  %v5697_v35 = vld [vmem:[%s6213_s14 + $0x560] ss:$8 sps:$4 sm:$0xff]   ;;  %v2394_v58 = vmul.f32 %v7674_v24, %v7765_v11  ;;  %v5707_v26 = vld [vmem:[%s6213_s14 + $0x654] ss:$8 sps:$4 sm:$0xff]   ;;  %v8117_v18 = vstv %s8050_s25 }
  0xf3   : > { %v2520_v28 = vpack.c.bf16 %v2517_v19, %v2514_v17  ;;  %v2007_v22 = vpack.c.bf16 %v2004_v20, %v2001_v34  ;;  %v2380_v17 = vadd.f32 %v2374_v52, %v2359_v13  ;;  %v2411_v34 = vmul.f32 %v7712_v15, %v7780_v53  ;;  %v5713_v15 = vld [vmem:[%s6213_s14 + $0x644] ss:$8 sps:$4 sm:$0xff]   ;;  %v8130_v52 = vld [vmem:[%s9188_s2 + $0x50] sm:$0xff] }
  0xf4   : > { %2295 = vmatpush2.bf16.msra.mxu1 %v5685_v36  ;;  %v2391_v36 = vmul.f32 %v7664_v33, %v7765_v11  ;;  %v2773_v33 = vsel %vm939_vm0, %v4988_v3, 0  ;;  %v2487_v19 = vadd.f32 %v2481_v7, %v2470_v0  ;;  %v8137_v3 = vstv %s8060_s24  ;;  %v8144_v0 = vld [vmem:[%s9188_s2 + $0x68] sm:$0xff] }
  0xf5   : > { %2781 = vmatpush1.bf16.msra.mxu0 %v5688_v30  ;;  %v2377_v30 = vmul.f32 %v9360_v27, %v7750_v9  ;;  %2296 = vmatprep.subr.bf16.mxu1 %v5693_v43  ;;  %v2484_v9 = vadd.f32 %v2478_v41, %v2467_v45  ;;  %v8079_v45 = vld [vmem:[%s9188_s2 + $0x1a8] sm:$0xff]  ;;  %v8087_v41 = vstv %s8013_s28  ;;  %v2904_v7 = vmul.f32 %v8144_v0, %v8117_v18 }
  0xf6   : > { %2782 = vmatprep.subr.bf16.mxu0 %v5696_v31  ;;  %2810 = vmatprep.mubr.bf16.mxu0 %v2520_v28  ;;  %v5704_v31 = vld [vmem:[%s6213_s14 + $0x554] ss:$8 sps:$4 sm:$0xff]   ;;  %9362 = vst [vmem:[#allocation18_spill] sm:$0xff] %v8079_v45  ;;  %v2498_v24 = vmul.f32 %v8079_v45, %v7933_v47  ;;  %v2872_v20 = vmul.f32 %v7434_v46, %v8087_v41  ;;  %v5705_v28 = vld [vmem:[%s6213_s14 + $0x650] ss:$8 sps:$4 sm:$0xff]  }
  0xf7   : > { %v2383_v43 = vadd.f32 %v2377_v30, %v2362_v49  ;;  %v8084_v11 = vadd.f32 %v2495_v21, %v2484_v9  ;;  %v2397_v13 = vadd.f32 %v2391_v36, %v2380_v17  ;;  %v8123_v49 = vld [vmem:[%s9188_s2 + $0x38] sm:$0xff]  ;;  %v2425_v30 = vmul.f32 %v7731_v40, %v7823_v29  ;;  %v5708_v40 = vld [vmem:[%s6213_s14 + $0x540] ss:$8 sps:$4 sm:$0xff]  }
  0xf8   : > { %2297 = vmatpush2.bf16.msra.mxu1 %v5691_v25  ;;  %v2907_v9 = vmul.f32 %v7483_v38, %v8117_v18  ;;  %v5711_v17 = vld [vmem:[%s6213_s14 + $0x640] ss:$8 sps:$4 sm:$0xff]  }
  0xf9   : > { %2783 = vmatpush1.bf16.msra.mxu0 %v5694_v8  ;;  %4990 = vmatprep.subr.msk.bf16.mxu1 %vm939_vm0, %v4989_v50  ;;  %v5702_v50 = vld [vmem:[%s6213_s14 + $0x550] ss:$8 sps:$4 sm:$0xff]   ;;  %v2408_v8 = vmul.f32 %v7702_v5, %v7780_v53  ;;  %v2400_v25 = vadd.f32 %v2394_v58, %v2383_v43  ;;  %v8110_v5 = vld [vmem:[%s9188_s2 + $0x20] sm:$0xff]  ;;  %v2504_v53 = vadd.f32 %v2498_v24, %v2487_v19  ;;  %v5716_v43 = vld [vmem:[%s6213_s14 + $0x534] ss:$8 sps:$4 sm:$0xff]   ;;  %v8175_v24 = vstv %s8070_s12  ;;  %s8195_s12 = sadd.s32 6, %s6206_s9 }
  0xfa   : > { %2784 = vmatprep.subr.bf16.mxu0 %v5699_v37  ;;  %v8103_v37 = vstv %s8029_s29  ;;  %v2875_v46 = vmul.f32 %v8110_v5, %v8087_v41  ;;  %s3002_s29 = sadd.s32 %s5371_s20, %s7981_s30  ;;  %s8139_s30 = sld [smem:[#allocation3 + %s2985_s10]] }
  0xfb   : > { %2299 = vmatmul.mubr.bf16.vlgmr.msra.gmra.mxu1 %v2007_v22  ;;  %v2887_v48 = vmul.f32 %v8123_v49, %v8103_v37  ;;  %v2890_v27 = vmul.f32 %v8130_v52, %v8103_v37  ;;  %v2414_v58 = vadd.f32 %v2408_v8, %v2397_v13  ;;  %s8177_s10 = sld [smem:[#allocation3 + %s3002_s29]]  ;;  %v8183_v8 = vld [vmem:[%s9188_s2 + $0xc8] sm:$0xff]  ;;  %v8199_v13 = vadd.f32 %v7977_v63, %v8084_v11  ;;  %s3389_s15 = sshra.s32 %s8195_s12, 7 }
  0xfc   : > { %2828 = vmatpush1.bf16.msra.mxu1 %v2773_v33  ;;  %2853 = vmatprep.mubr.bf16.mxu1 %v9336_v51  ;;  %v2417_v33 = vadd.f32 %v2411_v34, %v2400_v25  ;;  %v2938_v34 = vmul.f32 %v8183_v8, %v8175_v24  ;;  %v8202_v25 = vadd.f32 %v7977_v63, %v2504_v53  ;;  %v8218_v53 = vld [vmem:[%s9188_s2 + $0xf8] sm:$0xff]  ;;  %s8287_s13 = sshll.u32 %s3389_s15, 7  ;;  %s8322_s15 = sand.u32 127, %s8195_s12 }
  0xfd   : > { %2785 = vmatpush1.bf16.msra.mxu0 %v5697_v35  ;;  %2829 = vmatprep.subr.bf16.mxu1 %v5707_v26  ;;  %v2893_v21 = vadd.f32 %v2887_v48, %v2872_v20  ;;  %v2896_v22 = vadd.f32 %v2890_v27, %v2875_v46  ;;  %v8154_v35 = vld [vmem:[%s9188_s2 + $0x98] sm:$0xff]  ;;  %v8207_v46 = vld [vmem:[%s9188_s2 + $0xf0] sm:$0xff]  ;;  %v8212_v48 = vstv %s8089_s16  ;;  %s5377_s8 = sadd.s32 384, %s8287_s13  ;;  %s8361_s29 = sld [smem:[#allocation3 + %s8195_s12]] }
  0xfe   : > { %2786 = vmatprep.subr.bf16.mxu0 %v5704_v31  ;;  %v2921_v36 = vmul.f32 %v8154_v35, %v8137_v3  ;;  %v8161_v31 = vld [vmem:[%s9188_s2 + $0xb0] sm:$0xff]  ;;  %v8170_v26 = vld [vmem:[%s9188_s2 + $0xd8] sm:$0xff]  ;;  %9363 = vst [vmem:[#allocation19_spill] sm:$0xff] %v8207_v46  ;;  %s3429_s24 = sadd.s32 %s5377_s8, %s8322_s15  ;;  %s5379_s26 = sadd.s32 512, %s8287_s13 }
  0xff   : > { %v2924_v38 = vmul.f32 %v8161_v31, %v8137_v3  ;;  %v2428_v19 = vmul.f32 %v8170_v26, %v7823_v29  ;;  %v2910_v20 = vadd.f32 %v2904_v7, %v2893_v21  ;;  %v8190_v29 = vld [vmem:[%s9188_s2 + $0xe0] sm:$0xff]  ;;  %v5714_v27 = vld [vmem:[%s6213_s14 + $0x530] ss:$8 sps:$4 sm:$0xff]   ;;  %s5381_s6 = sadd.s32 640, %s8287_s13  ;;  %s3446_s17 = sadd.s32 %s5379_s26, %s8322_s15 }
 0x100   : > { %2830 = vmatpush1.bf16.msra.mxu1 %v5705_v28  ;;  %v2913_v28 = vadd.f32 %v2907_v9, %v2896_v22  ;;  %v2955_v9 = vmul.f32 %v8218_v53, %v8212_v48  ;;  %v8225_v21 = vld [vmem:[%s9188_s2 + $0x110] sm:$0xff]  ;;  %s3463_s20 = sadd.s32 %s5381_s6, %s8322_s15  ;;  %s8420_s28 = sld [smem:[#allocation3 + %s3446_s17]] }
 0x101   : > { %2787 = vmatpush1.bf16.msra.mxu0 %v5702_v50  ;;  %2831 = vmatprep.subr.bf16.mxu1 %v5713_v15  ;;  %v5719_v50 = vld [vmem:[%s6213_s14 + $0x634] ss:$8 sps:$4 sm:$0xff]   ;;  %v2442_v15 = vmul.f32 %v8207_v46, %v7867_v6  ;;  %v2927_v11 = vadd.f32 %v2921_v36, %v2910_v20  ;;  %v5717_v22 = vld [vmem:[%s6213_s14 + $0x630] ss:$8 sps:$4 sm:$0xff]   ;;  %v5722_v36 = vld [vmem:[%s6213_s14 + $0x524] ss:$8 sps:$4 sm:$0xff]   ;;  %v2434_v20 = vadd.f32 %v2428_v19, %v2417_v33  ;;  %v8239_v46 = vstv %s8105_s19 }
 0x102   : > { %2788 = vmatprep.subr.bf16.mxu0 %v5710_v10  ;;  %v2941_v10 = vmul.f32 %v8190_v29, %v8175_v24  ;;  %v2930_v7 = vadd.f32 %v2924_v38, %v2913_v28  ;;  %v2431_v38 = vadd.f32 %v2425_v30, %v2414_v58  ;;  %v8234_v28 = vld [vmem:[%s9188_s2 + $0x108] sm:$0xff]  ;;  %v2515_v19 = vmax.f32 %v8199_v13, 0.0  ;;  %s5375_s19 = sadd.s32 256, %s8287_s13  ;;  %s8464_s26 = sld [smem:[#allocation3 + %s3463_s20]] }
 0x103   : > { %9364 = vst [vmem:[#allocation21_spill] sm:$0xff] %v8234_v28  ;;  %v2445_v51 = vmul.f32 %v8234_v28, %v7867_v6  ;;  %v8246_v30 = vld [vmem:[%s9188_s2 + $0x128] sm:$0xff]  ;;  %v8253_v6 = vld [vmem:[%s9188_s2 + $0x140] sm:$0xff]  ;;  %s3412_s23 = sadd.s32 %s5375_s19, %s8322_s15  ;;  %s5383_s19 = sadd.s32 768, %s8287_s13 }
 0x104   : > { %2832 = vmatpush1.bf16.msra.mxu1 %v5711_v17  ;;  %v5725_v17 = vld [vmem:[%s6213_s14 + $0x624] ss:$8 sps:$4 sm:$0xff]   ;;  %v2947_v45 = vadd.f32 %v2941_v10, %v2930_v7  ;;  %9365 = vst [vmem:[#allocation23_spill] sm:$0xff] %v8246_v30  ;;  %v2972_v58 = vmul.f32 %v8246_v30, %v8239_v46  ;;  %9366 = vst [vmem:[#allocation24_spill] sm:$0xff] %v8253_v6  ;;  %v2975_v33 = vmul.f32 %v8253_v6, %v8239_v46  ;;  %v5720_v7 = vld [vmem:[%s6213_s14 + $0x520] ss:$8 sps:$4 sm:$0xff]   ;;  %s3480_s6 = sadd.s32 %s5383_s19, %s8322_s15 }
 0x105   : > { %2789 = vmatpush1.bf16.msra.mxu0 %v5708_v40  ;;  %v2958_v40 = vmul.f32 %v8225_v21, %v8212_v48  ;;  %2833 = vmatprep.subr.bf16.mxu1 %v5719_v50  ;;  %v2518_v50 = vmax.f32 %v8202_v25, 0.0  ;;  %v8276_v25 = vld [vmem:[%s9188_s2 + $0x158] sm:$0xff]  ;;  %s8386_s16 = sld [smem:[#allocation3 + %s3412_s23]]  ;;  %s5385_s20 = sadd.s32 896, %s8287_s13 }
 0x106   : > { %2790 = vmatprep.subr.bf16.mxu0 %v5716_v43  ;;  %v2944_v43 = vadd.f32 %v2938_v34, %v2927_v11  ;;  %v8262_v34 = vld [vmem:[%s9188_s2 + $0x120] sm:$0xff]  ;;  %v8267_v11 = vstv %s8139_s30  ;;  %9368 = vst [vmem:[#allocation25_spill] sm:$0xff] %v8276_v25  ;;  %s5387_s27 = sadd.s32 1024, %s8287_s13 }
 0x107   : > { %9367 = vst [vmem:[#allocation27_spill] sm:$0xff] %v8262_v34  ;;  %v2459_v10 = vmul.f32 %v8262_v34, %v7893_v62  ;;  %v2964_v28 = vadd.f32 %v2958_v40, %v2947_v45  ;;  %v2989_v12 = vmul.f32 %v8276_v25, %v8267_v11  ;;  %v8283_v34 = vld [vmem:[%s9188_s2 + $0x170] sm:$0xff]  ;;  %v5723_v45 = vld [vmem:[%s6213_s14 + $0x620] ss:$8 sps:$4 sm:$0xff]   ;;  %v2448_v40 = vadd.f32 %v2442_v15, %v2431_v38  ;;  %v8294_v25 = vld [vmem:[%s9188_s2 + $0x138] sm:$0xff] }
 0x108   : > { %v2961_v13 = vadd.f32 %v2955_v9, %v2944_v43  ;;  %9369 = vst [vmem:[#allocation26_spill] sm:$0xff] %v8283_v34  ;;  %2834 = vmatpush1.bf16.msra.mxu1 %v5717_v22  ;;  %v5728_v9 = vld [vmem:[%s6213_s14 + $0x614] ss:$8 sps:$4 sm:$0xff]   ;;  %v2451_v43 = vadd.f32 %v2445_v51, %v2434_v20  ;;  %v2462_v6 = vmul.f32 %v8294_v25, %v7893_v62  ;;  %v8305_v51 = vld [vmem:[%s9188_s2 + $0x188] sm:$0xff]  ;;  %v8312_v62 = vld [vmem:[%s9188_s2 + $0x1a0] sm:$0xff] }
 0x109   : > { %2791 = vmatpush1.bf16.msra.mxu0 %v5714_v27  ;;  %v2992_v27 = vmul.f32 %v8283_v34, %v8267_v11  ;;  %v8299_v34 = vstv %s8177_s10  ;;  %2835 = vmatprep.subr.bf16.mxu1 %v5725_v17  ;;  %v5731_v22 = vld [vmem:[%s6213_s14 + $0x6dc] ss:$8 sps:$4 sm:$0xff]   ;;  %v2981_v30 = vadd.f32 %v2975_v33, %v2964_v28  ;;  %9370 = vst [vmem:[#allocation13_spill] sm:$0xff] %v8312_v62  ;;  %s5373_s10 = sadd.s32 128, %s8287_s13 }
 0x10a   : > { %2792 = vmatprep.subr.bf16.mxu0 %v5722_v36  ;;  %v2978_v36 = vadd.f32 %v2972_v58, %v2961_v13  ;;  %v3006_v15 = vmul.f32 %v8305_v51, %v8299_v34  ;;  %v3009_v38 = vmul.f32 %v8312_v62, %v8299_v34  ;;  %v2521_v20 = vpack.c.bf16 %v2518_v50, %v2515_v19  ;;  %v5726_v58 = vld [vmem:[%s6213_s14 + $0x610] ss:$8 sps:$4 sm:$0xff]   ;;  %s3395_s21 = sadd.s32 %s5373_s10, %s8322_s15  ;;  %s8393_s10 = sld [smem:[#allocation3 + %s3429_s24]] }
 0x10b   : > { %v2873_v28 = vmul.f32 %v7795_v44, %v8087_v41  ;;  %v2888_v17 = vmul.f32 %v7802_v59, %v8103_v37  ;;  %v2876_v33 = vmul.f32 %v7818_v23, %v8087_v41  ;;  %v2891_v13 = vmul.f32 %v7834_v32, %v8103_v37  ;;  %v5729_v44 = vld [vmem:[%s6213_s14 + $0x6d8] ss:$8 sps:$4 sm:$0xff]   ;;  %v5734_v59 = vld [vmem:[%s6213_s14 + $0x604] ss:$8 sps:$4 sm:$0xff]   ;;  %s8380_s7 = sld [smem:[#allocation3 + %s3395_s21]]  ;;  %s8587_s21 = sadd.s32 7, %s6206_s9 }
 0x10c   : > { %v2995_v19 = vadd.f32 %v2989_v12, %v2978_v36  ;;  %v2998_v50 = vadd.f32 %v2992_v27, %v2981_v30  ;;  %2836 = vmatpush1.bf16.msra.mxu1 %v5723_v45  ;;  %v8341_v32 = vld [vmem:[%s9188_s2 + $0x168] sm:$0xff]  ;;  %v2465_v27 = vadd.f32 %v2459_v10, %v2448_v40  ;;  %v2468_v45 = vadd.f32 %v2462_v6, %v2451_v43  ;;  %s3901_s9 = sshra.s32 %s8587_s21, 7 }
 0x10d   : > { %2793 = vmatpush1.bf16.msra.mxu0 %v5720_v7  ;;  %v8334_v7 = vld [vmem:[%s9188_s2 + $0x150] sm:$0xff]  ;;  %9372 = vst [vmem:[#allocation9_spill] sm:$0xff] %v8341_v32  ;;  %v2479_v12 = vmul.f32 %v8341_v32, %v7914_v1  ;;  %3290 = vmatprep.subr.bf16.mxu1 %v5731_v22  ;;  %v2905_v62 = vmul.f32 %v7841_v2, %v8117_v18  ;;  %v8354_v32 = vstv %s8270_s11  ;;  %v5732_v6 = vld [vmem:[%s6213_s14 + $0x600] ss:$8 sps:$4 sm:$0xff]   ;;  %s3497_s11 = sadd.s32 %s5385_s20, %s8322_s15  ;;  %s8618_s20 = sshll.u32 %s3901_s9, 7 }
 0x10e   : > { %2794 = vmatprep.subr.bf16.mxu0 %v5728_v9  ;;  %9371 = vst [vmem:[#allocation14_spill] sm:$0xff] %v8334_v7  ;;  %v2476_v23 = vmul.f32 %v8334_v7, %v7914_v1  ;;  %v5737_v30 = vld [vmem:[%s6213_s14 + $0x6cc] ss:$8 sps:$4 sm:$0xff]   ;;  %v3012_v9 = vadd.f32 %v3006_v15, %v2995_v19  ;;  %v3015_v36 = vadd.f32 %v3009_v38, %v2998_v50  ;;  %v5735_v2 = vld [vmem:[%s6213_s14 + $0x6c8] ss:$8 sps:$4 sm:$0xff]   ;;  %v8369_v22 = vld [vmem:[%s9188_s2 + $0x180] sm:$0xff] }
 0x10f   : > { %v2894_v7 = vadd.f32 %v2888_v17, %v2873_v28  ;;  %v2908_v1 = vmul.f32 %v7875_v61, %v8117_v18  ;;  %4991 = vmatmul.mubr.msk.bf16.vlgmr.msra.gmra.mxu1 %vm935_vm1, %v2521_v20  ;;  %v2897_v10 = vadd.f32 %v2891_v13, %v2876_v33  ;;  %v5740_v61 = vld [vmem:[%s6213_s14 + $0x5f4] ss:$8 sps:$4 sm:$0xff]   ;;  %v2493_v15 = vmul.f32 %v8369_v22, %v7933_v47  ;;  %s5389_s8 = sadd.s32 128, %s8618_s20  ;;  %s5393_s19 = sadd.s32 384, %s8618_s20 }
 0x110   : > { %v3020_v40 = vadd.f32 %v8354_v32, %v3012_v9  ;;  %v3023_v43 = vadd.f32 %v8354_v32, %v3015_v36  ;;  %3291 = vmatpush1.bf16.msra.mxu1 %v5729_v44  ;;  %v8376_v38 = vld [vmem:[%s9188_s2 + $0x198] sm:$0xff]  ;;  %v2482_v17 = vadd.f32 %v2476_v23, %v2465_v27  ;;  %v2922_v50 = vmul.f32 %v7884_v55, %v8137_v3  ;;  %v5746_v55 = vld [vmem:[%s6213_s14 + $0x5e4] ss:$8 sps:$4 sm:$0xff]   ;;  %v5744_v9 = vld [vmem:[%s6213_s14 + $0x5e0] ss:$8 sps:$4 sm:$0xff]   ;;  %s5395_s25 = sadd.s32 512, %s8618_s20 }
 0x111   : > { %2795 = vmatpush2.bf16.msra.mxu0 %v5726_v58  ;;  %v2496_v20 = vmul.f32 %v8376_v38, %v7933_v47  ;;  %3292 = vmatprep.subr.bf16.mxu1 %v5737_v30  ;;  %v5743_v28 = vld [vmem:[%s6213_s14 + $0x6bc] ss:$8 sps:$4 sm:$0xff]   ;;  %v2485_v58 = vadd.f32 %v2479_v12, %v2468_v45  ;;  %v2911_v19 = vadd.f32 %v2905_v62, %v2894_v7  ;;  %v5738_v47 = vld [vmem:[%s6213_s14 + $0x5f0] ss:$8 sps:$4 sm:$0xff]   ;;  %v8397_v62 = vld [vmem:[%s6213_s14 + $0x7a8] sm:$0x33] }
 0x112   : > { %2796 = vmatprep.subr.bf16.mxu0 %v5734_v59  ;;  %v3026_v33 = vmax.f32 %v3020_v40, 0.0  ;;  %v3029_v13 = vmax.f32 %v3023_v43, 0.0  ;;  %v5741_v44 = vld [vmem:[%s6213_s14 + $0x6b8] ss:$8 sps:$4 sm:$0xff]   ;;  %v2914_v59 = vadd.f32 %v2908_v1, %v2897_v10  ;;  %v2925_v23 = vmul.f32 %v7906_v60, %v8137_v3  ;;  %v5749_v7 = vld [vmem:[%s6213_s14 + $0x6ac] ss:$8 sps:$4 sm:$0xff]  }
 0x113   : > { %v2499_v30 = vadd.f32 %v2493_v15, %v2482_v17  ;;  %v2502_v27 = vadd.f32 %v2496_v20, %v2485_v58  ;;  %v2928_v60 = vadd.f32 %v2922_v50, %v2911_v19  ;;  %v2939_v45 = vmul.f32 %v7924_v4, %v8175_v24  ;;  %v5747_v36 = vld [vmem:[%s6213_s14 + $0x6a8] ss:$8 sps:$4 sm:$0xff]   ;;  %v5752_v40 = vld [vmem:[%s6213_s14 + $0x5d4] ss:$8 sps:$4 sm:$0xff]   ;;  %v5758_v50 = vld [vmem:[%s6213_s14 + $0x5c4] ss:$8 sps:$4 sm:$0xff]  }
 0x114   : > { %v3032_v12 = vpack.c.bf16 %v3029_v13, %v3026_v33  ;;  %3293 = vmatpush1.bf16.msra.mxu1 %v5735_v2  ;;  %v2942_v10 = vmul.f32 %v7946_v54, %v8175_v24  ;;  %v2956_v4 = vmul.f32 %v7957_v57, %v8212_v48  ;;  %v2959_v43 = vmul.f32 %v7972_v56, %v8212_v48  ;;  %v5755_v54 = vld [vmem:[%s6213_s14 + $0x69c] ss:$8 sps:$4 sm:$0xff]   ;;  %v8460_v19 = vld [vmem:[%s9188_s2 + $0x48] sm:$0xff] }
 0x115   : > { %2797 = vmatpush2.bf16.msra.mxu0 %v5732_v6  ;;  %3294 = vmatprep.subr.bf16.mxu1 %v5743_v28  ;;  %v2931_v6 = vadd.f32 %v2925_v23, %v2914_v59  ;;  %v8418_v2 = vmul.f32 %v7988_v39, %v8239_v46  ;;  %v8428_v15 = vadd.f32 %v7977_v63, %v2502_v27  ;;  %v8433_v57 = vld [vmem:[%s9188_s2] sm:$0xff]  ;;  %v8440_v39 = vld [vmem:[%s9188_s2 + $0x30] sm:$0xff]  ;;  %v8453_v33 = vld [vmem:[%s9188_s2 + $0x18] sm:$0xff]  ;;  %v8475_v59 = vstv %s8380_s7  ;;  %s8642_s7 = sand.u32 127, %s8587_s21 }
 0x116   : > { %2798 = vmatprep.subr.bf16.mxu0 %v5740_v61  ;;  %3322 = vmatprep.mubr.bf16.mxu1 %v3032_v12  ;;  %v8425_v61 = vadd.f32 %v7977_v63, %v2499_v30  ;;  %v2871_v56 = vmul.f32 %v8433_v57, %v8087_v41  ;;  %9373 = vst [vmem:[#allocation15_spill] sm:$0xff] %v8440_v39  ;;  %v5750_v63 = vld [vmem:[%s6213_s14 + $0x5d0] ss:$8 sps:$4 sm:$0xff]   ;;  %9374 = vst [vmem:[#allocation16_spill] sm:$0xff] %v8453_v33  ;;  %v8486_v12 = vstv %s8386_s16  ;;  %v5761_v30 = vld [vmem:[%s6213_s14 + $0x68c] ss:$8 sps:$4 sm:$0xff]  }
 0x117   : > { %v2886_v20 = vmul.f32 %v8440_v39, %v8103_v37  ;;  %v5753_v28 = vld [vmem:[%s6213_s14 + $0x698] ss:$8 sps:$4 sm:$0xff]   ;;  %v2945_v17 = vadd.f32 %v2939_v45, %v2928_v60  ;;  %v8448_v58 = vmul.f32 %v8008_v16, %v8239_v46  ;;  %v2874_v13 = vmul.f32 %v8453_v33, %v8087_v41  ;;  %9375 = vst [vmem:[#allocation10_spill] sm:$0xff] %v8460_v19  ;;  %s8511_s16 = sld [smem:[#allocation3 + %s3480_s6]]  ;;  %s3514_s6 = sadd.s32 %s5387_s27, %s8322_s15 }
 0x118   : > { %3295 = vmatpush1.bf16.msra.mxu1 %v5741_v44  ;;  %v2889_v16 = vmul.f32 %v8460_v19, %v8103_v37  ;;  %v8469_v44 = vmul.f32 %v8020_v42, %v8267_v11  ;;  %v8472_v41 = vstv %s8361_s29  ;;  %v8481_v37 = vld [vmem:[%s9188_s2 + $0x60] sm:$0xff]  ;;  %v8495_v42 = vld [vmem:[%s9188_s2 + $0x8] sm:$0xff]  ;;  %v8503_v60 = vld [vmem:[%s9188_s2 + $0x78] sm:$0xff]  ;;  %s8584_s17 = sld [smem:[#allocation3 + %s3514_s6]]  ;;  %s3907_s27 = sadd.s32 %s5389_s8, %s8642_s7 }
 0x119   : > { %2799 = vmatpush2.bf16.msra.mxu0 %v5738_v47  ;;  %3296 = vmatprep.subr.bf16.mxu1 %v5749_v7  ;;  %v2948_v47 = vadd.f32 %v2942_v10, %v2931_v6  ;;  %9376 = vst [vmem:[#allocation28_spill] sm:$0xff] %v8481_v37  ;;  %v2903_v23 = vmul.f32 %v8481_v37, %v8117_v18  ;;  %9377 = vst [vmem:[#allocation17_spill] sm:$0xff] %v8503_v60  ;;  %v5764_v37 = vld [vmem:[%s6213_s14 + $0x5b4] ss:$8 sps:$4 sm:$0xff]   ;;  %s8634_s29 = sld [smem:[#allocation5 + %s8195_s12]]  ;;  %s5391_s12 = sadd.s32 256, %s8618_s20 }
 0x11a   : > { %2800 = vmatprep.subr.bf16.mxu0 %v5746_v55  ;;  %v8489_v55 = vstv %s8393_s10  ;;  %v3384_v7 = vmul.f32 %v8495_v42, %v8472_v41  ;;  %v2892_v27 = vadd.f32 %v2886_v20, %v2871_v56  ;;  %v2906_v45 = vmul.f32 %v8503_v60, %v8117_v18  ;;  %v8520_v18 = vld [vmem:[%s9188_s2 + $0x80] sm:$0xff]  ;;  %v5759_v20 = vld [vmem:[%s6213_s14 + $0x688] ss:$8 sps:$4 sm:$0xff]   ;;  %s3924_s30 = sadd.s32 %s5391_s12, %s8642_s7  ;;  %s8694_s15 = sld [smem:[#allocation3 + %s8587_s21]] }
 0x11b   : > { %v2895_v6 = vadd.f32 %v2889_v16, %v2874_v13  ;;  %v3402_v10 = vmul.f32 %v8130_v52, %v8475_v59  ;;  %v5756_v56 = vld [vmem:[%s6213_s14 + $0x5c0] ss:$8 sps:$4 sm:$0xff]   ;;  %v2962_v13 = vadd.f32 %v2956_v4, %v2945_v17  ;;  %v2965_v16 = vadd.f32 %v2959_v43, %v2948_v47  ;;  %s8712_s12 = sld [smem:[#allocation3 + %s3924_s30]]  ;;  %s5397_s10 = sadd.s32 640, %s8618_s20 }
 0x11c   : > { %3297 = vmatpush1.bf16.msra.mxu1 %v5747_v36  ;;  %v3399_v36 = vmul.f32 %v8123_v49, %v8475_v59  ;;  %v3433_v60 = vmul.f32 %v8154_v35, %v8489_v55  ;;  %v8539_v43 = vstv %s8420_s28  ;;  %v3436_v47 = vmul.f32 %v8161_v31, %v8489_v55  ;;  %s8556_s28 = sld [smem:[#allocation3 + %s3497_s11]]  ;;  %s5403_s11 = sadd.s32 1024, %s8618_s20 }
 0x11d   : > { %2801 = vmatpush2.bf16.msra.mxu0 %v5744_v9  ;;  %3298 = vmatprep.subr.bf16.mxu1 %v5755_v54  ;;  %v3387_v9 = vmul.f32 %v8110_v5, %v8472_v41  ;;  %v3419_v54 = vmul.f32 %v8520_v18, %v8486_v12  ;;  %s4026_s30 = sadd.s32 %s5403_s11, %s8642_s7 }
 0x11e   : > { %2802 = vmatprep.subr.bf16.mxu0 %v5752_v40  ;;  %v3416_v40 = vmul.f32 %v8144_v0, %v8486_v12  ;;  %v3405_v1 = vadd.f32 %v3399_v36, %v3384_v7  ;;  %v8547_v7 = vld [vmem:[%s9188_s2 + $0xa8] sm:$0xff] }
 0x11f   : > { %v3408_v17 = vadd.f32 %v3402_v10, %v3387_v9  ;;  %9379 = vst [vmem:[#allocation20_spill] sm:$0xff] %v8547_v7  ;;  %v2923_v36 = vmul.f32 %v8547_v7, %v8137_v3  ;;  %v3450_v9 = vmul.f32 %v8183_v8, %v8539_v43  ;;  %v2912_v10 = vadd.f32 %v2906_v45, %v2895_v6  ;;  %v5765_v6 = vld [vmem:[%s6213_s14 + $0x678] ss:$8 sps:$4 sm:$0xff]  }
 0x120   : > { %3299 = vmatpush1.bf16.msra.mxu1 %v5753_v28  ;;  %v5767_v28 = vld [vmem:[%s6213_s14 + $0x67c] ss:$8 sps:$4 sm:$0xff]   ;;  %v3422_v19 = vadd.f32 %v3416_v40, %v3405_v1  ;;  %v2993_v1 = vmul.f32 %v8046_v14, %v8267_v11  ;;  %v5773_v14 = vld [vmem:[%s6213_s14 + $0x66c] ss:$8 sps:$4 sm:$0xff]  }
 0x121   : > { %2803 = vmatpush2.bf16.msra.mxu0 %v5750_v63  ;;  %v8534_v63 = vld [vmem:[%s9188_s2 + $0x90] sm:$0xff]  ;;  %3300 = vmatprep.subr.bf16.mxu1 %v5761_v30  ;;  %v3453_v30 = vmul.f32 %v8190_v29, %v8539_v43 }
 0x122   : > { %2804 = vmatprep.subr.bf16.mxu0 %v5758_v50  ;;  %9378 = vst [vmem:[#allocation11_spill] sm:$0xff] %v8534_v63  ;;  %v2920_v4 = vmul.f32 %v8534_v63, %v8137_v3  ;;  %v2909_v50 = vadd.f32 %v2903_v23, %v2892_v27  ;;  %v8554_v63 = vstv %s8464_s26  ;;  %v3425_v23 = vadd.f32 %v3419_v54, %v3408_v17  ;;  %v5762_v27 = vld [vmem:[%s6213_s14 + $0x5b0] ss:$8 sps:$4 sm:$0xff]   ;;  %v5770_v54 = vld [vmem:[%s6213_s14 + $0x5a4] ss:$8 sps:$4 sm:$0xff]   ;;  %s3941_s26 = sadd.s32 %s5393_s19, %s8642_s7  ;;  %s3958_s19 = sadd.s32 %s5395_s25, %s8642_s7 }
 0x123   : > { %v2513_v3 = vmax.f32 %v8425_v61, 0.0  ;;  %v3439_v40 = vadd.f32 %v3433_v60, %v3422_v19  ;;  %v3467_v45 = vmul.f32 %v8218_v53, %v8554_v63  ;;  %v2516_v17 = vmax.f32 %v8428_v15, 0.0  ;;  %s3975_s25 = sadd.s32 %s5397_s10, %s8642_s7 }
 0x124   : > { %3301 = vmatpush1.bf16.msra.mxu1 %v5759_v20  ;;  %v3442_v7 = vadd.f32 %v3436_v47, %v3425_v23  ;;  %v3470_v61 = vmul.f32 %v8225_v21, %v8554_v63  ;;  %v2982_v19 = vadd.f32 %v8448_v58, %v2965_v16  ;;  %v2926_v20 = vadd.f32 %v2920_v4, %v2909_v50  ;;  %v5768_v47 = vld [vmem:[%s6213_s14 + $0x5a0] ss:$8 sps:$4 sm:$0xff]  }
 0x125   : > { %2805 = vmatpush2.bf16.msra.mxu0 %v5756_v56  ;;  %v2979_v56 = vadd.f32 %v8418_v2, %v2962_v13  ;;  %3302 = vmatprep.subr.bf16.mxu1 %v5767_v28  ;;  %v2940_v2 = vmul.f32 %v8170_v26, %v8175_v24  ;;  %v3456_v15 = vadd.f32 %v3450_v9, %v3439_v40  ;;  %v8590_v13 = vstv %s8511_s16  ;;  %v9381_v26 = vld [vmem:[#allocation23_spill] sm:$0xff]  ;;  %v9382_v9 = vld [vmem:[#allocation24_spill] sm:$0xff]  ;;  %s8720_s16 = sld [smem:[#allocation3 + %s3941_s26]] }
 0x126   : > { %2806 = vmatprep.subr.bf16.mxu0 %v5764_v37  ;;  %v8578_v37 = vld [vmem:[%s9188_s2 + $0xc0] sm:$0xff]  ;;  %v2929_v58 = vadd.f32 %v2923_v36, %v2912_v10  ;;  %v3459_v16 = vadd.f32 %v3453_v30, %v3442_v7  ;;  %v5081_v28 = vcombine.low %v8397_v62, %v8397_v62  ;;  %v3487_v40 = vmul.f32 %v9382_v9, %v8590_v13  ;;  %v5771_v4 = vld [vmem:[%s6213_s14 + $0x668] ss:$8 sps:$4 sm:$0xff]   ;;  %v9383_v7 = vld [vmem:[#allocation12_spill] sm:$0xff] }
 0x127   : > { %9380 = vst [vmem:[#allocation22_spill] sm:$0xff] %v8578_v37  ;;  %v2937_v60 = vmul.f32 %v8578_v37, %v8175_v24  ;;  %v3473_v23 = vadd.f32 %v3467_v45, %v3456_v15  ;;  %v3484_v24 = vmul.f32 %v9381_v26, %v8590_v13  ;;  %v2996_v50 = vadd.f32 %v8469_v44, %v2979_v56  ;;  %v9384_v15 = vld [vmem:[#allocation18_spill] sm:$0xff]  ;;  %v9386_v44 = vld [vmem:[#allocation21_spill] sm:$0xff] }
 0x128   : > { %3303 = vmatpush1.bf16.msra.mxu1 %v5765_v6  ;;  %v3007_v36 = vmul.f32 %v9383_v7, %v8299_v34  ;;  %v3476_v10 = vadd.f32 %v3470_v61, %v3459_v16  ;;  %v2519_v30 = vpack.c.bf16 %v2516_v17, %v2513_v3  ;;  %v2999_v45 = vadd.f32 %v2993_v1, %v2982_v19  ;;  %v9385_v6 = vld [vmem:[#allocation19_spill] sm:$0xff]  ;;  %v9387_v17 = vld [vmem:[#allocation25_spill] sm:$0xff]  ;;  %v9388_v19 = vld [vmem:[#allocation26_spill] sm:$0xff] }
 0x129   : > { %2807 = vmatpush2.bf16.msra.mxu0 %v5762_v27  ;;  %3304 = vmatprep.subr.bf16.mxu1 %v5773_v14  ;;  %v5776_v27 = vld [vmem:[%s6213_s14 + $0x75c] ss:$8 sps:$4 sm:$0xff]   ;;  %v3010_v37 = vmul.f32 %v9384_v15, %v8299_v34  ;;  %v2943_v39 = vadd.f32 %v2937_v60, %v2926_v20  ;;  %v2946_v33 = vadd.f32 %v2940_v2, %v2929_v58  ;;  %v8612_v61 = vstv %s8556_s28  ;;  %v5774_v60 = vld [vmem:[%s6213_s14 + $0x758] ss:$8 sps:$4 sm:$0xff]   ;;  %s5399_s28 = sadd.s32 768, %s8618_s20 }
 0x12a   : > { %2808 = vmatprep.subr.bf16.mxu0 %v5770_v54  ;;  %v2954_v54 = vmul.f32 %v9385_v6, %v8212_v48  ;;  %v2957_v56 = vmul.f32 %v9386_v44, %v8212_v48  ;;  %v3490_v3 = vadd.f32 %v3484_v24, %v3473_v23  ;;  %v3493_v1 = vadd.f32 %v3487_v40, %v3476_v10  ;;  %v5784_v20 = vld [vmem:[%s6213_s14 + $0x79c] ss:$8 sps:$4 sm:$0xff]   ;;  %v9390_v24 = vld [vmem:[#allocation27_spill] sm:$0xff] }
 0x12b   : > { %v3501_v14 = vmul.f32 %v9387_v17, %v8612_v61  ;;  %v3504_v16 = vmul.f32 %v9388_v19, %v8612_v61  ;;  %v9389_v48 = vcombine.high %v8397_v62, %v8397_v62  ;;  %v3285_v2 = vsel %vm939_vm0, %v5081_v28, 0  ;;  %v8660_v6 = vld [vmem:[%s9188_s2 + $0x10] sm:$0xff]  ;;  %v8667_v44 = vld [vmem:[%s9188_s2 + $0x40] sm:$0xff] }
 0x12c   : > { %3305 = vmatpush1.bf16.msra.mxu1 %v5771_v4  ;;  %v3013_v58 = vadd.f32 %v3007_v36, %v2996_v50  ;;  %v3016_v23 = vadd.f32 %v3010_v37, %v2999_v45  ;;  %v2971_v40 = vmul.f32 %v9390_v24, %v8239_v46  ;;  %v8631_v4 = vstv %s8584_s17  ;;  %v5782_v50 = vld [vmem:[%s6213_s14 + $0x798] ss:$8 sps:$4 sm:$0xff]   ;;  %v5787_v45 = vld [vmem:[%s6213_s14 + $0x73c] ss:$8 sps:$4 sm:$0xff]   ;;  %s8700_s17 = sld [smem:[#allocation3 + %s3907_s27]] }
 0x12d   : > { %2809 = vmatpush2.bf16.msra.mxu0 %v5768_v47  ;;  %3306 = vmatprep.subr.bf16.mxu1 %v5776_v27  ;;  %v5781_v47 = vld [vmem:[%s6213_s14 + $0x74c] ss:$8 sps:$4 sm:$0xff]   ;;  %v2960_v62 = vadd.f32 %v2954_v54, %v2943_v39  ;;  %v2963_v7 = vadd.f32 %v2957_v56, %v2946_v33  ;;  %v2974_v28 = vmul.f32 %v8294_v25, %v8239_v46  ;;  %v9391_v36 = vmov 0   ;;  %v9392_v39 = vld [vmem:[#allocation13_spill] sm:$0xff]  ;;  %v5779_v46 = vld [vmem:[%s6213_s14 + $0x748] ss:$8 sps:$4 sm:$0xff]  }
 0x12e   : > { %5083 = vmatprep.subr.msk.bf16.mxu0 %vm939_vm0, %v9389_v48  ;;  %v3518_v37 = vmul.f32 %v8305_v51, %v8631_v4  ;;  %v3507_v10 = vadd.f32 %v3501_v14, %v3490_v3  ;;  %v3521_v33 = vmul.f32 %v9392_v39, %v8631_v4  ;;  %v5790_v25 = vld [vmem:[%s6213_s14 + $0x78c] ss:$8 sps:$4 sm:$0xff]   ;;  %v8652_v27 = vadd.f32 %v8354_v32, %v3013_v58 }
 0x12f   : > { %v3024_v15 = vadd.f32 %v8354_v32, %v3016_v23  ;;  %v3385_v54 = vmul.f32 %v8660_v6, %v8472_v41  ;;  %v3400_v56 = vmul.f32 %v8667_v44, %v8475_v59  ;;  %v2977_v3 = vadd.f32 %v2971_v40, %v2960_v62  ;;  %v9393_v14 = vld [vmem:[#allocation14_spill] sm:$0xff]  ;;  %v5785_v40 = vld [vmem:[%s6213_s14 + $0x738] ss:$8 sps:$4 sm:$0xff]   ;;  %v5796_v62 = vld [vmem:[%s6213_s14 + $0x77c] ss:$8 sps:$4 sm:$0xff]  }
 0x130   : > { %2811 = vmatmul.mubr.bf16.vlgmr.msra.gmra.mxu0 %v2519_v30  ;;  %v3510_v30 = vadd.f32 %v3504_v16, %v3493_v1  ;;  %3307 = vmatpush2.bf16.msra.mxu1 %v5774_v60  ;;  %v2980_v1 = vadd.f32 %v2974_v28, %v2963_v7  ;;  %v2988_v16 = vmul.f32 %v9393_v14, %v8267_v11  ;;  %v9394_v60 = vld [vmem:[#allocation9_spill] sm:$0xff]  ;;  %v3027_v7 = vmax.f32 %v8652_v27, 0.0  ;;  %v5793_v28 = vld [vmem:[%s6213_s14 + $0x72c] ss:$8 sps:$4 sm:$0xff]  }
 0x131   : > { %3340 = vmatpush1.bf16.msra.mxu0 %v3285_v2  ;;  %3365 = vmatprep.mubr.bf16.mxu0 %v9391_v36  ;;  %v2991_v48 = vmul.f32 %v9394_v60, %v8267_v11  ;;  %v5788_v2 = vld [vmem:[%s6213_s14 + $0x788] ss:$8 sps:$4 sm:$0xff]   ;;  %v3524_v23 = vadd.f32 %v3518_v37, %v3507_v10  ;;  %v3005_v37 = vmul.f32 %v8369_v22, %v8299_v34  ;;  %v8718_v22 = vstv %s8634_s29  ;;  %s8735_s29 = sld [smem:[#allocation3 + %s3958_s19]]  ;;  %v5799_v14 = vld [vmem:[%s6213_s14 + $0x71c] ss:$8 sps:$4 sm:$0xff]   ;;  %s5401_s19 = sadd.s32 896, %s8618_s20 }
 0x132   : > { %3341 = vmatprep.subr.bf16.mxu0 %v5784_v20  ;;  %3308 = vmatprep.subr.bf16.mxu1 %v5781_v47  ;;  %v8682_v20 = vld [vmem:[%s9188_s2 + $0x28] sm:$0xff]  ;;  %v8689_v47 = vld [vmem:[%s9188_s2 + $0x58] sm:$0xff]  ;;  %v3527_v24 = vadd.f32 %v3521_v33, %v3510_v30  ;;  %v3406_v10 = vadd.f32 %v3400_v56, %v3385_v54  ;;  %v8708_v30 = vld [vmem:[%s9188_s2 + $0x70] sm:$0xff]  ;;  %v3008_v27 = vmul.f32 %v8376_v38, %v8299_v34  ;;  %s4009_s23 = sadd.s32 %s5401_s19, %s8642_s7 }
 0x133   : > { %v3388_v58 = vmul.f32 %v8682_v20, %v8472_v41  ;;  %v3403_v11 = vmul.f32 %v8689_v47, %v8475_v59  ;;  %v3417_v33 = vmul.f32 %v8708_v30, %v8486_v12  ;;  %v8727_v54 = vld [vmem:[%s9188_s2 + $0x88] sm:$0xff]  ;;  %v3532_v34 = vadd.f32 %v8718_v22, %v3524_v23  ;;  %v8741_v60 = vld [vmem:[%s9188_s2 + $0xa0] sm:$0xff]  ;;  %v8749_v23 = vld [vmem:[%s9188_s2 + $0xb8] sm:$0xff]  ;;  %s8842_s27 = sld [smem:[#allocation3 + %s4009_s23]] }
 0x134   : > { %3309 = vmatpush2.bf16.msra.mxu1 %v5779_v46  ;;  %v2994_v46 = vadd.f32 %v2988_v16, %v2977_v3  ;;  %9395 = vst [vmem:[#allocation23_spill] sm:$0xff] %v8727_v54  ;;  %v3420_v56 = vmul.f32 %v8727_v54, %v8486_v12  ;;  %v3535_v38 = vadd.f32 %v8718_v22, %v3527_v24  ;;  %v5791_v3 = vld [vmem:[%s6213_s14 + $0x728] ss:$8 sps:$4 sm:$0xff]   ;;  %9396 = vst [vmem:[#allocation24_spill] sm:$0xff] %v8741_v60 }
 0x135   : > { %3342 = vmatpush1.bf16.msra.mxu0 %v5782_v50  ;;  %3310 = vmatprep.subr.bf16.mxu1 %v5787_v45  ;;  %v3030_v50 = vmax.f32 %v3024_v15, 0.0  ;;  %v5794_v45 = vld [vmem:[%s6213_s14 + $0x778] ss:$8 sps:$4 sm:$0xff]   ;;  %v3409_v15 = vadd.f32 %v3403_v11, %v3388_v58  ;;  %v3423_v16 = vadd.f32 %v3417_v33, %v3406_v10  ;;  %9397 = vst [vmem:[#allocation12_spill] sm:$0xff] %v8749_v23  ;;  %v8756_v33 = vstv %s8694_s15  ;;  %s8770_s15 = sld [smem:[#allocation3 + %s3975_s25]] }
 0x136   : > { %3343 = vmatprep.subr.bf16.mxu0 %v5790_v25  ;;  %v2997_v25 = vadd.f32 %v2991_v48, %v2980_v1  ;;  %v5802_v1 = vld [vmem:[%s6213_s14 + $0x76c] ss:$8 sps:$4 sm:$0xff]   ;;  %v3434_v48 = vmul.f32 %v8741_v60, %v8489_v55  ;;  %v3011_v58 = vadd.f32 %v3005_v37, %v2994_v46  ;;  %v3437_v24 = vmul.f32 %v8749_v23, %v8489_v55  ;;  %v5803_v60 = vld [vmem:[%s6213_s14 + $0x708] ss:$8 sps:$4 sm:$0xff]  }
 0x137   : > { %v3541_v10 = vmax.f32 %v3535_v38, 0.0  ;;  %v8763_v37 = vld [vmem:[%s9188_s2 + $0xd0] sm:$0xff]  ;;  %v8806_v54 = vstv %s8735_s29 }
 0x138   : > { %3311 = vmatpush2.bf16.msra.mxu1 %v5785_v40  ;;  %v3014_v11 = vadd.f32 %v3008_v27, %v2997_v25  ;;  %v5800_v40 = vld [vmem:[%s6213_s14 + $0x768] ss:$8 sps:$4 sm:$0xff]   ;;  %9398 = vst [vmem:[#allocation18_spill] sm:$0xff] %v8763_v37  ;;  %v3451_v46 = vmul.f32 %v8763_v37, %v8539_v43  ;;  %v8768_v25 = vstv %s8700_s17  ;;  %v3896_v27 = vmul.f32 %v8495_v42, %v8756_v33  ;;  %s3992_s17 = sadd.s32 %s5399_s28, %s8642_s7  ;;  %s8866_s28 = sld [smem:[#allocation3 + %s4026_s30]] }
 0x139   : > { %3344 = vmatpush1.bf16.msra.mxu0 %v5788_v2  ;;  %3312 = vmatprep.subr.bf16.mxu1 %v5793_v28  ;;  %v3033_v2 = vpack.c.bf16 %v3030_v50, %v3027_v7  ;;  %v3538_v28 = vmax.f32 %v3532_v34, 0.0  ;;  %v5797_v7 = vld [vmem:[%s6213_s14 + $0x718] ss:$8 sps:$4 sm:$0xff]   ;;  %v5808_v50 = vld [vmem:[%s6213_s14 + $0x824] ss:$8 sps:$4 sm:$0xff]   ;;  %v3911_v42 = vmul.f32 %v8123_v49, %v8768_v25 }
 0x13a   : > { %3345 = vmatprep.subr.bf16.mxu0 %v5796_v62  ;;  %v3426_v62 = vadd.f32 %v3420_v56, %v3409_v15  ;;  %v5805_v15 = vld [vmem:[%s6213_s14 + $0x70c] ss:$8 sps:$4 sm:$0xff]   ;;  %v3440_v56 = vadd.f32 %v3434_v48, %v3423_v16  ;;  %v5806_v48 = vld [vmem:[%s6213_s14 + $0x820] ss:$8 sps:$4 sm:$0xff]  }
 0x13b   : > { %v8780_v34 = vld [vmem:[%s9188_s2 + $0xe8] sm:$0xff]  ;;  %v3544_v37 = vpack.c.bf16 %v3541_v10, %v3538_v28  ;;  %v3917_v49 = vadd.f32 %v3911_v42, %v3896_v27  ;;  %v5812_v27 = vld [vmem:[%s6213_s14 + $0x810] ss:$8 sps:$4 sm:$0xff]  }
 0x13c   : > { %3313 = vmatpush2.bf16.msra.mxu1 %v5791_v3  ;;  %9399 = vst [vmem:[#allocation19_spill] sm:$0xff] %v8780_v34  ;;  %v3454_v38 = vmul.f32 %v8780_v34, %v8539_v43  ;;  %v8785_v3 = vstv %s8712_s12  ;;  %v3443_v34 = vadd.f32 %v3437_v24, %v3426_v62  ;;  %s8808_s12 = sld [smem:[#allocation3 + %s3992_s17]]  ;;  %v5811_v24 = vld [vmem:[%s6213_s14 + $0x6fc] ss:$8 sps:$4 sm:$0xff]   ;;  %v3457_v10 = vadd.f32 %v3451_v46, %v3440_v56  ;;  %v5817_v56 = vld [vmem:[%s6213_s14 + $0x6ec] ss:$8 sps:$4 sm:$0xff]  }
 0x13d   : > { %3346 = vmatpush1.bf16.msra.mxu0 %v5794_v45  ;;  %v3899_v45 = vmul.f32 %v8110_v5, %v8756_v33  ;;  %3314 = vmatprep.subr.bf16.mxu1 %v5799_v14  ;;  %v8791_v5 = vstv %s8720_s16  ;;  %v3928_v14 = vmul.f32 %v8144_v0, %v8785_v3  ;;  %v3931_v16 = vmul.f32 %v8520_v18, %v8785_v3  ;;  %v5820_v46 = vld [vmem:[%s6213_s14 + $0x804] ss:$8 sps:$4 sm:$0xff]   ;;  %v8854_v42 = vld [vmem:[%s9188_s2 + $0x130] sm:$0xff]  ;;  %s8932_s16 = sld [smem:[#allocation5 + %s8587_s21]] }
 0x13e   : > { %3347 = vmatprep.subr.bf16.mxu0 %v5802_v1  ;;  %v3914_v1 = vmul.f32 %v8130_v52, %v8768_v25  ;;  %v3945_v23 = vmul.f32 %v8154_v35, %v8791_v5  ;;  %v5814_v52 = vld [vmem:[%s6213_s14 + $0x814] ss:$8 sps:$4 sm:$0xff]   ;;  %v3948_v18 = vmul.f32 %v8161_v31, %v8791_v5  ;;  %v8817_v35 = vld [vmem:[%s9188_s2 + $0x100] sm:$0xff]  ;;  %v3962_v31 = vmul.f32 %v8183_v8, %v8806_v54 }
 0x13f   : > { %v3468_v62 = vmul.f32 %v8817_v35, %v8554_v63  ;;  %v3934_v28 = vadd.f32 %v3928_v14, %v3917_v49  ;;  %v8833_v8 = vld [vmem:[%s9188_s2 + $0x118] sm:$0xff] }
 0x140   : > { %3315 = vmatpush2.bf16.msra.mxu1 %v5797_v7  ;;  %v3920_v0 = vadd.f32 %v3914_v1, %v3899_v45  ;;  %v3460_v45 = vadd.f32 %v3454_v38, %v3443_v34  ;;  %v5133_v34 = vld [vmem:[%s6213_s14 + $0x8f0] sm:$0x33]  ;;  %v3485_v1 = vmul.f32 %v8854_v42, %v8590_v13 }
 0x141   : > { %3348 = vmatpush1.bf16.msra.mxu0 %v5800_v40  ;;  %3316 = vmatprep.subr.bf16.mxu1 %v5805_v15  ;;  %v3019_v40 = vadd.f32 %v8354_v32, %v3011_v58  ;;  %v3022_v58 = vadd.f32 %v8354_v32, %v3014_v11  ;;  %v3951_v32 = vadd.f32 %v3945_v23, %v3934_v28  ;;  %v5809_v11 = vld [vmem:[%s6213_s14 + $0x6f8] ss:$8 sps:$4 sm:$0xff]  }
 0x142   : > { %3802 = vmatprep.subr.bf16.mxu0 %v5808_v50  ;;  %v3937_v7 = vadd.f32 %v3931_v16, %v3920_v0  ;;  %v3965_v50 = vmul.f32 %v8190_v29, %v8806_v54  ;;  %v8840_v29 = vstv %s8770_s15  ;;  %v3474_v23 = vadd.f32 %v3468_v62, %v3457_v10  ;;  %v5818_v16 = vld [vmem:[%s6213_s14 + $0x800] ss:$8 sps:$4 sm:$0xff]  }
 0x143   : > { %v3968_v38 = vadd.f32 %v3962_v31, %v3951_v32  ;;  %v3028_v49 = vmax.f32 %v3022_v58, 0.0  ;;  %v5815_v0 = vld [vmem:[%s6213_s14 + $0x6e8] ss:$8 sps:$4 sm:$0xff]   ;;  %v5174_v62 = vcombine.low %v5133_v34, %v5133_v34 }
 0x144   : > { %5084 = vmatmul.mubr.msk.bf16.vlgmr.msra.gmra.mxu0 %vm935_vm1, %v3033_v2  ;;  %v3471_v2 = vmul.f32 %v8833_v8, %v8554_v63  ;;  %3317 = vmatpush2.bf16.msra.mxu1 %v5803_v60  ;;  %v3954_v15 = vadd.f32 %v3948_v18, %v3937_v7  ;;  %v3982_v60 = vmul.f32 %v8225_v21, %v8840_v29  ;;  %v8862_v21 = vld [vmem:[%s9188_s2 + $0x148] sm:$0xff]  ;;  %v5823_v18 = vld [vmem:[%s6213_s14 + $0x7f4] ss:$8 sps:$4 sm:$0xff]  }
 0x145   : > { %3803 = vmatpush1.bf16.msra.mxu0 %v5806_v48  ;;  %3834 = vmatprep.mubr.bf16.mxu0 %v3544_v37  ;;  %v3979_v37 = vmul.f32 %v8218_v53, %v8840_v29  ;;  %v3025_v48 = vmax.f32 %v3019_v40, 0.0  ;;  %v8871_v40 = vstv %s8808_s12  ;;  %v3491_v7 = vadd.f32 %v3485_v1, %v3474_v23  ;;  %v8906_v1 = vld [vmem:[%s9188_s2 + $0x190] sm:$0xff] }
 0x146   : > { %3804 = vmatprep.subr.bf16.mxu0 %v5814_v52  ;;  %3318 = vmatprep.subr.bf16.mxu1 %v5811_v24  ;;  %v3971_v14 = vadd.f32 %v3965_v50, %v3954_v15  ;;  %v3477_v53 = vadd.f32 %v3471_v2, %v3460_v45  ;;  %v3488_v52 = vmul.f32 %v8862_v21, %v8590_v13  ;;  %v8880_v50 = vld [vmem:[%s9188_s2 + $0x160] sm:$0xff]  ;;  %v5821_v2 = vld [vmem:[%s6213_s14 + $0x7f0] ss:$8 sps:$4 sm:$0xff]   ;;  %v8895_v15 = vstv %s8842_s27 }
 0x147   : > { %v5175_v24 = vcombine.high %v5133_v34, %v5133_v34  ;;  %v3985_v28 = vadd.f32 %v3979_v37, %v3968_v38  ;;  %v3996_v58 = vmul.f32 %v9381_v26, %v8871_v40  ;;  %v3999_v10 = vmul.f32 %v9382_v9, %v8871_v40  ;;  %v8888_v26 = vld [vmem:[%s9188_s2 + $0x178] sm:$0xff] }
 0x148   : > { %3319 = vmatpush2.bf16.msra.mxu1 %v5809_v11  ;;  %v3988_v31 = vadd.f32 %v3982_v60, %v3971_v14  ;;  %v3031_v45 = vpack.c.bf16 %v3028_v49, %v3025_v48  ;;  %v3494_v32 = vadd.f32 %v3488_v52, %v3477_v53  ;;  %v3505_v9 = vmul.f32 %v8888_v26, %v8612_v61  ;;  %v9400_v53 = vld [vmem:[#allocation16_spill] sm:$0xff] }
 0x149   : > { %3805 = vmatpush1.bf16.msra.mxu0 %v5812_v27  ;;  %3320 = vmatprep.subr.bf16.mxu1 %v5817_v56  ;;  %v3502_v27 = vmul.f32 %v8880_v50, %v8612_v61  ;;  %v3797_v11 = vsel %vm939_vm0, %v5174_v62, 0  ;;  %v5831_v56 = vld [vmem:[%s6213_s14 + $0x8e4] ss:$8 sps:$4 sm:$0xff]   ;;  %v4002_v34 = vadd.f32 %v3996_v58, %v3985_v28  ;;  %v4013_v37 = vmul.f32 %v9387_v17, %v8895_v15  ;;  %v9401_v62 = vld [vmem:[#allocation15_spill] sm:$0xff] }
 0x14a   : > { %3806 = vmatprep.subr.bf16.mxu0 %v5820_v46  ;;  %v5828_v46 = vld [vmem:[%s6213_s14 + $0x7e4] ss:$8 sps:$4 sm:$0xff]   ;;  %v4005_v38 = vadd.f32 %v3999_v10, %v3988_v31  ;;  %v4016_v60 = vmul.f32 %v9388_v19, %v8895_v15  ;;  %v3519_v14 = vmul.f32 %v8906_v1, %v8631_v4  ;;  %v5826_v19 = vld [vmem:[%s6213_s14 + $0x7e0] ss:$8 sps:$4 sm:$0xff]   ;;  %v3511_v48 = vadd.f32 %v3505_v9, %v3494_v32  ;;  %v5837_v10 = vld [vmem:[%s6213_s14 + $0x8d4] ss:$8 sps:$4 sm:$0xff]  }
 0x14b   : > { %v3508_v23 = vadd.f32 %v3502_v27, %v3491_v7  ;;  %v3383_v49 = vmul.f32 %v8433_v57, %v8472_v41  ;;  %v3386_v52 = vmul.f32 %v9400_v53, %v8472_v41  ;;  %v3398_v28 = vmul.f32 %v9401_v62, %v8475_v59  ;;  %v9402_v31 = vld [vmem:[#allocation10_spill] sm:$0xff]  ;;  %v5835_v9 = vld [vmem:[%s6213_s14 + $0x8d0] ss:$8 sps:$4 sm:$0xff]  }
 0x14c   : > { %3321 = vmatpush2.bf16.msra.mxu1 %v5815_v0  ;;  %v8923_v0 = vstv %s8866_s28  ;;  %v3401_v58 = vmul.f32 %v9402_v31, %v8475_v59  ;;  %v4019_v7 = vadd.f32 %v4013_v37, %v4002_v34  ;;  %v4022_v27 = vadd.f32 %v4016_v60, %v4005_v38 }
 0x14d   : > { %3807 = vmatpush1.bf16.msra.mxu0 %v5818_v16  ;;  %5176 = vmatprep.subr.msk.bf16.mxu1 %vm939_vm0, %v5175_v24  ;;  %v8913_v16 = vld [vmem:[%s9188_s2 + $0x1a8] sm:$0xff]  ;;  %v5834_v24 = vld [vmem:[%s6213_s14 + $0x7d4] ss:$8 sps:$4 sm:$0xff]   ;;  %v4030_v41 = vmul.f32 %v8305_v51, %v8923_v0  ;;  %v3525_v59 = vadd.f32 %v3519_v14, %v3508_v23  ;;  %v3404_v38 = vadd.f32 %v3398_v28, %v3383_v49  ;;  %v8958_v28 = vstv %s8932_s16 }
 0x14e   : > { %3808 = vmatprep.subr.bf16.mxu0 %v5823_v18  ;;  %v3522_v17 = vmul.f32 %v8913_v16, %v8631_v4  ;;  %v5829_v18 = vld [vmem:[%s6213_s14 + $0x8e0] ss:$8 sps:$4 sm:$0xff]   ;;  %v5840_v51 = vld [vmem:[%s6213_s14 + $0x7c4] ss:$8 sps:$4 sm:$0xff]   ;;  %v3407_v37 = vadd.f32 %v3401_v58, %v3386_v52  ;;  %v9406_v49 = vld [vmem:[#allocation20_spill] sm:$0xff] }
 0x14f   : > { %3323 = vmatmul.mubr.bf16.vlgmr.msra.gmra.mxu1 %v3031_v45  ;;  %v4033_v45 = vmul.f32 %v9392_v39, %v8923_v0  ;;  %v5843_v39 = vld [vmem:[%s6213_s14 + $0x8c4] ss:$8 sps:$4 sm:$0xff]   ;;  %v4036_v60 = vadd.f32 %v4030_v41, %v4019_v7  ;;  %v5838_v14 = vld [vmem:[%s6213_s14 + $0x7c0] ss:$8 sps:$4 sm:$0xff]   ;;  %v3435_v52 = vmul.f32 %v9406_v49, %v8489_v55  ;;  %v5849_v58 = vld [vmem:[%s6213_s14 + $0x8b4] ss:$8 sps:$4 sm:$0xff]  }
 0x150   : > { %3852 = vmatpush1.bf16.msra.mxu1 %v3797_v11  ;;  %3877 = vmatprep.mubr.bf16.mxu1 %v9391_v36  ;;  %v3528_v32 = vadd.f32 %v3522_v17, %v3511_v48  ;;  %v9403_v11 = vld [vmem:[#allocation28_spill] sm:$0xff]  ;;  %v3533_v17 = vadd.f32 %v8718_v22, %v3525_v59  ;;  %v5841_v48 = vld [vmem:[%s6213_s14 + $0x8c0] ss:$8 sps:$4 sm:$0xff]  }
 0x151   : > { %3809 = vmatpush1.bf16.msra.mxu0 %v5821_v2  ;;  %3853 = vmatprep.subr.bf16.mxu1 %v5831_v56  ;;  %v5832_v2 = vld [vmem:[%s6213_s14 + $0x7d0] ss:$8 sps:$4 sm:$0xff]   ;;  %v9404_v56 = vld [vmem:[#allocation17_spill] sm:$0xff]  ;;  %v4039_v23 = vadd.f32 %v4033_v45, %v4022_v27  ;;  %v4044_v7 = vadd.f32 %v8958_v28, %v4036_v60 }
 0x152   : > { %3810 = vmatprep.subr.bf16.mxu0 %v5828_v46  ;;  %v3415_v46 = vmul.f32 %v9403_v11, %v8486_v12  ;;  %v3418_v34 = vmul.f32 %v9404_v56, %v8486_v12  ;;  %v9405_v12 = vld [vmem:[#allocation11_spill] sm:$0xff] }
 0x153   : > { %v4047_v27 = vadd.f32 %v8958_v28, %v4039_v23  ;;  %v5844_v45 = vld [vmem:[%s6213_s14 + $0x7b0] ss:$8 sps:$4 sm:$0xff]   ;;  %v4050_v60 = vmax.f32 %v4044_v7, 0.0 }
 0x154   : > { %3854 = vmatpush1.bf16.msra.mxu1 %v5829_v18  ;;  %v5846_v18 = vld [vmem:[%s6213_s14 + $0x7b4] ss:$8 sps:$4 sm:$0xff]   ;;  %v3421_v41 = vadd.f32 %v3415_v46, %v3404_v38 }
 0x155   : > { %3811 = vmatpush1.bf16.msra.mxu0 %v5826_v19  ;;  %3855 = vmatprep.subr.bf16.mxu1 %v5837_v10  ;;  %v3536_v19 = vadd.f32 %v8718_v22, %v3528_v32  ;;  %v3424_v10 = vadd.f32 %v3418_v34, %v3407_v37  ;;  %v5847_v32 = vld [vmem:[%s6213_s14 + $0x8b0] ss:$8 sps:$4 sm:$0xff]   ;;  %v4053_v23 = vmax.f32 %v4047_v27, 0.0 }
 0x156   : > { %3812 = vmatprep.subr.bf16.mxu0 %v5834_v24  ;;  %v3432_v24 = vmul.f32 %v9405_v12, %v8489_v55  ;;  %v5852_v55 = vld [vmem:[%s6213_s14 + $0x8a4] ss:$8 sps:$4 sm:$0xff]   ;;  %v8971_v46 = vld [vmem:[%s9188_s2 + $0xd8] sm:$0xff] }
 0x157   : > { %v3542_v59 = vmax.f32 %v3536_v19, 0.0  ;;  %v3452_v34 = vmul.f32 %v8971_v46, %v8539_v43  ;;  %v3441_v37 = vadd.f32 %v3435_v52, %v3424_v10  ;;  %v5853_v19 = vld [vmem:[%s6213_s14 + $0x968] ss:$8 sps:$4 sm:$0xff]   ;;  %v4056_v7 = vpack.c.bf16 %v4053_v23, %v4050_v60 }
 0x158   : > { %3856 = vmatpush1.bf16.msra.mxu1 %v5835_v9  ;;  %v9407_v9 = vld [vmem:[#allocation22_spill] sm:$0xff]  ;;  %v3438_v38 = vadd.f32 %v3432_v24, %v3421_v41  ;;  %v5861_v24 = vld [vmem:[%s6213_s14 + $0x95c] ss:$8 sps:$4 sm:$0xff]   ;;  %v5856_v27 = vld [vmem:[%s6213_s14 + $0x890] ss:$8 sps:$4 sm:$0xff]   ;;  %v3912_v60 = vmul.f32 %v8667_v44, %v8768_v25  ;;  %v3915_v23 = vmul.f32 %v8689_v47, %v8768_v25 }
 0x159   : > { %3813 = vmatpush1.bf16.msra.mxu0 %v5832_v2  ;;  %3857 = vmatprep.subr.bf16.mxu1 %v5843_v39  ;;  %v3539_v2 = vmax.f32 %v3533_v17, 0.0  ;;  %v5855_v39 = vld [vmem:[%s6213_s14 + $0x96c] ss:$8 sps:$4 sm:$0xff]  }
 0x15a   : > { %3814 = vmatprep.subr.bf16.mxu0 %v5840_v51  ;;  %v3449_v51 = vmul.f32 %v9407_v9, %v8539_v43  ;;  %v8982_v43 = vld [vmem:[%s9188_s2 + $0xf0] sm:$0xff]  ;;  %v8990_v41 = vld [vmem:[%s9188_s2 + $0x108] sm:$0xff] }
 0x15b   : > { %v3545_v17 = vpack.c.bf16 %v3542_v59, %v3539_v2  ;;  %v3469_v10 = vmul.f32 %v8990_v41, %v8554_v63  ;;  %v5864_v2 = vld [vmem:[%s6213_s14 + $0x884] ss:$8 sps:$4 sm:$0xff]   ;;  %v9028_v44 = vld [vmem:[%s9188_s2 + $0x150] sm:$0xff] }
 0x15c   : > { %3858 = vmatpush1.bf16.msra.mxu1 %v5841_v48  ;;  %v5858_v48 = vld [vmem:[%s6213_s14 + $0x894] ss:$8 sps:$4 sm:$0xff]   ;;  %v3455_v52 = vadd.f32 %v3449_v51, %v3438_v38  ;;  %v9001_v59 = vld [vmem:[%s9188_s2 + $0x120] sm:$0xff]  ;;  %v3897_v38 = vmul.f32 %v8660_v6, %v8756_v33  ;;  %v9035_v47 = vld [vmem:[%s9188_s2 + $0x168] sm:$0xff] }
 0x15d   : > { %3815 = vmatpush1.bf16.msra.mxu0 %v5838_v14  ;;  %3859 = vmatprep.subr.bf16.mxu1 %v5849_v58  ;;  %v5850_v14 = vld [vmem:[%s6213_s14 + $0x8a0] ss:$8 sps:$4 sm:$0xff]   ;;  %v3458_v58 = vadd.f32 %v3452_v34, %v3441_v37  ;;  %v9009_v34 = vld [vmem:[%s9188_s2 + $0x138] sm:$0xff]  ;;  %v3900_v37 = vmul.f32 %v8682_v20, %v8756_v33  ;;  %v3500_v20 = vmul.f32 %v9028_v44, %v8612_v61 }
 0x15e   : > { %3816 = vmatprep.subr.bf16.mxu0 %v5846_v18  ;;  %v3466_v18 = vmul.f32 %v8982_v43, %v8554_v63  ;;  %v5867_v63 = vld [vmem:[%s6213_s14 + $0x94c] ss:$8 sps:$4 sm:$0xff]  }
 0x15f   : > { %v3475_v51 = vadd.f32 %v3469_v10, %v3458_v58  ;;  %v3929_v58 = vmul.f32 %v8708_v30, %v8785_v3  ;;  %v9408_v10 = vld [vmem:[#allocation23_spill] sm:$0xff]  ;;  %v9050_v30 = vld [vmem:[%s9188_s2 + $0x180] sm:$0xff] }
 0x160   : > { %3860 = vmatpush1.bf16.msra.mxu1 %v5847_v32  ;;  %v3483_v32 = vmul.f32 %v9001_v59, %v8590_v13 }
 0x161   : > { %3817 = vmatpush1.bf16.msra.mxu0 %v5844_v45  ;;  %4314 = vmatprep.subr.bf16.mxu1 %v5855_v39  ;;  %v5859_v45 = vld [vmem:[%s6213_s14 + $0x958] ss:$8 sps:$4 sm:$0xff]   ;;  %v3486_v39 = vmul.f32 %v9009_v34, %v8590_v13  ;;  %v5870_v13 = vld [vmem:[%s6213_s14 + $0x874] ss:$8 sps:$4 sm:$0xff]  }
 0x162   : > { %3818 = vmatprep.subr.bf16.mxu0 %v5852_v55  ;;  %v3472_v55 = vadd.f32 %v3466_v18, %v3455_v52  ;;  %v3503_v18 = vmul.f32 %v9035_v47, %v8612_v61  ;;  %v3921_v52 = vadd.f32 %v3915_v23, %v3900_v37 }
 0x163   : > { %5177 = vmatmul.mubr.msk.bf16.vlgmr.msra.gmra.mxu1 %vm935_vm1, %v3545_v17  ;;  %v5865_v17 = vld [vmem:[%s6213_s14 + $0x948] ss:$8 sps:$4 sm:$0xff]  }
 0x164   : > { %4315 = vmatpush1.bf16.msra.mxu1 %v5853_v19  ;;  %4346 = vmatprep.mubr.bf16.mxu1 %v4056_v7  ;;  %v5873_v19 = vld [vmem:[%s6213_s14 + $0x93c] ss:$8 sps:$4 sm:$0xff]   ;;  %v3489_v6 = vadd.f32 %v3483_v32, %v3472_v55  ;;  %v3932_v7 = vmul.f32 %v9408_v10, %v8785_v3  ;;  %v5879_v32 = vld [vmem:[%s6213_s14 + $0x92c] ss:$8 sps:$4 sm:$0xff]   ;;  %v3517_v55 = vmul.f32 %v9050_v30, %v8631_v4 }
 0x165   : > { %3819 = vmatpush2.bf16.msra.mxu0 %v5850_v14  ;;  %4316 = vmatprep.subr.bf16.mxu1 %v5861_v24  ;;  %v5862_v14 = vld [vmem:[%s6213_s14 + $0x880] ss:$8 sps:$4 sm:$0xff]   ;;  %v3918_v24 = vadd.f32 %v3912_v60, %v3897_v38  ;;  %v9409_v60 = vld [vmem:[#allocation24_spill] sm:$0xff] }
 0x166   : > { %3820 = vmatprep.subr.bf16.mxu0 %v5858_v48  ;;  %v3492_v48 = vadd.f32 %v3486_v39, %v3475_v51  ;;  %v3506_v61 = vadd.f32 %v3500_v20, %v3489_v6  ;;  %v9057_v51 = vld [vmem:[%s9188_s2 + $0x198] sm:$0xff]  ;;  %v3938_v37 = vadd.f32 %v3932_v7, %v3921_v52  ;;  %v3946_v23 = vmul.f32 %v9409_v60, %v8791_v5 }
 0x167   : > { %v3520_v39 = vmul.f32 %v9057_v51, %v8631_v4  ;;  %v3935_v38 = vadd.f32 %v3929_v58, %v3918_v24  ;;  %v5882_v6 = vld [vmem:[%s6213_s14 + $0x854] ss:$8 sps:$4 sm:$0xff]   ;;  %v9411_v4 = vld [vmem:[#allocation18_spill] sm:$0xff]  ;;  %v3913_v60 = vmul.f32 %v9402_v31, %v8768_v25 }
 0x168   : > { %4317 = vmatpush1.bf16.msra.mxu1 %v5859_v45  ;;  %v5871_v45 = vld [vmem:[%s6213_s14 + $0x938] ss:$8 sps:$4 sm:$0xff]   ;;  %v3963_v20 = vmul.f32 %v9411_v4, %v8806_v54  ;;  %v3523_v52 = vadd.f32 %v3517_v55, %v3506_v61  ;;  %v5891_v55 = vld [vmem:[%s6213_s14 + $0x90c] ss:$8 sps:$4 sm:$0xff]  }
 0x169   : > { %3821 = vmatpush2.bf16.msra.mxu0 %v5856_v27  ;;  %4318 = vmatprep.subr.bf16.mxu1 %v5867_v63  ;;  %v5868_v27 = vld [vmem:[%s6213_s14 + $0x870] ss:$8 sps:$4 sm:$0xff]   ;;  %v3509_v63 = vadd.f32 %v3503_v18, %v3492_v48  ;;  %v5885_v48 = vld [vmem:[%s6213_s14 + $0x91c] ss:$8 sps:$4 sm:$0xff]   ;;  %v3952_v10 = vadd.f32 %v3946_v23, %v3935_v38  ;;  %v3927_v23 = vmul.f32 %v9403_v11, %v8785_v3 }
 0x16a   : > { %3822 = vmatprep.subr.bf16.mxu0 %v5864_v2  ;;  %v5876_v2 = vld [vmem:[%s6213_s14 + $0x864] ss:$8 sps:$4 sm:$0xff]   ;;  %v9412_v18 = vld [vmem:[#allocation19_spill] sm:$0xff]  ;;  %v5883_v61 = vld [vmem:[%s6213_s14 + $0x918] ss:$8 sps:$4 sm:$0xff]  }
 0x16b   : > { %v3966_v24 = vmul.f32 %v9412_v18, %v8806_v54  ;;  %v3526_v58 = vadd.f32 %v3520_v39, %v3509_v63  ;;  %v5888_v63 = vld [vmem:[%s6213_s14 + $0x844] ss:$8 sps:$4 sm:$0xff]   ;;  %v5886_v39 = vld [vmem:[%s6213_s14 + $0x840] ss:$8 sps:$4 sm:$0xff]   ;;  %v3944_v18 = vmul.f32 %v9405_v12, %v8791_v5  ;;  %v4017_v12 = vmul.f32 %v8888_v26, %v8895_v15 }
 0x16c   : > { %4319 = vmatpush1.bf16.msra.mxu1 %v5865_v17  ;;  %v5903_v26 = vld [vmem:[%s6213_s14 + $0x9dc] ss:$8 sps:$4 sm:$0xff]  }
 0x16d   : > { %3823 = vmatpush2.bf16.msra.mxu0 %v5862_v14  ;;  %4320 = vmatprep.subr.bf16.mxu1 %v5873_v19  ;;  %v9410_v14 = vld [vmem:[#allocation12_spill] sm:$0xff]  ;;  %v5877_v19 = vld [vmem:[%s6213_s14 + $0x928] ss:$8 sps:$4 sm:$0xff]  }
 0x16e   : > { %3824 = vmatprep.subr.bf16.mxu0 %v5870_v13  ;;  %v3949_v17 = vmul.f32 %v9410_v14, %v8791_v5  ;;  %v5874_v13 = vld [vmem:[%s6213_s14 + $0x860] ss:$8 sps:$4 sm:$0xff]   ;;  %v5894_v14 = vld [vmem:[%s6213_s14 + $0x834] ss:$8 sps:$4 sm:$0xff]  }
 0x170   : > { %4321 = vmatpush1.bf16.msra.mxu1 %v5871_v45  ;;  %v3955_v7 = vadd.f32 %v3949_v17, %v3938_v37  ;;  %v3895_v45 = vmul.f32 %v8433_v57, %v8756_v33  ;;  %v3980_v57 = vmul.f32 %v8817_v35, %v8840_v29  ;;  %v3930_v35 = vmul.f32 %v9404_v56, %v8785_v3  ;;  %v5897_v17 = vld [vmem:[%s6213_s14 + $0x8fc] ss:$8 sps:$4 sm:$0xff]   ;;  %v5892_v3 = vld [vmem:[%s6213_s14 + $0x830] ss:$8 sps:$4 sm:$0xff]  }
 0x171   : > { %3825 = vmatpush2.bf16.msra.mxu0 %v5868_v27  ;;  %4322 = vmatprep.subr.bf16.mxu1 %v5879_v32  ;;  %v5880_v27 = vld [vmem:[%s6213_s14 + $0x850] ss:$8 sps:$4 sm:$0xff]   ;;  %v3910_v32 = vmul.f32 %v9401_v62, %v8768_v25  ;;  %v3534_v25 = vadd.f32 %v8718_v22, %v3526_v58  ;;  %v3969_v62 = vadd.f32 %v3963_v20, %v3952_v10  ;;  %v5900_v58 = vld [vmem:[%s6213_s14 + $0x9ec] ss:$8 sps:$4 sm:$0xff]  }
 0x172   : > { %3826 = vmatprep.subr.bf16.mxu0 %v5876_v2  ;;  %v3898_v2 = vmul.f32 %v9400_v53, %v8756_v33  ;;  %v3983_v33 = vmul.f32 %v8833_v8, %v8840_v29  ;;  %v3531_v53 = vadd.f32 %v8718_v22, %v3523_v52  ;;  %v3972_v31 = vadd.f32 %v3966_v24, %v3955_v7  ;;  %v5889_v8 = vld [vmem:[%s6213_s14 + $0x908] ss:$8 sps:$4 sm:$0xff]   ;;  %v5226_v22 = vld [vmem:[%s6213_s14 + $0xa38] sm:$0x33] }
 0x173   : > { %v3916_v38 = vadd.f32 %v3910_v32, %v3895_v45  ;;  %v3540_v11 = vmax.f32 %v3534_v25, 0.0  ;;  %v3947_v24 = vmul.f32 %v9406_v49, %v8791_v5  ;;  %v5267_v52 = vcombine.low %v5226_v22, %v5226_v22  ;;  %v5901_v25 = vld [vmem:[%s6213_s14 + $0x9d8] ss:$8 sps:$4 sm:$0xff]  }
 0x174   : > { %4323 = vmatpush1.bf16.msra.mxu1 %v5877_v19  ;;  %v3919_v37 = vadd.f32 %v3913_v60, %v3898_v2  ;;  %v4000_v19 = vmul.f32 %v8862_v21, %v8871_v40  ;;  %v3989_v4 = vadd.f32 %v3983_v33, %v3972_v31  ;;  %v5268_v21 = vcombine.high %v5226_v22, %v5226_v22  ;;  %v5898_v60 = vld [vmem:[%s6213_s14 + $0x9e8] ss:$8 sps:$4 sm:$0xff]  }
 0x175   : > { %3827 = vmatpush2.bf16.msra.mxu0 %v5874_v13  ;;  %4324 = vmatprep.subr.bf16.mxu1 %v5885_v48  ;;  %v3997_v13 = vmul.f32 %v8854_v42, %v8871_v40  ;;  %v3986_v48 = vadd.f32 %v3980_v57, %v3969_v62  ;;  %v3933_v56 = vadd.f32 %v3927_v23, %v3916_v38  ;;  %v5895_v42 = vld [vmem:[%s6213_s14 + $0x8f8] ss:$8 sps:$4 sm:$0xff]   ;;  %v5909_v57 = vld [vmem:[%s6213_s14 + $0xa28] ss:$8 sps:$4 sm:$0xff]   ;;  %v5917_v62 = vld [vmem:[%s6213_s14 + $0xa1c] ss:$8 sps:$4 sm:$0xff]  }
 0x176   : > { %3828 = vmatprep.subr.bf16.mxu0 %v5882_v6  ;;  %v3537_v6 = vmax.f32 %v3531_v53, 0.0  ;;  %v3936_v20 = vadd.f32 %v3930_v35, %v3919_v37  ;;  %v4014_v10 = vmul.f32 %v8880_v50, %v8895_v15  ;;  %v4006_v45 = vadd.f32 %v4000_v19, %v3989_v4  ;;  %v5923_v23 = vld [vmem:[%s6213_s14 + $0xa0c] ss:$8 sps:$4 sm:$0xff]   ;;  %v5914_v35 = vld [vmem:[%s6213_s14 + $0x9bc] ss:$8 sps:$4 sm:$0xff]  }
 0x177   : > { %v3950_v5 = vadd.f32 %v3944_v18, %v3933_v56  ;;  %v3961_v2 = vmul.f32 %v9407_v9, %v8806_v54  ;;  %v3964_v32 = vmul.f32 %v8971_v46, %v8806_v54  ;;  %v4309_v50 = vsel %vm939_vm0, %v5267_v52, 0  ;;  %v5929_v19 = vld [vmem:[%s6213_s14 + $0x9fc] ss:$8 sps:$4 sm:$0xff]   ;;  %v5927_v4 = vld [vmem:[%s6213_s14 + $0x9f8] ss:$8 sps:$4 sm:$0xff]  }
 0x178   : > { %4325 = vmatpush1.bf16.msra.mxu1 %v5883_v61  ;;  %v3543_v7 = vpack.c.bf16 %v3540_v11, %v3537_v6  ;;  %v3953_v49 = vadd.f32 %v3947_v24, %v3936_v20  ;;  %v5911_v61 = vld [vmem:[%s6213_s14 + $0xa2c] ss:$8 sps:$4 sm:$0xff]   ;;  %v4034_v54 = vmul.f32 %v8913_v16, %v8923_v0  ;;  %v3978_v46 = vmul.f32 %v8982_v43, %v8840_v29  ;;  %v5926_v20 = vld [vmem:[%s6213_s14 + $0x99c] ss:$8 sps:$4 sm:$0xff]  }
 0x179   : > { %3829 = vmatpush2.bf16.msra.mxu0 %v5880_v27  ;;  %4326 = vmatprep.subr.bf16.mxu1 %v5891_v55  ;;  %v4003_v27 = vadd.f32 %v3997_v13, %v3986_v48  ;;  %v4023_v55 = vadd.f32 %v4017_v12, %v4006_v45  ;;  %v3967_v33 = vadd.f32 %v3961_v2, %v3950_v5  ;;  %v5908_v16 = vld [vmem:[%s6213_s14 + $0x9cc] ss:$8 sps:$4 sm:$0xff]   ;;  %v5912_v13 = vld [vmem:[%s6213_s14 + $0x9b8] ss:$8 sps:$4 sm:$0xff]   ;;  %v980_v12 = vpop.f32.mrf.mxu0 }
 0x17a   : > { %3830 = vmatprep.subr.bf16.mxu0 %v5888_v63  ;;  %v4031_v63 = vmul.f32 %v8906_v1, %v8923_v0  ;;  %v3970_v53 = vadd.f32 %v3964_v32, %v3953_v49  ;;  %v3981_v1 = vmul.f32 %v8990_v41, %v8840_v29  ;;  %v3995_v37 = vmul.f32 %v9001_v59, %v8871_v40  ;;  %v5906_v41 = vld [vmem:[%s6213_s14 + $0x9c8] ss:$8 sps:$4 sm:$0xff]   ;;  %v5920_v6 = vld [vmem:[%s6213_s14 + $0x9ac] ss:$8 sps:$4 sm:$0xff]   ;;  %v1023_v49 = vpop.f32.mrf.mxu1 }
 0x17b   : > { %v4020_v9 = vadd.f32 %v4014_v10, %v4003_v27  ;;  %v4040_v31 = vadd.f32 %v4034_v54, %v4023_v55  ;;  %v3998_v29 = vmul.f32 %v9009_v34, %v8871_v40  ;;  %v4012_v40 = vmul.f32 %v9028_v44, %v8895_v15  ;;  %v5932_v52 = vld [vmem:[%s6213_s14 + $0x98c] ss:$8 sps:$4 sm:$0xff]   ;;  %v5933_v27 = vld [vmem:[%s6213_s14 + $0x978] ss:$8 sps:$4 sm:$0xff]   ;;  %v982_v5 = vpop.f32.mrf.mxu0 }
 0x17c   : > { %4327 = vmatpush1.bf16.msra.mxu1 %v5889_v8  ;;  %v3987_v38 = vadd.f32 %v3981_v1, %v3970_v53  ;;  %v4015_v34 = vmul.f32 %v9035_v47, %v8895_v15  ;;  %v4029_v44 = vmul.f32 %v9050_v30, %v8923_v0  ;;  %v4032_v15 = vmul.f32 %v9057_v51, %v8923_v0  ;;  %v5918_v47 = vld [vmem:[%s6213_s14 + $0x9a8] ss:$8 sps:$4 sm:$0xff]   ;;  %v1025_v32 = vpop.f32.mrf.mxu1 }
 0x17d   : > { %3831 = vmatpush2.bf16.msra.mxu0 %v5886_v39  ;;  %4328 = vmatprep.subr.bf16.mxu1 %v5897_v17  ;;  %v4037_v43 = vadd.f32 %v4031_v63, %v4020_v9  ;;  %v5915_v39 = vld [vmem:[%s6213_s14 + $0xa18] ss:$8 sps:$4 sm:$0xff]   ;;  %v5921_v17 = vld [vmem:[%s6213_s14 + $0xa08] ss:$8 sps:$4 sm:$0xff]   ;;  %v984_v2 = vpop.f32.mrf.mxu0 }
 0x17e   : > { %3832 = vmatprep.subr.bf16.mxu0 %v5894_v14  ;;  %v4048_v14 = vadd.f32 %v8958_v28, %v4040_v31  ;;  %v4004_v22 = vadd.f32 %v3998_v29, %v3987_v38  ;;  %v5930_v51 = vld [vmem:[%s6213_s14 + $0x988] ss:$8 sps:$4 sm:$0xff]  }
 0x17f   : > { %v4045_v8 = vadd.f32 %v8958_v28, %v4037_v43 }
 0x180   : > { %4329 = vmatpush1.bf16.msra.mxu1 %v5895_v42  ;;  %v4054_v48 = vmax.f32 %v4048_v14, 0.0  ;;  %v4021_v56 = vadd.f32 %v4015_v34, %v4004_v22 }
 0x181   : > { %3833 = vmatpush2.bf16.msra.mxu0 %v5892_v3  ;;  %4330 = vmatprep.subr.bf16.mxu1 %v5900_v58  ;;  %v4051_v11 = vmax.f32 %v4045_v8, 0.0  ;;  %v5935_v58 = vld [vmem:[%s6213_s14 + $0x97c] ss:$8 sps:$4 sm:$0xff]  }
 0x182   : > { %5269 = vmatprep.subr.msk.bf16.mxu0 %vm939_vm0, %v5268_v21  ;;  %v4038_v42 = vadd.f32 %v4032_v15, %v4021_v56  ;;  %v5924_v21 = vld [vmem:[%s6213_s14 + $0x998] ss:$8 sps:$4 sm:$0xff]  }
 0x183   : > { %v4057_v18 = vpack.c.bf16 %v4054_v48, %v4051_v11 }
 0x184   : > { %3835 = vmatmul.mubr.bf16.vlgmr.msra.gmra.mxu0 %v3543_v7  ;;  %4331 = vmatpush2.bf16.msra.mxu1 %v5898_v60  ;;  %v4046_v30 = vadd.f32 %v8958_v28, %v4038_v42  ;;  %v986_v60 = vpop.f32.mrf.mxu0 }
 0x185   : > { %4364 = vmatpush1.bf16.msra.mxu0 %v4309_v50  ;;  %4389 = vmatprep.mubr.bf16.mxu0 %v9391_v36  ;;  %v3984_v36 = vadd.f32 %v3978_v46, %v3967_v33  ;;  %v1027_v50 = vpop.f32.mrf.mxu1 }
 0x186   : > { %4365 = vmatprep.subr.bf16.mxu0 %v5911_v61  ;;  %4332 = vmatprep.subr.bf16.mxu1 %v5903_v26  ;;  %v4052_v7 = vmax.f32 %v4046_v30, 0.0 }
 0x187   : > { %v4001_v59 = vadd.f32 %v3995_v37, %v3984_v36  ;;  %v1029_v61 = vpop.f32.mrf.mxu1 }
 0x188   : > { %4333 = vmatpush2.bf16.msra.mxu1 %v5901_v25 }
 0x189   : > { %4366 = vmatpush1.bf16.msra.mxu0 %v5909_v57  ;;  %4334 = vmatprep.subr.bf16.mxu1 %v5908_v16  ;;  %v4018_v3 = vadd.f32 %v4012_v40, %v4001_v59  ;;  %v1280_v63 = vpop.f32.mrf.mxu1 }
 0x18a   : > { %4367 = vmatprep.subr.bf16.mxu0 %v5917_v62 }
 0x18b   : > { %v4035_v24 = vadd.f32 %v4029_v44, %v4018_v3  ;;  %v1282_v55 = vpop.f32.mrf.mxu1 }
 0x18c   : > { %4335 = vmatpush2.bf16.msra.mxu1 %v5906_v41 }
 0x18d   : > { %4368 = vmatpush1.bf16.msra.mxu0 %v5915_v39  ;;  %4336 = vmatprep.subr.bf16.mxu1 %v5914_v35  ;;  %v4043_v0 = vadd.f32 %v8958_v28, %v4035_v24  ;;  %v1323_v28 = vpop.f32.mrf.mxu0  ;;  %v1284_v46 = vpop.f32.mrf.mxu1  ;;  %v1026_v24 = vadd.f32 %v1025_v32, %v982_v5 }
 0x18e   : > { %4369 = vmatprep.subr.bf16.mxu0 %v5923_v23 }
 0x18f   : > { %v4049_v10 = vmax.f32 %v4043_v0, 0.0  ;;  %v1325_v26 = vpop.f32.mrf.mxu0  ;;  %v1286_v33 = vpop.f32.mrf.mxu1  ;;  %v1283_v0 = vadd.f32 %v1282_v55, %v1026_v24 }
 0x190   : > { %4337 = vmatpush2.bf16.msra.mxu1 %v5912_v13 }
 0x191   : > { %4370 = vmatpush1.bf16.msra.mxu0 %v5921_v17  ;;  %4338 = vmatprep.subr.bf16.mxu1 %v5920_v6  ;;  %v4055_v45 = vpack.c.bf16 %v4052_v7, %v4049_v10  ;;  %v1327_v9 = vpop.f32.mrf.mxu0  ;;  %v1831_v1 = vpop.f32.mrf.mxu1  ;;  %v1326_v5 = vadd.f32 %v1325_v26, %v1283_v0 }
 0x192   : > { %4371 = vmatprep.subr.bf16.mxu0 %v5929_v19 }
 0x193   : > { %v9170_v54 = vpop.f32.mrf.mxu0  ;;  %v1833_v62 = vpop.f32.mrf.mxu1 }
 0x194   : > { %4339 = vmatpush2.bf16.msra.mxu1 %v5918_v47  ;;  %9413 = vst [vmem:[#allocation21_spill] sm:$0xff] %v9170_v54 }
 0x195   : > { %4372 = vmatpush1.bf16.msra.mxu0 %v5927_v4  ;;  %4340 = vmatprep.subr.bf16.mxu1 %v5926_v20  ;;  %v1835_v43 = vpop.f32.mrf.mxu1  ;;  %v1024_v20 = vadd.f32 %v1023_v49, %v980_v12 }
 0x197   : > { %v1837_v39 = vpop.f32.mrf.mxu1  ;;  %v1281_v42 = vadd.f32 %v1280_v63, %v1024_v20 }
 0x198   : > { %5270 = vmatmul.mubr.msk.bf16.vlgmr.msra.gmra.mxu0 %vm935_vm1, %v4057_v18  ;;  %4341 = vmatpush2.bf16.msra.mxu1 %v5924_v21  ;;  %v1028_v21 = vadd.f32 %v1027_v50, %v984_v2 }
 0x199   : > { %4342 = vmatprep.subr.bf16.mxu1 %v5932_v52  ;;  %v1324_v7 = vadd.f32 %v1323_v28, %v1281_v42  ;;  %v4405_v42 = vld [vmem:[#allocation2] sm:$0xff] }
 0x19c   : > { %4343 = vmatpush2.bf16.msra.mxu1 %v5930_v51  ;;  %v1788_v57 = vpop.f32.mrf.mxu0  ;;  %v1030_v51 = vadd.f32 %v1029_v61, %v986_v60 }
 0x19d   : > { %4344 = vmatprep.subr.bf16.mxu1 %v5935_v58  ;;  %v1832_v30 = vadd.f32 %v1831_v1, %v1788_v57  ;;  %v1285_v58 = vadd.f32 %v1284_v46, %v1028_v21  ;;  %v9414_v21 = vld [vmem:[#allocation21_spill] sm:$0xff] }
 0x19e   : > { %v1790_v53 = vpop.f32.mrf.mxu0  ;;  %v1287_v54 = vadd.f32 %v1286_v33, %v1030_v51 }
 0x19f   : > { %v1840_v32 = vadd.f32 %v1832_v30, %v1324_v7  ;;  %v1328_v2 = vadd.f32 %v1327_v9, %v1285_v58  ;;  %v4406_v58 = vld [vmem:[#allocation2 + $0x18] sm:$0xff] }
 0x1a0   : > { %4345 = vmatpush2.bf16.msra.mxu1 %v5933_v27  ;;  %v1792_v25 = vpop.f32.mrf.mxu0  ;;  %v1834_v27 = vadd.f32 %v1833_v62, %v1790_v53  ;;  %v1330_v28 = vadd.f32 %v9414_v21, %v1287_v54 }
 0x1a1   : > { %v1836_v12 = vadd.f32 %v1835_v43, %v1792_v25 }
 0x1a2   : > { %v1794_v16 = vpop.f32.mrf.mxu0  ;;  %v1841_v57 = vadd.f32 %v1834_v27, %v1326_v5 }
 0x1a3   : > { %4347 = vmatmul.mubr.bf16.vlgmr.msra.gmra.mxu1 %v4055_v45  ;;  %v1838_v50 = vadd.f32 %v1837_v39, %v1794_v16  ;;  %v1842_v53 = vadd.f32 %v1836_v12, %v1328_v2  ;;  %v4407_v12 = vld [vmem:[#allocation2 + $0x8] sm:$0xff] }
 0x1b0   : > { %v2343_v31 = vpop.f32.mrf.mxu0 }
 0x1b2   : > { %v2345_v36 = vpop.f32.mrf.mxu0 }
 0x1b4   : > { %v2347_v37 = vpop.f32.mrf.mxu0 }
 0x1b6   : > { %v2349_v41 = vpop.f32.mrf.mxu0 }
 0x1bb   : > { %v2300_v38 = vpop.f32.mrf.mxu1 }
 0x1bc   : > { %v2344_v45 = vadd.f32 %v2343_v31, %v2300_v38 }
 0x1bd   : > { %v2302_v29 = vpop.f32.mrf.mxu1 }
 0x1be   : > { %v2346_v20 = vadd.f32 %v2345_v36, %v2302_v29  ;;  %v2352_v60 = vadd.f32 %v2344_v45, %v1840_v32  ;;  %v1843_v36 = vadd.f32 %v1838_v50, %v1330_v28 }
 0x1bf   : > { %v2304_v23 = vpop.f32.mrf.mxu1 }
 0x1c0   : > { %v2348_v24 = vadd.f32 %v2347_v37, %v2304_v23  ;;  %v2353_v25 = vadd.f32 %v2346_v20, %v1841_v57 }
 0x1c1   : > { %v2306_v8 = vpop.f32.mrf.mxu1 }
 0x1c2   : > { %v2350_v62 = vadd.f32 %v2349_v41, %v2306_v8  ;;  %v2354_v38 = vadd.f32 %v2348_v24, %v1842_v53 }
 0x1cf   : > { %v2855_v17 = vpop.f32.mrf.mxu1 }
 0x1d1   : > { %v2857_v22 = vpop.f32.mrf.mxu1 }
 0x1d3   : > { %v2859_v34 = vpop.f32.mrf.mxu1 }
 0x1d5   : > { %v2861_v19 = vpop.f32.mrf.mxu1 }
 0x1f0   : > { %v2812_v35 = vpop.f32.mrf.mxu0 }
 0x1f1   : > { %v2856_v63 = vadd.f32 %v2855_v17, %v2812_v35 }
 0x1f2   : > { %v2814_v14 = vpop.f32.mrf.mxu0 }
 0x1f3   : > { %v2858_v61 = vadd.f32 %v2857_v22, %v2814_v14  ;;  %v2864_v43 = vadd.f32 %v2856_v63, %v2352_v60  ;;  %v2355_v14 = vadd.f32 %v2350_v62, %v1843_v36 }
 0x1f4   : > { %v2816_v59 = vpop.f32.mrf.mxu0 }
 0x1f5   : > { %v2860_v33 = vadd.f32 %v2859_v34, %v2816_v59  ;;  %v2865_v29 = vadd.f32 %v2858_v61, %v2353_v25 }
 0x1f6   : > { %v2818_v40 = vpop.f32.mrf.mxu0 }
 0x1f7   : > { %v2862_v9 = vadd.f32 %v2861_v19, %v2818_v40  ;;  %v2866_v17 = vadd.f32 %v2860_v33, %v2354_v38 }
 0x1f9   : > { %v2867_v34 = vadd.f32 %v2862_v9, %v2355_v14 }
 0x204   : > { %v3367_v13 = vpop.f32.mrf.mxu0 }
 0x206   : > { %v3369_v6 = vpop.f32.mrf.mxu0 }
 0x208   : > { %v3371_v48 = vpop.f32.mrf.mxu0 }
 0x20a   : > { %v3373_v3 = vpop.f32.mrf.mxu0 }
 0x20f   : > { %v3324_v11 = vpop.f32.mrf.mxu1 }
 0x210   : > { %v3368_v46 = vadd.f32 %v3367_v13, %v3324_v11 }
 0x211   : > { %v3326_v4 = vpop.f32.mrf.mxu1 }
 0x212   : > { %v3370_v26 = vadd.f32 %v3369_v6, %v3326_v4  ;;  %v3376_v23 = vadd.f32 %v3368_v46, %v2864_v43  ;;  %v4404_v4 = vld [vmem:[#allocation2 + $0x10] sm:$0xff] }
 0x213   : > { %v3328_v56 = vpop.f32.mrf.mxu1 }
 0x214   : > { %v3372_v16 = vadd.f32 %v3371_v48, %v3328_v56  ;;  %v3377_v13 = vadd.f32 %v3370_v26, %v2865_v29 }
 0x215   : > { %v3330_v15 = vpop.f32.mrf.mxu1 }
 0x216   : > { %v3374_v22 = vadd.f32 %v3373_v3, %v3330_v15  ;;  %v3378_v6 = vadd.f32 %v3372_v16, %v2866_v17 }
 0x223   : > { %v3879_v18 = vpop.f32.mrf.mxu1 }
 0x225   : > { %v3881_v10 = vpop.f32.mrf.mxu1 }
 0x227   : > { %v3883_v55 = vpop.f32.mrf.mxu1 }
 0x229   : > { %v3885_v39 = vpop.f32.mrf.mxu1 }
 0x244   : > { %v3836_v44 = vpop.f32.mrf.mxu0 }
 0x245   : > { %v3880_v31 = vadd.f32 %v3879_v18, %v3836_v44  ;;  %v3379_v18 = vadd.f32 %v3374_v22, %v2867_v34 }
 0x246   : > { %v3838_v47 = vpop.f32.mrf.mxu0 }
 0x247   : > { %v3882_v35 = vadd.f32 %v3881_v10, %v3838_v47  ;;  %v3888_v41 = vadd.f32 %v3880_v31, %v3376_v23 }
 0x248   : > { %v3840_v52 = vpop.f32.mrf.mxu0 }
 0x249   : > { %v3884_v8 = vadd.f32 %v3883_v55, %v3840_v52  ;;  %v3889_v40 = vadd.f32 %v3882_v35, %v3377_v13 }
 0x24a   : > { %v3842_v49 = vpop.f32.mrf.mxu0 }
 0x24b   : > { %v3886_v19 = vadd.f32 %v3885_v39, %v3842_v49  ;;  %v3890_v0 = vadd.f32 %v3884_v8, %v3378_v6 }
 0x24d   : > { %v3891_v10 = vadd.f32 %v3886_v19, %v3379_v18 }
 0x258   : > { %v4391_v1 = vpop.f32.mrf.mxu0 }
 0x25a   : > { %v4393_v37 = vpop.f32.mrf.mxu0 }
 0x25c   : > { %v4395_v11 = vpop.f32.mrf.mxu0 }
 0x25e   : > { %v4397_v51 = vpop.f32.mrf.mxu0 }
 0x263   : > { %v4348_v54 = vpop.f32.mrf.mxu1 }
 0x264   : > { %v4392_v59 = vadd.f32 %v4391_v1, %v4348_v54 }
 0x265   : > { %v4350_v44 = vpop.f32.mrf.mxu1 }
 0x266   : > { %v4400_v48 = vadd.f32 %v4392_v59, %v3888_v41  ;;  %v4394_v56 = vadd.f32 %v4393_v37, %v4350_v44 }
 0x267   : > { %v4352_v47 = vpop.f32.mrf.mxu1 }
 0x268   : > { %v4408_v30 = vadd.f32 %v4404_v4, %v4400_v48  ;;  %v4401_v3 = vadd.f32 %v4394_v56, %v3889_v40  ;;  %v4396_v15 = vadd.f32 %v4395_v11, %v4352_v47 }
 0x269   : > { %v4354_v52 = vpop.f32.mrf.mxu1 }
 0x26a   : > { %4412 = vst [vmem:[#allocation2 + $0x10] sm:$0xff] %v4408_v30  ;;  %v4409_v7 = vadd.f32 %v4405_v42, %v4401_v3  ;;  %v4402_v27 = vadd.f32 %v4396_v15, %v3890_v0  ;;  %v4398_v45 = vadd.f32 %v4397_v51, %v4354_v52 }
 0x26c   : > { %4413 = vst [vmem:[#allocation2] sm:$0xff] %v4409_v7  ;;  %v4410_v49 = vadd.f32 %v4406_v58, %v4402_v27  ;;  %v4403_v5 = vadd.f32 %v4398_v45, %v3891_v10  ;;  %4419 = sbr.rel (%p5271_p4) target bundleno = 640 (0x280), region = 56 }
 0x26e   : > { %4414 = vst [vmem:[#allocation2 + $0x18] sm:$0xff] %v4410_v49  ;;  %v4411_v32 = vadd.f32 %v4407_v12, %v4403_v5 }
 0x270   : > { %4415 = vst [vmem:[#allocation2 + $0x8] sm:$0xff] %v4411_v32 }
 0x271   : > { %v4426_v20 = vlaneseq  ;;  %v4424_v2 = vld [vmem:[%s9190_s4] sm:$0x3]  ;;  %v4420_v50 = vld [vmem:[#allocation2 + $0x10] sm:$0xff] }
 0x273   : > { %v4427_v63 = vshrl.u32 %v4426_v20, 7  ;;  %v4421_v1 = vld [vmem:[#allocation2] sm:$0xff] }
 0x275   : > { %v4428_v24 = vsub.s32 0, %v4427_v63  ;;  %v4432_v55 = vsub.s32 1, %v4427_v63  ;;  %v4422_v57 = vld [vmem:[#allocation2 + $0x18] sm:$0xff] }
 0x277   : > { %v4423_v60 = vld [vmem:[#allocation2 + $0x8] sm:$0xff]  ;;  %v4429_v61 = vrot.slane %v4424_v2, %v4428_v24  ;;  %v4433_v46 = vrot.slane %v4424_v2, %v4432_v55 }
 0x279   : > { %v4436_v21 = vadd.f32 %v4429_v61, %v4420_v50  ;;  %v4437_v28 = vadd.f32 %v4433_v46, %v4421_v1  ;;  %v4438_v53 = vadd.f32 %v4429_v61, %v4422_v57  ;;  %v4439_v62 = vadd.f32 %v4433_v46, %v4423_v60 }
 0x27b   : > { %v4440_v33 = vmax.f32 %v4436_v21, 0.0  ;;  %v4441_v25 = vmax.f32 %v4437_v28, 0.0  ;;  %v4442_v43 = vmax.f32 %v4438_v53, 0.0  ;;  %v4443_v26 = vmax.f32 %v4439_v62, 0.0 }
 0x27d   : > { %v5404_v31 = vpack.c.bf16 %v4441_v25, %v4440_v33  ;;  %v5405_v36 = vpack.c.bf16 %v4443_v26, %v4442_v43 }
 0x27f   : > { %4456 = vst [vmem:[%s9191_s5] sm:$0xff] %v5404_v31  ;;  %4457 = vst [vmem:[%s9191_s5 + $0x8] sm:$0xff] %v5405_v36 }
 0x280 PF: > { %s17_s18 = sadd.s32 1, %s6115_s18  }
 0x281   : > { %p14_p6 = scmp.ge.s32.totalorder %s17_s18, 6  }
 0x283   :  { %16 = sbr.rel (!%p14_p6) target bundleno = 2 (0x2), region = 98 }
 0x288   :  { %4469 = vsyncpa [#allocation4], 1 }
 0x289   :  { %4471 = vsyncpa [#allocation4 + $0x1], 1 }
 0x28a   :  { %4472 = vsyncpa [#allocation6], 1 }

</bundles_post_ra>
